<compile_context>
chip_gen: v7x
topology: tpu7x:2x2x1
jax: 0.10.0
libtpu: 0.0.40
codegen_flags: <defaults>
</compile_context>

<pallas_src>
import jax
import jax.numpy as jnp
import numpy as np
from jax import lax
from jax.experimental import pallas as pl
from jax.experimental.pallas import tpu as pltpu

HIDDEN = 100      # hidden_size of the PyTorch module
HIDDEN_PAD = 128  # lane-aligned hidden size used by the kernel
SEQ = 24          # seq length implied by Linear2(24*2, 24) and .view(-1, 48)


# ----------------------------------------------------------------------------- helpers
def _round_up(n, m):
    return (n + m - 1) // m * m


def _padded_block_bytes(shape, dtype):
    """VMEM footprint of one block (last dim -> 128 lanes, 2nd-last -> 8 sublanes)."""
    itemsize = jnp.dtype(dtype).itemsize
    packing = max(1, 4 // itemsize)                 # sub-32-bit dtypes pack along sublanes
    if len(shape) < 2:
        n = 1
        for d in shape:
            n *= d
        return _round_up(n * itemsize, 4096)
    lanes = _round_up(shape[-1], 128)
    subl = _round_up(shape[-2], 8 * packing)
    lead = 1
    for d in shape[:-2]:
        lead *= d
    return lead * subl * lanes * itemsize


def _derive_vmem_limit(io_blocks, scratch_blocks=()):
    """Scoped-VMEM limit from real buffer sizes (double-buffered I/O) + headroom."""
    io = sum(_padded_block_bytes(s, d) for s, d in io_blocks)
    scr = sum(_padded_block_bytes(s, d) for s, d in scratch_blocks)
    est = 2 * io + scr
    return int(min(64 * 2**20, max(16 * 2**20, 2 * est)))   # stay within v7x's 64 MiB


# ------------------------------------------------------------------------------ kernel
def custom_rnn_kernel(x_tb_ref, x_bt_ref, m_ref,
                      wih_ref, bih_ref, whh_ref, bhn_ref,
                      w12p_ref, w12last_ref, w2bsum_ref, b2e_ref,
                      out_ref):
    """GRU gate order follows PyTorch (r, z, n):
         r = sigmoid(Wir x + bir + Whr h + bhr)     (bhr, bhz pre-folded into bih)
         z = sigmoid(Wiz x + biz + Whz h + bhz)
         n = tanh   (Win x + bin + r * (Whn h + bhn))
         h = n + z * (h - n)
       Tail (Linear(100,1) + Linear(48,24) algebraically folded):
         out = min(relu(sum_t h_t @ w12[t] + m * colsum(W2b) + b2e), x)
       w12p is w12 shifted by one step so the in-loop pred matmul consumes the
       loop-carry h (off the serial sigmoid/tanh chain); h0 = 0 makes step 0 exact.
    """
    T = x_tb_ref.shape[0]
    B = x_tb_ref.shape[1]
    H = whh_ref.shape[0]            # padded hidden (128)
    N = w12last_ref.shape[1]        # 24 output columns

    wih = wih_ref[...]              # (1, 3H) f32 fused input weight row [r | z | n]
    bih = bih_ref[...]              # (1, 3H) f32 fused input bias (+ b_hr, b_hz folded)
    bhn_b = jnp.broadcast_to(bhn_ref[...], (B, H))   # hoisted: no re-broadcast per step

    def step(t, carry):
        h, acc = carry                                              # h:(B,H) f32, acc:(B,N) f32
        hb = h.astype(jnp.bfloat16)
        # pred matmul on the loop-carry h (= h_{t-1}; zero at t == 0): independent of
        # this step's transcendentals, so the MXU push can issue at iteration start.
        acc = acc + jnp.dot(hb, w12p_ref[t], preferred_element_type=jnp.float32)
        # single fused (B,128)x(128,384) bf16 MXU matmul for all three gates
        gh = jnp.dot(hb, whh_ref[...], preferred_element_type=jnp.float32)   # (B, 3H)
        gi = x_tb_ref[t] * wih + bih                                          # (B, 3H)
        rz = jax.nn.sigmoid(gi[:, :2 * H] + gh[:, :2 * H])                    # r|z in one pass
        r = rz[:, :H]
        z = rz[:, H:]
        n = jnp.tanh(gi[:, 2 * H:] + r * (gh[:, 2 * H:] + bhn_b))
        h_new = n + z * (h - n)
        return h_new, acc

    h0 = jnp.zeros((B, H), jnp.float32)                             # rnn(x, None) -> h0 = 0
    acc0 = jnp.zeros((B, N), jnp.float32)
    h_fin, acc = lax.fori_loop(0, T, step, (h0, acc0), unroll=True)  # fixed T=24, unrolled
    # final hidden state's pred contribution (w12p is shifted by one step)
    acc = acc + jnp.dot(h_fin.astype(jnp.bfloat16), w12last_ref[...],
                        preferred_element_type=jnp.float32)

    # m-half of Linear2 (m constant across its 24 slots -> m * colsum(W2b)),
    # bias b2 + b1*colsum(W2a) pre-folded in the wrapper, ReLU, then torch.min(pred, x).
    pred = acc + m_ref[...] * w2bsum_ref[...] + b2e_ref[...]
    out_ref[...] = jnp.minimum(jnp.maximum(pred, 0.0), x_bt_ref[...])


# ----------------------------------------------------------------------------- wrapper
def custom_rnn_forward(x, m, kernel_params, *, batch_block=128):
    """x: (B, T=24, 1) batch-first, m: (B, 1, 1). Returns (B, 24, 1) like the module."""
    (wih_k, bih_k, whh_k, bhn_k, w12p_k, w12last_k, w2bsum_k, b2e_k) = kernel_params
    B, T, _ = x.shape
    T_out = b2e_k.shape[1]
    assert T == w12p_k.shape[0] == T_out, "module structure implies seq_len == 24"

    # Batch tiling: pad B to a multiple-of-8 block.  When the (padded) batch allows at
    # least two blocks, cap the block at ~half the batch so the 'parallel' grid axis has
    # >= 2 entries (v7x dual TensorCore gets work; harmless on single-TC v5e/v6e).
    B8 = _round_up(B, 8)
    bb = int(min(batch_block, B8))
    if B8 >= 16:
        bb = int(min(bb, _round_up(B8 // 2, 8)))
    Bp = _round_up(B, bb)

    x = x.astype(jnp.float32)
    m_col = m.astype(jnp.float32).reshape(B, 1)
    if Bp != B:
        x = jnp.pad(x, ((0, Bp - B), (0, 0), (0, 0)))
        m_col = jnp.pad(m_col, ((0, Bp - B), (0, 0)))
    x_tb = jnp.transpose(x, (1, 0, 2))          # (T, Bp, 1) time-major for the recurrence
    x_bt = x[:, :, 0]                           # (Bp, T)   batch-major for the final min

    io_blocks = [
        ((T, bb, 1), jnp.float32), ((bb, T), jnp.float32), ((bb, 1), jnp.float32),
        (tuple(wih_k.shape), wih_k.dtype), (tuple(bih_k.shape), bih_k.dtype),
        (tuple(whh_k.shape), whh_k.dtype), (tuple(bhn_k.shape), bhn_k.dtype),
        (tuple(w12p_k.shape), w12p_k.dtype), (tuple(w12last_k.shape), w12last_k.dtype),
        (tuple(w2bsum_k.shape), w2bsum_k.dtype), (tuple(b2e_k.shape), b2e_k.dtype),
        ((bb, T_out), jnp.float32),
    ]
    vmem_limit = _derive_vmem_limit(io_blocks)

    out = pl.pallas_call(
        custom_rnn_kernel,
        out_shape=jax.ShapeDtypeStruct((Bp, T_out), jnp.float32),
        grid_spec=pltpu.PrefetchScalarGridSpec(
            num_scalar_prefetch=0,
            grid=(Bp // bb,),
            in_specs=[
                pl.BlockSpec((T, bb, 1), lambda i: (0, i, 0)),            # x time-major
                pl.BlockSpec((bb, T), lambda i: (i, 0)),                  # x batch-major (min)
                pl.BlockSpec((bb, 1), lambda i: (i, 0)),                  # m
                pl.BlockSpec(tuple(wih_k.shape), lambda i: (0, 0)),       # W_ih fused row
                pl.BlockSpec(tuple(bih_k.shape), lambda i: (0, 0)),       # b_ih (+ b_hr, b_hz)
                pl.BlockSpec(tuple(whh_k.shape), lambda i: (0, 0)),       # W_hh fused (bf16)
                pl.BlockSpec(tuple(bhn_k.shape), lambda i: (0, 0)),       # b_hn
                pl.BlockSpec(tuple(w12p_k.shape), lambda i: (0, 0, 0)),   # shifted w1 (x) W2a
                pl.BlockSpec(tuple(w12last_k.shape), lambda i: (0, 0)),   # last-step w1 (x) W2a
                pl.BlockSpec(tuple(w2bsum_k.shape), lambda i: (0, 0)),    # colsum(W2b)
                pl.BlockSpec(tuple(b2e_k.shape), lambda i: (0, 0)),       # b2 + b1*colsum(W2a)
            ],
            out_specs=pl.BlockSpec((bb, T_out), lambda i: (i, 0)),
        ),
        compiler_params=pltpu.CompilerParams(
            dimension_semantics=("parallel",),
            vmem_limit_bytes=vmem_limit,
        ),
    )(x_tb, x_bt, m_col, wih_k, bih_k, whh_k, bhn_k,
      w12p_k, w12last_k, w2bsum_k, b2e_k)
    return out[:B].reshape(B, T_out, 1)


# -------------------------------------------------------------------- params & reference
def init_params(key, hidden=HIDDEN, seq=SEQ):
    """Deterministic params with the module's natural shapes (uniform +-1/sqrt(fan_in))."""
    ks = jax.random.split(key, 8)
    u = lambda k, shape, s: jax.random.uniform(k, shape, jnp.float32, -s, s)
    s = 1.0 / np.sqrt(hidden)
    return dict(
        w_ih=u(ks[0], (3, hidden), s),            # GRU weight_ih_l0 (3H, 1), per-gate rows
        w_hh=u(ks[1], (3, hidden, hidden), s),    # GRU weight_hh_l0 (3H, H), per-gate (H, H)
        b_ih=u(ks[2], (3, hidden), s),
        b_hh=u(ks[3], (3, hidden), s),
        w1=u(ks[4], (hidden,), s),                # Linear(hidden, 1).weight
        b1=u(ks[5], (), s),                       # Linear(hidden, 1).bias
        W2=u(ks[6], (seq, 2 * seq), 1.0 / np.sqrt(2 * seq)),   # Linear(48, 24).weight
        b2=u(ks[7], (seq,), 1.0 / np.sqrt(2 * seq)),
    )


def pack_params(p, hp=HIDDEN_PAD, matmul_dtype=jnp.bfloat16):
    """Build kernel operands: fused gates, zero-padded H->hp, pre-folded tail weights."""
    h0 = p["w_ih"].shape[1]
    T = p["W2"].shape[0]
    pad_h = ((0, 0), (0, hp - h0))

    wih = jnp.pad(p["w_ih"], pad_h).reshape(1, 3 * hp)
    # fold b_hr / b_hz into the input bias (exact); b_hn must stay inside r * ( . )
    bih_g = jnp.concatenate([p["b_ih"][:2] + p["b_hh"][:2], p["b_ih"][2:3]], axis=0)
    bih = jnp.pad(bih_g, pad_h).reshape(1, 3 * hp)
    bhn = jnp.pad(p["b_hh"][2:3], pad_h).reshape(1, hp)

    # fused recurrence weight: columns of gate g = W_hh_g^T so that h @ block == W_hh_g @ h
    whh_g = jnp.pad(jnp.transpose(p["w_hh"], (0, 2, 1)),
                    ((0, 0), (0, hp - h0), (0, hp - h0)))                 # (3, hp, hp)
    whh = jnp.concatenate([whh_g[0], whh_g[1], whh_g[2]], axis=1).astype(matmul_dtype)

    # Linear2 split: out = pred @ W2a + m_bt @ W2b + b2, with W2a[t, n] = W2[n, t]
    w2a = p["W2"][:, :T].T                                                # (T, 24)
    w2b = p["W2"][:, T:].T                                                # (T, 24)
    w1p = jnp.pad(p["w1"], (0, hp - h0))                                  # (hp,)
    w12 = (w1p[None, :, None] * w2a[:, None, :]).astype(matmul_dtype)     # (T, hp, 24) bf16
    # shift by one step so the in-loop pred matmul consumes the loop-carry h
    w12p = jnp.concatenate([jnp.zeros((1,) + w12.shape[1:], w12.dtype), w12[:-1]], axis=0)
    w12last = w12[-1]                                                     # (hp, 24)
    w2bsum = jnp.sum(w2b, axis=0, keepdims=True)                          # (1, 24)  m-half
    b2e = (p["b2"] + p["b1"] * jnp.sum(w2a, axis=0))[None, :]             # (1, 24)  b2 + b1*colsum

    kparams = (wih, bih, whh, bhn, w12p, w12last, w2bsum, b2e)
    _assert_padded_lanes_zero(kparams, h0, hp)
    return kparams


def _assert_padded_lanes_zero(kparams, h0, hp):
    """The kernel relies on padded hidden lanes staying exactly 0 through the recurrence
    (and being ignored by w12); guard the packing so future edits cannot break it."""
    wih, bih, whh, bhn, w12p, w12last, _, _ = kparams

    def _gate_cols_zero(row):
        return bool(np.all(np.asarray(row).reshape(3, hp)[:, h0:] == 0))

    assert _gate_cols_zero(wih) and _gate_cols_zero(bih)
    assert bool(np.all(np.asarray(bhn)[:, h0:] == 0))
    w = np.asarray(whh).reshape(hp, 3, hp)
    assert bool(np.all(w[h0:, :, :] == 0)) and bool(np.all(w[:, :, h0:] == 0))
    assert bool(np.all(np.asarray(w12p)[:, h0:, :] == 0))
    assert bool(np.all(np.asarray(w12last)[h0:, :] == 0))


def reference_forward(x, m, p, recurrence_dtype=jnp.bfloat16):
    """Pure-JAX reference mirroring the PyTorch forward.  The recurrence mirrors the
    kernel's mixed precision (bf16 W_hh / h operands, f32 accumulation); the tail
    (Linear(100,1), Linear(48,24), ReLU, min) is kept in plain f32."""
    B, T, _ = x.shape
    w_hh = p["w_hh"].astype(recurrence_dtype).astype(jnp.float32)

    def step(h, x_t):                                       # x_t: (B, 1)
        hq = h.astype(recurrence_dtype).astype(jnp.float32)
        gh = jnp.einsum("bj,gij->gbi", hq, w_hh) + p["b_hh"][:, None, :]
        gi = x_t[None] * p["w_ih"][:, None, :] + p["b_ih"][:, None, :]
        r = jax.nn.sigmoid(gi[0] + gh[0])
        z = jax.nn.sigmoid(gi[1] + gh[1])
        n = jnp.tanh(gi[2] + r * gh[2])
        h_new = (1.0 - z) * n + z * h
        return h_new, h_new

    xs = jnp.transpose(x.astype(jnp.float32), (1, 0, 2))                  # (T, B, 1)
    _, hs = lax.scan(step, jnp.zeros((B, p["w_hh"].shape[-1]), jnp.float32), xs)
    pred = jnp.einsum("tbh,h->bt", hs, p["w1"]) + p["b1"]                 # Linear(hidden, 1)
    m_bt = jnp.broadcast_to(m.astype(jnp.float32).reshape(B, 1), (B, T))  # expand_as
    z2 = jnp.concatenate([pred, m_bt], axis=1)                            # cat + view(-1, 48)
    out = jax.nn.relu(z2 @ p["W2"].T + p["b2"])                           # Linear2 + ReLU
    out = jnp.minimum(out, x[:, :, 0].astype(jnp.float32))                # torch.min(pred, x)
    return out.reshape(B, T, 1)


# -------------------------------------------------------------------------------- main
if __name__ == "__main__":
    key = jax.random.PRNGKey(0)
    kx, km, kp = jax.random.split(key, 3)
    B = 2                                                    # small demo batch (wrapper pads to 8)
    x = jax.random.normal(kx, (B, SEQ, 1), dtype=jnp.float32)
    m = jax.random.normal(km, (B, 1, 1), dtype=jnp.float32)
    params = init_params(kp)
    kparams = pack_params(params)

    out = custom_rnn_forward(x, m, kparams)
    out = jax.block_until_ready(out)

    ref = reference_forward(x, m, params)
    # bf16 MXU pred path (w12 / h operands) vs f32 reference tail -> 1e-2 tolerance
    np.testing.assert_allclose(np.asarray(out), np.asarray(ref), rtol=1e-2, atol=1e-2)
    assert out.shape == (B, SEQ, 1)
    print("KERNEL_OK")
</pallas_src>

<mosaic_0001>
module attributes {stable_mosaic.version = 11 : i64} {
  func.func @custom_rnn_kernel(%arg0: i32, %arg1: memref<24x8x1xf32, #tpu.memory_space<vmem>>, %arg2: memref<8x24xf32, #tpu.memory_space<vmem>>, %arg3: memref<8x1xf32, #tpu.memory_space<vmem>>, %arg4: memref<1x384xf32, #tpu.memory_space<vmem>>, %arg5: memref<1x384xf32, #tpu.memory_space<vmem>>, %arg6: memref<128x384xbf16, #tpu.memory_space<vmem>>, %arg7: memref<1x128xf32, #tpu.memory_space<vmem>>, %arg8: memref<24x128x24xbf16, #tpu.memory_space<vmem>>, %arg9: memref<128x24xbf16, #tpu.memory_space<vmem>>, %arg10: memref<1x24xf32, #tpu.memory_space<vmem>>, %arg11: memref<1x24xf32, #tpu.memory_space<vmem>>, %arg12: memref<8x24xf32, #tpu.memory_space<vmem>>) attributes {dimension_semantics = [#tpu.dimension_semantics<parallel>], iteration_bounds = array<i64: 1>, scalar_prefetch = 0 : i64, scratch_operands = 0 : i64, tpu.core_type = #tpu.core_type<tc>, window_params = [{transform_indices = @transform_0, window_bounds = array<i64: 24, 8, 1>}, {transform_indices = @transform_1, window_bounds = array<i64: 8, 24>}, {transform_indices = @transform_2, window_bounds = array<i64: 8, 1>}, {pipeline_mode = #tpu.pipeline_mode<synchronous>, transform_indices = @transform_3, window_bounds = array<i64: 1, 384>}, {pipeline_mode = #tpu.pipeline_mode<synchronous>, transform_indices = @transform_4, window_bounds = array<i64: 1, 384>}, {pipeline_mode = #tpu.pipeline_mode<synchronous>, transform_indices = @transform_5, window_bounds = array<i64: 128, 384>}, {pipeline_mode = #tpu.pipeline_mode<synchronous>, transform_indices = @transform_6, window_bounds = array<i64: 1, 128>}, {pipeline_mode = #tpu.pipeline_mode<synchronous>, transform_indices = @transform_7, window_bounds = array<i64: 24, 128, 24>}, {pipeline_mode = #tpu.pipeline_mode<synchronous>, transform_indices = @transform_8, window_bounds = array<i64: 128, 24>}, {pipeline_mode = #tpu.pipeline_mode<synchronous>, transform_indices = @transform_9, window_bounds = array<i64: 1, 24>}, {pipeline_mode = #tpu.pipeline_mode<synchronous>, transform_indices = @transform_10, window_bounds = array<i64: 1, 24>}, {transform_indices = @transform_11, window_bounds = array<i64: 8, 24>}]} {
    %c0 = arith.constant 0 : index
    %c0_0 = arith.constant 0 : index
    %0 = vector.load %arg4[%c0, %c0_0] : memref<1x384xf32, #tpu.memory_space<vmem>>, vector<1x384xf32>
    %c0_1 = arith.constant 0 : index
    %c0_2 = arith.constant 0 : index
    %1 = vector.load %arg5[%c0_1, %c0_2] : memref<1x384xf32, #tpu.memory_space<vmem>>, vector<1x384xf32>
    %c0_3 = arith.constant 0 : index
    %c0_4 = arith.constant 0 : index
    %2 = vector.load %arg7[%c0_3, %c0_4] : memref<1x128xf32, #tpu.memory_space<vmem>>, vector<1x128xf32>
    %3 = vector.shape_cast %2 : vector<1x128xf32> to vector<1x128xf32>
    %4 = vector.broadcast %3 : vector<1x128xf32> to vector<8x128xf32>
    %cst = arith.constant 0.000000e+00 : f32
    %5 = vector.broadcast %cst : f32 to vector<8x128xf32>
    %cst_5 = arith.constant 0.000000e+00 : f32
    %6 = vector.broadcast %cst_5 : f32 to vector<8x24xf32>
    %c0_i32 = arith.constant 0 : i32
    %7 = arith.truncf %5 : vector<8x128xf32> to vector<8x128xbf16>
    %8 = arith.index_cast %c0_i32 : i32 to index
    %c0_6 = arith.constant 0 : index
    %c0_7 = arith.constant 0 : index
    %9 = vector.load %arg8[%8, %c0_6, %c0_7] : memref<24x128x24xbf16, #tpu.memory_space<vmem>>, vector<1x128x24xbf16>
    %10 = vector.shape_cast %9 : vector<1x128x24xbf16> to vector<128x24xbf16>
    %cst_8 = arith.constant dense<0.000000e+00> : vector<8x24xf32>
    %11 = tpu.matmul %7, %10, %cst_8 {dimension_numbers = #tpu.dot_dimension_numbers<[1], [0], [0], [1], [0, 0, 1, 1], [], []>} : vector<8x128xbf16>, vector<128x24xbf16>, vector<8x24xf32> -> vector<8x24xf32>
    %12 = arith.addf %6, %11 : vector<8x24xf32>
    %c0_9 = arith.constant 0 : index
    %c0_10 = arith.constant 0 : index
    %13 = vector.load %arg6[%c0_9, %c0_10] : memref<128x384xbf16, #tpu.memory_space<vmem>>, vector<128x384xbf16>
    %cst_11 = arith.constant dense<0.000000e+00> : vector<8x384xf32>
    %14 = tpu.matmul %7, %13, %cst_11 {dimension_numbers = #tpu.dot_dimension_numbers<[1], [0], [0], [1], [0, 0, 1, 1], [], []>} : vector<8x128xbf16>, vector<128x384xbf16>, vector<8x384xf32> -> vector<8x384xf32>
    %15 = arith.index_cast %c0_i32 : i32 to index
    %c0_12 = arith.constant 0 : index
    %c0_13 = arith.constant 0 : index
    %16 = vector.load %arg1[%15, %c0_12, %c0_13] : memref<24x8x1xf32, #tpu.memory_space<vmem>>, vector<1x8x1xf32>
    %17 = vector.shape_cast %16 : vector<1x8x1xf32> to vector<8x1xf32>
    %18 = vector.broadcast %17 : vector<8x1xf32> to vector<8x384xf32>
    %19 = vector.broadcast %0 : vector<1x384xf32> to vector<8x384xf32>
    %20 = arith.mulf %18, %19 : vector<8x384xf32>
    %21 = vector.broadcast %1 : vector<1x384xf32> to vector<8x384xf32>
    %22 = arith.addf %20, %21 : vector<8x384xf32>
    %23 = vector.extract_strided_slice %22 {offsets = [0, 0], sizes = [8, 256], strides = [1, 1]} : vector<8x384xf32> to vector<8x256xf32>
    %24 = vector.extract_strided_slice %14 {offsets = [0, 0], sizes = [8, 256], strides = [1, 1]} : vector<8x384xf32> to vector<8x256xf32>
    %25 = arith.addf %23, %24 : vector<8x256xf32>
    %26 = arith.negf %25 : vector<8x256xf32>
    %27 = math.exp %26 : vector<8x256xf32>
    %cst_14 = arith.constant 1.000000e+00 : f32
    %28 = vector.broadcast %cst_14 : f32 to vector<8x256xf32>
    %29 = arith.addf %28, %27 : vector<8x256xf32>
    %30 = arith.divf %28, %29 : vector<8x256xf32>
    %31 = vector.extract_strided_slice %30 {offsets = [0, 0], sizes = [8, 128], strides = [1, 1]} : vector<8x256xf32> to vector<8x128xf32>
    %32 = vector.extract_strided_slice %30 {offsets = [0, 128], sizes = [8, 128], strides = [1, 1]} : vector<8x256xf32> to vector<8x128xf32>
    %33 = vector.extract_strided_slice %22 {offsets = [0, 256], sizes = [8, 128], strides = [1, 1]} : vector<8x384xf32> to vector<8x128xf32>
    %34 = vector.extract_strided_slice %14 {offsets = [0, 256], sizes = [8, 128], strides = [1, 1]} : vector<8x384xf32> to vector<8x128xf32>
    %35 = arith.addf %34, %4 : vector<8x128xf32>
    %36 = arith.mulf %31, %35 : vector<8x128xf32>
    %37 = arith.addf %33, %36 : vector<8x128xf32>
    %38 = math.tanh %37 : vector<8x128xf32>
    %39 = arith.subf %5, %38 : vector<8x128xf32>
    %40 = arith.mulf %32, %39 : vector<8x128xf32>
    %41 = arith.addf %38, %40 : vector<8x128xf32>
    %c1_i32 = arith.constant 1 : i32
    %42 = arith.truncf %41 : vector<8x128xf32> to vector<8x128xbf16>
    %43 = arith.index_cast %c1_i32 : i32 to index
    %c0_15 = arith.constant 0 : index
    %c0_16 = arith.constant 0 : index
    %44 = vector.load %arg8[%43, %c0_15, %c0_16] : memref<24x128x24xbf16, #tpu.memory_space<vmem>>, vector<1x128x24xbf16>
    %45 = vector.shape_cast %44 : vector<1x128x24xbf16> to vector<128x24xbf16>
    %cst_17 = arith.constant dense<0.000000e+00> : vector<8x24xf32>
    %46 = tpu.matmul %42, %45, %cst_17 {dimension_numbers = #tpu.dot_dimension_numbers<[1], [0], [0], [1], [0, 0, 1, 1], [], []>} : vector<8x128xbf16>, vector<128x24xbf16>, vector<8x24xf32> -> vector<8x24xf32>
    %47 = arith.addf %12, %46 : vector<8x24xf32>
    %c0_18 = arith.constant 0 : index
    %c0_19 = arith.constant 0 : index
    %48 = vector.load %arg6[%c0_18, %c0_19] : memref<128x384xbf16, #tpu.memory_space<vmem>>, vector<128x384xbf16>
    %cst_20 = arith.constant dense<0.000000e+00> : vector<8x384xf32>
    %49 = tpu.matmul %42, %48, %cst_20 {dimension_numbers = #tpu.dot_dimension_numbers<[1], [0], [0], [1], [0, 0, 1, 1], [], []>} : vector<8x128xbf16>, vector<128x384xbf16>, vector<8x384xf32> -> vector<8x384xf32>
    %50 = arith.index_cast %c1_i32 : i32 to index
    %c0_21 = arith.constant 0 : index
    %c0_22 = arith.constant 0 : index
    %51 = vector.load %arg1[%50, %c0_21, %c0_22] : memref<24x8x1xf32, #tpu.memory_space<vmem>>, vector<1x8x1xf32>
    %52 = vector.shape_cast %51 : vector<1x8x1xf32> to vector<8x1xf32>
    %53 = vector.broadcast %52 : vector<8x1xf32> to vector<8x384xf32>
    %54 = vector.broadcast %0 : vector<1x384xf32> to vector<8x384xf32>
    %55 = arith.mulf %53, %54 : vector<8x384xf32>
    %56 = vector.broadcast %1 : vector<1x384xf32> to vector<8x384xf32>
    %57 = arith.addf %55, %56 : vector<8x384xf32>
    %58 = vector.extract_strided_slice %57 {offsets = [0, 0], sizes = [8, 256], strides = [1, 1]} : vector<8x384xf32> to vector<8x256xf32>
    %59 = vector.extract_strided_slice %49 {offsets = [0, 0], sizes = [8, 256], strides = [1, 1]} : vector<8x384xf32> to vector<8x256xf32>
    %60 = arith.addf %58, %59 : vector<8x256xf32>
    %61 = arith.negf %60 : vector<8x256xf32>
    %62 = math.exp %61 : vector<8x256xf32>
    %cst_23 = arith.constant 1.000000e+00 : f32
    %63 = vector.broadcast %cst_23 : f32 to vector<8x256xf32>
    %64 = arith.addf %63, %62 : vector<8x256xf32>
    %65 = arith.divf %63, %64 : vector<8x256xf32>
    %66 = vector.extract_strided_slice %65 {offsets = [0, 0], sizes = [8, 128], strides = [1, 1]} : vector<8x256xf32> to vector<8x128xf32>
    %67 = vector.extract_strided_slice %65 {offsets = [0, 128], sizes = [8, 128], strides = [1, 1]} : vector<8x256xf32> to vector<8x128xf32>
    %68 = vector.extract_strided_slice %57 {offsets = [0, 256], sizes = [8, 128], strides = [1, 1]} : vector<8x384xf32> to vector<8x128xf32>
    %69 = vector.extract_strided_slice %49 {offsets = [0, 256], sizes = [8, 128], strides = [1, 1]} : vector<8x384xf32> to vector<8x128xf32>
    %70 = arith.addf %69, %4 : vector<8x128xf32>
    %71 = arith.mulf %66, %70 : vector<8x128xf32>
    %72 = arith.addf %68, %71 : vector<8x128xf32>
    %73 = math.tanh %72 : vector<8x128xf32>
    %74 = arith.subf %41, %73 : vector<8x128xf32>
    %75 = arith.mulf %67, %74 : vector<8x128xf32>
    %76 = arith.addf %73, %75 : vector<8x128xf32>
    %c2_i32 = arith.constant 2 : i32
    %77 = arith.truncf %76 : vector<8x128xf32> to vector<8x128xbf16>
    %78 = arith.index_cast %c2_i32 : i32 to index
    %c0_24 = arith.constant 0 : index
    %c0_25 = arith.constant 0 : index
    %79 = vector.load %arg8[%78, %c0_24, %c0_25] : memref<24x128x24xbf16, #tpu.memory_space<vmem>>, vector<1x128x24xbf16>
    %80 = vector.shape_cast %79 : vector<1x128x24xbf16> to vector<128x24xbf16>
    %cst_26 = arith.constant dense<0.000000e+00> : vector<8x24xf32>
    %81 = tpu.matmul %77, %80, %cst_26 {dimension_numbers = #tpu.dot_dimension_numbers<[1], [0], [0], [1], [0, 0, 1, 1], [], []>} : vector<8x128xbf16>, vector<128x24xbf16>, vector<8x24xf32> -> vector<8x24xf32>
    %82 = arith.addf %47, %81 : vector<8x24xf32>
    %c0_27 = arith.constant 0 : index
    %c0_28 = arith.constant 0 : index
    %83 = vector.load %arg6[%c0_27, %c0_28] : memref<128x384xbf16, #tpu.memory_space<vmem>>, vector<128x384xbf16>
    %cst_29 = arith.constant dense<0.000000e+00> : vector<8x384xf32>
    %84 = tpu.matmul %77, %83, %cst_29 {dimension_numbers = #tpu.dot_dimension_numbers<[1], [0], [0], [1], [0, 0, 1, 1], [], []>} : vector<8x128xbf16>, vector<128x384xbf16>, vector<8x384xf32> -> vector<8x384xf32>
    %85 = arith.index_cast %c2_i32 : i32 to index
    %c0_30 = arith.constant 0 : index
    %c0_31 = arith.constant 0 : index
    %86 = vector.load %arg1[%85, %c0_30, %c0_31] : memref<24x8x1xf32, #tpu.memory_space<vmem>>, vector<1x8x1xf32>
    %87 = vector.shape_cast %86 : vector<1x8x1xf32> to vector<8x1xf32>
    %88 = vector.broadcast %87 : vector<8x1xf32> to vector<8x384xf32>
    %89 = vector.broadcast %0 : vector<1x384xf32> to vector<8x384xf32>
    %90 = arith.mulf %88, %89 : vector<8x384xf32>
    %91 = vector.broadcast %1 : vector<1x384xf32> to vector<8x384xf32>
    %92 = arith.addf %90, %91 : vector<8x384xf32>
    %93 = vector.extract_strided_slice %92 {offsets = [0, 0], sizes = [8, 256], strides = [1, 1]} : vector<8x384xf32> to vector<8x256xf32>
    %94 = vector.extract_strided_slice %84 {offsets = [0, 0], sizes = [8, 256], strides = [1, 1]} : vector<8x384xf32> to vector<8x256xf32>
    %95 = arith.addf %93, %94 : vector<8x256xf32>
    %96 = arith.negf %95 : vector<8x256xf32>
    %97 = math.exp %96 : vector<8x256xf32>
    %cst_32 = arith.constant 1.000000e+00 : f32
    %98 = vector.broadcast %cst_32 : f32 to vector<8x256xf32>
    %99 = arith.addf %98, %97 : vector<8x256xf32>
    %100 = arith.divf %98, %99 : vector<8x256xf32>
    %101 = vector.extract_strided_slice %100 {offsets = [0, 0], sizes = [8, 128], strides = [1, 1]} : vector<8x256xf32> to vector<8x128xf32>
    %102 = vector.extract_strided_slice %100 {offsets = [0, 128], sizes = [8, 128], strides = [1, 1]} : vector<8x256xf32> to vector<8x128xf32>
    %103 = vector.extract_strided_slice %92 {offsets = [0, 256], sizes = [8, 128], strides = [1, 1]} : vector<8x384xf32> to vector<8x128xf32>
    %104 = vector.extract_strided_slice %84 {offsets = [0, 256], sizes = [8, 128], strides = [1, 1]} : vector<8x384xf32> to vector<8x128xf32>
    %105 = arith.addf %104, %4 : vector<8x128xf32>
    %106 = arith.mulf %101, %105 : vector<8x128xf32>
    %107 = arith.addf %103, %106 : vector<8x128xf32>
    %108 = math.tanh %107 : vector<8x128xf32>
    %109 = arith.subf %76, %108 : vector<8x128xf32>
    %110 = arith.mulf %102, %109 : vector<8x128xf32>
    %111 = arith.addf %108, %110 : vector<8x128xf32>
    %c3_i32 = arith.constant 3 : i32
    %112 = arith.truncf %111 : vector<8x128xf32> to vector<8x128xbf16>
    %113 = arith.index_cast %c3_i32 : i32 to index
    %c0_33 = arith.constant 0 : index
    %c0_34 = arith.constant 0 : index
    %114 = vector.load %arg8[%113, %c0_33, %c0_34] : memref<24x128x24xbf16, #tpu.memory_space<vmem>>, vector<1x128x24xbf16>
    %115 = vector.shape_cast %114 : vector<1x128x24xbf16> to vector<128x24xbf16>
    %cst_35 = arith.constant dense<0.000000e+00> : vector<8x24xf32>
    %116 = tpu.matmul %112, %115, %cst_35 {dimension_numbers = #tpu.dot_dimension_numbers<[1], [0], [0], [1], [0, 0, 1, 1], [], []>} : vector<8x128xbf16>, vector<128x24xbf16>, vector<8x24xf32> -> vector<8x24xf32>
    %117 = arith.addf %82, %116 : vector<8x24xf32>
    %c0_36 = arith.constant 0 : index
    %c0_37 = arith.constant 0 : index
    %118 = vector.load %arg6[%c0_36, %c0_37] : memref<128x384xbf16, #tpu.memory_space<vmem>>, vector<128x384xbf16>
    %cst_38 = arith.constant dense<0.000000e+00> : vector<8x384xf32>
    %119 = tpu.matmul %112, %118, %cst_38 {dimension_numbers = #tpu.dot_dimension_numbers<[1], [0], [0], [1], [0, 0, 1, 1], [], []>} : vector<8x128xbf16>, vector<128x384xbf16>, vector<8x384xf32> -> vector<8x384xf32>
    %120 = arith.index_cast %c3_i32 : i32 to index
    %c0_39 = arith.constant 0 : index
    %c0_40 = arith.constant 0 : index
    %121 = vector.load %arg1[%120, %c0_39, %c0_40] : memref<24x8x1xf32, #tpu.memory_space<vmem>>, vector<1x8x1xf32>
    %122 = vector.shape_cast %121 : vector<1x8x1xf32> to vector<8x1xf32>
    %123 = vector.broadcast %122 : vector<8x1xf32> to vector<8x384xf32>
    %124 = vector.broadcast %0 : vector<1x384xf32> to vector<8x384xf32>
    %125 = arith.mulf %123, %124 : vector<8x384xf32>
    %126 = vector.broadcast %1 : vector<1x384xf32> to vector<8x384xf32>
    %127 = arith.addf %125, %126 : vector<8x384xf32>
    %128 = vector.extract_strided_slice %127 {offsets = [0, 0], sizes = [8, 256], strides = [1, 1]} : vector<8x384xf32> to vector<8x256xf32>
    %129 = vector.extract_strided_slice %119 {offsets = [0, 0], sizes = [8, 256], strides = [1, 1]} : vector<8x384xf32> to vector<8x256xf32>
    %130 = arith.addf %128, %129 : vector<8x256xf32>
    %131 = arith.negf %130 : vector<8x256xf32>
    %132 = math.exp %131 : vector<8x256xf32>
    %cst_41 = arith.constant 1.000000e+00 : f32
    %133 = vector.broadcast %cst_41 : f32 to vector<8x256xf32>
    %134 = arith.addf %133, %132 : vector<8x256xf32>
    %135 = arith.divf %133, %134 : vector<8x256xf32>
    %136 = vector.extract_strided_slice %135 {offsets = [0, 0], sizes = [8, 128], strides = [1, 1]} : vector<8x256xf32> to vector<8x128xf32>
    %137 = vector.extract_strided_slice %135 {offsets = [0, 128], sizes = [8, 128], strides = [1, 1]} : vector<8x256xf32> to vector<8x128xf32>
    %138 = vector.extract_strided_slice %127 {offsets = [0, 256], sizes = [8, 128], strides = [1, 1]} : vector<8x384xf32> to vector<8x128xf32>
    %139 = vector.extract_strided_slice %119 {offsets = [0, 256], sizes = [8, 128], strides = [1, 1]} : vector<8x384xf32> to vector<8x128xf32>
    %140 = arith.addf %139, %4 : vector<8x128xf32>
    %141 = arith.mulf %136, %140 : vector<8x128xf32>
    %142 = arith.addf %138, %141 : vector<8x128xf32>
    %143 = math.tanh %142 : vector<8x128xf32>
    %144 = arith.subf %111, %143 : vector<8x128xf32>
    %145 = arith.mulf %137, %144 : vector<8x128xf32>
    %146 = arith.addf %143, %145 : vector<8x128xf32>
    %c4_i32 = arith.constant 4 : i32
    %147 = arith.truncf %146 : vector<8x128xf32> to vector<8x128xbf16>
    %148 = arith.index_cast %c4_i32 : i32 to index
    %c0_42 = arith.constant 0 : index
    %c0_43 = arith.constant 0 : index
    %149 = vector.load %arg8[%148, %c0_42, %c0_43] : memref<24x128x24xbf16, #tpu.memory_space<vmem>>, vector<1x128x24xbf16>
    %150 = vector.shape_cast %149 : vector<1x128x24xbf16> to vector<128x24xbf16>
    %cst_44 = arith.constant dense<0.000000e+00> : vector<8x24xf32>
    %151 = tpu.matmul %147, %150, %cst_44 {dimension_numbers = #tpu.dot_dimension_numbers<[1], [0], [0], [1], [0, 0, 1, 1], [], []>} : vector<8x128xbf16>, vector<128x24xbf16>, vector<8x24xf32> -> vector<8x24xf32>
    %152 = arith.addf %117, %151 : vector<8x24xf32>
    %c0_45 = arith.constant 0 : index
    %c0_46 = arith.constant 0 : index
    %153 = vector.load %arg6[%c0_45, %c0_46] : memref<128x384xbf16, #tpu.memory_space<vmem>>, vector<128x384xbf16>
    %cst_47 = arith.constant dense<0.000000e+00> : vector<8x384xf32>
    %154 = tpu.matmul %147, %153, %cst_47 {dimension_numbers = #tpu.dot_dimension_numbers<[1], [0], [0], [1], [0, 0, 1, 1], [], []>} : vector<8x128xbf16>, vector<128x384xbf16>, vector<8x384xf32> -> vector<8x384xf32>
    %155 = arith.index_cast %c4_i32 : i32 to index
    %c0_48 = arith.constant 0 : index
    %c0_49 = arith.constant 0 : index
    %156 = vector.load %arg1[%155, %c0_48, %c0_49] : memref<24x8x1xf32, #tpu.memory_space<vmem>>, vector<1x8x1xf32>
    %157 = vector.shape_cast %156 : vector<1x8x1xf32> to vector<8x1xf32>
    %158 = vector.broadcast %157 : vector<8x1xf32> to vector<8x384xf32>
    %159 = vector.broadcast %0 : vector<1x384xf32> to vector<8x384xf32>
    %160 = arith.mulf %158, %159 : vector<8x384xf32>
    %161 = vector.broadcast %1 : vector<1x384xf32> to vector<8x384xf32>
    %162 = arith.addf %160, %161 : vector<8x384xf32>
    %163 = vector.extract_strided_slice %162 {offsets = [0, 0], sizes = [8, 256], strides = [1, 1]} : vector<8x384xf32> to vector<8x256xf32>
    %164 = vector.extract_strided_slice %154 {offsets = [0, 0], sizes = [8, 256], strides = [1, 1]} : vector<8x384xf32> to vector<8x256xf32>
    %165 = arith.addf %163, %164 : vector<8x256xf32>
    %166 = arith.negf %165 : vector<8x256xf32>
    %167 = math.exp %166 : vector<8x256xf32>
    %cst_50 = arith.constant 1.000000e+00 : f32
    %168 = vector.broadcast %cst_50 : f32 to vector<8x256xf32>
    %169 = arith.addf %168, %167 : vector<8x256xf32>
    %170 = arith.divf %168, %169 : vector<8x256xf32>
    %171 = vector.extract_strided_slice %170 {offsets = [0, 0], sizes = [8, 128], strides = [1, 1]} : vector<8x256xf32> to vector<8x128xf32>
    %172 = vector.extract_strided_slice %170 {offsets = [0, 128], sizes = [8, 128], strides = [1, 1]} : vector<8x256xf32> to vector<8x128xf32>
    %173 = vector.extract_strided_slice %162 {offsets = [0, 256], sizes = [8, 128], strides = [1, 1]} : vector<8x384xf32> to vector<8x128xf32>
    %174 = vector.extract_strided_slice %154 {offsets = [0, 256], sizes = [8, 128], strides = [1, 1]} : vector<8x384xf32> to vector<8x128xf32>
    %175 = arith.addf %174, %4 : vector<8x128xf32>
    %176 = arith.mulf %171, %175 : vector<8x128xf32>
    %177 = arith.addf %173, %176 : vector<8x128xf32>
    %178 = math.tanh %177 : vector<8x128xf32>
    %179 = arith.subf %146, %178 : vector<8x128xf32>
    %180 = arith.mulf %172, %179 : vector<8x128xf32>
    %181 = arith.addf %178, %180 : vector<8x128xf32>
    %c5_i32 = arith.constant 5 : i32
    %182 = arith.truncf %181 : vector<8x128xf32> to vector<8x128xbf16>
    %183 = arith.index_cast %c5_i32 : i32 to index
    %c0_51 = arith.constant 0 : index
    %c0_52 = arith.constant 0 : index
    %184 = vector.load %arg8[%183, %c0_51, %c0_52] : memref<24x128x24xbf16, #tpu.memory_space<vmem>>, vector<1x128x24xbf16>
    %185 = vector.shape_cast %184 : vector<1x128x24xbf16> to vector<128x24xbf16>
    %cst_53 = arith.constant dense<0.000000e+00> : vector<8x24xf32>
    %186 = tpu.matmul %182, %185, %cst_53 {dimension_numbers = #tpu.dot_dimension_numbers<[1], [0], [0], [1], [0, 0, 1, 1], [], []>} : vector<8x128xbf16>, vector<128x24xbf16>, vector<8x24xf32> -> vector<8x24xf32>
    %187 = arith.addf %152, %186 : vector<8x24xf32>
    %c0_54 = arith.constant 0 : index
    %c0_55 = arith.constant 0 : index
    %188 = vector.load %arg6[%c0_54, %c0_55] : memref<128x384xbf16, #tpu.memory_space<vmem>>, vector<128x384xbf16>
    %cst_56 = arith.constant dense<0.000000e+00> : vector<8x384xf32>
    %189 = tpu.matmul %182, %188, %cst_56 {dimension_numbers = #tpu.dot_dimension_numbers<[1], [0], [0], [1], [0, 0, 1, 1], [], []>} : vector<8x128xbf16>, vector<128x384xbf16>, vector<8x384xf32> -> vector<8x384xf32>
    %190 = arith.index_cast %c5_i32 : i32 to index
    %c0_57 = arith.constant 0 : index
    %c0_58 = arith.constant 0 : index
    %191 = vector.load %arg1[%190, %c0_57, %c0_58] : memref<24x8x1xf32, #tpu.memory_space<vmem>>, vector<1x8x1xf32>
    %192 = vector.shape_cast %191 : vector<1x8x1xf32> to vector<8x1xf32>
    %193 = vector.broadcast %192 : vector<8x1xf32> to vector<8x384xf32>
    %194 = vector.broadcast %0 : vector<1x384xf32> to vector<8x384xf32>
    %195 = arith.mulf %193, %194 : vector<8x384xf32>
    %196 = vector.broadcast %1 : vector<1x384xf32> to vector<8x384xf32>
    %197 = arith.addf %195, %196 : vector<8x384xf32>
    %198 = vector.extract_strided_slice %197 {offsets = [0, 0], sizes = [8, 256], strides = [1, 1]} : vector<8x384xf32> to vector<8x256xf32>
    %199 = vector.extract_strided_slice %189 {offsets = [0, 0], sizes = [8, 256], strides = [1, 1]} : vector<8x384xf32> to vector<8x256xf32>
    %200 = arith.addf %198, %199 : vector<8x256xf32>
    %201 = arith.negf %200 : vector<8x256xf32>
    %202 = math.exp %201 : vector<8x256xf32>
    %cst_59 = arith.constant 1.000000e+00 : f32
    %203 = vector.broadcast %cst_59 : f32 to vector<8x256xf32>
    %204 = arith.addf %203, %202 : vector<8x256xf32>
    %205 = arith.divf %203, %204 : vector<8x256xf32>
    %206 = vector.extract_strided_slice %205 {offsets = [0, 0], sizes = [8, 128], strides = [1, 1]} : vector<8x256xf32> to vector<8x128xf32>
    %207 = vector.extract_strided_slice %205 {offsets = [0, 128], sizes = [8, 128], strides = [1, 1]} : vector<8x256xf32> to vector<8x128xf32>
    %208 = vector.extract_strided_slice %197 {offsets = [0, 256], sizes = [8, 128], strides = [1, 1]} : vector<8x384xf32> to vector<8x128xf32>
    %209 = vector.extract_strided_slice %189 {offsets = [0, 256], sizes = [8, 128], strides = [1, 1]} : vector<8x384xf32> to vector<8x128xf32>
    %210 = arith.addf %209, %4 : vector<8x128xf32>
    %211 = arith.mulf %206, %210 : vector<8x128xf32>
    %212 = arith.addf %208, %211 : vector<8x128xf32>
    %213 = math.tanh %212 : vector<8x128xf32>
    %214 = arith.subf %181, %213 : vector<8x128xf32>
    %215 = arith.mulf %207, %214 : vector<8x128xf32>
    %216 = arith.addf %213, %215 : vector<8x128xf32>
    %c6_i32 = arith.constant 6 : i32
    %217 = arith.truncf %216 : vector<8x128xf32> to vector<8x128xbf16>
    %218 = arith.index_cast %c6_i32 : i32 to index
    %c0_60 = arith.constant 0 : index
    %c0_61 = arith.constant 0 : index
    %219 = vector.load %arg8[%218, %c0_60, %c0_61] : memref<24x128x24xbf16, #tpu.memory_space<vmem>>, vector<1x128x24xbf16>
    %220 = vector.shape_cast %219 : vector<1x128x24xbf16> to vector<128x24xbf16>
    %cst_62 = arith.constant dense<0.000000e+00> : vector<8x24xf32>
    %221 = tpu.matmul %217, %220, %cst_62 {dimension_numbers = #tpu.dot_dimension_numbers<[1], [0], [0], [1], [0, 0, 1, 1], [], []>} : vector<8x128xbf16>, vector<128x24xbf16>, vector<8x24xf32> -> vector<8x24xf32>
    %222 = arith.addf %187, %221 : vector<8x24xf32>
    %c0_63 = arith.constant 0 : index
    %c0_64 = arith.constant 0 : index
    %223 = vector.load %arg6[%c0_63, %c0_64] : memref<128x384xbf16, #tpu.memory_space<vmem>>, vector<128x384xbf16>
    %cst_65 = arith.constant dense<0.000000e+00> : vector<8x384xf32>
    %224 = tpu.matmul %217, %223, %cst_65 {dimension_numbers = #tpu.dot_dimension_numbers<[1], [0], [0], [1], [0, 0, 1, 1], [], []>} : vector<8x128xbf16>, vector<128x384xbf16>, vector<8x384xf32> -> vector<8x384xf32>
    %225 = arith.index_cast %c6_i32 : i32 to index
    %c0_66 = arith.constant 0 : index
    %c0_67 = arith.constant 0 : index
    %226 = vector.load %arg1[%225, %c0_66, %c0_67] : memref<24x8x1xf32, #tpu.memory_space<vmem>>, vector<1x8x1xf32>
    %227 = vector.shape_cast %226 : vector<1x8x1xf32> to vector<8x1xf32>
    %228 = vector.broadcast %227 : vector<8x1xf32> to vector<8x384xf32>
    %229 = vector.broadcast %0 : vector<1x384xf32> to vector<8x384xf32>
    %230 = arith.mulf %228, %229 : vector<8x384xf32>
    %231 = vector.broadcast %1 : vector<1x384xf32> to vector<8x384xf32>
    %232 = arith.addf %230, %231 : vector<8x384xf32>
    %233 = vector.extract_strided_slice %232 {offsets = [0, 0], sizes = [8, 256], strides = [1, 1]} : vector<8x384xf32> to vector<8x256xf32>
    %234 = vector.extract_strided_slice %224 {offsets = [0, 0], sizes = [8, 256], strides = [1, 1]} : vector<8x384xf32> to vector<8x256xf32>
    %235 = arith.addf %233, %234 : vector<8x256xf32>
    %236 = arith.negf %235 : vector<8x256xf32>
    %237 = math.exp %236 : vector<8x256xf32>
    %cst_68 = arith.constant 1.000000e+00 : f32
    %238 = vector.broadcast %cst_68 : f32 to vector<8x256xf32>
    %239 = arith.addf %238, %237 : vector<8x256xf32>
    %240 = arith.divf %238, %239 : vector<8x256xf32>
    %241 = vector.extract_strided_slice %240 {offsets = [0, 0], sizes = [8, 128], strides = [1, 1]} : vector<8x256xf32> to vector<8x128xf32>
    %242 = vector.extract_strided_slice %240 {offsets = [0, 128], sizes = [8, 128], strides = [1, 1]} : vector<8x256xf32> to vector<8x128xf32>
    %243 = vector.extract_strided_slice %232 {offsets = [0, 256], sizes = [8, 128], strides = [1, 1]} : vector<8x384xf32> to vector<8x128xf32>
    %244 = vector.extract_strided_slice %224 {offsets = [0, 256], sizes = [8, 128], strides = [1, 1]} : vector<8x384xf32> to vector<8x128xf32>
    %245 = arith.addf %244, %4 : vector<8x128xf32>
    %246 = arith.mulf %241, %245 : vector<8x128xf32>
    %247 = arith.addf %243, %246 : vector<8x128xf32>
    %248 = math.tanh %247 : vector<8x128xf32>
    %249 = arith.subf %216, %248 : vector<8x128xf32>
    %250 = arith.mulf %242, %249 : vector<8x128xf32>
    %251 = arith.addf %248, %250 : vector<8x128xf32>
    %c7_i32 = arith.constant 7 : i32
    %252 = arith.truncf %251 : vector<8x128xf32> to vector<8x128xbf16>
    %253 = arith.index_cast %c7_i32 : i32 to index
    %c0_69 = arith.constant 0 : index
    %c0_70 = arith.constant 0 : index
    %254 = vector.load %arg8[%253, %c0_69, %c0_70] : memref<24x128x24xbf16, #tpu.memory_space<vmem>>, vector<1x128x24xbf16>
    %255 = vector.shape_cast %254 : vector<1x128x24xbf16> to vector<128x24xbf16>
    %cst_71 = arith.constant dense<0.000000e+00> : vector<8x24xf32>
    %256 = tpu.matmul %252, %255, %cst_71 {dimension_numbers = #tpu.dot_dimension_numbers<[1], [0], [0], [1], [0, 0, 1, 1], [], []>} : vector<8x128xbf16>, vector<128x24xbf16>, vector<8x24xf32> -> vector<8x24xf32>
    %257 = arith.addf %222, %256 : vector<8x24xf32>
    %c0_72 = arith.constant 0 : index
    %c0_73 = arith.constant 0 : index
    %258 = vector.load %arg6[%c0_72, %c0_73] : memref<128x384xbf16, #tpu.memory_space<vmem>>, vector<128x384xbf16>
    %cst_74 = arith.constant dense<0.000000e+00> : vector<8x384xf32>
    %259 = tpu.matmul %252, %258, %cst_74 {dimension_numbers = #tpu.dot_dimension_numbers<[1], [0], [0], [1], [0, 0, 1, 1], [], []>} : vector<8x128xbf16>, vector<128x384xbf16>, vector<8x384xf32> -> vector<8x384xf32>
    %260 = arith.index_cast %c7_i32 : i32 to index
    %c0_75 = arith.constant 0 : index
    %c0_76 = arith.constant 0 : index
    %261 = vector.load %arg1[%260, %c0_75, %c0_76] : memref<24x8x1xf32, #tpu.memory_space<vmem>>, vector<1x8x1xf32>
    %262 = vector.shape_cast %261 : vector<1x8x1xf32> to vector<8x1xf32>
    %263 = vector.broadcast %262 : vector<8x1xf32> to vector<8x384xf32>
    %264 = vector.broadcast %0 : vector<1x384xf32> to vector<8x384xf32>
    %265 = arith.mulf %263, %264 : vector<8x384xf32>
    %266 = vector.broadcast %1 : vector<1x384xf32> to vector<8x384xf32>
    %267 = arith.addf %265, %266 : vector<8x384xf32>
    %268 = vector.extract_strided_slice %267 {offsets = [0, 0], sizes = [8, 256], strides = [1, 1]} : vector<8x384xf32> to vector<8x256xf32>
    %269 = vector.extract_strided_slice %259 {offsets = [0, 0], sizes = [8, 256], strides = [1, 1]} : vector<8x384xf32> to vector<8x256xf32>
    %270 = arith.addf %268, %269 : vector<8x256xf32>
    %271 = arith.negf %270 : vector<8x256xf32>
    %272 = math.exp %271 : vector<8x256xf32>
    %cst_77 = arith.constant 1.000000e+00 : f32
    %273 = vector.broadcast %cst_77 : f32 to vector<8x256xf32>
    %274 = arith.addf %273, %272 : vector<8x256xf32>
    %275 = arith.divf %273, %274 : vector<8x256xf32>
    %276 = vector.extract_strided_slice %275 {offsets = [0, 0], sizes = [8, 128], strides = [1, 1]} : vector<8x256xf32> to vector<8x128xf32>
    %277 = vector.extract_strided_slice %275 {offsets = [0, 128], sizes = [8, 128], strides = [1, 1]} : vector<8x256xf32> to vector<8x128xf32>
    %278 = vector.extract_strided_slice %267 {offsets = [0, 256], sizes = [8, 128], strides = [1, 1]} : vector<8x384xf32> to vector<8x128xf32>
    %279 = vector.extract_strided_slice %259 {offsets = [0, 256], sizes = [8, 128], strides = [1, 1]} : vector<8x384xf32> to vector<8x128xf32>
    %280 = arith.addf %279, %4 : vector<8x128xf32>
    %281 = arith.mulf %276, %280 : vector<8x128xf32>
    %282 = arith.addf %278, %281 : vector<8x128xf32>
    %283 = math.tanh %282 : vector<8x128xf32>
    %284 = arith.subf %251, %283 : vector<8x128xf32>
    %285 = arith.mulf %277, %284 : vector<8x128xf32>
    %286 = arith.addf %283, %285 : vector<8x128xf32>
    %c8_i32 = arith.constant 8 : i32
    %287 = arith.truncf %286 : vector<8x128xf32> to vector<8x128xbf16>
    %288 = arith.index_cast %c8_i32 : i32 to index
    %c0_78 = arith.constant 0 : index
    %c0_79 = arith.constant 0 : index
    %289 = vector.load %arg8[%288, %c0_78, %c0_79] : memref<24x128x24xbf16, #tpu.memory_space<vmem>>, vector<1x128x24xbf16>
    %290 = vector.shape_cast %289 : vector<1x128x24xbf16> to vector<128x24xbf16>
    %cst_80 = arith.constant dense<0.000000e+00> : vector<8x24xf32>
    %291 = tpu.matmul %287, %290, %cst_80 {dimension_numbers = #tpu.dot_dimension_numbers<[1], [0], [0], [1], [0, 0, 1, 1], [], []>} : vector<8x128xbf16>, vector<128x24xbf16>, vector<8x24xf32> -> vector<8x24xf32>
    %292 = arith.addf %257, %291 : vector<8x24xf32>
    %c0_81 = arith.constant 0 : index
    %c0_82 = arith.constant 0 : index
    %293 = vector.load %arg6[%c0_81, %c0_82] : memref<128x384xbf16, #tpu.memory_space<vmem>>, vector<128x384xbf16>
    %cst_83 = arith.constant dense<0.000000e+00> : vector<8x384xf32>
    %294 = tpu.matmul %287, %293, %cst_83 {dimension_numbers = #tpu.dot_dimension_numbers<[1], [0], [0], [1], [0, 0, 1, 1], [], []>} : vector<8x128xbf16>, vector<128x384xbf16>, vector<8x384xf32> -> vector<8x384xf32>
    %295 = arith.index_cast %c8_i32 : i32 to index
    %c0_84 = arith.constant 0 : index
    %c0_85 = arith.constant 0 : index
    %296 = vector.load %arg1[%295, %c0_84, %c0_85] : memref<24x8x1xf32, #tpu.memory_space<vmem>>, vector<1x8x1xf32>
    %297 = vector.shape_cast %296 : vector<1x8x1xf32> to vector<8x1xf32>
    %298 = vector.broadcast %297 : vector<8x1xf32> to vector<8x384xf32>
    %299 = vector.broadcast %0 : vector<1x384xf32> to vector<8x384xf32>
    %300 = arith.mulf %298, %299 : vector<8x384xf32>
    %301 = vector.broadcast %1 : vector<1x384xf32> to vector<8x384xf32>
    %302 = arith.addf %300, %301 : vector<8x384xf32>
    %303 = vector.extract_strided_slice %302 {offsets = [0, 0], sizes = [8, 256], strides = [1, 1]} : vector<8x384xf32> to vector<8x256xf32>
    %304 = vector.extract_strided_slice %294 {offsets = [0, 0], sizes = [8, 256], strides = [1, 1]} : vector<8x384xf32> to vector<8x256xf32>
    %305 = arith.addf %303, %304 : vector<8x256xf32>
    %306 = arith.negf %305 : vector<8x256xf32>
    %307 = math.exp %306 : vector<8x256xf32>
    %cst_86 = arith.constant 1.000000e+00 : f32
    %308 = vector.broadcast %cst_86 : f32 to vector<8x256xf32>
    %309 = arith.addf %308, %307 : vector<8x256xf32>
    %310 = arith.divf %308, %309 : vector<8x256xf32>
    %311 = vector.extract_strided_slice %310 {offsets = [0, 0], sizes = [8, 128], strides = [1, 1]} : vector<8x256xf32> to vector<8x128xf32>
    %312 = vector.extract_strided_slice %310 {offsets = [0, 128], sizes = [8, 128], strides = [1, 1]} : vector<8x256xf32> to vector<8x128xf32>
    %313 = vector.extract_strided_slice %302 {offsets = [0, 256], sizes = [8, 128], strides = [1, 1]} : vector<8x384xf32> to vector<8x128xf32>
    %314 = vector.extract_strided_slice %294 {offsets = [0, 256], sizes = [8, 128], strides = [1, 1]} : vector<8x384xf32> to vector<8x128xf32>
    %315 = arith.addf %314, %4 : vector<8x128xf32>
    %316 = arith.mulf %311, %315 : vector<8x128xf32>
    %317 = arith.addf %313, %316 : vector<8x128xf32>
    %318 = math.tanh %317 : vector<8x128xf32>
    %319 = arith.subf %286, %318 : vector<8x128xf32>
    %320 = arith.mulf %312, %319 : vector<8x128xf32>
    %321 = arith.addf %318, %320 : vector<8x128xf32>
    %c9_i32 = arith.constant 9 : i32
    %322 = arith.truncf %321 : vector<8x128xf32> to vector<8x128xbf16>
    %323 = arith.index_cast %c9_i32 : i32 to index
    %c0_87 = arith.constant 0 : index
    %c0_88 = arith.constant 0 : index
    %324 = vector.load %arg8[%323, %c0_87, %c0_88] : memref<24x128x24xbf16, #tpu.memory_space<vmem>>, vector<1x128x24xbf16>
    %325 = vector.shape_cast %324 : vector<1x128x24xbf16> to vector<128x24xbf16>
    %cst_89 = arith.constant dense<0.000000e+00> : vector<8x24xf32>
    %326 = tpu.matmul %322, %325, %cst_89 {dimension_numbers = #tpu.dot_dimension_numbers<[1], [0], [0], [1], [0, 0, 1, 1], [], []>} : vector<8x128xbf16>, vector<128x24xbf16>, vector<8x24xf32> -> vector<8x24xf32>
    %327 = arith.addf %292, %326 : vector<8x24xf32>
    %c0_90 = arith.constant 0 : index
    %c0_91 = arith.constant 0 : index
    %328 = vector.load %arg6[%c0_90, %c0_91] : memref<128x384xbf16, #tpu.memory_space<vmem>>, vector<128x384xbf16>
    %cst_92 = arith.constant dense<0.000000e+00> : vector<8x384xf32>
    %329 = tpu.matmul %322, %328, %cst_92 {dimension_numbers = #tpu.dot_dimension_numbers<[1], [0], [0], [1], [0, 0, 1, 1], [], []>} : vector<8x128xbf16>, vector<128x384xbf16>, vector<8x384xf32> -> vector<8x384xf32>
    %330 = arith.index_cast %c9_i32 : i32 to index
    %c0_93 = arith.constant 0 : index
    %c0_94 = arith.constant 0 : index
    %331 = vector.load %arg1[%330, %c0_93, %c0_94] : memref<24x8x1xf32, #tpu.memory_space<vmem>>, vector<1x8x1xf32>
    %332 = vector.shape_cast %331 : vector<1x8x1xf32> to vector<8x1xf32>
    %333 = vector.broadcast %332 : vector<8x1xf32> to vector<8x384xf32>
    %334 = vector.broadcast %0 : vector<1x384xf32> to vector<8x384xf32>
    %335 = arith.mulf %333, %334 : vector<8x384xf32>
    %336 = vector.broadcast %1 : vector<1x384xf32> to vector<8x384xf32>
    %337 = arith.addf %335, %336 : vector<8x384xf32>
    %338 = vector.extract_strided_slice %337 {offsets = [0, 0], sizes = [8, 256], strides = [1, 1]} : vector<8x384xf32> to vector<8x256xf32>
    %339 = vector.extract_strided_slice %329 {offsets = [0, 0], sizes = [8, 256], strides = [1, 1]} : vector<8x384xf32> to vector<8x256xf32>
    %340 = arith.addf %338, %339 : vector<8x256xf32>
    %341 = arith.negf %340 : vector<8x256xf32>
    %342 = math.exp %341 : vector<8x256xf32>
    %cst_95 = arith.constant 1.000000e+00 : f32
    %343 = vector.broadcast %cst_95 : f32 to vector<8x256xf32>
    %344 = arith.addf %343, %342 : vector<8x256xf32>
    %345 = arith.divf %343, %344 : vector<8x256xf32>
    %346 = vector.extract_strided_slice %345 {offsets = [0, 0], sizes = [8, 128], strides = [1, 1]} : vector<8x256xf32> to vector<8x128xf32>
    %347 = vector.extract_strided_slice %345 {offsets = [0, 128], sizes = [8, 128], strides = [1, 1]} : vector<8x256xf32> to vector<8x128xf32>
    %348 = vector.extract_strided_slice %337 {offsets = [0, 256], sizes = [8, 128], strides = [1, 1]} : vector<8x384xf32> to vector<8x128xf32>
    %349 = vector.extract_strided_slice %329 {offsets = [0, 256], sizes = [8, 128], strides = [1, 1]} : vector<8x384xf32> to vector<8x128xf32>
    %350 = arith.addf %349, %4 : vector<8x128xf32>
    %351 = arith.mulf %346, %350 : vector<8x128xf32>
    %352 = arith.addf %348, %351 : vector<8x128xf32>
    %353 = math.tanh %352 : vector<8x128xf32>
    %354 = arith.subf %321, %353 : vector<8x128xf32>
    %355 = arith.mulf %347, %354 : vector<8x128xf32>
    %356 = arith.addf %353, %355 : vector<8x128xf32>
    %c10_i32 = arith.constant 10 : i32
    %357 = arith.truncf %356 : vector<8x128xf32> to vector<8x128xbf16>
    %358 = arith.index_cast %c10_i32 : i32 to index
    %c0_96 = arith.constant 0 : index
    %c0_97 = arith.constant 0 : index
    %359 = vector.load %arg8[%358, %c0_96, %c0_97] : memref<24x128x24xbf16, #tpu.memory_space<vmem>>, vector<1x128x24xbf16>
    %360 = vector.shape_cast %359 : vector<1x128x24xbf16> to vector<128x24xbf16>
    %cst_98 = arith.constant dense<0.000000e+00> : vector<8x24xf32>
    %361 = tpu.matmul %357, %360, %cst_98 {dimension_numbers = #tpu.dot_dimension_numbers<[1], [0], [0], [1], [0, 0, 1, 1], [], []>} : vector<8x128xbf16>, vector<128x24xbf16>, vector<8x24xf32> -> vector<8x24xf32>
    %362 = arith.addf %327, %361 : vector<8x24xf32>
    %c0_99 = arith.constant 0 : index
    %c0_100 = arith.constant 0 : index
    %363 = vector.load %arg6[%c0_99, %c0_100] : memref<128x384xbf16, #tpu.memory_space<vmem>>, vector<128x384xbf16>
    %cst_101 = arith.constant dense<0.000000e+00> : vector<8x384xf32>
    %364 = tpu.matmul %357, %363, %cst_101 {dimension_numbers = #tpu.dot_dimension_numbers<[1], [0], [0], [1], [0, 0, 1, 1], [], []>} : vector<8x128xbf16>, vector<128x384xbf16>, vector<8x384xf32> -> vector<8x384xf32>
    %365 = arith.index_cast %c10_i32 : i32 to index
    %c0_102 = arith.constant 0 : index
    %c0_103 = arith.constant 0 : index
    %366 = vector.load %arg1[%365, %c0_102, %c0_103] : memref<24x8x1xf32, #tpu.memory_space<vmem>>, vector<1x8x1xf32>
    %367 = vector.shape_cast %366 : vector<1x8x1xf32> to vector<8x1xf32>
    %368 = vector.broadcast %367 : vector<8x1xf32> to vector<8x384xf32>
    %369 = vector.broadcast %0 : vector<1x384xf32> to vector<8x384xf32>
    %370 = arith.mulf %368, %369 : vector<8x384xf32>
    %371 = vector.broadcast %1 : vector<1x384xf32> to vector<8x384xf32>
    %372 = arith.addf %370, %371 : vector<8x384xf32>
    %373 = vector.extract_strided_slice %372 {offsets = [0, 0], sizes = [8, 256], strides = [1, 1]} : vector<8x384xf32> to vector<8x256xf32>
    %374 = vector.extract_strided_slice %364 {offsets = [0, 0], sizes = [8, 256], strides = [1, 1]} : vector<8x384xf32> to vector<8x256xf32>
    %375 = arith.addf %373, %374 : vector<8x256xf32>
    %376 = arith.negf %375 : vector<8x256xf32>
    %377 = math.exp %376 : vector<8x256xf32>
    %cst_104 = arith.constant 1.000000e+00 : f32
    %378 = vector.broadcast %cst_104 : f32 to vector<8x256xf32>
    %379 = arith.addf %378, %377 : vector<8x256xf32>
    %380 = arith.divf %378, %379 : vector<8x256xf32>
    %381 = vector.extract_strided_slice %380 {offsets = [0, 0], sizes = [8, 128], strides = [1, 1]} : vector<8x256xf32> to vector<8x128xf32>
    %382 = vector.extract_strided_slice %380 {offsets = [0, 128], sizes = [8, 128], strides = [1, 1]} : vector<8x256xf32> to vector<8x128xf32>
    %383 = vector.extract_strided_slice %372 {offsets = [0, 256], sizes = [8, 128], strides = [1, 1]} : vector<8x384xf32> to vector<8x128xf32>
    %384 = vector.extract_strided_slice %364 {offsets = [0, 256], sizes = [8, 128], strides = [1, 1]} : vector<8x384xf32> to vector<8x128xf32>
    %385 = arith.addf %384, %4 : vector<8x128xf32>
    %386 = arith.mulf %381, %385 : vector<8x128xf32>
    %387 = arith.addf %383, %386 : vector<8x128xf32>
    %388 = math.tanh %387 : vector<8x128xf32>
    %389 = arith.subf %356, %388 : vector<8x128xf32>
    %390 = arith.mulf %382, %389 : vector<8x128xf32>
    %391 = arith.addf %388, %390 : vector<8x128xf32>
    %c11_i32 = arith.constant 11 : i32
    %392 = arith.truncf %391 : vector<8x128xf32> to vector<8x128xbf16>
    %393 = arith.index_cast %c11_i32 : i32 to index
    %c0_105 = arith.constant 0 : index
    %c0_106 = arith.constant 0 : index
    %394 = vector.load %arg8[%393, %c0_105, %c0_106] : memref<24x128x24xbf16, #tpu.memory_space<vmem>>, vector<1x128x24xbf16>
    %395 = vector.shape_cast %394 : vector<1x128x24xbf16> to vector<128x24xbf16>
    %cst_107 = arith.constant dense<0.000000e+00> : vector<8x24xf32>
    %396 = tpu.matmul %392, %395, %cst_107 {dimension_numbers = #tpu.dot_dimension_numbers<[1], [0], [0], [1], [0, 0, 1, 1], [], []>} : vector<8x128xbf16>, vector<128x24xbf16>, vector<8x24xf32> -> vector<8x24xf32>
    %397 = arith.addf %362, %396 : vector<8x24xf32>
    %c0_108 = arith.constant 0 : index
    %c0_109 = arith.constant 0 : index
    %398 = vector.load %arg6[%c0_108, %c0_109] : memref<128x384xbf16, #tpu.memory_space<vmem>>, vector<128x384xbf16>
    %cst_110 = arith.constant dense<0.000000e+00> : vector<8x384xf32>
    %399 = tpu.matmul %392, %398, %cst_110 {dimension_numbers = #tpu.dot_dimension_numbers<[1], [0], [0], [1], [0, 0, 1, 1], [], []>} : vector<8x128xbf16>, vector<128x384xbf16>, vector<8x384xf32> -> vector<8x384xf32>
    %400 = arith.index_cast %c11_i32 : i32 to index
    %c0_111 = arith.constant 0 : index
    %c0_112 = arith.constant 0 : index
    %401 = vector.load %arg1[%400, %c0_111, %c0_112] : memref<24x8x1xf32, #tpu.memory_space<vmem>>, vector<1x8x1xf32>
    %402 = vector.shape_cast %401 : vector<1x8x1xf32> to vector<8x1xf32>
    %403 = vector.broadcast %402 : vector<8x1xf32> to vector<8x384xf32>
    %404 = vector.broadcast %0 : vector<1x384xf32> to vector<8x384xf32>
    %405 = arith.mulf %403, %404 : vector<8x384xf32>
    %406 = vector.broadcast %1 : vector<1x384xf32> to vector<8x384xf32>
    %407 = arith.addf %405, %406 : vector<8x384xf32>
    %408 = vector.extract_strided_slice %407 {offsets = [0, 0], sizes = [8, 256], strides = [1, 1]} : vector<8x384xf32> to vector<8x256xf32>
    %409 = vector.extract_strided_slice %399 {offsets = [0, 0], sizes = [8, 256], strides = [1, 1]} : vector<8x384xf32> to vector<8x256xf32>
    %410 = arith.addf %408, %409 : vector<8x256xf32>
    %411 = arith.negf %410 : vector<8x256xf32>
    %412 = math.exp %411 : vector<8x256xf32>
    %cst_113 = arith.constant 1.000000e+00 : f32
    %413 = vector.broadcast %cst_113 : f32 to vector<8x256xf32>
    %414 = arith.addf %413, %412 : vector<8x256xf32>
    %415 = arith.divf %413, %414 : vector<8x256xf32>
    %416 = vector.extract_strided_slice %415 {offsets = [0, 0], sizes = [8, 128], strides = [1, 1]} : vector<8x256xf32> to vector<8x128xf32>
    %417 = vector.extract_strided_slice %415 {offsets = [0, 128], sizes = [8, 128], strides = [1, 1]} : vector<8x256xf32> to vector<8x128xf32>
    %418 = vector.extract_strided_slice %407 {offsets = [0, 256], sizes = [8, 128], strides = [1, 1]} : vector<8x384xf32> to vector<8x128xf32>
    %419 = vector.extract_strided_slice %399 {offsets = [0, 256], sizes = [8, 128], strides = [1, 1]} : vector<8x384xf32> to vector<8x128xf32>
    %420 = arith.addf %419, %4 : vector<8x128xf32>
    %421 = arith.mulf %416, %420 : vector<8x128xf32>
    %422 = arith.addf %418, %421 : vector<8x128xf32>
    %423 = math.tanh %422 : vector<8x128xf32>
    %424 = arith.subf %391, %423 : vector<8x128xf32>
    %425 = arith.mulf %417, %424 : vector<8x128xf32>
    %426 = arith.addf %423, %425 : vector<8x128xf32>
    %c12_i32 = arith.constant 12 : i32
    %427 = arith.truncf %426 : vector<8x128xf32> to vector<8x128xbf16>
    %428 = arith.index_cast %c12_i32 : i32 to index
    %c0_114 = arith.constant 0 : index
    %c0_115 = arith.constant 0 : index
    %429 = vector.load %arg8[%428, %c0_114, %c0_115] : memref<24x128x24xbf16, #tpu.memory_space<vmem>>, vector<1x128x24xbf16>
    %430 = vector.shape_cast %429 : vector<1x128x24xbf16> to vector<128x24xbf16>
    %cst_116 = arith.constant dense<0.000000e+00> : vector<8x24xf32>
    %431 = tpu.matmul %427, %430, %cst_116 {dimension_numbers = #tpu.dot_dimension_numbers<[1], [0], [0], [1], [0, 0, 1, 1], [], []>} : vector<8x128xbf16>, vector<128x24xbf16>, vector<8x24xf32> -> vector<8x24xf32>
    %432 = arith.addf %397, %431 : vector<8x24xf32>
    %c0_117 = arith.constant 0 : index
    %c0_118 = arith.constant 0 : index
    %433 = vector.load %arg6[%c0_117, %c0_118] : memref<128x384xbf16, #tpu.memory_space<vmem>>, vector<128x384xbf16>
    %cst_119 = arith.constant dense<0.000000e+00> : vector<8x384xf32>
    %434 = tpu.matmul %427, %433, %cst_119 {dimension_numbers = #tpu.dot_dimension_numbers<[1], [0], [0], [1], [0, 0, 1, 1], [], []>} : vector<8x128xbf16>, vector<128x384xbf16>, vector<8x384xf32> -> vector<8x384xf32>
    %435 = arith.index_cast %c12_i32 : i32 to index
    %c0_120 = arith.constant 0 : index
    %c0_121 = arith.constant 0 : index
    %436 = vector.load %arg1[%435, %c0_120, %c0_121] : memref<24x8x1xf32, #tpu.memory_space<vmem>>, vector<1x8x1xf32>
    %437 = vector.shape_cast %436 : vector<1x8x1xf32> to vector<8x1xf32>
    %438 = vector.broadcast %437 : vector<8x1xf32> to vector<8x384xf32>
    %439 = vector.broadcast %0 : vector<1x384xf32> to vector<8x384xf32>
    %440 = arith.mulf %438, %439 : vector<8x384xf32>
    %441 = vector.broadcast %1 : vector<1x384xf32> to vector<8x384xf32>
    %442 = arith.addf %440, %441 : vector<8x384xf32>
    %443 = vector.extract_strided_slice %442 {offsets = [0, 0], sizes = [8, 256], strides = [1, 1]} : vector<8x384xf32> to vector<8x256xf32>
    %444 = vector.extract_strided_slice %434 {offsets = [0, 0], sizes = [8, 256], strides = [1, 1]} : vector<8x384xf32> to vector<8x256xf32>
    %445 = arith.addf %443, %444 : vector<8x256xf32>
    %446 = arith.negf %445 : vector<8x256xf32>
    %447 = math.exp %446 : vector<8x256xf32>
    %cst_122 = arith.constant 1.000000e+00 : f32
    %448 = vector.broadcast %cst_122 : f32 to vector<8x256xf32>
    %449 = arith.addf %448, %447 : vector<8x256xf32>
    %450 = arith.divf %448, %449 : vector<8x256xf32>
    %451 = vector.extract_strided_slice %450 {offsets = [0, 0], sizes = [8, 128], strides = [1, 1]} : vector<8x256xf32> to vector<8x128xf32>
    %452 = vector.extract_strided_slice %450 {offsets = [0, 128], sizes = [8, 128], strides = [1, 1]} : vector<8x256xf32> to vector<8x128xf32>
    %453 = vector.extract_strided_slice %442 {offsets = [0, 256], sizes = [8, 128], strides = [1, 1]} : vector<8x384xf32> to vector<8x128xf32>
    %454 = vector.extract_strided_slice %434 {offsets = [0, 256], sizes = [8, 128], strides = [1, 1]} : vector<8x384xf32> to vector<8x128xf32>
    %455 = arith.addf %454, %4 : vector<8x128xf32>
    %456 = arith.mulf %451, %455 : vector<8x128xf32>
    %457 = arith.addf %453, %456 : vector<8x128xf32>
    %458 = math.tanh %457 : vector<8x128xf32>
    %459 = arith.subf %426, %458 : vector<8x128xf32>
    %460 = arith.mulf %452, %459 : vector<8x128xf32>
    %461 = arith.addf %458, %460 : vector<8x128xf32>
    %c13_i32 = arith.constant 13 : i32
    %462 = arith.truncf %461 : vector<8x128xf32> to vector<8x128xbf16>
    %463 = arith.index_cast %c13_i32 : i32 to index
    %c0_123 = arith.constant 0 : index
    %c0_124 = arith.constant 0 : index
    %464 = vector.load %arg8[%463, %c0_123, %c0_124] : memref<24x128x24xbf16, #tpu.memory_space<vmem>>, vector<1x128x24xbf16>
    %465 = vector.shape_cast %464 : vector<1x128x24xbf16> to vector<128x24xbf16>
    %cst_125 = arith.constant dense<0.000000e+00> : vector<8x24xf32>
    %466 = tpu.matmul %462, %465, %cst_125 {dimension_numbers = #tpu.dot_dimension_numbers<[1], [0], [0], [1], [0, 0, 1, 1], [], []>} : vector<8x128xbf16>, vector<128x24xbf16>, vector<8x24xf32> -> vector<8x24xf32>
    %467 = arith.addf %432, %466 : vector<8x24xf32>
    %c0_126 = arith.constant 0 : index
    %c0_127 = arith.constant 0 : index
    %468 = vector.load %arg6[%c0_126, %c0_127] : memref<128x384xbf16, #tpu.memory_space<vmem>>, vector<128x384xbf16>
    %cst_128 = arith.constant dense<0.000000e+00> : vector<8x384xf32>
    %469 = tpu.matmul %462, %468, %cst_128 {dimension_numbers = #tpu.dot_dimension_numbers<[1], [0], [0], [1], [0, 0, 1, 1], [], []>} : vector<8x128xbf16>, vector<128x384xbf16>, vector<8x384xf32> -> vector<8x384xf32>
    %470 = arith.index_cast %c13_i32 : i32 to index
    %c0_129 = arith.constant 0 : index
    %c0_130 = arith.constant 0 : index
    %471 = vector.load %arg1[%470, %c0_129, %c0_130] : memref<24x8x1xf32, #tpu.memory_space<vmem>>, vector<1x8x1xf32>
    %472 = vector.shape_cast %471 : vector<1x8x1xf32> to vector<8x1xf32>
    %473 = vector.broadcast %472 : vector<8x1xf32> to vector<8x384xf32>
    %474 = vector.broadcast %0 : vector<1x384xf32> to vector<8x384xf32>
    %475 = arith.mulf %473, %474 : vector<8x384xf32>
    %476 = vector.broadcast %1 : vector<1x384xf32> to vector<8x384xf32>
    %477 = arith.addf %475, %476 : vector<8x384xf32>
    %478 = vector.extract_strided_slice %477 {offsets = [0, 0], sizes = [8, 256], strides = [1, 1]} : vector<8x384xf32> to vector<8x256xf32>
    %479 = vector.extract_strided_slice %469 {offsets = [0, 0], sizes = [8, 256], strides = [1, 1]} : vector<8x384xf32> to vector<8x256xf32>
    %480 = arith.addf %478, %479 : vector<8x256xf32>
    %481 = arith.negf %480 : vector<8x256xf32>
    %482 = math.exp %481 : vector<8x256xf32>
    %cst_131 = arith.constant 1.000000e+00 : f32
    %483 = vector.broadcast %cst_131 : f32 to vector<8x256xf32>
    %484 = arith.addf %483, %482 : vector<8x256xf32>
    %485 = arith.divf %483, %484 : vector<8x256xf32>
    %486 = vector.extract_strided_slice %485 {offsets = [0, 0], sizes = [8, 128], strides = [1, 1]} : vector<8x256xf32> to vector<8x128xf32>
    %487 = vector.extract_strided_slice %485 {offsets = [0, 128], sizes = [8, 128], strides = [1, 1]} : vector<8x256xf32> to vector<8x128xf32>
    %488 = vector.extract_strided_slice %477 {offsets = [0, 256], sizes = [8, 128], strides = [1, 1]} : vector<8x384xf32> to vector<8x128xf32>
    %489 = vector.extract_strided_slice %469 {offsets = [0, 256], sizes = [8, 128], strides = [1, 1]} : vector<8x384xf32> to vector<8x128xf32>
    %490 = arith.addf %489, %4 : vector<8x128xf32>
    %491 = arith.mulf %486, %490 : vector<8x128xf32>
    %492 = arith.addf %488, %491 : vector<8x128xf32>
    %493 = math.tanh %492 : vector<8x128xf32>
    %494 = arith.subf %461, %493 : vector<8x128xf32>
    %495 = arith.mulf %487, %494 : vector<8x128xf32>
    %496 = arith.addf %493, %495 : vector<8x128xf32>
    %c14_i32 = arith.constant 14 : i32
    %497 = arith.truncf %496 : vector<8x128xf32> to vector<8x128xbf16>
    %498 = arith.index_cast %c14_i32 : i32 to index
    %c0_132 = arith.constant 0 : index
    %c0_133 = arith.constant 0 : index
    %499 = vector.load %arg8[%498, %c0_132, %c0_133] : memref<24x128x24xbf16, #tpu.memory_space<vmem>>, vector<1x128x24xbf16>
    %500 = vector.shape_cast %499 : vector<1x128x24xbf16> to vector<128x24xbf16>
    %cst_134 = arith.constant dense<0.000000e+00> : vector<8x24xf32>
    %501 = tpu.matmul %497, %500, %cst_134 {dimension_numbers = #tpu.dot_dimension_numbers<[1], [0], [0], [1], [0, 0, 1, 1], [], []>} : vector<8x128xbf16>, vector<128x24xbf16>, vector<8x24xf32> -> vector<8x24xf32>
    %502 = arith.addf %467, %501 : vector<8x24xf32>
    %c0_135 = arith.constant 0 : index
    %c0_136 = arith.constant 0 : index
    %503 = vector.load %arg6[%c0_135, %c0_136] : memref<128x384xbf16, #tpu.memory_space<vmem>>, vector<128x384xbf16>
    %cst_137 = arith.constant dense<0.000000e+00> : vector<8x384xf32>
    %504 = tpu.matmul %497, %503, %cst_137 {dimension_numbers = #tpu.dot_dimension_numbers<[1], [0], [0], [1], [0, 0, 1, 1], [], []>} : vector<8x128xbf16>, vector<128x384xbf16>, vector<8x384xf32> -> vector<8x384xf32>
    %505 = arith.index_cast %c14_i32 : i32 to index
    %c0_138 = arith.constant 0 : index
    %c0_139 = arith.constant 0 : index
    %506 = vector.load %arg1[%505, %c0_138, %c0_139] : memref<24x8x1xf32, #tpu.memory_space<vmem>>, vector<1x8x1xf32>
    %507 = vector.shape_cast %506 : vector<1x8x1xf32> to vector<8x1xf32>
    %508 = vector.broadcast %507 : vector<8x1xf32> to vector<8x384xf32>
    %509 = vector.broadcast %0 : vector<1x384xf32> to vector<8x384xf32>
    %510 = arith.mulf %508, %509 : vector<8x384xf32>
    %511 = vector.broadcast %1 : vector<1x384xf32> to vector<8x384xf32>
    %512 = arith.addf %510, %511 : vector<8x384xf32>
    %513 = vector.extract_strided_slice %512 {offsets = [0, 0], sizes = [8, 256], strides = [1, 1]} : vector<8x384xf32> to vector<8x256xf32>
    %514 = vector.extract_strided_slice %504 {offsets = [0, 0], sizes = [8, 256], strides = [1, 1]} : vector<8x384xf32> to vector<8x256xf32>
    %515 = arith.addf %513, %514 : vector<8x256xf32>
    %516 = arith.negf %515 : vector<8x256xf32>
    %517 = math.exp %516 : vector<8x256xf32>
    %cst_140 = arith.constant 1.000000e+00 : f32
    %518 = vector.broadcast %cst_140 : f32 to vector<8x256xf32>
    %519 = arith.addf %518, %517 : vector<8x256xf32>
    %520 = arith.divf %518, %519 : vector<8x256xf32>
    %521 = vector.extract_strided_slice %520 {offsets = [0, 0], sizes = [8, 128], strides = [1, 1]} : vector<8x256xf32> to vector<8x128xf32>
    %522 = vector.extract_strided_slice %520 {offsets = [0, 128], sizes = [8, 128], strides = [1, 1]} : vector<8x256xf32> to vector<8x128xf32>
    %523 = vector.extract_strided_slice %512 {offsets = [0, 256], sizes = [8, 128], strides = [1, 1]} : vector<8x384xf32> to vector<8x128xf32>
    %524 = vector.extract_strided_slice %504 {offsets = [0, 256], sizes = [8, 128], strides = [1, 1]} : vector<8x384xf32> to vector<8x128xf32>
    %525 = arith.addf %524, %4 : vector<8x128xf32>
    %526 = arith.mulf %521, %525 : vector<8x128xf32>
    %527 = arith.addf %523, %526 : vector<8x128xf32>
    %528 = math.tanh %527 : vector<8x128xf32>
    %529 = arith.subf %496, %528 : vector<8x128xf32>
    %530 = arith.mulf %522, %529 : vector<8x128xf32>
    %531 = arith.addf %528, %530 : vector<8x128xf32>
    %c15_i32 = arith.constant 15 : i32
    %532 = arith.truncf %531 : vector<8x128xf32> to vector<8x128xbf16>
    %533 = arith.index_cast %c15_i32 : i32 to index
    %c0_141 = arith.constant 0 : index
    %c0_142 = arith.constant 0 : index
    %534 = vector.load %arg8[%533, %c0_141, %c0_142] : memref<24x128x24xbf16, #tpu.memory_space<vmem>>, vector<1x128x24xbf16>
    %535 = vector.shape_cast %534 : vector<1x128x24xbf16> to vector<128x24xbf16>
    %cst_143 = arith.constant dense<0.000000e+00> : vector<8x24xf32>
    %536 = tpu.matmul %532, %535, %cst_143 {dimension_numbers = #tpu.dot_dimension_numbers<[1], [0], [0], [1], [0, 0, 1, 1], [], []>} : vector<8x128xbf16>, vector<128x24xbf16>, vector<8x24xf32> -> vector<8x24xf32>
    %537 = arith.addf %502, %536 : vector<8x24xf32>
    %c0_144 = arith.constant 0 : index
    %c0_145 = arith.constant 0 : index
    %538 = vector.load %arg6[%c0_144, %c0_145] : memref<128x384xbf16, #tpu.memory_space<vmem>>, vector<128x384xbf16>
    %cst_146 = arith.constant dense<0.000000e+00> : vector<8x384xf32>
    %539 = tpu.matmul %532, %538, %cst_146 {dimension_numbers = #tpu.dot_dimension_numbers<[1], [0], [0], [1], [0, 0, 1, 1], [], []>} : vector<8x128xbf16>, vector<128x384xbf16>, vector<8x384xf32> -> vector<8x384xf32>
    %540 = arith.index_cast %c15_i32 : i32 to index
    %c0_147 = arith.constant 0 : index
    %c0_148 = arith.constant 0 : index
    %541 = vector.load %arg1[%540, %c0_147, %c0_148] : memref<24x8x1xf32, #tpu.memory_space<vmem>>, vector<1x8x1xf32>
    %542 = vector.shape_cast %541 : vector<1x8x1xf32> to vector<8x1xf32>
    %543 = vector.broadcast %542 : vector<8x1xf32> to vector<8x384xf32>
    %544 = vector.broadcast %0 : vector<1x384xf32> to vector<8x384xf32>
    %545 = arith.mulf %543, %544 : vector<8x384xf32>
    %546 = vector.broadcast %1 : vector<1x384xf32> to vector<8x384xf32>
    %547 = arith.addf %545, %546 : vector<8x384xf32>
    %548 = vector.extract_strided_slice %547 {offsets = [0, 0], sizes = [8, 256], strides = [1, 1]} : vector<8x384xf32> to vector<8x256xf32>
    %549 = vector.extract_strided_slice %539 {offsets = [0, 0], sizes = [8, 256], strides = [1, 1]} : vector<8x384xf32> to vector<8x256xf32>
    %550 = arith.addf %548, %549 : vector<8x256xf32>
    %551 = arith.negf %550 : vector<8x256xf32>
    %552 = math.exp %551 : vector<8x256xf32>
    %cst_149 = arith.constant 1.000000e+00 : f32
    %553 = vector.broadcast %cst_149 : f32 to vector<8x256xf32>
    %554 = arith.addf %553, %552 : vector<8x256xf32>
    %555 = arith.divf %553, %554 : vector<8x256xf32>
    %556 = vector.extract_strided_slice %555 {offsets = [0, 0], sizes = [8, 128], strides = [1, 1]} : vector<8x256xf32> to vector<8x128xf32>
    %557 = vector.extract_strided_slice %555 {offsets = [0, 128], sizes = [8, 128], strides = [1, 1]} : vector<8x256xf32> to vector<8x128xf32>
    %558 = vector.extract_strided_slice %547 {offsets = [0, 256], sizes = [8, 128], strides = [1, 1]} : vector<8x384xf32> to vector<8x128xf32>
    %559 = vector.extract_strided_slice %539 {offsets = [0, 256], sizes = [8, 128], strides = [1, 1]} : vector<8x384xf32> to vector<8x128xf32>
    %560 = arith.addf %559, %4 : vector<8x128xf32>
    %561 = arith.mulf %556, %560 : vector<8x128xf32>
    %562 = arith.addf %558, %561 : vector<8x128xf32>
    %563 = math.tanh %562 : vector<8x128xf32>
    %564 = arith.subf %531, %563 : vector<8x128xf32>
    %565 = arith.mulf %557, %564 : vector<8x128xf32>
    %566 = arith.addf %563, %565 : vector<8x128xf32>
    %c16_i32 = arith.constant 16 : i32
    %567 = arith.truncf %566 : vector<8x128xf32> to vector<8x128xbf16>
    %568 = arith.index_cast %c16_i32 : i32 to index
    %c0_150 = arith.constant 0 : index
    %c0_151 = arith.constant 0 : index
    %569 = vector.load %arg8[%568, %c0_150, %c0_151] : memref<24x128x24xbf16, #tpu.memory_space<vmem>>, vector<1x128x24xbf16>
    %570 = vector.shape_cast %569 : vector<1x128x24xbf16> to vector<128x24xbf16>
    %cst_152 = arith.constant dense<0.000000e+00> : vector<8x24xf32>
    %571 = tpu.matmul %567, %570, %cst_152 {dimension_numbers = #tpu.dot_dimension_numbers<[1], [0], [0], [1], [0, 0, 1, 1], [], []>} : vector<8x128xbf16>, vector<128x24xbf16>, vector<8x24xf32> -> vector<8x24xf32>
    %572 = arith.addf %537, %571 : vector<8x24xf32>
    %c0_153 = arith.constant 0 : index
    %c0_154 = arith.constant 0 : index
    %573 = vector.load %arg6[%c0_153, %c0_154] : memref<128x384xbf16, #tpu.memory_space<vmem>>, vector<128x384xbf16>
    %cst_155 = arith.constant dense<0.000000e+00> : vector<8x384xf32>
    %574 = tpu.matmul %567, %573, %cst_155 {dimension_numbers = #tpu.dot_dimension_numbers<[1], [0], [0], [1], [0, 0, 1, 1], [], []>} : vector<8x128xbf16>, vector<128x384xbf16>, vector<8x384xf32> -> vector<8x384xf32>
    %575 = arith.index_cast %c16_i32 : i32 to index
    %c0_156 = arith.constant 0 : index
    %c0_157 = arith.constant 0 : index
    %576 = vector.load %arg1[%575, %c0_156, %c0_157] : memref<24x8x1xf32, #tpu.memory_space<vmem>>, vector<1x8x1xf32>
    %577 = vector.shape_cast %576 : vector<1x8x1xf32> to vector<8x1xf32>
    %578 = vector.broadcast %577 : vector<8x1xf32> to vector<8x384xf32>
    %579 = vector.broadcast %0 : vector<1x384xf32> to vector<8x384xf32>
    %580 = arith.mulf %578, %579 : vector<8x384xf32>
    %581 = vector.broadcast %1 : vector<1x384xf32> to vector<8x384xf32>
    %582 = arith.addf %580, %581 : vector<8x384xf32>
    %583 = vector.extract_strided_slice %582 {offsets = [0, 0], sizes = [8, 256], strides = [1, 1]} : vector<8x384xf32> to vector<8x256xf32>
    %584 = vector.extract_strided_slice %574 {offsets = [0, 0], sizes = [8, 256], strides = [1, 1]} : vector<8x384xf32> to vector<8x256xf32>
    %585 = arith.addf %583, %584 : vector<8x256xf32>
    %586 = arith.negf %585 : vector<8x256xf32>
    %587 = math.exp %586 : vector<8x256xf32>
    %cst_158 = arith.constant 1.000000e+00 : f32
    %588 = vector.broadcast %cst_158 : f32 to vector<8x256xf32>
    %589 = arith.addf %588, %587 : vector<8x256xf32>
    %590 = arith.divf %588, %589 : vector<8x256xf32>
    %591 = vector.extract_strided_slice %590 {offsets = [0, 0], sizes = [8, 128], strides = [1, 1]} : vector<8x256xf32> to vector<8x128xf32>
    %592 = vector.extract_strided_slice %590 {offsets = [0, 128], sizes = [8, 128], strides = [1, 1]} : vector<8x256xf32> to vector<8x128xf32>
    %593 = vector.extract_strided_slice %582 {offsets = [0, 256], sizes = [8, 128], strides = [1, 1]} : vector<8x384xf32> to vector<8x128xf32>
    %594 = vector.extract_strided_slice %574 {offsets = [0, 256], sizes = [8, 128], strides = [1, 1]} : vector<8x384xf32> to vector<8x128xf32>
    %595 = arith.addf %594, %4 : vector<8x128xf32>
    %596 = arith.mulf %591, %595 : vector<8x128xf32>
    %597 = arith.addf %593, %596 : vector<8x128xf32>
    %598 = math.tanh %597 : vector<8x128xf32>
    %599 = arith.subf %566, %598 : vector<8x128xf32>
    %600 = arith.mulf %592, %599 : vector<8x128xf32>
    %601 = arith.addf %598, %600 : vector<8x128xf32>
    %c17_i32 = arith.constant 17 : i32
    %602 = arith.truncf %601 : vector<8x128xf32> to vector<8x128xbf16>
    %603 = arith.index_cast %c17_i32 : i32 to index
    %c0_159 = arith.constant 0 : index
    %c0_160 = arith.constant 0 : index
    %604 = vector.load %arg8[%603, %c0_159, %c0_160] : memref<24x128x24xbf16, #tpu.memory_space<vmem>>, vector<1x128x24xbf16>
    %605 = vector.shape_cast %604 : vector<1x128x24xbf16> to vector<128x24xbf16>
    %cst_161 = arith.constant dense<0.000000e+00> : vector<8x24xf32>
    %606 = tpu.matmul %602, %605, %cst_161 {dimension_numbers = #tpu.dot_dimension_numbers<[1], [0], [0], [1], [0, 0, 1, 1], [], []>} : vector<8x128xbf16>, vector<128x24xbf16>, vector<8x24xf32> -> vector<8x24xf32>
    %607 = arith.addf %572, %606 : vector<8x24xf32>
    %c0_162 = arith.constant 0 : index
    %c0_163 = arith.constant 0 : index
    %608 = vector.load %arg6[%c0_162, %c0_163] : memref<128x384xbf16, #tpu.memory_space<vmem>>, vector<128x384xbf16>
    %cst_164 = arith.constant dense<0.000000e+00> : vector<8x384xf32>
    %609 = tpu.matmul %602, %608, %cst_164 {dimension_numbers = #tpu.dot_dimension_numbers<[1], [0], [0], [1], [0, 0, 1, 1], [], []>} : vector<8x128xbf16>, vector<128x384xbf16>, vector<8x384xf32> -> vector<8x384xf32>
    %610 = arith.index_cast %c17_i32 : i32 to index
    %c0_165 = arith.constant 0 : index
    %c0_166 = arith.constant 0 : index
    %611 = vector.load %arg1[%610, %c0_165, %c0_166] : memref<24x8x1xf32, #tpu.memory_space<vmem>>, vector<1x8x1xf32>
    %612 = vector.shape_cast %611 : vector<1x8x1xf32> to vector<8x1xf32>
    %613 = vector.broadcast %612 : vector<8x1xf32> to vector<8x384xf32>
    %614 = vector.broadcast %0 : vector<1x384xf32> to vector<8x384xf32>
    %615 = arith.mulf %613, %614 : vector<8x384xf32>
    %616 = vector.broadcast %1 : vector<1x384xf32> to vector<8x384xf32>
    %617 = arith.addf %615, %616 : vector<8x384xf32>
    %618 = vector.extract_strided_slice %617 {offsets = [0, 0], sizes = [8, 256], strides = [1, 1]} : vector<8x384xf32> to vector<8x256xf32>
    %619 = vector.extract_strided_slice %609 {offsets = [0, 0], sizes = [8, 256], strides = [1, 1]} : vector<8x384xf32> to vector<8x256xf32>
    %620 = arith.addf %618, %619 : vector<8x256xf32>
    %621 = arith.negf %620 : vector<8x256xf32>
    %622 = math.exp %621 : vector<8x256xf32>
    %cst_167 = arith.constant 1.000000e+00 : f32
    %623 = vector.broadcast %cst_167 : f32 to vector<8x256xf32>
    %624 = arith.addf %623, %622 : vector<8x256xf32>
    %625 = arith.divf %623, %624 : vector<8x256xf32>
    %626 = vector.extract_strided_slice %625 {offsets = [0, 0], sizes = [8, 128], strides = [1, 1]} : vector<8x256xf32> to vector<8x128xf32>
    %627 = vector.extract_strided_slice %625 {offsets = [0, 128], sizes = [8, 128], strides = [1, 1]} : vector<8x256xf32> to vector<8x128xf32>
    %628 = vector.extract_strided_slice %617 {offsets = [0, 256], sizes = [8, 128], strides = [1, 1]} : vector<8x384xf32> to vector<8x128xf32>
    %629 = vector.extract_strided_slice %609 {offsets = [0, 256], sizes = [8, 128], strides = [1, 1]} : vector<8x384xf32> to vector<8x128xf32>
    %630 = arith.addf %629, %4 : vector<8x128xf32>
    %631 = arith.mulf %626, %630 : vector<8x128xf32>
    %632 = arith.addf %628, %631 : vector<8x128xf32>
    %633 = math.tanh %632 : vector<8x128xf32>
    %634 = arith.subf %601, %633 : vector<8x128xf32>
    %635 = arith.mulf %627, %634 : vector<8x128xf32>
    %636 = arith.addf %633, %635 : vector<8x128xf32>
    %c18_i32 = arith.constant 18 : i32
    %637 = arith.truncf %636 : vector<8x128xf32> to vector<8x128xbf16>
    %638 = arith.index_cast %c18_i32 : i32 to index
    %c0_168 = arith.constant 0 : index
    %c0_169 = arith.constant 0 : index
    %639 = vector.load %arg8[%638, %c0_168, %c0_169] : memref<24x128x24xbf16, #tpu.memory_space<vmem>>, vector<1x128x24xbf16>
    %640 = vector.shape_cast %639 : vector<1x128x24xbf16> to vector<128x24xbf16>
    %cst_170 = arith.constant dense<0.000000e+00> : vector<8x24xf32>
    %641 = tpu.matmul %637, %640, %cst_170 {dimension_numbers = #tpu.dot_dimension_numbers<[1], [0], [0], [1], [0, 0, 1, 1], [], []>} : vector<8x128xbf16>, vector<128x24xbf16>, vector<8x24xf32> -> vector<8x24xf32>
    %642 = arith.addf %607, %641 : vector<8x24xf32>
    %c0_171 = arith.constant 0 : index
    %c0_172 = arith.constant 0 : index
    %643 = vector.load %arg6[%c0_171, %c0_172] : memref<128x384xbf16, #tpu.memory_space<vmem>>, vector<128x384xbf16>
    %cst_173 = arith.constant dense<0.000000e+00> : vector<8x384xf32>
    %644 = tpu.matmul %637, %643, %cst_173 {dimension_numbers = #tpu.dot_dimension_numbers<[1], [0], [0], [1], [0, 0, 1, 1], [], []>} : vector<8x128xbf16>, vector<128x384xbf16>, vector<8x384xf32> -> vector<8x384xf32>
    %645 = arith.index_cast %c18_i32 : i32 to index
    %c0_174 = arith.constant 0 : index
    %c0_175 = arith.constant 0 : index
    %646 = vector.load %arg1[%645, %c0_174, %c0_175] : memref<24x8x1xf32, #tpu.memory_space<vmem>>, vector<1x8x1xf32>
    %647 = vector.shape_cast %646 : vector<1x8x1xf32> to vector<8x1xf32>
    %648 = vector.broadcast %647 : vector<8x1xf32> to vector<8x384xf32>
    %649 = vector.broadcast %0 : vector<1x384xf32> to vector<8x384xf32>
    %650 = arith.mulf %648, %649 : vector<8x384xf32>
    %651 = vector.broadcast %1 : vector<1x384xf32> to vector<8x384xf32>
    %652 = arith.addf %650, %651 : vector<8x384xf32>
    %653 = vector.extract_strided_slice %652 {offsets = [0, 0], sizes = [8, 256], strides = [1, 1]} : vector<8x384xf32> to vector<8x256xf32>
    %654 = vector.extract_strided_slice %644 {offsets = [0, 0], sizes = [8, 256], strides = [1, 1]} : vector<8x384xf32> to vector<8x256xf32>
    %655 = arith.addf %653, %654 : vector<8x256xf32>
    %656 = arith.negf %655 : vector<8x256xf32>
    %657 = math.exp %656 : vector<8x256xf32>
    %cst_176 = arith.constant 1.000000e+00 : f32
    %658 = vector.broadcast %cst_176 : f32 to vector<8x256xf32>
    %659 = arith.addf %658, %657 : vector<8x256xf32>
    %660 = arith.divf %658, %659 : vector<8x256xf32>
    %661 = vector.extract_strided_slice %660 {offsets = [0, 0], sizes = [8, 128], strides = [1, 1]} : vector<8x256xf32> to vector<8x128xf32>
    %662 = vector.extract_strided_slice %660 {offsets = [0, 128], sizes = [8, 128], strides = [1, 1]} : vector<8x256xf32> to vector<8x128xf32>
    %663 = vector.extract_strided_slice %652 {offsets = [0, 256], sizes = [8, 128], strides = [1, 1]} : vector<8x384xf32> to vector<8x128xf32>
    %664 = vector.extract_strided_slice %644 {offsets = [0, 256], sizes = [8, 128], strides = [1, 1]} : vector<8x384xf32> to vector<8x128xf32>
    %665 = arith.addf %664, %4 : vector<8x128xf32>
    %666 = arith.mulf %661, %665 : vector<8x128xf32>
    %667 = arith.addf %663, %666 : vector<8x128xf32>
    %668 = math.tanh %667 : vector<8x128xf32>
    %669 = arith.subf %636, %668 : vector<8x128xf32>
    %670 = arith.mulf %662, %669 : vector<8x128xf32>
    %671 = arith.addf %668, %670 : vector<8x128xf32>
    %c19_i32 = arith.constant 19 : i32
    %672 = arith.truncf %671 : vector<8x128xf32> to vector<8x128xbf16>
    %673 = arith.index_cast %c19_i32 : i32 to index
    %c0_177 = arith.constant 0 : index
    %c0_178 = arith.constant 0 : index
    %674 = vector.load %arg8[%673, %c0_177, %c0_178] : memref<24x128x24xbf16, #tpu.memory_space<vmem>>, vector<1x128x24xbf16>
    %675 = vector.shape_cast %674 : vector<1x128x24xbf16> to vector<128x24xbf16>
    %cst_179 = arith.constant dense<0.000000e+00> : vector<8x24xf32>
    %676 = tpu.matmul %672, %675, %cst_179 {dimension_numbers = #tpu.dot_dimension_numbers<[1], [0], [0], [1], [0, 0, 1, 1], [], []>} : vector<8x128xbf16>, vector<128x24xbf16>, vector<8x24xf32> -> vector<8x24xf32>
    %677 = arith.addf %642, %676 : vector<8x24xf32>
    %c0_180 = arith.constant 0 : index
    %c0_181 = arith.constant 0 : index
    %678 = vector.load %arg6[%c0_180, %c0_181] : memref<128x384xbf16, #tpu.memory_space<vmem>>, vector<128x384xbf16>
    %cst_182 = arith.constant dense<0.000000e+00> : vector<8x384xf32>
    %679 = tpu.matmul %672, %678, %cst_182 {dimension_numbers = #tpu.dot_dimension_numbers<[1], [0], [0], [1], [0, 0, 1, 1], [], []>} : vector<8x128xbf16>, vector<128x384xbf16>, vector<8x384xf32> -> vector<8x384xf32>
    %680 = arith.index_cast %c19_i32 : i32 to index
    %c0_183 = arith.constant 0 : index
    %c0_184 = arith.constant 0 : index
    %681 = vector.load %arg1[%680, %c0_183, %c0_184] : memref<24x8x1xf32, #tpu.memory_space<vmem>>, vector<1x8x1xf32>
    %682 = vector.shape_cast %681 : vector<1x8x1xf32> to vector<8x1xf32>
    %683 = vector.broadcast %682 : vector<8x1xf32> to vector<8x384xf32>
    %684 = vector.broadcast %0 : vector<1x384xf32> to vector<8x384xf32>
    %685 = arith.mulf %683, %684 : vector<8x384xf32>
    %686 = vector.broadcast %1 : vector<1x384xf32> to vector<8x384xf32>
    %687 = arith.addf %685, %686 : vector<8x384xf32>
    %688 = vector.extract_strided_slice %687 {offsets = [0, 0], sizes = [8, 256], strides = [1, 1]} : vector<8x384xf32> to vector<8x256xf32>
    %689 = vector.extract_strided_slice %679 {offsets = [0, 0], sizes = [8, 256], strides = [1, 1]} : vector<8x384xf32> to vector<8x256xf32>
    %690 = arith.addf %688, %689 : vector<8x256xf32>
    %691 = arith.negf %690 : vector<8x256xf32>
    %692 = math.exp %691 : vector<8x256xf32>
    %cst_185 = arith.constant 1.000000e+00 : f32
    %693 = vector.broadcast %cst_185 : f32 to vector<8x256xf32>
    %694 = arith.addf %693, %692 : vector<8x256xf32>
    %695 = arith.divf %693, %694 : vector<8x256xf32>
    %696 = vector.extract_strided_slice %695 {offsets = [0, 0], sizes = [8, 128], strides = [1, 1]} : vector<8x256xf32> to vector<8x128xf32>
    %697 = vector.extract_strided_slice %695 {offsets = [0, 128], sizes = [8, 128], strides = [1, 1]} : vector<8x256xf32> to vector<8x128xf32>
    %698 = vector.extract_strided_slice %687 {offsets = [0, 256], sizes = [8, 128], strides = [1, 1]} : vector<8x384xf32> to vector<8x128xf32>
    %699 = vector.extract_strided_slice %679 {offsets = [0, 256], sizes = [8, 128], strides = [1, 1]} : vector<8x384xf32> to vector<8x128xf32>
    %700 = arith.addf %699, %4 : vector<8x128xf32>
    %701 = arith.mulf %696, %700 : vector<8x128xf32>
    %702 = arith.addf %698, %701 : vector<8x128xf32>
    %703 = math.tanh %702 : vector<8x128xf32>
    %704 = arith.subf %671, %703 : vector<8x128xf32>
    %705 = arith.mulf %697, %704 : vector<8x128xf32>
    %706 = arith.addf %703, %705 : vector<8x128xf32>
    %c20_i32 = arith.constant 20 : i32
    %707 = arith.truncf %706 : vector<8x128xf32> to vector<8x128xbf16>
    %708 = arith.index_cast %c20_i32 : i32 to index
    %c0_186 = arith.constant 0 : index
    %c0_187 = arith.constant 0 : index
    %709 = vector.load %arg8[%708, %c0_186, %c0_187] : memref<24x128x24xbf16, #tpu.memory_space<vmem>>, vector<1x128x24xbf16>
    %710 = vector.shape_cast %709 : vector<1x128x24xbf16> to vector<128x24xbf16>
    %cst_188 = arith.constant dense<0.000000e+00> : vector<8x24xf32>
    %711 = tpu.matmul %707, %710, %cst_188 {dimension_numbers = #tpu.dot_dimension_numbers<[1], [0], [0], [1], [0, 0, 1, 1], [], []>} : vector<8x128xbf16>, vector<128x24xbf16>, vector<8x24xf32> -> vector<8x24xf32>
    %712 = arith.addf %677, %711 : vector<8x24xf32>
    %c0_189 = arith.constant 0 : index
    %c0_190 = arith.constant 0 : index
    %713 = vector.load %arg6[%c0_189, %c0_190] : memref<128x384xbf16, #tpu.memory_space<vmem>>, vector<128x384xbf16>
    %cst_191 = arith.constant dense<0.000000e+00> : vector<8x384xf32>
    %714 = tpu.matmul %707, %713, %cst_191 {dimension_numbers = #tpu.dot_dimension_numbers<[1], [0], [0], [1], [0, 0, 1, 1], [], []>} : vector<8x128xbf16>, vector<128x384xbf16>, vector<8x384xf32> -> vector<8x384xf32>
    %715 = arith.index_cast %c20_i32 : i32 to index
    %c0_192 = arith.constant 0 : index
    %c0_193 = arith.constant 0 : index
    %716 = vector.load %arg1[%715, %c0_192, %c0_193] : memref<24x8x1xf32, #tpu.memory_space<vmem>>, vector<1x8x1xf32>
    %717 = vector.shape_cast %716 : vector<1x8x1xf32> to vector<8x1xf32>
    %718 = vector.broadcast %717 : vector<8x1xf32> to vector<8x384xf32>
    %719 = vector.broadcast %0 : vector<1x384xf32> to vector<8x384xf32>
    %720 = arith.mulf %718, %719 : vector<8x384xf32>
    %721 = vector.broadcast %1 : vector<1x384xf32> to vector<8x384xf32>
    %722 = arith.addf %720, %721 : vector<8x384xf32>
    %723 = vector.extract_strided_slice %722 {offsets = [0, 0], sizes = [8, 256], strides = [1, 1]} : vector<8x384xf32> to vector<8x256xf32>
    %724 = vector.extract_strided_slice %714 {offsets = [0, 0], sizes = [8, 256], strides = [1, 1]} : vector<8x384xf32> to vector<8x256xf32>
    %725 = arith.addf %723, %724 : vector<8x256xf32>
    %726 = arith.negf %725 : vector<8x256xf32>
    %727 = math.exp %726 : vector<8x256xf32>
    %cst_194 = arith.constant 1.000000e+00 : f32
    %728 = vector.broadcast %cst_194 : f32 to vector<8x256xf32>
    %729 = arith.addf %728, %727 : vector<8x256xf32>
    %730 = arith.divf %728, %729 : vector<8x256xf32>
    %731 = vector.extract_strided_slice %730 {offsets = [0, 0], sizes = [8, 128], strides = [1, 1]} : vector<8x256xf32> to vector<8x128xf32>
    %732 = vector.extract_strided_slice %730 {offsets = [0, 128], sizes = [8, 128], strides = [1, 1]} : vector<8x256xf32> to vector<8x128xf32>
    %733 = vector.extract_strided_slice %722 {offsets = [0, 256], sizes = [8, 128], strides = [1, 1]} : vector<8x384xf32> to vector<8x128xf32>
    %734 = vector.extract_strided_slice %714 {offsets = [0, 256], sizes = [8, 128], strides = [1, 1]} : vector<8x384xf32> to vector<8x128xf32>
    %735 = arith.addf %734, %4 : vector<8x128xf32>
    %736 = arith.mulf %731, %735 : vector<8x128xf32>
    %737 = arith.addf %733, %736 : vector<8x128xf32>
    %738 = math.tanh %737 : vector<8x128xf32>
    %739 = arith.subf %706, %738 : vector<8x128xf32>
    %740 = arith.mulf %732, %739 : vector<8x128xf32>
    %741 = arith.addf %738, %740 : vector<8x128xf32>
    %c21_i32 = arith.constant 21 : i32
    %742 = arith.truncf %741 : vector<8x128xf32> to vector<8x128xbf16>
    %743 = arith.index_cast %c21_i32 : i32 to index
    %c0_195 = arith.constant 0 : index
    %c0_196 = arith.constant 0 : index
    %744 = vector.load %arg8[%743, %c0_195, %c0_196] : memref<24x128x24xbf16, #tpu.memory_space<vmem>>, vector<1x128x24xbf16>
    %745 = vector.shape_cast %744 : vector<1x128x24xbf16> to vector<128x24xbf16>
    %cst_197 = arith.constant dense<0.000000e+00> : vector<8x24xf32>
    %746 = tpu.matmul %742, %745, %cst_197 {dimension_numbers = #tpu.dot_dimension_numbers<[1], [0], [0], [1], [0, 0, 1, 1], [], []>} : vector<8x128xbf16>, vector<128x24xbf16>, vector<8x24xf32> -> vector<8x24xf32>
    %747 = arith.addf %712, %746 : vector<8x24xf32>
    %c0_198 = arith.constant 0 : index
    %c0_199 = arith.constant 0 : index
    %748 = vector.load %arg6[%c0_198, %c0_199] : memref<128x384xbf16, #tpu.memory_space<vmem>>, vector<128x384xbf16>
    %cst_200 = arith.constant dense<0.000000e+00> : vector<8x384xf32>
    %749 = tpu.matmul %742, %748, %cst_200 {dimension_numbers = #tpu.dot_dimension_numbers<[1], [0], [0], [1], [0, 0, 1, 1], [], []>} : vector<8x128xbf16>, vector<128x384xbf16>, vector<8x384xf32> -> vector<8x384xf32>
    %750 = arith.index_cast %c21_i32 : i32 to index
    %c0_201 = arith.constant 0 : index
    %c0_202 = arith.constant 0 : index
    %751 = vector.load %arg1[%750, %c0_201, %c0_202] : memref<24x8x1xf32, #tpu.memory_space<vmem>>, vector<1x8x1xf32>
    %752 = vector.shape_cast %751 : vector<1x8x1xf32> to vector<8x1xf32>
    %753 = vector.broadcast %752 : vector<8x1xf32> to vector<8x384xf32>
    %754 = vector.broadcast %0 : vector<1x384xf32> to vector<8x384xf32>
    %755 = arith.mulf %753, %754 : vector<8x384xf32>
    %756 = vector.broadcast %1 : vector<1x384xf32> to vector<8x384xf32>
    %757 = arith.addf %755, %756 : vector<8x384xf32>
    %758 = vector.extract_strided_slice %757 {offsets = [0, 0], sizes = [8, 256], strides = [1, 1]} : vector<8x384xf32> to vector<8x256xf32>
    %759 = vector.extract_strided_slice %749 {offsets = [0, 0], sizes = [8, 256], strides = [1, 1]} : vector<8x384xf32> to vector<8x256xf32>
    %760 = arith.addf %758, %759 : vector<8x256xf32>
    %761 = arith.negf %760 : vector<8x256xf32>
    %762 = math.exp %761 : vector<8x256xf32>
    %cst_203 = arith.constant 1.000000e+00 : f32
    %763 = vector.broadcast %cst_203 : f32 to vector<8x256xf32>
    %764 = arith.addf %763, %762 : vector<8x256xf32>
    %765 = arith.divf %763, %764 : vector<8x256xf32>
    %766 = vector.extract_strided_slice %765 {offsets = [0, 0], sizes = [8, 128], strides = [1, 1]} : vector<8x256xf32> to vector<8x128xf32>
    %767 = vector.extract_strided_slice %765 {offsets = [0, 128], sizes = [8, 128], strides = [1, 1]} : vector<8x256xf32> to vector<8x128xf32>
    %768 = vector.extract_strided_slice %757 {offsets = [0, 256], sizes = [8, 128], strides = [1, 1]} : vector<8x384xf32> to vector<8x128xf32>
    %769 = vector.extract_strided_slice %749 {offsets = [0, 256], sizes = [8, 128], strides = [1, 1]} : vector<8x384xf32> to vector<8x128xf32>
    %770 = arith.addf %769, %4 : vector<8x128xf32>
    %771 = arith.mulf %766, %770 : vector<8x128xf32>
    %772 = arith.addf %768, %771 : vector<8x128xf32>
    %773 = math.tanh %772 : vector<8x128xf32>
    %774 = arith.subf %741, %773 : vector<8x128xf32>
    %775 = arith.mulf %767, %774 : vector<8x128xf32>
    %776 = arith.addf %773, %775 : vector<8x128xf32>
    %c22_i32 = arith.constant 22 : i32
    %777 = arith.truncf %776 : vector<8x128xf32> to vector<8x128xbf16>
    %778 = arith.index_cast %c22_i32 : i32 to index
    %c0_204 = arith.constant 0 : index
    %c0_205 = arith.constant 0 : index
    %779 = vector.load %arg8[%778, %c0_204, %c0_205] : memref<24x128x24xbf16, #tpu.memory_space<vmem>>, vector<1x128x24xbf16>
    %780 = vector.shape_cast %779 : vector<1x128x24xbf16> to vector<128x24xbf16>
    %cst_206 = arith.constant dense<0.000000e+00> : vector<8x24xf32>
    %781 = tpu.matmul %777, %780, %cst_206 {dimension_numbers = #tpu.dot_dimension_numbers<[1], [0], [0], [1], [0, 0, 1, 1], [], []>} : vector<8x128xbf16>, vector<128x24xbf16>, vector<8x24xf32> -> vector<8x24xf32>
    %782 = arith.addf %747, %781 : vector<8x24xf32>
    %c0_207 = arith.constant 0 : index
    %c0_208 = arith.constant 0 : index
    %783 = vector.load %arg6[%c0_207, %c0_208] : memref<128x384xbf16, #tpu.memory_space<vmem>>, vector<128x384xbf16>
    %cst_209 = arith.constant dense<0.000000e+00> : vector<8x384xf32>
    %784 = tpu.matmul %777, %783, %cst_209 {dimension_numbers = #tpu.dot_dimension_numbers<[1], [0], [0], [1], [0, 0, 1, 1], [], []>} : vector<8x128xbf16>, vector<128x384xbf16>, vector<8x384xf32> -> vector<8x384xf32>
    %785 = arith.index_cast %c22_i32 : i32 to index
    %c0_210 = arith.constant 0 : index
    %c0_211 = arith.constant 0 : index
    %786 = vector.load %arg1[%785, %c0_210, %c0_211] : memref<24x8x1xf32, #tpu.memory_space<vmem>>, vector<1x8x1xf32>
    %787 = vector.shape_cast %786 : vector<1x8x1xf32> to vector<8x1xf32>
    %788 = vector.broadcast %787 : vector<8x1xf32> to vector<8x384xf32>
    %789 = vector.broadcast %0 : vector<1x384xf32> to vector<8x384xf32>
    %790 = arith.mulf %788, %789 : vector<8x384xf32>
    %791 = vector.broadcast %1 : vector<1x384xf32> to vector<8x384xf32>
    %792 = arith.addf %790, %791 : vector<8x384xf32>
    %793 = vector.extract_strided_slice %792 {offsets = [0, 0], sizes = [8, 256], strides = [1, 1]} : vector<8x384xf32> to vector<8x256xf32>
    %794 = vector.extract_strided_slice %784 {offsets = [0, 0], sizes = [8, 256], strides = [1, 1]} : vector<8x384xf32> to vector<8x256xf32>
    %795 = arith.addf %793, %794 : vector<8x256xf32>
    %796 = arith.negf %795 : vector<8x256xf32>
    %797 = math.exp %796 : vector<8x256xf32>
    %cst_212 = arith.constant 1.000000e+00 : f32
    %798 = vector.broadcast %cst_212 : f32 to vector<8x256xf32>
    %799 = arith.addf %798, %797 : vector<8x256xf32>
    %800 = arith.divf %798, %799 : vector<8x256xf32>
    %801 = vector.extract_strided_slice %800 {offsets = [0, 0], sizes = [8, 128], strides = [1, 1]} : vector<8x256xf32> to vector<8x128xf32>
    %802 = vector.extract_strided_slice %800 {offsets = [0, 128], sizes = [8, 128], strides = [1, 1]} : vector<8x256xf32> to vector<8x128xf32>
    %803 = vector.extract_strided_slice %792 {offsets = [0, 256], sizes = [8, 128], strides = [1, 1]} : vector<8x384xf32> to vector<8x128xf32>
    %804 = vector.extract_strided_slice %784 {offsets = [0, 256], sizes = [8, 128], strides = [1, 1]} : vector<8x384xf32> to vector<8x128xf32>
    %805 = arith.addf %804, %4 : vector<8x128xf32>
    %806 = arith.mulf %801, %805 : vector<8x128xf32>
    %807 = arith.addf %803, %806 : vector<8x128xf32>
    %808 = math.tanh %807 : vector<8x128xf32>
    %809 = arith.subf %776, %808 : vector<8x128xf32>
    %810 = arith.mulf %802, %809 : vector<8x128xf32>
    %811 = arith.addf %808, %810 : vector<8x128xf32>
    %c23_i32 = arith.constant 23 : i32
    %812 = arith.truncf %811 : vector<8x128xf32> to vector<8x128xbf16>
    %813 = arith.index_cast %c23_i32 : i32 to index
    %c0_213 = arith.constant 0 : index
    %c0_214 = arith.constant 0 : index
    %814 = vector.load %arg8[%813, %c0_213, %c0_214] : memref<24x128x24xbf16, #tpu.memory_space<vmem>>, vector<1x128x24xbf16>
    %815 = vector.shape_cast %814 : vector<1x128x24xbf16> to vector<128x24xbf16>
    %cst_215 = arith.constant dense<0.000000e+00> : vector<8x24xf32>
    %816 = tpu.matmul %812, %815, %cst_215 {dimension_numbers = #tpu.dot_dimension_numbers<[1], [0], [0], [1], [0, 0, 1, 1], [], []>} : vector<8x128xbf16>, vector<128x24xbf16>, vector<8x24xf32> -> vector<8x24xf32>
    %817 = arith.addf %782, %816 : vector<8x24xf32>
    %c0_216 = arith.constant 0 : index
    %c0_217 = arith.constant 0 : index
    %818 = vector.load %arg6[%c0_216, %c0_217] : memref<128x384xbf16, #tpu.memory_space<vmem>>, vector<128x384xbf16>
    %cst_218 = arith.constant dense<0.000000e+00> : vector<8x384xf32>
    %819 = tpu.matmul %812, %818, %cst_218 {dimension_numbers = #tpu.dot_dimension_numbers<[1], [0], [0], [1], [0, 0, 1, 1], [], []>} : vector<8x128xbf16>, vector<128x384xbf16>, vector<8x384xf32> -> vector<8x384xf32>
    %820 = arith.index_cast %c23_i32 : i32 to index
    %c0_219 = arith.constant 0 : index
    %c0_220 = arith.constant 0 : index
    %821 = vector.load %arg1[%820, %c0_219, %c0_220] : memref<24x8x1xf32, #tpu.memory_space<vmem>>, vector<1x8x1xf32>
    %822 = vector.shape_cast %821 : vector<1x8x1xf32> to vector<8x1xf32>
    %823 = vector.broadcast %822 : vector<8x1xf32> to vector<8x384xf32>
    %824 = vector.broadcast %0 : vector<1x384xf32> to vector<8x384xf32>
    %825 = arith.mulf %823, %824 : vector<8x384xf32>
    %826 = vector.broadcast %1 : vector<1x384xf32> to vector<8x384xf32>
    %827 = arith.addf %825, %826 : vector<8x384xf32>
    %828 = vector.extract_strided_slice %827 {offsets = [0, 0], sizes = [8, 256], strides = [1, 1]} : vector<8x384xf32> to vector<8x256xf32>
    %829 = vector.extract_strided_slice %819 {offsets = [0, 0], sizes = [8, 256], strides = [1, 1]} : vector<8x384xf32> to vector<8x256xf32>
    %830 = arith.addf %828, %829 : vector<8x256xf32>
    %831 = arith.negf %830 : vector<8x256xf32>
    %832 = math.exp %831 : vector<8x256xf32>
    %cst_221 = arith.constant 1.000000e+00 : f32
    %833 = vector.broadcast %cst_221 : f32 to vector<8x256xf32>
    %834 = arith.addf %833, %832 : vector<8x256xf32>
    %835 = arith.divf %833, %834 : vector<8x256xf32>
    %836 = vector.extract_strided_slice %835 {offsets = [0, 0], sizes = [8, 128], strides = [1, 1]} : vector<8x256xf32> to vector<8x128xf32>
    %837 = vector.extract_strided_slice %835 {offsets = [0, 128], sizes = [8, 128], strides = [1, 1]} : vector<8x256xf32> to vector<8x128xf32>
    %838 = vector.extract_strided_slice %827 {offsets = [0, 256], sizes = [8, 128], strides = [1, 1]} : vector<8x384xf32> to vector<8x128xf32>
    %839 = vector.extract_strided_slice %819 {offsets = [0, 256], sizes = [8, 128], strides = [1, 1]} : vector<8x384xf32> to vector<8x128xf32>
    %840 = arith.addf %839, %4 : vector<8x128xf32>
    %841 = arith.mulf %836, %840 : vector<8x128xf32>
    %842 = arith.addf %838, %841 : vector<8x128xf32>
    %843 = math.tanh %842 : vector<8x128xf32>
    %844 = arith.subf %811, %843 : vector<8x128xf32>
    %845 = arith.mulf %837, %844 : vector<8x128xf32>
    %846 = arith.addf %843, %845 : vector<8x128xf32>
    %c24_i32 = arith.constant 24 : i32
    %847 = arith.truncf %846 : vector<8x128xf32> to vector<8x128xbf16>
    %c0_222 = arith.constant 0 : index
    %c0_223 = arith.constant 0 : index
    %848 = vector.load %arg9[%c0_222, %c0_223] : memref<128x24xbf16, #tpu.memory_space<vmem>>, vector<128x24xbf16>
    %cst_224 = arith.constant dense<0.000000e+00> : vector<8x24xf32>
    %849 = tpu.matmul %847, %848, %cst_224 {dimension_numbers = #tpu.dot_dimension_numbers<[1], [0], [0], [1], [0, 0, 1, 1], [], []>} : vector<8x128xbf16>, vector<128x24xbf16>, vector<8x24xf32> -> vector<8x24xf32>
    %850 = arith.addf %817, %849 : vector<8x24xf32>
    %c0_225 = arith.constant 0 : index
    %c0_226 = arith.constant 0 : index
    %851 = vector.load %arg3[%c0_225, %c0_226] : memref<8x1xf32, #tpu.memory_space<vmem>>, vector<8x1xf32>
    %c0_227 = arith.constant 0 : index
    %c0_228 = arith.constant 0 : index
    %852 = vector.load %arg10[%c0_227, %c0_228] : memref<1x24xf32, #tpu.memory_space<vmem>>, vector<1x24xf32>
    %853 = vector.broadcast %851 : vector<8x1xf32> to vector<8x24xf32>
    %854 = vector.broadcast %852 : vector<1x24xf32> to vector<8x24xf32>
    %855 = arith.mulf %853, %854 : vector<8x24xf32>
    %856 = arith.addf %850, %855 : vector<8x24xf32>
    %c0_229 = arith.constant 0 : index
    %c0_230 = arith.constant 0 : index
    %857 = vector.load %arg11[%c0_229, %c0_230] : memref<1x24xf32, #tpu.memory_space<vmem>>, vector<1x24xf32>
    %858 = vector.broadcast %857 : vector<1x24xf32> to vector<8x24xf32>
    %859 = arith.addf %856, %858 : vector<8x24xf32>
    %cst_231 = arith.constant 0.000000e+00 : f32
    %860 = vector.broadcast %cst_231 : f32 to vector<8x24xf32>
    %861 = arith.maximumf %859, %860 : vector<8x24xf32>
    %c0_232 = arith.constant 0 : index
    %c0_233 = arith.constant 0 : index
    %862 = vector.load %arg2[%c0_232, %c0_233] : memref<8x24xf32, #tpu.memory_space<vmem>>, vector<8x24xf32>
    %863 = arith.minimumf %861, %862 : vector<8x24xf32>
    %c0_234 = arith.constant 0 : index
    %c0_235 = arith.constant 0 : index
    %864 = vector.load %arg12[%c0_234, %c0_235] : memref<8x24xf32, #tpu.memory_space<vmem>>, vector<8x24xf32>
    tpu.vector_store %arg12[%c0_234, %c0_235], %863 {strides = array<i32>} : memref<8x24xf32, #tpu.memory_space<vmem>>, vector<8x24xf32>,
    return
  }
  func.func @transform_0(%arg0: i32) -> (i32, i32, i32) {
    %c0_i32 = arith.constant 0 : i32
    %c0_i32_0 = arith.constant 0 : i32
    %c0_i32_1 = arith.constant 0 : i32
    return %c0_i32, %arg0, %c0_i32_0 : i32, i32, i32
  }
  func.func @transform_1(%arg0: i32) -> (i32, i32) {
    %c0_i32 = arith.constant 0 : i32
    %c0_i32_0 = arith.constant 0 : i32
    return %arg0, %c0_i32 : i32, i32
  }
  func.func @transform_2(%arg0: i32) -> (i32, i32) {
    %c0_i32 = arith.constant 0 : i32
    %c0_i32_0 = arith.constant 0 : i32
    return %arg0, %c0_i32 : i32, i32
  }
  func.func @transform_3(%arg0: i32) -> (i32, i32) {
    %c0_i32 = arith.constant 0 : i32
    %c0_i32_0 = arith.constant 0 : i32
    %c0_i32_1 = arith.constant 0 : i32
    return %c0_i32, %c0_i32_0 : i32, i32
  }
  func.func @transform_4(%arg0: i32) -> (i32, i32) {
    %c0_i32 = arith.constant 0 : i32
    %c0_i32_0 = arith.constant 0 : i32
    %c0_i32_1 = arith.constant 0 : i32
    return %c0_i32, %c0_i32_0 : i32, i32
  }
  func.func @transform_5(%arg0: i32) -> (i32, i32) {
    %c0_i32 = arith.constant 0 : i32
    %c0_i32_0 = arith.constant 0 : i32
    %c0_i32_1 = arith.constant 0 : i32
    return %c0_i32, %c0_i32_0 : i32, i32
  }
  func.func @transform_6(%arg0: i32) -> (i32, i32) {
    %c0_i32 = arith.constant 0 : i32
    %c0_i32_0 = arith.constant 0 : i32
    %c0_i32_1 = arith.constant 0 : i32
    return %c0_i32, %c0_i32_0 : i32, i32
  }
  func.func @transform_7(%arg0: i32) -> (i32, i32, i32) {
    %c0_i32 = arith.constant 0 : i32
    %c0_i32_0 = arith.constant 0 : i32
    %c0_i32_1 = arith.constant 0 : i32
    %c0_i32_2 = arith.constant 0 : i32
    return %c0_i32, %c0_i32_0, %c0_i32_1 : i32, i32, i32
  }
  func.func @transform_8(%arg0: i32) -> (i32, i32) {
    %c0_i32 = arith.constant 0 : i32
    %c0_i32_0 = arith.constant 0 : i32
    %c0_i32_1 = arith.constant 0 : i32
    return %c0_i32, %c0_i32_0 : i32, i32
  }
  func.func @transform_9(%arg0: i32) -> (i32, i32) {
    %c0_i32 = arith.constant 0 : i32
    %c0_i32_0 = arith.constant 0 : i32
    %c0_i32_1 = arith.constant 0 : i32
    return %c0_i32, %c0_i32_0 : i32, i32
  }
  func.func @transform_10(%arg0: i32) -> (i32, i32) {
    %c0_i32 = arith.constant 0 : i32
    %c0_i32_0 = arith.constant 0 : i32
    %c0_i32_1 = arith.constant 0 : i32
    return %c0_i32, %c0_i32_0 : i32, i32
  }
  func.func @transform_11(%arg0: i32) -> (i32, i32) {
    %c0_i32 = arith.constant 0 : i32
    %c0_i32_0 = arith.constant 0 : i32
    return %arg0, %c0_i32 : i32, i32
  }
}

</mosaic_0001>

<bundles_post_ra>
// kernel: tpu_custom_call.1
= control target key start
LH: loop header
LB: loop body
LE: loop exit
PB: predicated region body
PF: predicated region fallthrough
CT: control target
= control target key end

     0   :  { %v8425_v2 = vmov 0.0   ;;  %v8426_v3 = vmov 0   ;;  %vm8427_vm0 = vmmov 0   ;;  %s11344_s0 = inlined_call_operand.vmem [shape: f32[24,8,1], index: 0, kind: input, shape index: {}]   ;;  %s11345_s1 = inlined_call_operand.vmem [shape: f32[8,24], index: 1, kind: input, shape index: {}]   ;;  %s11346_s2 = inlined_call_operand.vmem [shape: f32[8,1], index: 2, kind: input, shape index: {}]   ;;  %s11347_s3 = inlined_call_operand.vmem [shape: f32[1,384], index: 3, kind: input, shape index: {}]   ;;  %s11348_s4 = inlined_call_operand.vmem [shape: f32[1,384], index: 4, kind: input, shape index: {}]   ;;  %s11349_s5 = inlined_call_operand.vmem [shape: bf16[128,384], index: 5, kind: input, shape index: {}]   ;;  %s11350_s6 = inlined_call_operand.vmem [shape: f32[1,128], index: 6, kind: input, shape index: {}]   ;;  %s11351_s7 = inlined_call_operand.vmem [shape: bf16[24,128,24], index: 7, kind: input, shape index: {}]   ;;  %s11352_s8 = inlined_call_operand.vmem [shape: bf16[128,24], index: 8, kind: input, shape index: {}]   ;;  %s11353_s9 = inlined_call_operand.vmem [shape: f32[1,24], index: 9, kind: input, shape index: {}]   ;;  %s11354_s10 = inlined_call_operand.vmem [shape: f32[1,24], index: 10, kind: input, shape index: {}]   ;;  %s11355_s11 = inlined_call_operand.hbm [shape: f32[8,24], index: 11, kind: output, shape index: {}]  }
   0x1   :  { %v7805_v0 = vld [vmem:[%s11349_s5 + $0x4] ss:$12 sps:$4 sm:$0xff]   ;;  %v7807_v1 = vld [vmem:[%s11349_s5] ss:$12 sps:$4 sm:$0xff]   ;;  %6819 = vmatprep.subr.bf16.mxu1 %v8425_v2  ;;  %257 = vmatprep.mubr.bf16.mxu0 %v8426_v3  ;;  %v7808_v4 = vld [vmem:[%s11349_s5 + $0x1c] ss:$12 sps:$4 sm:$0xff]  }
   0x2   :  { %225 = vmatprep.subr.bf16.mxu0 %v7805_v0  ;;  %6835 = vmatprep.mubr.msk.bf16.mxu1 %vm8427_vm0, %v8425_v2  ;;  %v7810_v5 = vld [vmem:[%s11349_s5 + $0x18] ss:$12 sps:$4 sm:$0xff]   ;;  %v7811_v6 = vld [vmem:[%s11349_s5 + $0x34] ss:$12 sps:$4 sm:$0xff]   ;;  %v7813_v7 = vld [vmem:[%s11349_s5 + $0x30] ss:$12 sps:$4 sm:$0xff]  }
   0x3   :  { %226 = vmatpush1.bf16.msra.mxu0 %v7807_v1  ;;  %7803 = vset.pattern.permute.xlu0 %v8426_v3  ;;  %v7814_v8 = vld [vmem:[%s11349_s5 + $0x4c] ss:$12 sps:$4 sm:$0xff]   ;;  %v8519_v9 = vld [vmem:[%s11349_s5 + $0x8] ss:$12 sps:$4 sm:$0xff]   ;;  %v7817_v11 = vld [vmem:[%s11349_s5 + $0x64] ss:$12 sps:$4 sm:$0xff]  }
   0x4   :  { %227 = vmatprep.subr.bf16.mxu0 %v7808_v4  ;;  %7804 = vset.pattern.permute.xlu1 %v8426_v3  ;;  %v7816_v10 = vld [vmem:[%s11349_s5 + $0x48] ss:$12 sps:$4 sm:$0xff]   ;;  %v8532_v12 = vld [vmem:[%s11349_s5 + $0x20] ss:$12 sps:$4 sm:$0xff]   ;;  %v8541_v14 = vld [vmem:[%s11349_s5 + $0x38] ss:$12 sps:$4 sm:$0xff]  }
   0x5   :  { %6820 = vmatpush3.bf16.msra.mxu1 %v8519_v9  ;;  %v7819_v13 = vld [vmem:[%s11349_s5 + $0x60] ss:$12 sps:$4 sm:$0xff]   ;;  %v7820_v15 = vld [vmem:[%s11349_s5 + $0x7c] ss:$12 sps:$4 sm:$0xff]   ;;  %v7822_v17 = vld [vmem:[%s11349_s5 + $0x78] ss:$12 sps:$4 sm:$0xff]  }
   0x6   :  { %6821 = vmatprep.subr.bf16.mxu1 %v8425_v2  ;;  %v306_v16 = vld [vmem:[%s11344_s0] sm:$0xff]  ;;  %v8557_v18 = vld [vmem:[%s11349_s5 + $0x50] ss:$12 sps:$4 sm:$0xff]   ;;  %v5771_v21 = vld [vmem:[%s11344_s0 + $0x8] sm:$0xff] }
   0x7   :  { %228 = vmatpush1.bf16.msra.mxu0 %v7810_v5  ;;  %v7823_v19 = vld [vmem:[%s11349_s5 + $0x94] ss:$12 sps:$4 sm:$0xff]   ;;  %309 = vperm.xlu0 %7803, %v306_v16   ;;  %v7826_v20 = vld [vmem:[%s11349_s5 + $0x90] ss:$12 sps:$4 sm:$0xff]   ;;  %v7827_v22 = vld [vmem:[%s11349_s5 + $0xac] ss:$12 sps:$4 sm:$0xff]  }
   0x8   :  { %229 = vmatprep.subr.bf16.mxu0 %v7811_v6  ;;  %v8576_v23 = vld [vmem:[%s11349_s5 + $0x68] ss:$12 sps:$4 sm:$0xff]   ;;  %v5852_v24 = vld [vmem:[%s11344_s0 + $0x20] sm:$0xff]  ;;  %v8609_v30 = vld [vmem:[%s11349_s5 + $0xb0] ss:$12 sps:$4 sm:$0xff]  }
   0x9   :  { %6822 = vmatpush3.bf16.msra.mxu1 %v8532_v12  ;;  %v7830_v25 = vld [vmem:[%s11349_s5 + $0xa8] ss:$12 sps:$4 sm:$0xff]   ;;  %v8588_v26 = vld [vmem:[%s11349_s5 + $0x80] ss:$12 sps:$4 sm:$0xff]   ;;  %v8598_v28 = vld [vmem:[%s11349_s5 + $0x98] ss:$12 sps:$4 sm:$0xff]  }
   0xa   :  { %6823 = vmatprep.subr.bf16.mxu1 %v8425_v2  ;;  %v5906_v27 = vld [vmem:[%s11344_s0 + $0x30] sm:$0xff]  ;;  %v5960_v29 = vld [vmem:[%s11344_s0 + $0x40] sm:$0xff]  ;;  %v7838_v40 = vld [vmem:[%s11351_s7 + $0x8] sm:$0xff]  }
   0xb   :  { %230 = vmatpush1.bf16.msra.mxu0 %v7813_v7  ;;  %650 = vperm.xlu0 %7803, %v5771_v21   ;;  %v6014_v31 = vld [vmem:[%s11344_s0 + $0x50] sm:$0xff]  ;;  %v6068_v32 = vld [vmem:[%s11344_s0 + $0x60] sm:$0xff]  ;;  %v7840_v42 = vld [vmem:[%s11351_s7 + $0x18] sm:$0xff]  }
   0xc   :  { %231 = vmatprep.subr.bf16.mxu0 %v7814_v8  ;;  %v6122_v33 = vld [vmem:[%s11344_s0 + $0x70] sm:$0xff]  ;;  %v6176_v34 = vld [vmem:[%s11344_s0 + $0x80] sm:$0xff]  ;;  %v7842_v44 = vld [vmem:[%s11351_s7 + $0x28] sm:$0xff]  }
   0xd   :  { %6824 = vmatpush3.bf16.msra.mxu1 %v8541_v14  ;;  %v6230_v35 = vld [vmem:[%s11344_s0 + $0x90] sm:$0xff]  ;;  %v6284_v36 = vld [vmem:[%s11344_s0 + $0xa0] sm:$0xff]  ;;  %v7844_v46 = vld [vmem:[%s11351_s7 + $0x38] sm:$0xff]  }
   0xe   :  { %6825 = vmatprep.subr.bf16.mxu1 %v8425_v2  ;;  %v6338_v37 = vld [vmem:[%s11344_s0 + $0xb0] sm:$0xff]  ;;  %v7837_v38 = vld [vmem:[%s11351_s7] sm:$0xff]   ;;  %v7846_v48 = vld [vmem:[%s11351_s7 + $0x48] sm:$0xff]  }
   0xf   :  { %232 = vmatpush1.bf16.msra.mxu0 %v7816_v10  ;;  %1316 = vperm.xlu0 %7803, %v5852_v24   ;;  %v5670_v39 = vld [vmem:[%s11346_s2] sm:$0xff]  ;;  %v7839_v41 = vld [vmem:[%s11351_s7 + $0x10] sm:$0xff]   ;;  %v7848_v50 = vld [vmem:[%s11351_s7 + $0x58] sm:$0xff]  }
  0x10   :  { %233 = vmatprep.subr.bf16.mxu0 %v7817_v11  ;;  %v7841_v43 = vld [vmem:[%s11351_s7 + $0x20] sm:$0xff]   ;;  %v7843_v45 = vld [vmem:[%s11351_s7 + $0x30] sm:$0xff]   ;;  %v7850_v52 = vld [vmem:[%s11351_s7 + $0x68] sm:$0xff]  }
  0x11   :  { %6826 = vmatpush3.bf16.msra.mxu1 %v8557_v18  ;;  %v7845_v47 = vld [vmem:[%s11351_s7 + $0x40] sm:$0xff]   ;;  %v7847_v49 = vld [vmem:[%s11351_s7 + $0x50] sm:$0xff]   ;;  %v7852_v54 = vld [vmem:[%s11351_s7 + $0x78] sm:$0xff]  }
  0x12   :  { %6827 = vmatprep.subr.bf16.mxu1 %v8425_v2  ;;  %v7849_v51 = vld [vmem:[%s11351_s7 + $0x60] sm:$0xff]   ;;  %v7851_v53 = vld [vmem:[%s11351_s7 + $0x70] sm:$0xff]  }
  0x13   :  { %234 = vmatpush1.bf16.msra.mxu0 %v7819_v13  ;;  %1760 = vperm.xlu0 %7803, %v5906_v27  }
  0x14   :  { %235 = vmatprep.subr.bf16.mxu0 %v7820_v15 }
  0x15   :  { %6828 = vmatpush3.bf16.msra.mxu1 %v8576_v23 }
  0x16   :  { %6829 = vmatprep.subr.bf16.mxu1 %v8425_v2 }
  0x17   :  { %236 = vmatpush1.bf16.msra.mxu0 %v7822_v17  ;;  %2204 = vperm.xlu0 %7803, %v5960_v29  }
  0x18   :  { %237 = vmatprep.subr.bf16.mxu0 %v7823_v19 }
  0x19   :  { %6830 = vmatpush3.bf16.msra.mxu1 %v8588_v26 }
  0x1a   :  { %6831 = vmatprep.subr.bf16.mxu1 %v8425_v2 }
  0x1b   :  { %238 = vmatpush1.bf16.msra.mxu0 %v7826_v20  ;;  %2648 = vperm.xlu0 %7803, %v6014_v31  }
  0x1c   :  { %239 = vmatprep.subr.bf16.mxu0 %v7827_v22 }
  0x1d   :  { %6832 = vmatpush3.bf16.msra.mxu1 %v8598_v28 }
  0x1e   :  { %6833 = vmatprep.subr.bf16.mxu1 %v8425_v2 }
  0x1f   :  { %240 = vmatpush1.bf16.msra.mxu0 %v7830_v25  ;;  %3092 = vperm.xlu0 %7803, %v6068_v32  }
  0x20   :  { %6839 = vmatprep.subr.bf16.mxu0 %v8425_v2 }
  0x21   :  { %6834 = vmatpush3.bf16.msra.mxu1 %v8609_v30 }
  0x22   :  { %258 = vmatmul.mubr.bf16.vlgmr.msra.gmra.mrb[0].mxu0 %v8426_v3  ;;  %6859 = vmatprep.subr.bf16.mxu1 %v8425_v2 }
  0x23   :  { %6855 = vmatprep.mubr.msk.bf16.mxu0 %vm8427_vm0, %v8425_v2  ;;  %3536 = vperm.xlu0 %7803, %v6122_v33  }
  0x24   :  { %6836 = vmatmul.mubr.bf16.vlgmr.msra.gmra.mrb[0].mxu1 %v8426_v3  ;;  %6840 = vmatpush3.bf16.msra.mxu0 %v7845_v47 }
  0x25   :  { %6875 = vmatprep.mubr.msk.bf16.mxu1 %vm8427_vm0, %v8425_v2  ;;  %6860 = vmatpush3.bf16.msra.mxu1 %v7837_v38 }
  0x26   :  { %6861 = vmatprep.subr.bf16.mxu1 %v8425_v2  ;;  %6841 = vmatprep.subr.bf16.mxu0 %v8425_v2 }
  0x27   :  { %3980 = vperm.xlu0 %7803, %v6176_v34  }
  0x28   :  { %6842 = vmatpush3.bf16.msra.mxu0 %v7846_v48 }
  0x29   :  { %6862 = vmatpush3.bf16.msra.mxu1 %v7838_v40  ;;  %6843 = vmatprep.subr.bf16.mxu0 %v8425_v2 }
  0x2a   :  { %6863 = vmatprep.subr.bf16.mxu1 %v8425_v2 }
  0x2b   :  { %4424 = vperm.xlu0 %7803, %v6230_v35  }
  0x2c   :  { %6844 = vmatpush3.bf16.msra.mxu0 %v7847_v49 }
  0x2d   :  { %6864 = vmatpush3.bf16.msra.mxu1 %v7839_v41  ;;  %6845 = vmatprep.subr.bf16.mxu0 %v8425_v2 }
  0x2e   :  { %6865 = vmatprep.subr.bf16.mxu1 %v8425_v2 }
  0x2f   :  { %4868 = vperm.xlu0 %7803, %v6284_v36  }
  0x30   :  { %6846 = vmatpush3.bf16.msra.mxu0 %v7848_v50 }
  0x31   :  { %6866 = vmatpush3.bf16.msra.mxu1 %v7840_v42  ;;  %6847 = vmatprep.subr.bf16.mxu0 %v8425_v2 }
  0x32   :  { %6867 = vmatprep.subr.bf16.mxu1 %v8425_v2 }
  0x33   :  { %5312 = vperm.xlu0 %7803, %v6338_v37  }
  0x34   :  { %6848 = vmatpush3.bf16.msra.mxu0 %v7849_v51 }
  0x35   :  { %6868 = vmatpush3.bf16.msra.mxu1 %v7841_v43  ;;  %6849 = vmatprep.subr.bf16.mxu0 %v8425_v2 }
  0x36   :  { %6869 = vmatprep.subr.bf16.mxu1 %v8425_v2 }
  0x37   :  { %5674 = vperm.xlu0 %7803, %v5670_v39  }
  0x38   :  { %6850 = vmatpush3.bf16.msra.mxu0 %v7850_v52 }
  0x39   :  { %6870 = vmatpush3.bf16.msra.mxu1 %v7842_v44  ;;  %6851 = vmatprep.subr.bf16.mxu0 %v8425_v2 }
  0x3a   :  { %6871 = vmatprep.subr.bf16.mxu1 %v8425_v2 }
  0x3c   :  { %6852 = vmatpush3.bf16.msra.mxu0 %v7851_v53 }
  0x3d   :  { %6872 = vmatpush3.bf16.msra.mxu1 %v7843_v45  ;;  %6853 = vmatprep.subr.bf16.mxu0 %v8425_v2 }
  0x3e   :  { %6873 = vmatprep.subr.bf16.mxu1 %v8425_v2 }
  0x41   :  { %6874 = vmatpush3.bf16.msra.mxu1 %v7844_v46 }
  0x42   :  { %6879 = vmatprep.subr.bf16.mxu1 %v8425_v2 }
  0x44   :  { %6876 = vmatmul.mubr.bf16.vlgmr.msra.gmra.mrb[4].mxu1 %v8426_v3 }
  0x45   :  { %6880 = vmatpush3.bf16.msra.mxu1 %v8519_v9  ;;  %6895 = vmatprep.mubr.msk.bf16.mxu1 %vm8427_vm0, %v8425_v2 }
  0x46   :  { %6881 = vmatprep.subr.bf16.mxu1 %v8425_v2 }
  0x49   :  { %6882 = vmatpush3.bf16.msra.mxu1 %v8532_v12 }
  0x4a   :  { %6883 = vmatprep.subr.bf16.mxu1 %v8425_v2 }
  0x4d   :  { %6884 = vmatpush3.bf16.msra.mxu1 %v8541_v14 }
  0x4e   :  { %6885 = vmatprep.subr.bf16.mxu1 %v8425_v2 }
  0x51   :  { %6886 = vmatpush3.bf16.msra.mxu1 %v8557_v18 }
  0x52   :  { %6887 = vmatprep.subr.bf16.mxu1 %v8425_v2 }
  0x55   :  { %6888 = vmatpush3.bf16.msra.mxu1 %v8576_v23 }
  0x56   :  { %6889 = vmatprep.subr.bf16.mxu1 %v8425_v2 }
  0x59   :  { %6890 = vmatpush3.bf16.msra.mxu1 %v8588_v26 }
  0x5a   :  { %6891 = vmatprep.subr.bf16.mxu1 %v8425_v2 }
  0x5d   :  { %6892 = vmatpush3.bf16.msra.mxu1 %v8598_v28 }
  0x5e   :  { %6893 = vmatprep.subr.bf16.mxu1 %v8425_v2 }
  0x5f   :  { %16 = vsyncpa [#allocation3], 0  ;;  %6854 = vmatpush3.bf16.msra.mxu0 %v7852_v54  ;;  %v8729_v55 = vld [vmem:[%s11349_s5 + $0x4] ss:$12 sps:$4 sm:$0xff]   ;;  %v313_v56 = vlaneseq  ;;  %v40_v59 = vld [vmem:[%s11347_s3] sm:$0x7] }
  0x60   :  { %565 = vmatprep.subr.bf16.mxu0 %v8729_v55  ;;  %v41_v61 = vld [vmem:[%s11348_s4] sm:$0x7]  ;;  %v8777_v42 = vld [vmem:[%s11349_s5 + $0x1c] ss:$12 sps:$4 sm:$0xff]   ;;  %v8786_v43 = vld [vmem:[%s11349_s5 + $0x18] ss:$12 sps:$4 sm:$0xff]  }
  0x61   :  { %6894 = vmatpush3.bf16.msra.mxu1 %v8609_v30  ;;  %v314_v57 = vshrl.u32 %v313_v56, 7  ;;  %v8756_v25 = vld [vmem:[%s11350_s6] ss:$0 sm:$0xff]  ;;  %v8800_v45 = vld [vmem:[%s11349_s5 + $0x30] ss:$12 sps:$4 sm:$0xff]   ;;  %vm5696_vm1 = vcmask 195584  }
  0x62   :  { %787 = vmatprep.subr.bf16.mxu1 %v8729_v55  ;;  %v8770_v41 = vld [vmem:[%s11349_s5] ss:$12 sps:$4 sm:$0xff]   ;;  %v8814_v47 = vld [vmem:[%s11349_s5 + $0x48] ss:$12 sps:$4 sm:$0xff]   ;;  %v8820_v48 = vld [vmem:[%s11349_s5 + $0x64] ss:$12 sps:$4 sm:$0xff]  }
  0x63   :  { %v315_v58 = vsub.s32 0, %v314_v57  ;;  %v319_v63 = vsub.s32 1, %v314_v57  ;;  %v323_v23 = vsub.s32 2, %v314_v57  ;;  %v8792_v44 = vld [vmem:[%s11349_s5 + $0x34] ss:$12 sps:$4 sm:$0xff]  }
  0x64   :  { %v8806_v46 = vld [vmem:[%s11349_s5 + $0x4c] ss:$12 sps:$4 sm:$0xff]   ;;  %v8834_v50 = vld [vmem:[%s11349_s5 + $0x7c] ss:$12 sps:$4 sm:$0xff]   ;;  %v8848_v52 = vld [vmem:[%s11349_s5 + $0x94] ss:$12 sps:$4 sm:$0xff]  }
  0x65   :  { %v8736_v60 = vrot.slane %v40_v59, %v315_v58  ;;  %v8742_v1 = vrot.slane %v41_v61, %v315_v58  ;;  %v8744_v4 = vrot.slane %v40_v59, %v319_v63  ;;  %v8748_v10 = vrot.slane %v41_v61, %v319_v63  ;;  %v8828_v49 = vld [vmem:[%s11349_s5 + $0x60] ss:$12 sps:$4 sm:$0xff]   ;;  %v8842_v51 = vld [vmem:[%s11349_s5 + $0x78] ss:$12 sps:$4 sm:$0xff]   ;;  %v8856_v53 = vld [vmem:[%s11349_s5 + $0x90] ss:$12 sps:$4 sm:$0xff]  }
  0x66   :  { %v8751_v24 = vrot.slane %v40_v59, %v323_v23  ;;  %v8759_v27 = vrot.slane %v41_v61, %v323_v23  ;;  %v8862_v54 = vld [vmem:[%s11349_s5 + $0xac] ss:$12 sps:$4 sm:$0xff]   ;;  %v8870_v56 = vld [vmem:[%s11349_s5 + $0xa8] ss:$12 sps:$4 sm:$0xff]  }
  0x67   :  { %v7854_v63 = vld [vmem:[%s11351_s7 + $0x88] sm:$0xff]  }
  0x86   :  { %v310_v62 = vpop.permute.xlu0 %309 }
  0x87   :  { %v328_v0 = vmul.f32 %v8736_v60, %v310_v62  ;;  %v329_v7 = vmul.f32 %v8744_v4, %v310_v62  ;;  %v330_v26 = vmul.f32 %v8751_v24, %v310_v62  ;;  %v7853_v62 = vld [vmem:[%s11351_s7 + $0x80] sm:$0xff]  }
  0x89   :  { %v347_v5 = vadd.f32 %v8742_v1, %v328_v0  ;;  %v348_v14 = vadd.f32 %v8748_v10, %v329_v7  ;;  %v349_v31 = vadd.f32 %v8759_v27, %v330_v26  ;;  %v7855_v0 = vld [vmem:[%s11351_s7 + $0x90] sm:$0xff]   ;;  %v7858_v7 = vld [vmem:[%s11351_s7 + $0xa8] sm:$0xff]  }
  0xf5   :  { %v259_v6 = vpop.f32.mrb[0].mxu0 }
  0xf6   :  { %v350_v8 = vadd.f32 %v347_v5, %v259_v6  ;;  %v261_v9 = vpop.f32.mrb[1].mxu0  ;;  %v7856_v5 = vld [vmem:[%s11351_s7 + $0x98] sm:$0xff]   ;;  %v7857_v6 = vld [vmem:[%s11351_s7 + $0xa0] sm:$0xff]  }
  0xf7   :  { %v263_v11 = vpop.f32.mrb[2].mxu0  ;;  %v300_v15 = vpop.f32.mrb[0].mxu1  ;;  %v351_v16 = vadd.f32 %v348_v14, %v261_v9  ;;  %v7860_v9 = vld [vmem:[%s11351_s7 + $0xb8] sm:$0xff]  }
  0xf8   :  { %v5737_v12 = vmul.f32 -1.442695, %v350_v8  ;;  %v264_v13 = vpop.f32.mrb[3].mxu0  ;;  %v6837_v17 = vpop.f32.mrb[1].mxu1  ;;  %v364_v28 = vadd.f32 %v8756_v25, %v300_v15  ;;  %v7859_v8 = vld [vmem:[%s11351_s7 + $0xb0] sm:$0xff]   ;;  %v5933_v14 = vld [vmem:[%s11344_s0 + $0x38] sm:$0xff] }
  0xf9   :  { %v303_v18 = vpop.f32.mrb[2].mxu1  ;;  %v5738_v20 = vmul.f32 -1.442695, %v351_v16  ;;  %v5798_v11 = vld [vmem:[%s11344_s0 + $0x10] sm:$0xff]  ;;  %v5879_v13 = vld [vmem:[%s11344_s0 + $0x28] sm:$0xff] }
  0xfa   :  { %8037 = vpow2.f32 %v5737_v12  ;;  %v6838_v19 = vpop.f32.mrb[3].mxu1  ;;  %872 = vperm.xlu1 %7804, %v5798_v11   ;;  %v5825_v12 = vld [vmem:[%s11344_s0 + $0x18] sm:$0xff] }
  0xfb   :  { %8039 = vpow2.f32 %v5738_v20 }
  0xfe   :  { %1094 = vperm.xlu1 %7804, %v5825_v12  }
 0x102   :  { %1538 = vperm.xlu1 %7804, %v5879_v13  }
 0x104   :  { %v8038_v21 = vpop.eup %8037 }
 0x105   :  { %v358_v22 = vadd.f32 1.0, %v8038_v21  ;;  %v8040_v29 = vpop.eup %8039 }
 0x106   :  { %v359_v33 = vadd.f32 1.0, %v8040_v29  ;;  %1982 = vperm.xlu1 %7804, %v5933_v14   ;;  %v6095_v29 = vld [vmem:[%s11344_s0 + $0x68] sm:$0xff] }
 0x107   :  { %8041 = vrcp.f32 %v358_v22  ;;  %v5987_v22 = vld [vmem:[%s11344_s0 + $0x48] sm:$0xff] }
 0x10a   :  { %2426 = vperm.xlu1 %7804, %v5987_v22  }
 0x111   :  { %v8042_v30 = vpop.eup %8041 }
 0x112   :  { %v365_v32 = vmul.f32 %v8042_v30, %v364_v28  ;;  %v6041_v28 = vld [vmem:[%s11344_s0 + $0x58] sm:$0xff] }
 0x113   :  { %2870 = vperm.xlu1 %7804, %v6041_v28   ;;  %v6149_v30 = vld [vmem:[%s11344_s0 + $0x78] sm:$0xff] }
 0x114   :  { %v366_v34 = vadd.f32 %v365_v32, %v349_v31  ;;  %v6203_v31 = vld [vmem:[%s11344_s0 + $0x88] sm:$0xff]  ;;  %v6257_v32 = vld [vmem:[%s11344_s0 + $0x98] sm:$0xff] }
 0x115   :  { %v8981_v28 = vld [vmem:[%s11349_s5 + $0x38] ss:$12 sps:$4 sm:$0xff]  }
 0x116   :  { %8043 = vtanh.f32 %v366_v34  ;;  %v6311_v34 = vld [vmem:[%s11344_s0 + $0xa8] sm:$0xff] }
 0x117   :  { %8045 = vrcp.f32 %v359_v33  ;;  %v559_v57 = vpop.f32.mrb[4].mxu1  ;;  %3314 = vperm.xlu1 %7804, %v6095_v29   ;;  %v651_v33 = vpop.permute.xlu0 %650  ;;  %v8988_v29 = vld [vmem:[%s11349_s5 + $0x50] ss:$12 sps:$4 sm:$0xff]  }
 0x118   :  { %v6877_v58 = vpop.f32.mrb[5].mxu1 }
 0x119   :  { %v562_v59 = vpop.f32.mrb[6].mxu1 }
 0x11a   :  { %v6878_v61 = vpop.f32.mrb[7].mxu1  ;;  %v654_v59 = vmul.f32 %v651_v33, %v8744_v4 }
 0x11b   :  { %3758 = vperm.xlu1 %7804, %v6149_v30   ;;  %v8995_v30 = vld [vmem:[%s11349_s5 + $0x68] ss:$12 sps:$4 sm:$0xff]  }
 0x11f   :  { %4202 = vperm.xlu1 %7804, %v6203_v31   ;;  %v9002_v31 = vld [vmem:[%s11349_s5 + $0x80] ss:$12 sps:$4 sm:$0xff]  }
 0x120   :  { %v8044_v35 = vpop.eup %8043 }
 0x121   :  { %v368_v36 = vsub.f32 0.0, %v8044_v35  ;;  %v8046_v37 = vpop.eup %8045 }
 0x123   :  { %v369_v38 = vmul.f32 %v8046_v37, %v368_v36  ;;  %4646 = vperm.xlu1 %7804, %v6257_v32   ;;  %v6365_v36 = vld [vmem:[%s11344_s0 + $0xb8] sm:$0xff] }
 0x124   :  { %v9009_v32 = vld [vmem:[%s11349_s5 + $0x98] ss:$12 sps:$4 sm:$0xff]  }
 0x125   :  { %v8763_v39 = vadd.f32 %v8044_v35, %v369_v38  ;;  %v653_v35 = vmul.f32 %v651_v33, %v8736_v60 }
 0x127   :  { %v371_v40 = vpack.c.bf16 %v8763_v39, %v8763_v39  ;;  %5090 = vperm.xlu1 %7804, %v6311_v34   ;;  %v656_v37 = vadd.f32 %v653_v35, %v8742_v1  ;;  %v7861_v34 = vld [vmem:[%s11351_s7 + $0xc0] sm:$0xff]   ;;  %v7862_v35 = vld [vmem:[%s11351_s7 + $0xc8] sm:$0xff]  }
 0x129   :  { %6856 = vmatmul.mubr.bf16.vlgmr.msra.gmra.mrb[4].mxu0 %v371_v40  ;;  %6896 = vmatmul.mubr.bf16.vlgmr.msra.gmra.mrb[8].mxu1 %v371_v40 }
 0x12a   :  { %566 = vmatpush1.bf16.msra.mxu0 %v8770_v41  ;;  %597 = vmatprep.mubr.bf16.mxu0 %v8426_v3 }
 0x12b   :  { %567 = vmatprep.subr.bf16.mxu0 %v8777_v42  ;;  %788 = vmatpush1.bf16.msra.mxu1 %v8770_v41 }
 0x12c   :  { %789 = vmatprep.subr.bf16.mxu1 %v8777_v42  ;;  %819 = vmatprep.mubr.bf16.mxu1 %v8426_v3 }
 0x12d   :  { %5534 = vperm.xlu1 %7804, %v6365_v36   ;;  %v7863_v36 = vld [vmem:[%s11351_s7 + $0xd0] sm:$0xff]  }
 0x12e   :  { %568 = vmatpush1.bf16.msra.mxu0 %v8786_v43 }
 0x12f   :  { %569 = vmatprep.subr.bf16.mxu0 %v8792_v44  ;;  %790 = vmatpush1.bf16.msra.mxu1 %v8786_v43 }
 0x130   :  { %791 = vmatprep.subr.bf16.mxu1 %v8792_v44 }
 0x132   :  { %570 = vmatpush1.bf16.msra.mxu0 %v8800_v45 }
 0x133   :  { %571 = vmatprep.subr.bf16.mxu0 %v8806_v46  ;;  %792 = vmatpush1.bf16.msra.mxu1 %v8800_v45 }
 0x134   :  { %793 = vmatprep.subr.bf16.mxu1 %v8806_v46 }
 0x136   :  { %572 = vmatpush1.bf16.msra.mxu0 %v8814_v47 }
 0x137   :  { %573 = vmatprep.subr.bf16.mxu0 %v8820_v48  ;;  %794 = vmatpush1.bf16.msra.mxu1 %v8814_v47 }
 0x138   :  { %795 = vmatprep.subr.bf16.mxu1 %v8820_v48 }
 0x13a   :  { %574 = vmatpush1.bf16.msra.mxu0 %v8828_v49 }
 0x13b   :  { %575 = vmatprep.subr.bf16.mxu0 %v8834_v50  ;;  %796 = vmatpush1.bf16.msra.mxu1 %v8828_v49 }
 0x13c   :  { %797 = vmatprep.subr.bf16.mxu1 %v8834_v50 }
 0x13e   :  { %576 = vmatpush1.bf16.msra.mxu0 %v8842_v51 }
 0x13f   :  { %577 = vmatprep.subr.bf16.mxu0 %v8848_v52  ;;  %798 = vmatpush1.bf16.msra.mxu1 %v8842_v51 }
 0x140   :  { %799 = vmatprep.subr.bf16.mxu1 %v8848_v52 }
 0x142   :  { %578 = vmatpush1.bf16.msra.mxu0 %v8856_v53 }
 0x143   :  { %579 = vmatprep.subr.bf16.mxu0 %v8862_v54  ;;  %800 = vmatpush1.bf16.msra.mxu1 %v8856_v53 }
 0x144   :  { %801 = vmatprep.subr.bf16.mxu1 %v8862_v54 }
 0x146   :  { %580 = vmatpush1.bf16.msra.mxu0 %v8870_v56 }
 0x147   :  { %6899 = vmatprep.subr.bf16.mxu0 %v8425_v2  ;;  %802 = vmatpush1.bf16.msra.mxu1 %v8870_v56 }
 0x148   :  { %6939 = vmatprep.subr.bf16.mxu1 %v8425_v2 }
 0x149   :  { %598 = vmatmul.mubr.bf16.vlgmr.msra.gmra.mrb[8].mxu0 %v371_v40 }
 0x14a   :  { %6915 = vmatprep.mubr.msk.bf16.mxu0 %vm8427_vm0, %v8425_v2  ;;  %6900 = vmatpush3.bf16.msra.mxu0 %v7853_v62 }
 0x14b   :  { %6901 = vmatprep.subr.bf16.mxu0 %v8425_v2 }
 0x14e   :  { %6902 = vmatpush3.bf16.msra.mxu0 %v7854_v63  ;;  %v657_v63 = vadd.f32 %v654_v59, %v8748_v10 }
 0x14f   :  { %6903 = vmatprep.subr.bf16.mxu0 %v8425_v2 }
 0x152   :  { %6904 = vmatpush3.bf16.msra.mxu0 %v7855_v0 }
 0x153   :  { %6905 = vmatprep.subr.bf16.mxu0 %v8425_v2 }
 0x156   :  { %6906 = vmatpush3.bf16.msra.mxu0 %v7856_v5 }
 0x157   :  { %6907 = vmatprep.subr.bf16.mxu0 %v8425_v2 }
 0x15a   :  { %6908 = vmatpush3.bf16.msra.mxu0 %v7857_v6 }
 0x15b   :  { %6909 = vmatprep.subr.bf16.mxu0 %v8425_v2 }
 0x15e   :  { %6910 = vmatpush3.bf16.msra.mxu0 %v7858_v7 }
 0x15f   :  { %6911 = vmatprep.subr.bf16.mxu0 %v8425_v2 }
 0x162   :  { %6912 = vmatpush3.bf16.msra.mxu0 %v7859_v8  ;;  %v655_v8 = vmul.f32 %v651_v33, %v8751_v24  ;;  %v9016_v33 = vld [vmem:[%s11349_s5 + $0xb0] ss:$12 sps:$4 sm:$0xff]  }
 0x163   :  { %6913 = vmatprep.subr.bf16.mxu0 %v8425_v2 }
 0x164   :  { %v658_v13 = vadd.f32 %v655_v8, %v8759_v27 }
 0x166   :  { %6914 = vmatpush3.bf16.msra.mxu0 %v7860_v9 }
 0x167   :  { %6919 = vmatprep.subr.bf16.mxu0 %v8425_v2 }
 0x179   :  { %v873_v59 = vpop.permute.xlu1 %872 }
 0x1fc   :  { %v471_v15 = vpop.f32.mrb[4].mxu0  ;;  %v640_v16 = vpop.f32.mrb[8].mxu1 }
 0x1fd   :  { %v8922_v17 = vadd.f32 %v559_v57, %v471_v15  ;;  %v6857_v18 = vpop.f32.mrb[5].mxu0  ;;  %v6897_v19 = vpop.f32.mrb[9].mxu1  ;;  %v673_v11 = vadd.f32 %v8756_v25, %v640_v16  ;;  %v8963_v16 = vld [vmem:[%s11349_s5 + $0x8] ss:$12 sps:$4 sm:$0xff]  }
 0x1fe   :  { %v474_v20 = vpop.f32.mrb[6].mxu0  ;;  %v643_v21 = vpop.f32.mrb[10].mxu1 }
 0x1ff   :  { %v6858_v23 = vpop.f32.mrb[7].mxu0  ;;  %v6898_v26 = vpop.f32.mrb[11].mxu1 }
 0x21c   :  { %v599_v38 = vpop.f32.mrb[8].mxu0 }
 0x21d   :  { %v659_v40 = vadd.f32 %v656_v37, %v599_v38  ;;  %v601_v57 = vpop.f32.mrb[9].mxu0  ;;  %v7864_v37 = vld [vmem:[%s11351_s7 + $0xd8] sm:$0xff]   ;;  %v7865_v38 = vld [vmem:[%s11351_s7 + $0xe0] sm:$0xff]  }
 0x21e   :  { %v603_v58 = vpop.f32.mrb[10].mxu0  ;;  %v660_v0 = vadd.f32 %v657_v63, %v601_v57  ;;  %v7867_v57 = vld [vmem:[%s11351_s7 + $0xf0] sm:$0xff]  }
 0x21f   :  { %v5772_v61 = vmul.f32 -1.442695, %v659_v40  ;;  %v604_v62 = vpop.f32.mrb[11].mxu0  ;;  %v7866_v40 = vld [vmem:[%s11351_s7 + $0xe8] sm:$0xff]   ;;  %v7868_v58 = vld [vmem:[%s11351_s7 + $0xf8] sm:$0xff]  }
 0x220   :  { %v5773_v5 = vmul.f32 -1.442695, %v660_v0 }
 0x221   :  { %8047 = vpow2.f32 %v5772_v61  ;;  %v875_v61 = vmul.f32 %v873_v59, %v8736_v60 }
 0x222   :  { %8049 = vpow2.f32 %v5773_v5 }
 0x223   :  { %v878_v62 = vadd.f32 %v875_v61, %v8742_v1 }
 0x22b   :  { %v8048_v6 = vpop.eup %8047 }
 0x22c   :  { %v667_v7 = vadd.f32 1.0, %v8048_v6  ;;  %v8050_v9 = vpop.eup %8049 }
 0x22d   :  { %v668_v18 = vadd.f32 1.0, %v8050_v9 }
 0x22e   :  { %8051 = vrcp.f32 %v667_v7 }
 0x238   :  { %v8052_v12 = vpop.eup %8051 }
 0x239   :  { %v674_v14 = vmul.f32 %v8052_v12, %v673_v11 }
 0x23b   :  { %v675_v15 = vadd.f32 %v674_v14, %v658_v13 }
 0x23d   :  { %8053 = vtanh.f32 %v675_v15  ;;  %v876_v15 = vmul.f32 %v873_v59, %v8744_v4 }
 0x23e   :  { %8055 = vrcp.f32 %v668_v18 }
 0x23f   :  { %v879_v18 = vadd.f32 %v876_v15, %v8748_v10  ;;  %v7875_v15 = vld [vmem:[%s11351_s7 + $0x130] sm:$0xff]  }
 0x247   :  { %v8054_v19 = vpop.eup %8053 }
 0x248   :  { %v677_v20 = vsub.f32 %v8763_v39, %v8054_v19  ;;  %v8056_v21 = vpop.eup %8055  ;;  %v8974_v39 = vld [vmem:[%s11349_s5 + $0x20] ss:$12 sps:$4 sm:$0xff]  }
 0x24a   :  { %v678_v22 = vmul.f32 %v8056_v21, %v677_v20 }
 0x24c   :  { %v8956_v23 = vadd.f32 %v8054_v19, %v678_v22 }
 0x24e   :  { %v680_v26 = vpack.c.bf16 %v8956_v23, %v8956_v23 }
 0x250   :  { %6916 = vmatmul.mubr.bf16.vlgmr.msra.gmra.mrb[12].mxu0 %v680_v26  ;;  %820 = vmatmul.mubr.bf16.vlgmr.msra.gmra.mrb[12].mxu1 %v680_v26 }
 0x251   :  { %6920 = vmatpush3.bf16.msra.mxu0 %v8963_v16  ;;  %6935 = vmatprep.mubr.msk.bf16.mxu0 %vm8427_vm0, %v8425_v2 }
 0x252   :  { %6921 = vmatprep.subr.bf16.mxu0 %v8425_v2  ;;  %6955 = vmatprep.mubr.msk.bf16.mxu1 %vm8427_vm0, %v8425_v2 }
 0x253   :  { %6940 = vmatpush3.bf16.msra.mxu1 %v7861_v34 }
 0x254   :  { %6941 = vmatprep.subr.bf16.mxu1 %v8425_v2 }
 0x255   :  { %6922 = vmatpush3.bf16.msra.mxu0 %v8974_v39 }
 0x256   :  { %6923 = vmatprep.subr.bf16.mxu0 %v8425_v2 }
 0x257   :  { %6942 = vmatpush3.bf16.msra.mxu1 %v7862_v35 }
 0x258   :  { %6943 = vmatprep.subr.bf16.mxu1 %v8425_v2 }
 0x259   :  { %6924 = vmatpush3.bf16.msra.mxu0 %v8981_v28 }
 0x25a   :  { %6925 = vmatprep.subr.bf16.mxu0 %v8425_v2 }
 0x25b   :  { %6944 = vmatpush3.bf16.msra.mxu1 %v7863_v36 }
 0x25c   :  { %6945 = vmatprep.subr.bf16.mxu1 %v8425_v2 }
 0x25d   :  { %6926 = vmatpush3.bf16.msra.mxu0 %v8988_v29 }
 0x25e   :  { %6927 = vmatprep.subr.bf16.mxu0 %v8425_v2 }
 0x25f   :  { %6946 = vmatpush3.bf16.msra.mxu1 %v7864_v37 }
 0x260   :  { %6947 = vmatprep.subr.bf16.mxu1 %v8425_v2 }
 0x261   :  { %6928 = vmatpush3.bf16.msra.mxu0 %v8995_v30 }
 0x262   :  { %6929 = vmatprep.subr.bf16.mxu0 %v8425_v2 }
 0x263   :  { %6948 = vmatpush3.bf16.msra.mxu1 %v7865_v38 }
 0x264   :  { %6949 = vmatprep.subr.bf16.mxu1 %v8425_v2 }
 0x265   :  { %6930 = vmatpush3.bf16.msra.mxu0 %v9002_v31 }
 0x266   :  { %6931 = vmatprep.subr.bf16.mxu0 %v8425_v2 }
 0x267   :  { %6950 = vmatpush3.bf16.msra.mxu1 %v7866_v40 }
 0x268   :  { %6951 = vmatprep.subr.bf16.mxu1 %v8425_v2 }
 0x269   :  { %6932 = vmatpush3.bf16.msra.mxu0 %v9009_v32 }
 0x26a   :  { %6933 = vmatprep.subr.bf16.mxu0 %v8425_v2 }
 0x26b   :  { %6952 = vmatpush3.bf16.msra.mxu1 %v7867_v57 }
 0x26c   :  { %6953 = vmatprep.subr.bf16.mxu1 %v8425_v2 }
 0x26d   :  { %6934 = vmatpush3.bf16.msra.mxu0 %v9016_v33 }
 0x26e   :  { %1009 = vmatprep.subr.bf16.mxu0 %v8729_v55 }
 0x26f   :  { %6954 = vmatpush3.bf16.msra.mxu1 %v7868_v58 }
 0x270   :  { %6936 = vmatmul.mubr.bf16.vlgmr.msra.gmra.mrb[16].mxu0 %v680_v26  ;;  %6959 = vmatprep.subr.bf16.mxu1 %v8425_v2 }
 0x271   :  { %1010 = vmatpush1.bf16.msra.mxu0 %v8770_v41  ;;  %1041 = vmatprep.mubr.bf16.mxu0 %v8426_v3 }
 0x272   :  { %1011 = vmatprep.subr.bf16.mxu0 %v8777_v42 }
 0x275   :  { %1012 = vmatpush1.bf16.msra.mxu0 %v8786_v43 }
 0x276   :  { %1013 = vmatprep.subr.bf16.mxu0 %v8792_v44 }
 0x279   :  { %1014 = vmatpush1.bf16.msra.mxu0 %v8800_v45 }
 0x27a   :  { %1015 = vmatprep.subr.bf16.mxu0 %v8806_v46 }
 0x27d   :  { %1016 = vmatpush1.bf16.msra.mxu0 %v8814_v47 }
 0x27e   :  { %1017 = vmatprep.subr.bf16.mxu0 %v8820_v48 }
 0x281   :  { %1018 = vmatpush1.bf16.msra.mxu0 %v8828_v49 }
 0x282   :  { %1019 = vmatprep.subr.bf16.mxu0 %v8834_v50 }
 0x285   :  { %1020 = vmatpush1.bf16.msra.mxu0 %v8842_v51 }
 0x286   :  { %1021 = vmatprep.subr.bf16.mxu0 %v8848_v52 }
 0x289   :  { %1022 = vmatpush1.bf16.msra.mxu0 %v8856_v53 }
 0x28a   :  { %1023 = vmatprep.subr.bf16.mxu0 %v8862_v54 }
 0x28d   :  { %1024 = vmatpush1.bf16.msra.mxu0 %v8870_v56 }
 0x28e   :  { %6979 = vmatprep.subr.bf16.mxu0 %v8425_v2 }
 0x323   :  { %v780_v63 = vpop.f32.mrb[12].mxu0  ;;  %v821_v0 = vpop.f32.mrb[12].mxu1 }
 0x324   :  { %v9072_v5 = vadd.f32 %v780_v63, %v8922_v17  ;;  %v881_v6 = vadd.f32 %v878_v62, %v821_v0  ;;  %v6917_v7 = vpop.f32.mrb[13].mxu0  ;;  %v823_v8 = vpop.f32.mrb[13].mxu1  ;;  %v877_v17 = vmul.f32 %v873_v59, %v8751_v24 }
 0x325   :  { %v783_v9 = vpop.f32.mrb[14].mxu0  ;;  %v825_v11 = vpop.f32.mrb[14].mxu1  ;;  %v882_v19 = vadd.f32 %v879_v18, %v823_v8  ;;  %v7876_v18 = vld [vmem:[%s11351_s7 + $0x138] sm:$0xff]  }
 0x326   :  { %v5799_v12 = vmul.f32 -1.442695, %v881_v6  ;;  %v6918_v13 = vpop.f32.mrb[15].mxu0  ;;  %v826_v14 = vpop.f32.mrb[15].mxu1  ;;  %v880_v40 = vadd.f32 %v877_v17, %v8759_v27  ;;  %v7870_v9 = vld [vmem:[%s11351_s7 + $0x108] sm:$0xff]   ;;  %v7871_v11 = vld [vmem:[%s11351_s7 + $0x110] sm:$0xff]  }
 0x327   :  { %v5800_v21 = vmul.f32 -1.442695, %v882_v19  ;;  %v7873_v13 = vld [vmem:[%s11351_s7 + $0x120] sm:$0xff]   ;;  %v7874_v14 = vld [vmem:[%s11351_s7 + $0x128] sm:$0xff]   ;;  %v1095_v19 = vpop.permute.xlu1 %1094 }
 0x328   :  { %8057 = vpow2.f32 %v5799_v12  ;;  %v7872_v12 = vld [vmem:[%s11351_s7 + $0x118] sm:$0xff]  }
 0x329   :  { %8059 = vpow2.f32 %v5800_v21 }
 0x332   :  { %v8058_v20 = vpop.eup %8057 }
 0x333   :  { %v889_v22 = vadd.f32 1.0, %v8058_v20  ;;  %v8060_v34 = vpop.eup %8059  ;;  %v1097_v20 = vmul.f32 %v1095_v19, %v8736_v60 }
 0x334   :  { %v890_v61 = vadd.f32 1.0, %v8060_v34 }
 0x335   :  { %8061 = vrcp.f32 %v889_v22  ;;  %v1100_v21 = vadd.f32 %v1097_v20, %v8742_v1 }
 0x33f   :  { %v8062_v37 = vpop.eup %8061 }
 0x343   :  { %v862_v26 = vpop.f32.mrb[16].mxu0 }
 0x344   :  { %v895_v35 = vadd.f32 %v8756_v25, %v862_v26  ;;  %v6937_v36 = vpop.f32.mrb[17].mxu0 }
 0x345   :  { %v865_v38 = vpop.f32.mrb[18].mxu0 }
 0x346   :  { %v896_v57 = vmul.f32 %v8062_v37, %v895_v35  ;;  %v6938_v58 = vpop.f32.mrb[19].mxu0 }
 0x348   :  { %v897_v62 = vadd.f32 %v896_v57, %v880_v40 }
 0x34a   :  { %8063 = vtanh.f32 %v897_v62 }
 0x34b   :  { %8065 = vrcp.f32 %v890_v61  ;;  %v1098_v61 = vmul.f32 %v1095_v19, %v8744_v4 }
 0x34d   :  { %v1101_v62 = vadd.f32 %v1098_v61, %v8748_v10  ;;  %v7884_v61 = vld [vmem:[%s11351_s7 + $0x178] sm:$0xff]  }
 0x354   :  { %v8064_v63 = vpop.eup %8063 }
 0x355   :  { %v899_v0 = vsub.f32 %v8956_v23, %v8064_v63  ;;  %v8066_v6 = vpop.eup %8065  ;;  %v7869_v23 = vld [vmem:[%s11351_s7 + $0x100] sm:$0xff]  }
 0x357   :  { %v900_v59 = vmul.f32 %v8066_v6, %v899_v0 }
 0x359   :  { %v9080_v7 = vadd.f32 %v8064_v63, %v900_v59 }
 0x35b   :  { %v902_v8 = vpack.c.bf16 %v9080_v7, %v9080_v7 }
 0x35d   :  { %6956 = vmatmul.mubr.bf16.vlgmr.msra.gmra.mrb[16].mxu1 %v902_v8  ;;  %1042 = vmatmul.mubr.bf16.vlgmr.msra.gmra.mrb[20].mxu0 %v902_v8 }
 0x35e   :  { %6960 = vmatpush3.bf16.msra.mxu1 %v8963_v16  ;;  %6975 = vmatprep.mubr.msk.bf16.mxu1 %vm8427_vm0, %v8425_v2 }
 0x35f   :  { %6961 = vmatprep.subr.bf16.mxu1 %v8425_v2  ;;  %6995 = vmatprep.mubr.msk.bf16.mxu0 %vm8427_vm0, %v8425_v2 }
 0x360   :  { %6980 = vmatpush3.bf16.msra.mxu0 %v7869_v23 }
 0x361   :  { %6981 = vmatprep.subr.bf16.mxu0 %v8425_v2 }
 0x362   :  { %6962 = vmatpush3.bf16.msra.mxu1 %v8974_v39 }
 0x363   :  { %6963 = vmatprep.subr.bf16.mxu1 %v8425_v2 }
 0x364   :  { %6982 = vmatpush3.bf16.msra.mxu0 %v7870_v9 }
 0x365   :  { %6983 = vmatprep.subr.bf16.mxu0 %v8425_v2 }
 0x366   :  { %6964 = vmatpush3.bf16.msra.mxu1 %v8981_v28 }
 0x367   :  { %6965 = vmatprep.subr.bf16.mxu1 %v8425_v2 }
 0x368   :  { %6984 = vmatpush3.bf16.msra.mxu0 %v7871_v11 }
 0x369   :  { %6985 = vmatprep.subr.bf16.mxu0 %v8425_v2 }
 0x36a   :  { %6966 = vmatpush3.bf16.msra.mxu1 %v8988_v29 }
 0x36b   :  { %6967 = vmatprep.subr.bf16.mxu1 %v8425_v2 }
 0x36c   :  { %6986 = vmatpush3.bf16.msra.mxu0 %v7872_v12 }
 0x36d   :  { %6987 = vmatprep.subr.bf16.mxu0 %v8425_v2 }
 0x36e   :  { %6968 = vmatpush3.bf16.msra.mxu1 %v8995_v30 }
 0x36f   :  { %6969 = vmatprep.subr.bf16.mxu1 %v8425_v2 }
 0x370   :  { %6988 = vmatpush3.bf16.msra.mxu0 %v7873_v13 }
 0x371   :  { %6989 = vmatprep.subr.bf16.mxu0 %v8425_v2 }
 0x372   :  { %6970 = vmatpush3.bf16.msra.mxu1 %v9002_v31 }
 0x373   :  { %6971 = vmatprep.subr.bf16.mxu1 %v8425_v2 }
 0x374   :  { %6990 = vmatpush3.bf16.msra.mxu0 %v7874_v14 }
 0x375   :  { %6991 = vmatprep.subr.bf16.mxu0 %v8425_v2 }
 0x376   :  { %6972 = vmatpush3.bf16.msra.mxu1 %v9009_v32 }
 0x377   :  { %6973 = vmatprep.subr.bf16.mxu1 %v8425_v2 }
 0x378   :  { %6992 = vmatpush3.bf16.msra.mxu0 %v7875_v15 }
 0x379   :  { %6993 = vmatprep.subr.bf16.mxu0 %v8425_v2 }
 0x37a   :  { %6974 = vmatpush3.bf16.msra.mxu1 %v9016_v33 }
 0x37b   :  { %1231 = vmatprep.subr.bf16.mxu1 %v8729_v55 }
 0x37c   :  { %6994 = vmatpush3.bf16.msra.mxu0 %v7876_v18 }
 0x37d   :  { %6976 = vmatmul.mubr.bf16.vlgmr.msra.gmra.mrb[20].mxu1 %v902_v8  ;;  %6999 = vmatprep.subr.bf16.mxu0 %v8425_v2 }
 0x37e   :  { %1232 = vmatpush1.bf16.msra.mxu1 %v8770_v41  ;;  %1263 = vmatprep.mubr.bf16.mxu1 %v8426_v3 }
 0x37f   :  { %1233 = vmatprep.subr.bf16.mxu1 %v8777_v42 }
 0x382   :  { %1234 = vmatpush1.bf16.msra.mxu1 %v8786_v43 }
 0x383   :  { %1235 = vmatprep.subr.bf16.mxu1 %v8792_v44 }
 0x386   :  { %1236 = vmatpush1.bf16.msra.mxu1 %v8800_v45 }
 0x387   :  { %1237 = vmatprep.subr.bf16.mxu1 %v8806_v46 }
 0x38a   :  { %1238 = vmatpush1.bf16.msra.mxu1 %v8814_v47 }
 0x38b   :  { %1239 = vmatprep.subr.bf16.mxu1 %v8820_v48 }
 0x38e   :  { %1240 = vmatpush1.bf16.msra.mxu1 %v8828_v49 }
 0x38f   :  { %1241 = vmatprep.subr.bf16.mxu1 %v8834_v50 }
 0x392   :  { %1242 = vmatpush1.bf16.msra.mxu1 %v8842_v51 }
 0x393   :  { %1243 = vmatprep.subr.bf16.mxu1 %v8848_v52 }
 0x396   :  { %1244 = vmatpush1.bf16.msra.mxu1 %v8856_v53 }
 0x397   :  { %1245 = vmatprep.subr.bf16.mxu1 %v8862_v54 }
 0x39a   :  { %1246 = vmatpush1.bf16.msra.mxu1 %v8870_v56 }
 0x39b   :  { %7019 = vmatprep.subr.bf16.mxu1 %v8425_v2 }
 0x430   :  { %v1002_v22 = vpop.f32.mrb[16].mxu1  ;;  %v1043_v17 = vpop.f32.mrb[20].mxu0 }
 0x431   :  { %v9156_v26 = vadd.f32 %v1002_v22, %v9072_v5  ;;  %v1103_v34 = vadd.f32 %v1100_v21, %v1043_v17  ;;  %v6957_v35 = vpop.f32.mrb[17].mxu1  ;;  %v1045_v36 = vpop.f32.mrb[21].mxu0  ;;  %v1099_v5 = vmul.f32 %v1095_v19, %v8751_v24 }
 0x432   :  { %v1005_v37 = vpop.f32.mrb[18].mxu1  ;;  %v1047_v38 = vpop.f32.mrb[22].mxu0  ;;  %v1104_v63 = vadd.f32 %v1101_v62, %v1045_v36 }
 0x433   :  { %v5826_v40 = vmul.f32 -1.442695, %v1103_v34  ;;  %v6958_v57 = vpop.f32.mrb[19].mxu1  ;;  %v1048_v58 = vpop.f32.mrb[23].mxu0  ;;  %v1102_v14 = vadd.f32 %v1099_v5, %v8759_v27  ;;  %v7879_v37 = vld [vmem:[%s11351_s7 + $0x150] sm:$0xff]   ;;  %v7880_v38 = vld [vmem:[%s11351_s7 + $0x158] sm:$0xff]  }
 0x434   :  { %v5827_v6 = vmul.f32 -1.442695, %v1104_v63  ;;  %v7882_v57 = vld [vmem:[%s11351_s7 + $0x168] sm:$0xff]   ;;  %v7883_v58 = vld [vmem:[%s11351_s7 + $0x170] sm:$0xff]   ;;  %v1317_v62 = vpop.permute.xlu0 %1316 }
 0x435   :  { %8067 = vpow2.f32 %v5826_v40  ;;  %v7881_v40 = vld [vmem:[%s11351_s7 + $0x160] sm:$0xff]   ;;  %v1319_v63 = vmul.f32 %v1317_v62, %v8736_v60 }
 0x436   :  { %8069 = vpow2.f32 %v5827_v6 }
 0x43f   :  { %v8068_v0 = vpop.eup %8067 }
 0x440   :  { %v1111_v59 = vadd.f32 1.0, %v8068_v0  ;;  %v8070_v23 = vpop.eup %8069  ;;  %v1322_v0 = vadd.f32 %v1319_v63, %v8742_v1 }
 0x441   :  { %v1112_v20 = vadd.f32 1.0, %v8070_v23 }
 0x442   :  { %8071 = vrcp.f32 %v1111_v59 }
 0x44c   :  { %v8072_v12 = vpop.eup %8071 }
 0x450   :  { %v1084_v8 = vpop.f32.mrb[20].mxu1 }
 0x451   :  { %v1117_v9 = vadd.f32 %v8756_v25, %v1084_v8  ;;  %v6977_v11 = vpop.f32.mrb[21].mxu1 }
 0x452   :  { %v1087_v13 = vpop.f32.mrb[22].mxu1 }
 0x453   :  { %v1118_v15 = vmul.f32 %v8072_v12, %v1117_v9  ;;  %v6978_v18 = vpop.f32.mrb[23].mxu1 }
 0x454   :  { %v1320_v18 = vmul.f32 %v1317_v62, %v8744_v4 }
 0x455   :  { %v1119_v21 = vadd.f32 %v1118_v15, %v1102_v14 }
 0x457   :  { %8073 = vtanh.f32 %v1119_v21 }
 0x458   :  { %8075 = vrcp.f32 %v1112_v20  ;;  %v1323_v20 = vadd.f32 %v1320_v18, %v8748_v10 }
 0x461   :  { %v8074_v22 = vpop.eup %8073 }
 0x462   :  { %v1121_v17 = vsub.f32 %v9080_v7, %v8074_v22  ;;  %v8076_v34 = vpop.eup %8075  ;;  %v7878_v7 = vld [vmem:[%s11351_s7 + $0x148] sm:$0xff]  }
 0x464   :  { %v1122_v19 = vmul.f32 %v8076_v34, %v1121_v17 }
 0x466   :  { %v9164_v35 = vadd.f32 %v8074_v22, %v1122_v19 }
 0x468   :  { %v1124_v36 = vpack.c.bf16 %v9164_v35, %v9164_v35 }
 0x46a   :  { %6996 = vmatmul.mubr.bf16.vlgmr.msra.gmra.mrb[24].mxu0 %v1124_v36  ;;  %1264 = vmatmul.mubr.bf16.vlgmr.msra.gmra.mrb[24].mxu1 %v1124_v36 }
 0x46b   :  { %7000 = vmatpush3.bf16.msra.mxu0 %v8963_v16  ;;  %7015 = vmatprep.mubr.msk.bf16.mxu0 %vm8427_vm0, %v8425_v2 }
 0x46c   :  { %7001 = vmatprep.subr.bf16.mxu0 %v8425_v2  ;;  %7035 = vmatprep.mubr.msk.bf16.mxu1 %vm8427_vm0, %v8425_v2 }
 0x46f   :  { %7002 = vmatpush3.bf16.msra.mxu0 %v8974_v39 }
 0x470   :  { %7003 = vmatprep.subr.bf16.mxu0 %v8425_v2 }
 0x473   :  { %7004 = vmatpush3.bf16.msra.mxu0 %v8981_v28 }
 0x474   :  { %7005 = vmatprep.subr.bf16.mxu0 %v8425_v2 }
 0x477   :  { %7006 = vmatpush3.bf16.msra.mxu0 %v8988_v29 }
 0x478   :  { %7007 = vmatprep.subr.bf16.mxu0 %v8425_v2 }
 0x47b   :  { %7008 = vmatpush3.bf16.msra.mxu0 %v8995_v30 }
 0x47c   :  { %7009 = vmatprep.subr.bf16.mxu0 %v8425_v2 }
 0x47f   :  { %7010 = vmatpush3.bf16.msra.mxu0 %v9002_v31 }
 0x480   :  { %7011 = vmatprep.subr.bf16.mxu0 %v8425_v2 }
 0x483   :  { %7012 = vmatpush3.bf16.msra.mxu0 %v9009_v32 }
 0x484   :  { %7013 = vmatprep.subr.bf16.mxu0 %v8425_v2 }
 0x487   :  { %7014 = vmatpush3.bf16.msra.mxu0 %v9016_v33 }
 0x488   :  { %1453 = vmatprep.subr.bf16.mxu0 %v8729_v55  ;;  %v7877_v55 = vld [vmem:[%s11351_s7 + $0x140] sm:$0xff]  }
 0x489   :  { %7020 = vmatpush3.bf16.msra.mxu1 %v7877_v55 }
 0x48a   :  { %7016 = vmatmul.mubr.bf16.vlgmr.msra.gmra.mrb[28].mxu0 %v1124_v36  ;;  %7021 = vmatprep.subr.bf16.mxu1 %v8425_v2 }
 0x48b   :  { %1454 = vmatpush1.bf16.msra.mxu0 %v8770_v41  ;;  %1485 = vmatprep.mubr.bf16.mxu0 %v8426_v3 }
 0x48c   :  { %1455 = vmatprep.subr.bf16.mxu0 %v8777_v42 }
 0x48d   :  { %7022 = vmatpush3.bf16.msra.mxu1 %v7878_v7 }
 0x48e   :  { %7023 = vmatprep.subr.bf16.mxu1 %v8425_v2 }
 0x48f   :  { %1456 = vmatpush1.bf16.msra.mxu0 %v8786_v43 }
 0x490   :  { %1457 = vmatprep.subr.bf16.mxu0 %v8792_v44 }
 0x491   :  { %7024 = vmatpush3.bf16.msra.mxu1 %v7879_v37 }
 0x492   :  { %7025 = vmatprep.subr.bf16.mxu1 %v8425_v2 }
 0x493   :  { %1458 = vmatpush1.bf16.msra.mxu0 %v8800_v45 }
 0x494   :  { %1459 = vmatprep.subr.bf16.mxu0 %v8806_v46 }
 0x495   :  { %7026 = vmatpush3.bf16.msra.mxu1 %v7880_v38 }
 0x496   :  { %7027 = vmatprep.subr.bf16.mxu1 %v8425_v2 }
 0x497   :  { %1460 = vmatpush1.bf16.msra.mxu0 %v8814_v47 }
 0x498   :  { %1461 = vmatprep.subr.bf16.mxu0 %v8820_v48 }
 0x499   :  { %7028 = vmatpush3.bf16.msra.mxu1 %v7881_v40 }
 0x49a   :  { %7029 = vmatprep.subr.bf16.mxu1 %v8425_v2 }
 0x49b   :  { %1462 = vmatpush1.bf16.msra.mxu0 %v8828_v49 }
 0x49c   :  { %1463 = vmatprep.subr.bf16.mxu0 %v8834_v50 }
 0x49d   :  { %7030 = vmatpush3.bf16.msra.mxu1 %v7882_v57 }
 0x49e   :  { %7031 = vmatprep.subr.bf16.mxu1 %v8425_v2 }
 0x49f   :  { %1464 = vmatpush1.bf16.msra.mxu0 %v8842_v51 }
 0x4a0   :  { %1465 = vmatprep.subr.bf16.mxu0 %v8848_v52 }
 0x4a1   :  { %7032 = vmatpush3.bf16.msra.mxu1 %v7883_v58 }
 0x4a2   :  { %7033 = vmatprep.subr.bf16.mxu1 %v8425_v2 }
 0x4a3   :  { %1466 = vmatpush1.bf16.msra.mxu0 %v8856_v53 }
 0x4a4   :  { %1467 = vmatprep.subr.bf16.mxu0 %v8862_v54 }
 0x4a5   :  { %7034 = vmatpush3.bf16.msra.mxu1 %v7884_v61 }
 0x4a6   :  { %7039 = vmatprep.subr.bf16.mxu1 %v8425_v2 }
 0x4a7   :  { %1468 = vmatpush1.bf16.msra.mxu0 %v8870_v56 }
 0x4a8   :  { %7059 = vmatprep.subr.bf16.mxu0 %v8425_v2 }
 0x53d   :  { %v1224_v6 = vpop.f32.mrb[24].mxu0  ;;  %v1265_v59 = vpop.f32.mrb[24].mxu1 }
 0x53e   :  { %v9240_v5 = vadd.f32 %v1224_v6, %v9156_v26  ;;  %v1325_v8 = vadd.f32 %v1322_v0, %v1265_v59  ;;  %v6997_v23 = vpop.f32.mrb[25].mxu0  ;;  %v1267_v9 = vpop.f32.mrb[25].mxu1  ;;  %v1321_v26 = vmul.f32 %v1317_v62, %v8751_v24 }
 0x53f   :  { %v1227_v11 = vpop.f32.mrb[26].mxu0  ;;  %v1269_v12 = vpop.f32.mrb[26].mxu1  ;;  %v1326_v21 = vadd.f32 %v1323_v20, %v1267_v9 }
 0x540   :  { %v5853_v13 = vmul.f32 -1.442695, %v1325_v8  ;;  %v6998_v14 = vpop.f32.mrb[27].mxu0  ;;  %v1270_v15 = vpop.f32.mrb[27].mxu1  ;;  %v1324_v40 = vadd.f32 %v1321_v26, %v8759_v27 }
 0x541   :  { %v5854_v17 = vmul.f32 -1.442695, %v1326_v21 }
 0x542   :  { %8077 = vpow2.f32 %v5853_v13 }
 0x543   :  { %8079 = vpow2.f32 %v5854_v17 }
 0x54c   :  { %v8078_v22 = vpop.eup %8077 }
 0x54d   :  { %v1333_v34 = vadd.f32 1.0, %v8078_v22  ;;  %v8080_v36 = vpop.eup %8079 }
 0x54e   :  { %v1334_v61 = vadd.f32 1.0, %v8080_v36  ;;  %v9337_v36 = vld [vmem:[%s11350_s6] ss:$0 sm:$0xff] }
 0x54f   :  { %8081 = vrcp.f32 %v1333_v34 }
 0x559   :  { %v8082_v37 = vpop.eup %8081 }
 0x55d   :  { %v1306_v19 = vpop.f32.mrb[28].mxu0 }
 0x55e   :  { %v1339_v55 = vadd.f32 %v8756_v25, %v1306_v19  ;;  %v7017_v7 = vpop.f32.mrb[29].mxu0 }
 0x55f   :  { %v1309_v38 = vpop.f32.mrb[30].mxu0 }
 0x560   :  { %v1340_v57 = vmul.f32 %v8082_v37, %v1339_v55  ;;  %v7018_v58 = vpop.f32.mrb[31].mxu0 }
 0x562   :  { %v1341_v63 = vadd.f32 %v1340_v57, %v1324_v40 }
 0x564   :  { %8083 = vtanh.f32 %v1341_v63 }
 0x565   :  { %8085 = vrcp.f32 %v1334_v61 }
 0x56e   :  { %v8084_v0 = vpop.eup %8083 }
 0x56f   :  { %v1343_v6 = vsub.f32 %v9164_v35, %v8084_v0  ;;  %v8086_v59 = vpop.eup %8085  ;;  %v9274_v35 = vld [vmem:[%s11349_s5 + $0x4] ss:$12 sps:$4 sm:$0xff]  }
 0x571   :  { %v1344_v62 = vmul.f32 %v8086_v59, %v1343_v6 }
 0x573   :  { %v9248_v8 = vadd.f32 %v8084_v0, %v1344_v62 }
 0x575   :  { %v1346_v25 = vpack.c.bf16 %v9248_v8, %v9248_v8 }
 0x577   :  { %7036 = vmatmul.mubr.bf16.vlgmr.msra.gmra.mrb[28].mxu1 %v1346_v25  ;;  %1486 = vmatmul.mubr.bf16.vlgmr.msra.gmra.mrb[32].mxu0 %v1346_v25 }
 0x578   :  { %7040 = vmatpush3.bf16.msra.mxu1 %v8963_v16  ;;  %7055 = vmatprep.mubr.msk.bf16.mxu1 %vm8427_vm0, %v8425_v2 }
 0x579   :  { %7041 = vmatprep.subr.bf16.mxu1 %v8425_v2  ;;  %7075 = vmatprep.mubr.msk.bf16.mxu0 %vm8427_vm0, %v8425_v2 }
 0x57c   :  { %7042 = vmatpush3.bf16.msra.mxu1 %v8974_v39 }
 0x57d   :  { %7043 = vmatprep.subr.bf16.mxu1 %v8425_v2 }
 0x580   :  { %7044 = vmatpush3.bf16.msra.mxu1 %v8981_v28 }
 0x581   :  { %7045 = vmatprep.subr.bf16.mxu1 %v8425_v2 }
 0x584   :  { %7046 = vmatpush3.bf16.msra.mxu1 %v8988_v29 }
 0x585   :  { %7047 = vmatprep.subr.bf16.mxu1 %v8425_v2 }
 0x588   :  { %7048 = vmatpush3.bf16.msra.mxu1 %v8995_v30 }
 0x589   :  { %7049 = vmatprep.subr.bf16.mxu1 %v8425_v2 }
 0x58c   :  { %7050 = vmatpush3.bf16.msra.mxu1 %v9002_v31 }
 0x58d   :  { %7051 = vmatprep.subr.bf16.mxu1 %v8425_v2 }
 0x590   :  { %7052 = vmatpush3.bf16.msra.mxu1 %v9009_v32 }
 0x591   :  { %7053 = vmatprep.subr.bf16.mxu1 %v8425_v2 }
 0x594   :  { %7054 = vmatpush3.bf16.msra.mxu1 %v9016_v33 }
 0x595   :  { %1675 = vmatprep.subr.bf16.mxu1 %v9274_v35 }
 0x597   :  { %7056 = vmatmul.mubr.bf16.vlgmr.msra.gmra.mrb[32].mxu1 %v1346_v25 }
 0x598   :  { %1676 = vmatpush1.bf16.msra.mxu1 %v8770_v41  ;;  %1707 = vmatprep.mubr.bf16.mxu1 %v8426_v3  ;;  %v7885_v41 = vld [vmem:[%s11351_s7 + $0x180] sm:$0xff]  }
 0x599   :  { %1677 = vmatprep.subr.bf16.mxu1 %v8777_v42  ;;  %7060 = vmatpush3.bf16.msra.mxu0 %v7885_v41  ;;  %v7886_v42 = vld [vmem:[%s11351_s7 + $0x188] sm:$0xff]  }
 0x59a   :  { %7061 = vmatprep.subr.bf16.mxu0 %v8425_v2 }
 0x59c   :  { %1678 = vmatpush1.bf16.msra.mxu1 %v8786_v43  ;;  %v7887_v43 = vld [vmem:[%s11351_s7 + $0x190] sm:$0xff]  }
 0x59d   :  { %1679 = vmatprep.subr.bf16.mxu1 %v8792_v44  ;;  %7062 = vmatpush3.bf16.msra.mxu0 %v7886_v42  ;;  %v7888_v44 = vld [vmem:[%s11351_s7 + $0x198] sm:$0xff]  }
 0x59e   :  { %7063 = vmatprep.subr.bf16.mxu0 %v8425_v2  ;;  %v9424_v42 = vld [vmem:[%s11349_s5 + $0x7c] ss:$12 sps:$4 sm:$0xff]  }
 0x5a0   :  { %1680 = vmatpush1.bf16.msra.mxu1 %v8800_v45  ;;  %v7889_v45 = vld [vmem:[%s11351_s7 + $0x1a0] sm:$0xff]  }
 0x5a1   :  { %1681 = vmatprep.subr.bf16.mxu1 %v8806_v46  ;;  %7064 = vmatpush3.bf16.msra.mxu0 %v7887_v43  ;;  %v7890_v46 = vld [vmem:[%s11351_s7 + $0x1a8] sm:$0xff]   ;;  %v9430_v43 = vld [vmem:[%s11349_s5 + $0x78] ss:$12 sps:$4 sm:$0xff]  }
 0x5a2   :  { %7065 = vmatprep.subr.bf16.mxu0 %v8425_v2 }
 0x5a4   :  { %1682 = vmatpush1.bf16.msra.mxu1 %v8814_v47  ;;  %v7891_v47 = vld [vmem:[%s11351_s7 + $0x1b0] sm:$0xff]  }
 0x5a5   :  { %1683 = vmatprep.subr.bf16.mxu1 %v8820_v48  ;;  %7066 = vmatpush3.bf16.msra.mxu0 %v7888_v44  ;;  %v7892_v48 = vld [vmem:[%s11351_s7 + $0x1b8] sm:$0xff]   ;;  %v9436_v44 = vld [vmem:[%s11349_s5 + $0x94] ss:$12 sps:$4 sm:$0xff]  }
 0x5a6   :  { %7067 = vmatprep.subr.bf16.mxu0 %v8425_v2 }
 0x5a8   :  { %1684 = vmatpush1.bf16.msra.mxu1 %v8828_v49  ;;  %v1539_v49 = vpop.permute.xlu1 %1538 }
 0x5a9   :  { %1685 = vmatprep.subr.bf16.mxu1 %v8834_v50  ;;  %7068 = vmatpush3.bf16.msra.mxu0 %v7889_v45  ;;  %v1541_v50 = vmul.f32 %v1539_v49, %v8736_v60  ;;  %v1542_v18 = vmul.f32 %v1539_v49, %v8744_v4  ;;  %v9442_v45 = vld [vmem:[%s11349_s5 + $0x90] ss:$12 sps:$4 sm:$0xff]  }
 0x5aa   :  { %7069 = vmatprep.subr.bf16.mxu0 %v8425_v2 }
 0x5ab   :  { %v1545_v20 = vadd.f32 %v1542_v18, %v8748_v10 }
 0x5ac   :  { %1686 = vmatpush1.bf16.msra.mxu1 %v8842_v51  ;;  %v1544_v51 = vadd.f32 %v1541_v50, %v8742_v1  ;;  %v7895_v50 = vld [vmem:[%s11351_s7 + $0x1d0] sm:$0xff]  }
 0x5ad   :  { %1687 = vmatprep.subr.bf16.mxu1 %v8848_v52  ;;  %7070 = vmatpush3.bf16.msra.mxu0 %v7890_v46  ;;  %v9448_v46 = vld [vmem:[%s11349_s5 + $0xac] ss:$12 sps:$4 sm:$0xff]  }
 0x5ae   :  { %7071 = vmatprep.subr.bf16.mxu0 %v8425_v2 }
 0x5b0   :  { %1688 = vmatpush1.bf16.msra.mxu1 %v8856_v53 }
 0x5b1   :  { %1689 = vmatprep.subr.bf16.mxu1 %v8862_v54  ;;  %7072 = vmatpush3.bf16.msra.mxu0 %v7891_v47  ;;  %v9454_v47 = vld [vmem:[%s11349_s5 + $0xa8] ss:$12 sps:$4 sm:$0xff]  }
 0x5b2   :  { %7073 = vmatprep.subr.bf16.mxu0 %v8425_v2 }
 0x5b4   :  { %1690 = vmatpush1.bf16.msra.mxu1 %v8870_v56 }
 0x5b5   :  { %7099 = vmatprep.subr.bf16.mxu1 %v8425_v2  ;;  %7074 = vmatpush3.bf16.msra.mxu0 %v7892_v48  ;;  %v7893_v48 = vld [vmem:[%s11351_s7 + $0x1c0] sm:$0xff]  }
 0x5b6   :  { %7079 = vmatprep.subr.bf16.mxu0 %v8425_v2 }
 0x64a   :  { %v1446_v52 = vpop.f32.mrb[28].mxu1  ;;  %v1487_v53 = vpop.f32.mrb[32].mxu0 }
 0x64b   :  { %v9329_v54 = vadd.f32 %v1446_v52, %v9240_v5  ;;  %v1547_v56 = vadd.f32 %v1544_v51, %v1487_v53  ;;  %v7037_v23 = vpop.f32.mrb[29].mxu1  ;;  %v1489_v9 = vpop.f32.mrb[33].mxu0  ;;  %v1543_v5 = vmul.f32 %v1539_v49, %v8751_v24  ;;  %v7894_v49 = vld [vmem:[%s11351_s7 + $0x1c8] sm:$0xff]   ;;  %v7896_v51 = vld [vmem:[%s11351_s7 + $0x1d8] sm:$0xff]   ;;  %v7897_v52 = vld [vmem:[%s11351_s7 + $0x1e0] sm:$0xff]  }
 0x64c   :  { %v1449_v11 = vpop.f32.mrb[30].mxu1  ;;  %v1491_v12 = vpop.f32.mrb[34].mxu0  ;;  %v1548_v21 = vadd.f32 %v1545_v20, %v1489_v9  ;;  %v7898_v53 = vld [vmem:[%s11351_s7 + $0x1e8] sm:$0xff]   ;;  %v7900_v23 = vld [vmem:[%s11351_s7 + $0x1f8] sm:$0xff]  }
 0x64d   :  { %v5880_v13 = vmul.f32 -1.442695, %v1547_v56  ;;  %v7038_v14 = vpop.f32.mrb[31].mxu1  ;;  %v1492_v15 = vpop.f32.mrb[35].mxu0  ;;  %v1546_v40 = vadd.f32 %v1543_v5, %v8759_v27  ;;  %v7899_v56 = vld [vmem:[%s11351_s7 + $0x1f0] sm:$0xff]  }
 0x64e   :  { %v5881_v17 = vmul.f32 -1.442695, %v1548_v21  ;;  %v1761_v9 = vpop.permute.xlu0 %1760 }
 0x64f   :  { %8087 = vpow2.f32 %v5880_v13  ;;  %v1763_v11 = vmul.f32 %v1761_v9, %v8736_v60 }
 0x650   :  { %8089 = vpow2.f32 %v5881_v17 }
 0x651   :  { %v1766_v12 = vadd.f32 %v1763_v11, %v8742_v1  ;;  %v9526_v11 = vld [vmem:[%s11349_s5 + $0x38] ss:$12 sps:$4 sm:$0xff]  }
 0x659   :  { %v8088_v22 = vpop.eup %8087 }
 0x65a   :  { %v1555_v34 = vadd.f32 1.0, %v8088_v22  ;;  %v8090_v19 = vpop.eup %8089 }
 0x65b   :  { %v1556_v61 = vadd.f32 1.0, %v8090_v19  ;;  %v1764_v19 = vmul.f32 %v1761_v9, %v8744_v4 }
 0x65c   :  { %8091 = vrcp.f32 %v1555_v34 }
 0x666   :  { %v8092_v37 = vpop.eup %8091 }
 0x66a   :  { %v1528_v26 = vpop.f32.mrb[32].mxu1 }
 0x66b   :  { %v1561_v55 = vadd.f32 %v9337_v36, %v1528_v26  ;;  %v7057_v7 = vpop.f32.mrb[33].mxu1 }
 0x66c   :  { %v1531_v38 = vpop.f32.mrb[34].mxu1 }
 0x66d   :  { %v1562_v57 = vmul.f32 %v8092_v37, %v1561_v55  ;;  %v7058_v58 = vpop.f32.mrb[35].mxu1  ;;  %v1767_v55 = vadd.f32 %v1764_v19, %v8748_v10  ;;  %v7907_v19 = vld [vmem:[%s11351_s7 + $0x230] sm:$0xff]  }
 0x66f   :  { %v1563_v63 = vadd.f32 %v1562_v57, %v1546_v40 }
 0x671   :  { %8093 = vtanh.f32 %v1563_v63 }
 0x672   :  { %8095 = vrcp.f32 %v1556_v61 }
 0x67b   :  { %v8094_v0 = vpop.eup %8093 }
 0x67c   :  { %v1565_v6 = vsub.f32 %v9248_v8, %v8094_v0  ;;  %v8096_v59 = vpop.eup %8095  ;;  %v9418_v8 = vld [vmem:[%s11349_s5 + $0x60] ss:$12 sps:$4 sm:$0xff]  }
 0x67e   :  { %v1566_v62 = vmul.f32 %v8096_v59, %v1565_v6 }
 0x680   :  { %v9342_v25 = vadd.f32 %v8094_v0, %v1566_v62 }
 0x682   :  { %v1568_v41 = vpack.c.bf16 %v9342_v25, %v9342_v25 }
 0x684   :  { %7076 = vmatmul.mubr.bf16.vlgmr.msra.gmra.mrb[36].mxu0 %v1568_v41  ;;  %1708 = vmatmul.mubr.bf16.vlgmr.msra.gmra.mrb[36].mxu1 %v1568_v41 }
 0x685   :  { %7080 = vmatpush3.bf16.msra.mxu0 %v8963_v16  ;;  %7095 = vmatprep.mubr.msk.bf16.mxu0 %vm8427_vm0, %v8425_v2  ;;  %v9369_v16 = vld [vmem:[%s11349_s5] ss:$12 sps:$4 sm:$0xff]  }
 0x686   :  { %7081 = vmatprep.subr.bf16.mxu0 %v8425_v2  ;;  %7115 = vmatprep.mubr.msk.bf16.mxu1 %vm8427_vm0, %v8425_v2 }
 0x687   :  { %7100 = vmatpush3.bf16.msra.mxu1 %v7893_v48 }
 0x688   :  { %7101 = vmatprep.subr.bf16.mxu1 %v8425_v2 }
 0x689   :  { %7082 = vmatpush3.bf16.msra.mxu0 %v8974_v39  ;;  %v9376_v39 = vld [vmem:[%s11349_s5 + $0x1c] ss:$12 sps:$4 sm:$0xff]  }
 0x68a   :  { %7083 = vmatprep.subr.bf16.mxu0 %v8425_v2 }
 0x68b   :  { %7102 = vmatpush3.bf16.msra.mxu1 %v7894_v49 }
 0x68c   :  { %7103 = vmatprep.subr.bf16.mxu1 %v8425_v2 }
 0x68d   :  { %7084 = vmatpush3.bf16.msra.mxu0 %v8981_v28  ;;  %v9382_v28 = vld [vmem:[%s11349_s5 + $0x18] ss:$12 sps:$4 sm:$0xff]  }
 0x68e   :  { %7085 = vmatprep.subr.bf16.mxu0 %v8425_v2 }
 0x68f   :  { %7104 = vmatpush3.bf16.msra.mxu1 %v7895_v50 }
 0x690   :  { %7105 = vmatprep.subr.bf16.mxu1 %v8425_v2 }
 0x691   :  { %7086 = vmatpush3.bf16.msra.mxu0 %v8988_v29  ;;  %v9388_v29 = vld [vmem:[%s11349_s5 + $0x34] ss:$12 sps:$4 sm:$0xff]  }
 0x692   :  { %7087 = vmatprep.subr.bf16.mxu0 %v8425_v2 }
 0x693   :  { %7106 = vmatpush3.bf16.msra.mxu1 %v7896_v51 }
 0x694   :  { %7107 = vmatprep.subr.bf16.mxu1 %v8425_v2 }
 0x695   :  { %7088 = vmatpush3.bf16.msra.mxu0 %v8995_v30  ;;  %v9394_v30 = vld [vmem:[%s11349_s5 + $0x30] ss:$12 sps:$4 sm:$0xff]  }
 0x696   :  { %7089 = vmatprep.subr.bf16.mxu0 %v8425_v2 }
 0x697   :  { %7108 = vmatpush3.bf16.msra.mxu1 %v7897_v52 }
 0x698   :  { %7109 = vmatprep.subr.bf16.mxu1 %v8425_v2 }
 0x699   :  { %7090 = vmatpush3.bf16.msra.mxu0 %v9002_v31  ;;  %v9400_v31 = vld [vmem:[%s11349_s5 + $0x4c] ss:$12 sps:$4 sm:$0xff]  }
 0x69a   :  { %7091 = vmatprep.subr.bf16.mxu0 %v8425_v2 }
 0x69b   :  { %7110 = vmatpush3.bf16.msra.mxu1 %v7898_v53 }
 0x69c   :  { %7111 = vmatprep.subr.bf16.mxu1 %v8425_v2 }
 0x69d   :  { %7092 = vmatpush3.bf16.msra.mxu0 %v9009_v32  ;;  %v9406_v32 = vld [vmem:[%s11349_s5 + $0x48] ss:$12 sps:$4 sm:$0xff]  }
 0x69e   :  { %7093 = vmatprep.subr.bf16.mxu0 %v8425_v2 }
 0x69f   :  { %7112 = vmatpush3.bf16.msra.mxu1 %v7899_v56 }
 0x6a0   :  { %7113 = vmatprep.subr.bf16.mxu1 %v8425_v2 }
 0x6a1   :  { %7094 = vmatpush3.bf16.msra.mxu0 %v9016_v33  ;;  %v9412_v33 = vld [vmem:[%s11349_s5 + $0x64] ss:$12 sps:$4 sm:$0xff]  }
 0x6a2   :  { %1897 = vmatprep.subr.bf16.mxu0 %v9274_v35 }
 0x6a3   :  { %7114 = vmatpush3.bf16.msra.mxu1 %v7900_v23 }
 0x6a4   :  { %7096 = vmatmul.mubr.bf16.vlgmr.msra.gmra.mrb[40].mxu0 %v1568_v41  ;;  %7119 = vmatprep.subr.bf16.mxu1 %v8425_v2 }
 0x6a5   :  { %1898 = vmatpush1.bf16.msra.mxu0 %v9369_v16  ;;  %1929 = vmatprep.mubr.bf16.mxu0 %v8426_v3 }
 0x6a6   :  { %1899 = vmatprep.subr.bf16.mxu0 %v9376_v39 }
 0x6a9   :  { %1900 = vmatpush1.bf16.msra.mxu0 %v9382_v28 }
 0x6aa   :  { %1901 = vmatprep.subr.bf16.mxu0 %v9388_v29 }
 0x6ad   :  { %1902 = vmatpush1.bf16.msra.mxu0 %v9394_v30 }
 0x6ae   :  { %1903 = vmatprep.subr.bf16.mxu0 %v9400_v31 }
 0x6b1   :  { %1904 = vmatpush1.bf16.msra.mxu0 %v9406_v32 }
 0x6b2   :  { %1905 = vmatprep.subr.bf16.mxu0 %v9412_v33 }
 0x6b5   :  { %1906 = vmatpush1.bf16.msra.mxu0 %v9418_v8 }
 0x6b6   :  { %1907 = vmatprep.subr.bf16.mxu0 %v9424_v42 }
 0x6b9   :  { %1908 = vmatpush1.bf16.msra.mxu0 %v9430_v43 }
 0x6ba   :  { %1909 = vmatprep.subr.bf16.mxu0 %v9436_v44 }
 0x6bd   :  { %1910 = vmatpush1.bf16.msra.mxu0 %v9442_v45 }
 0x6be   :  { %1911 = vmatprep.subr.bf16.mxu0 %v9448_v46 }
 0x6c1   :  { %1912 = vmatpush1.bf16.msra.mxu0 %v9454_v47 }
 0x6c2   :  { %7139 = vmatprep.subr.bf16.mxu0 %v8425_v2 }
 0x757   :  { %v1668_v13 = vpop.f32.mrb[36].mxu0  ;;  %v1709_v14 = vpop.f32.mrb[36].mxu1 }
 0x758   :  { %v9493_v15 = vadd.f32 %v1668_v13, %v9329_v54  ;;  %v1769_v18 = vadd.f32 %v1766_v12, %v1709_v14  ;;  %v7077_v20 = vpop.f32.mrb[37].mxu0  ;;  %v1711_v21 = vpop.f32.mrb[37].mxu1  ;;  %v1765_v54 = vmul.f32 %v1761_v9, %v8751_v24  ;;  %v9508_v9 = vld [vmem:[%s11349_s5 + $0x8] ss:$12 sps:$4 sm:$0xff]   ;;  %v9533_v12 = vld [vmem:[%s11349_s5 + $0x50] ss:$12 sps:$4 sm:$0xff]  }
 0x759   :  { %v1671_v22 = vpop.f32.mrb[38].mxu0  ;;  %v1713_v17 = vpop.f32.mrb[38].mxu1  ;;  %v1770_v7 = vadd.f32 %v1767_v55, %v1711_v21  ;;  %v9540_v13 = vld [vmem:[%s11349_s5 + $0x68] ss:$12 sps:$4 sm:$0xff]   ;;  %v9547_v14 = vld [vmem:[%s11349_s5 + $0x80] ss:$12 sps:$4 sm:$0xff]  }
 0x75a   :  { %v5907_v34 = vmul.f32 -1.442695, %v1769_v18  ;;  %v7078_v5 = vpop.f32.mrb[39].mxu0  ;;  %v1714_v26 = vpop.f32.mrb[39].mxu1  ;;  %v1768_v59 = vadd.f32 %v1765_v54, %v8759_v27  ;;  %v9554_v18 = vld [vmem:[%s11349_s5 + $0x98] ss:$12 sps:$4 sm:$0xff]  }
 0x75b   :  { %v5908_v38 = vmul.f32 -1.442695, %v1770_v7  ;;  %v9561_v20 = vld [vmem:[%s11349_s5 + $0xb0] ss:$12 sps:$4 sm:$0xff]   ;;  %v7901_v21 = vld [vmem:[%s11351_s7 + $0x200] sm:$0xff]   ;;  %v7902_v22 = vld [vmem:[%s11351_s7 + $0x208] sm:$0xff]   ;;  %v1983_v7 = vpop.permute.xlu1 %1982 }
 0x75c   :  { %8097 = vpow2.f32 %v5907_v34  ;;  %v7903_v17 = vld [vmem:[%s11351_s7 + $0x210] sm:$0xff]   ;;  %v7904_v34 = vld [vmem:[%s11351_s7 + $0x218] sm:$0xff]   ;;  %v7905_v5 = vld [vmem:[%s11351_s7 + $0x220] sm:$0xff]  }
 0x75d   :  { %8099 = vpow2.f32 %v5908_v38  ;;  %v7906_v26 = vld [vmem:[%s11351_s7 + $0x228] sm:$0xff]   ;;  %v7908_v55 = vld [vmem:[%s11351_s7 + $0x238] sm:$0xff]  }
 0x766   :  { %v8098_v37 = vpop.eup %8097 }
 0x767   :  { %v1777_v40 = vadd.f32 1.0, %v8098_v37  ;;  %v8100_v58 = vpop.eup %8099  ;;  %v1985_v37 = vmul.f32 %v1983_v7, %v8736_v60 }
 0x768   :  { %v1778_v48 = vadd.f32 1.0, %v8100_v58 }
 0x769   :  { %8101 = vrcp.f32 %v1777_v40  ;;  %v1988_v38 = vadd.f32 %v1985_v37, %v8742_v1 }
 0x773   :  { %v8102_v0 = vpop.eup %8101 }
 0x777   :  { %v1750_v57 = vpop.f32.mrb[40].mxu0 }
 0x778   :  { %v1783_v61 = vadd.f32 %v9337_v36, %v1750_v57  ;;  %v7097_v63 = vpop.f32.mrb[41].mxu0 }
 0x779   :  { %v1753_v6 = vpop.f32.mrb[42].mxu0 }
 0x77a   :  { %v1784_v62 = vmul.f32 %v8102_v0, %v1783_v61  ;;  %v7098_v41 = vpop.f32.mrb[43].mxu0 }
 0x77c   :  { %v1785_v49 = vadd.f32 %v1784_v62, %v1768_v59 }
 0x77e   :  { %8103 = vtanh.f32 %v1785_v49 }
 0x77f   :  { %8105 = vrcp.f32 %v1778_v48  ;;  %v1986_v48 = vmul.f32 %v1983_v7, %v8744_v4 }
 0x781   :  { %v1989_v49 = vadd.f32 %v1986_v48, %v8748_v10  ;;  %v7915_v48 = vld [vmem:[%s11351_s7 + $0x270] sm:$0xff]  }
 0x788   :  { %v8104_v50 = vpop.eup %8103 }
 0x789   :  { %v1787_v51 = vsub.f32 %v9342_v25, %v8104_v50  ;;  %v8106_v52 = vpop.eup %8105  ;;  %v9519_v25 = vld [vmem:[%s11349_s5 + $0x20] ss:$12 sps:$4 sm:$0xff]  }
 0x78b   :  { %v1788_v53 = vmul.f32 %v8106_v52, %v1787_v51 }
 0x78d   :  { %v9501_v56 = vadd.f32 %v8104_v50, %v1788_v53 }
 0x78f   :  { %v1790_v23 = vpack.c.bf16 %v9501_v56, %v9501_v56 }
 0x791   :  { %7116 = vmatmul.mubr.bf16.vlgmr.msra.gmra.mrb[40].mxu1 %v1790_v23  ;;  %1930 = vmatmul.mubr.bf16.vlgmr.msra.gmra.mrb[44].mxu0 %v1790_v23 }
 0x792   :  { %7120 = vmatpush3.bf16.msra.mxu1 %v9508_v9  ;;  %7135 = vmatprep.mubr.msk.bf16.mxu1 %vm8427_vm0, %v8425_v2 }
 0x793   :  { %7121 = vmatprep.subr.bf16.mxu1 %v8425_v2  ;;  %7155 = vmatprep.mubr.msk.bf16.mxu0 %vm8427_vm0, %v8425_v2 }
 0x794   :  { %7140 = vmatpush3.bf16.msra.mxu0 %v7901_v21 }
 0x795   :  { %7141 = vmatprep.subr.bf16.mxu0 %v8425_v2 }
 0x796   :  { %7122 = vmatpush3.bf16.msra.mxu1 %v9519_v25 }
 0x797   :  { %7123 = vmatprep.subr.bf16.mxu1 %v8425_v2 }
 0x798   :  { %7142 = vmatpush3.bf16.msra.mxu0 %v7902_v22 }
 0x799   :  { %7143 = vmatprep.subr.bf16.mxu0 %v8425_v2 }
 0x79a   :  { %7124 = vmatpush3.bf16.msra.mxu1 %v9526_v11 }
 0x79b   :  { %7125 = vmatprep.subr.bf16.mxu1 %v8425_v2 }
 0x79c   :  { %7144 = vmatpush3.bf16.msra.mxu0 %v7903_v17 }
 0x79d   :  { %7145 = vmatprep.subr.bf16.mxu0 %v8425_v2 }
 0x79e   :  { %7126 = vmatpush3.bf16.msra.mxu1 %v9533_v12 }
 0x79f   :  { %7127 = vmatprep.subr.bf16.mxu1 %v8425_v2 }
 0x7a0   :  { %7146 = vmatpush3.bf16.msra.mxu0 %v7904_v34 }
 0x7a1   :  { %7147 = vmatprep.subr.bf16.mxu0 %v8425_v2 }
 0x7a2   :  { %7128 = vmatpush3.bf16.msra.mxu1 %v9540_v13 }
 0x7a3   :  { %7129 = vmatprep.subr.bf16.mxu1 %v8425_v2 }
 0x7a4   :  { %7148 = vmatpush3.bf16.msra.mxu0 %v7905_v5 }
 0x7a5   :  { %7149 = vmatprep.subr.bf16.mxu0 %v8425_v2 }
 0x7a6   :  { %7130 = vmatpush3.bf16.msra.mxu1 %v9547_v14 }
 0x7a7   :  { %7131 = vmatprep.subr.bf16.mxu1 %v8425_v2 }
 0x7a8   :  { %7150 = vmatpush3.bf16.msra.mxu0 %v7906_v26 }
 0x7a9   :  { %7151 = vmatprep.subr.bf16.mxu0 %v8425_v2 }
 0x7aa   :  { %7132 = vmatpush3.bf16.msra.mxu1 %v9554_v18 }
 0x7ab   :  { %7133 = vmatprep.subr.bf16.mxu1 %v8425_v2 }
 0x7ac   :  { %7152 = vmatpush3.bf16.msra.mxu0 %v7907_v19 }
 0x7ad   :  { %7153 = vmatprep.subr.bf16.mxu0 %v8425_v2 }
 0x7ae   :  { %7134 = vmatpush3.bf16.msra.mxu1 %v9561_v20 }
 0x7af   :  { %2119 = vmatprep.subr.bf16.mxu1 %v9274_v35 }
 0x7b0   :  { %7154 = vmatpush3.bf16.msra.mxu0 %v7908_v55 }
 0x7b1   :  { %7136 = vmatmul.mubr.bf16.vlgmr.msra.gmra.mrb[44].mxu1 %v1790_v23  ;;  %7159 = vmatprep.subr.bf16.mxu0 %v8425_v2 }
 0x7b2   :  { %2120 = vmatpush1.bf16.msra.mxu1 %v9369_v16  ;;  %2151 = vmatprep.mubr.bf16.mxu1 %v8426_v3 }
 0x7b3   :  { %2121 = vmatprep.subr.bf16.mxu1 %v9376_v39 }
 0x7b6   :  { %2122 = vmatpush1.bf16.msra.mxu1 %v9382_v28 }
 0x7b7   :  { %2123 = vmatprep.subr.bf16.mxu1 %v9388_v29 }
 0x7ba   :  { %2124 = vmatpush1.bf16.msra.mxu1 %v9394_v30 }
 0x7bb   :  { %2125 = vmatprep.subr.bf16.mxu1 %v9400_v31 }
 0x7be   :  { %2126 = vmatpush1.bf16.msra.mxu1 %v9406_v32 }
 0x7bf   :  { %2127 = vmatprep.subr.bf16.mxu1 %v9412_v33 }
 0x7c2   :  { %2128 = vmatpush1.bf16.msra.mxu1 %v9418_v8 }
 0x7c3   :  { %2129 = vmatprep.subr.bf16.mxu1 %v9424_v42 }
 0x7c6   :  { %2130 = vmatpush1.bf16.msra.mxu1 %v9430_v43 }
 0x7c7   :  { %2131 = vmatprep.subr.bf16.mxu1 %v9436_v44 }
 0x7ca   :  { %2132 = vmatpush1.bf16.msra.mxu1 %v9442_v45 }
 0x7cb   :  { %2133 = vmatprep.subr.bf16.mxu1 %v9448_v46 }
 0x7ce   :  { %2134 = vmatpush1.bf16.msra.mxu1 %v9454_v47 }
 0x7cf   :  { %7179 = vmatprep.subr.bf16.mxu1 %v8425_v2 }
 0x864   :  { %v1890_v40 = vpop.f32.mrb[40].mxu1  ;;  %v1931_v54 = vpop.f32.mrb[44].mxu0 }
 0x865   :  { %v9617_v57 = vadd.f32 %v1890_v40, %v9493_v15  ;;  %v1991_v58 = vadd.f32 %v1988_v38, %v1931_v54  ;;  %v7117_v61 = vpop.f32.mrb[41].mxu1  ;;  %v1933_v63 = vpop.f32.mrb[45].mxu0  ;;  %v1987_v15 = vmul.f32 %v1983_v7, %v8751_v24 }
 0x866   :  { %v1893_v0 = vpop.f32.mrb[42].mxu1  ;;  %v1935_v6 = vpop.f32.mrb[46].mxu0  ;;  %v1992_v50 = vadd.f32 %v1989_v49, %v1933_v63  ;;  %v7916_v49 = vld [vmem:[%s11351_s7 + $0x278] sm:$0xff]  }
 0x867   :  { %v5934_v59 = vmul.f32 -1.442695, %v1991_v58  ;;  %v7118_v62 = vpop.f32.mrb[43].mxu1  ;;  %v1936_v41 = vpop.f32.mrb[47].mxu0  ;;  %v1990_v26 = vadd.f32 %v1987_v15, %v8759_v27  ;;  %v7910_v0 = vld [vmem:[%s11351_s7 + $0x248] sm:$0xff]   ;;  %v7911_v6 = vld [vmem:[%s11351_s7 + $0x250] sm:$0xff]  }
 0x868   :  { %v5935_v52 = vmul.f32 -1.442695, %v1992_v50  ;;  %v7913_v62 = vld [vmem:[%s11351_s7 + $0x260] sm:$0xff]   ;;  %v7914_v41 = vld [vmem:[%s11351_s7 + $0x268] sm:$0xff]   ;;  %v2205_v50 = vpop.permute.xlu0 %2204 }
 0x869   :  { %8107 = vpow2.f32 %v5934_v59  ;;  %v7912_v59 = vld [vmem:[%s11351_s7 + $0x258] sm:$0xff]  }
 0x86a   :  { %8109 = vpow2.f32 %v5935_v52 }
 0x873   :  { %v8108_v51 = vpop.eup %8107 }
 0x874   :  { %v1999_v53 = vadd.f32 1.0, %v8108_v51  ;;  %v8110_v21 = vpop.eup %8109  ;;  %v2207_v51 = vmul.f32 %v2205_v50, %v8736_v60 }
 0x875   :  { %v2000_v37 = vadd.f32 1.0, %v8110_v21 }
 0x876   :  { %8111 = vrcp.f32 %v1999_v53  ;;  %v2210_v52 = vadd.f32 %v2207_v51, %v8742_v1 }
 0x880   :  { %v8112_v34 = vpop.eup %8111 }
 0x884   :  { %v1972_v23 = vpop.f32.mrb[44].mxu1 }
 0x885   :  { %v2005_v22 = vadd.f32 %v9337_v36, %v1972_v23  ;;  %v7137_v17 = vpop.f32.mrb[45].mxu1 }
 0x886   :  { %v1975_v5 = vpop.f32.mrb[46].mxu1 }
 0x887   :  { %v2006_v19 = vmul.f32 %v8112_v34, %v2005_v22  ;;  %v7138_v55 = vpop.f32.mrb[47].mxu1 }
 0x889   :  { %v2007_v38 = vadd.f32 %v2006_v19, %v1990_v26 }
 0x88b   :  { %8113 = vtanh.f32 %v2007_v38 }
 0x88c   :  { %8115 = vrcp.f32 %v2000_v37  ;;  %v2208_v37 = vmul.f32 %v2205_v50, %v8744_v4 }
 0x88e   :  { %v2211_v38 = vadd.f32 %v2208_v37, %v8748_v10  ;;  %v7924_v37 = vld [vmem:[%s11351_s7 + $0x2b8] sm:$0xff]  }
 0x895   :  { %v8114_v40 = vpop.eup %8113 }
 0x896   :  { %v2009_v54 = vsub.f32 %v9501_v56, %v8114_v40  ;;  %v8116_v58 = vpop.eup %8115  ;;  %v7909_v56 = vld [vmem:[%s11351_s7 + $0x240] sm:$0xff]  }
 0x898   :  { %v2010_v7 = vmul.f32 %v8116_v58, %v2009_v54 }
 0x89a   :  { %v9625_v61 = vadd.f32 %v8114_v40, %v2010_v7 }
 0x89c   :  { %v2012_v63 = vpack.c.bf16 %v9625_v61, %v9625_v61 }
 0x89e   :  { %7156 = vmatmul.mubr.bf16.vlgmr.msra.gmra.mrb[48].mxu0 %v2012_v63  ;;  %2152 = vmatmul.mubr.bf16.vlgmr.msra.gmra.mrb[48].mxu1 %v2012_v63 }
 0x89f   :  { %7160 = vmatpush3.bf16.msra.mxu0 %v9508_v9  ;;  %7175 = vmatprep.mubr.msk.bf16.mxu0 %vm8427_vm0, %v8425_v2 }
 0x8a0   :  { %7161 = vmatprep.subr.bf16.mxu0 %v8425_v2  ;;  %7195 = vmatprep.mubr.msk.bf16.mxu1 %vm8427_vm0, %v8425_v2 }
 0x8a1   :  { %7180 = vmatpush3.bf16.msra.mxu1 %v7909_v56 }
 0x8a2   :  { %7181 = vmatprep.subr.bf16.mxu1 %v8425_v2 }
 0x8a3   :  { %7162 = vmatpush3.bf16.msra.mxu0 %v9519_v25 }
 0x8a4   :  { %7163 = vmatprep.subr.bf16.mxu0 %v8425_v2 }
 0x8a5   :  { %7182 = vmatpush3.bf16.msra.mxu1 %v7910_v0 }
 0x8a6   :  { %7183 = vmatprep.subr.bf16.mxu1 %v8425_v2 }
 0x8a7   :  { %7164 = vmatpush3.bf16.msra.mxu0 %v9526_v11 }
 0x8a8   :  { %7165 = vmatprep.subr.bf16.mxu0 %v8425_v2 }
 0x8a9   :  { %7184 = vmatpush3.bf16.msra.mxu1 %v7911_v6 }
 0x8aa   :  { %7185 = vmatprep.subr.bf16.mxu1 %v8425_v2 }
 0x8ab   :  { %7166 = vmatpush3.bf16.msra.mxu0 %v9533_v12 }
 0x8ac   :  { %7167 = vmatprep.subr.bf16.mxu0 %v8425_v2 }
 0x8ad   :  { %7186 = vmatpush3.bf16.msra.mxu1 %v7912_v59 }
 0x8ae   :  { %7187 = vmatprep.subr.bf16.mxu1 %v8425_v2 }
 0x8af   :  { %7168 = vmatpush3.bf16.msra.mxu0 %v9540_v13 }
 0x8b0   :  { %7169 = vmatprep.subr.bf16.mxu0 %v8425_v2 }
 0x8b1   :  { %7188 = vmatpush3.bf16.msra.mxu1 %v7913_v62 }
 0x8b2   :  { %7189 = vmatprep.subr.bf16.mxu1 %v8425_v2 }
 0x8b3   :  { %7170 = vmatpush3.bf16.msra.mxu0 %v9547_v14 }
 0x8b4   :  { %7171 = vmatprep.subr.bf16.mxu0 %v8425_v2 }
 0x8b5   :  { %7190 = vmatpush3.bf16.msra.mxu1 %v7914_v41 }
 0x8b6   :  { %7191 = vmatprep.subr.bf16.mxu1 %v8425_v2 }
 0x8b7   :  { %7172 = vmatpush3.bf16.msra.mxu0 %v9554_v18 }
 0x8b8   :  { %7173 = vmatprep.subr.bf16.mxu0 %v8425_v2 }
 0x8b9   :  { %7192 = vmatpush3.bf16.msra.mxu1 %v7915_v48 }
 0x8ba   :  { %7193 = vmatprep.subr.bf16.mxu1 %v8425_v2 }
 0x8bb   :  { %7174 = vmatpush3.bf16.msra.mxu0 %v9561_v20 }
 0x8bc   :  { %2341 = vmatprep.subr.bf16.mxu0 %v9274_v35 }
 0x8bd   :  { %7194 = vmatpush3.bf16.msra.mxu1 %v7916_v49 }
 0x8be   :  { %7176 = vmatmul.mubr.bf16.vlgmr.msra.gmra.mrb[52].mxu0 %v2012_v63  ;;  %7199 = vmatprep.subr.bf16.mxu1 %v8425_v2 }
 0x8bf   :  { %2342 = vmatpush1.bf16.msra.mxu0 %v9369_v16  ;;  %2373 = vmatprep.mubr.bf16.mxu0 %v8426_v3 }
 0x8c0   :  { %2343 = vmatprep.subr.bf16.mxu0 %v9376_v39 }
 0x8c3   :  { %2344 = vmatpush1.bf16.msra.mxu0 %v9382_v28 }
 0x8c4   :  { %2345 = vmatprep.subr.bf16.mxu0 %v9388_v29 }
 0x8c7   :  { %2346 = vmatpush1.bf16.msra.mxu0 %v9394_v30 }
 0x8c8   :  { %2347 = vmatprep.subr.bf16.mxu0 %v9400_v31 }
 0x8cb   :  { %2348 = vmatpush1.bf16.msra.mxu0 %v9406_v32 }
 0x8cc   :  { %2349 = vmatprep.subr.bf16.mxu0 %v9412_v33 }
 0x8cf   :  { %2350 = vmatpush1.bf16.msra.mxu0 %v9418_v8 }
 0x8d0   :  { %2351 = vmatprep.subr.bf16.mxu0 %v9424_v42 }
 0x8d3   :  { %2352 = vmatpush1.bf16.msra.mxu0 %v9430_v43 }
 0x8d4   :  { %2353 = vmatprep.subr.bf16.mxu0 %v9436_v44 }
 0x8d7   :  { %2354 = vmatpush1.bf16.msra.mxu0 %v9442_v45 }
 0x8d8   :  { %2355 = vmatprep.subr.bf16.mxu0 %v9448_v46 }
 0x8db   :  { %2356 = vmatpush1.bf16.msra.mxu0 %v9454_v47 }
 0x8dc   :  { %7219 = vmatprep.subr.bf16.mxu0 %v8425_v2 }
 0x971   :  { %v2112_v53 = vpop.f32.mrb[48].mxu0  ;;  %v2153_v15 = vpop.f32.mrb[48].mxu1 }
 0x972   :  { %v9701_v23 = vadd.f32 %v2112_v53, %v9617_v57  ;;  %v2213_v21 = vadd.f32 %v2210_v52, %v2153_v15  ;;  %v7157_v22 = vpop.f32.mrb[49].mxu0  ;;  %v2155_v17 = vpop.f32.mrb[49].mxu1  ;;  %v2209_v57 = vmul.f32 %v2205_v50, %v8751_v24 }
 0x973   :  { %v2115_v34 = vpop.f32.mrb[50].mxu0  ;;  %v2157_v5 = vpop.f32.mrb[50].mxu1  ;;  %v2214_v40 = vadd.f32 %v2211_v38, %v2155_v17 }
 0x974   :  { %v5961_v26 = vmul.f32 -1.442695, %v2213_v21  ;;  %v7158_v19 = vpop.f32.mrb[51].mxu0  ;;  %v2158_v55 = vpop.f32.mrb[51].mxu1  ;;  %v2212_v41 = vadd.f32 %v2209_v57, %v8759_v27  ;;  %v7919_v34 = vld [vmem:[%s11351_s7 + $0x290] sm:$0xff]   ;;  %v7920_v5 = vld [vmem:[%s11351_s7 + $0x298] sm:$0xff]  }
 0x975   :  { %v5962_v58 = vmul.f32 -1.442695, %v2214_v40  ;;  %v7922_v19 = vld [vmem:[%s11351_s7 + $0x2a8] sm:$0xff]   ;;  %v7923_v55 = vld [vmem:[%s11351_s7 + $0x2b0] sm:$0xff]   ;;  %v2427_v38 = vpop.permute.xlu1 %2426 }
 0x976   :  { %8117 = vpow2.f32 %v5961_v26  ;;  %v7921_v26 = vld [vmem:[%s11351_s7 + $0x2a0] sm:$0xff]   ;;  %v2429_v40 = vmul.f32 %v2427_v38, %v8736_v60 }
 0x977   :  { %8119 = vpow2.f32 %v5962_v58 }
 0x980   :  { %v8118_v54 = vpop.eup %8117 }
 0x981   :  { %v2221_v7 = vadd.f32 1.0, %v8118_v54  ;;  %v8120_v56 = vpop.eup %8119  ;;  %v2432_v54 = vadd.f32 %v2429_v40, %v8742_v1 }
 0x982   :  { %v2222_v51 = vadd.f32 1.0, %v8120_v56 }
 0x983   :  { %8121 = vrcp.f32 %v2221_v7 }
 0x98d   :  { %v8122_v59 = vpop.eup %8121 }
 0x991   :  { %v2194_v63 = vpop.f32.mrb[52].mxu0 }
 0x992   :  { %v2227_v0 = vadd.f32 %v9337_v36, %v2194_v63  ;;  %v7177_v6 = vpop.f32.mrb[53].mxu0 }
 0x993   :  { %v2197_v62 = vpop.f32.mrb[54].mxu0 }
 0x994   :  { %v2228_v48 = vmul.f32 %v8122_v59, %v2227_v0  ;;  %v7178_v49 = vpop.f32.mrb[55].mxu0 }
 0x995   :  { %v2430_v49 = vmul.f32 %v2427_v38, %v8744_v4 }
 0x996   :  { %v2229_v52 = vadd.f32 %v2228_v48, %v2212_v41 }
 0x998   :  { %8123 = vtanh.f32 %v2229_v52 }
 0x999   :  { %8125 = vrcp.f32 %v2222_v51  ;;  %v2433_v51 = vadd.f32 %v2430_v49, %v8748_v10 }
 0x9a2   :  { %v8124_v53 = vpop.eup %8123 }
 0x9a3   :  { %v2231_v15 = vsub.f32 %v9625_v61, %v8124_v53  ;;  %v8126_v21 = vpop.eup %8125  ;;  %v7918_v61 = vld [vmem:[%s11351_s7 + $0x288] sm:$0xff]  }
 0x9a5   :  { %v2232_v50 = vmul.f32 %v8126_v21, %v2231_v15 }
 0x9a7   :  { %v9709_v22 = vadd.f32 %v8124_v53, %v2232_v50 }
 0x9a9   :  { %v2234_v17 = vpack.c.bf16 %v9709_v22, %v9709_v22 }
 0x9ab   :  { %7196 = vmatmul.mubr.bf16.vlgmr.msra.gmra.mrb[52].mxu1 %v2234_v17  ;;  %2374 = vmatmul.mubr.bf16.vlgmr.msra.gmra.mrb[56].mxu0 %v2234_v17 }
 0x9ac   :  { %7200 = vmatpush3.bf16.msra.mxu1 %v9508_v9  ;;  %7215 = vmatprep.mubr.msk.bf16.mxu1 %vm8427_vm0, %v8425_v2 }
 0x9ad   :  { %7201 = vmatprep.subr.bf16.mxu1 %v8425_v2  ;;  %7235 = vmatprep.mubr.msk.bf16.mxu0 %vm8427_vm0, %v8425_v2 }
 0x9b0   :  { %7202 = vmatpush3.bf16.msra.mxu1 %v9519_v25 }
 0x9b1   :  { %7203 = vmatprep.subr.bf16.mxu1 %v8425_v2 }
 0x9b4   :  { %7204 = vmatpush3.bf16.msra.mxu1 %v9526_v11 }
 0x9b5   :  { %7205 = vmatprep.subr.bf16.mxu1 %v8425_v2 }
 0x9b8   :  { %7206 = vmatpush3.bf16.msra.mxu1 %v9533_v12 }
 0x9b9   :  { %7207 = vmatprep.subr.bf16.mxu1 %v8425_v2 }
 0x9bc   :  { %7208 = vmatpush3.bf16.msra.mxu1 %v9540_v13 }
 0x9bd   :  { %7209 = vmatprep.subr.bf16.mxu1 %v8425_v2 }
 0x9c0   :  { %7210 = vmatpush3.bf16.msra.mxu1 %v9547_v14 }
 0x9c1   :  { %7211 = vmatprep.subr.bf16.mxu1 %v8425_v2 }
 0x9c4   :  { %7212 = vmatpush3.bf16.msra.mxu1 %v9554_v18 }
 0x9c5   :  { %7213 = vmatprep.subr.bf16.mxu1 %v8425_v2 }
 0x9c8   :  { %7214 = vmatpush3.bf16.msra.mxu1 %v9561_v20 }
 0x9c9   :  { %2563 = vmatprep.subr.bf16.mxu1 %v9274_v35  ;;  %v7917_v35 = vld [vmem:[%s11351_s7 + $0x280] sm:$0xff]  }
 0x9ca   :  { %7220 = vmatpush3.bf16.msra.mxu0 %v7917_v35 }
 0x9cb   :  { %7216 = vmatmul.mubr.bf16.vlgmr.msra.gmra.mrb[56].mxu1 %v2234_v17  ;;  %7221 = vmatprep.subr.bf16.mxu0 %v8425_v2 }
 0x9cc   :  { %2564 = vmatpush1.bf16.msra.mxu1 %v9369_v16  ;;  %2595 = vmatprep.mubr.bf16.mxu1 %v8426_v3 }
 0x9cd   :  { %2565 = vmatprep.subr.bf16.mxu1 %v9376_v39 }
 0x9ce   :  { %7222 = vmatpush3.bf16.msra.mxu0 %v7918_v61 }
 0x9cf   :  { %7223 = vmatprep.subr.bf16.mxu0 %v8425_v2 }
 0x9d0   :  { %2566 = vmatpush1.bf16.msra.mxu1 %v9382_v28 }
 0x9d1   :  { %2567 = vmatprep.subr.bf16.mxu1 %v9388_v29 }
 0x9d2   :  { %7224 = vmatpush3.bf16.msra.mxu0 %v7919_v34 }
 0x9d3   :  { %7225 = vmatprep.subr.bf16.mxu0 %v8425_v2 }
 0x9d4   :  { %2568 = vmatpush1.bf16.msra.mxu1 %v9394_v30 }
 0x9d5   :  { %2569 = vmatprep.subr.bf16.mxu1 %v9400_v31 }
 0x9d6   :  { %7226 = vmatpush3.bf16.msra.mxu0 %v7920_v5 }
 0x9d7   :  { %7227 = vmatprep.subr.bf16.mxu0 %v8425_v2 }
 0x9d8   :  { %2570 = vmatpush1.bf16.msra.mxu1 %v9406_v32 }
 0x9d9   :  { %2571 = vmatprep.subr.bf16.mxu1 %v9412_v33 }
 0x9da   :  { %7228 = vmatpush3.bf16.msra.mxu0 %v7921_v26 }
 0x9db   :  { %7229 = vmatprep.subr.bf16.mxu0 %v8425_v2 }
 0x9dc   :  { %2572 = vmatpush1.bf16.msra.mxu1 %v9418_v8 }
 0x9dd   :  { %2573 = vmatprep.subr.bf16.mxu1 %v9424_v42 }
 0x9de   :  { %7230 = vmatpush3.bf16.msra.mxu0 %v7922_v19 }
 0x9df   :  { %7231 = vmatprep.subr.bf16.mxu0 %v8425_v2 }
 0x9e0   :  { %2574 = vmatpush1.bf16.msra.mxu1 %v9430_v43 }
 0x9e1   :  { %2575 = vmatprep.subr.bf16.mxu1 %v9436_v44 }
 0x9e2   :  { %7232 = vmatpush3.bf16.msra.mxu0 %v7923_v55 }
 0x9e3   :  { %7233 = vmatprep.subr.bf16.mxu0 %v8425_v2 }
 0x9e4   :  { %2576 = vmatpush1.bf16.msra.mxu1 %v9442_v45 }
 0x9e5   :  { %2577 = vmatprep.subr.bf16.mxu1 %v9448_v46 }
 0x9e6   :  { %7234 = vmatpush3.bf16.msra.mxu0 %v7924_v37 }
 0x9e7   :  { %7239 = vmatprep.subr.bf16.mxu0 %v8425_v2 }
 0x9e8   :  { %2578 = vmatpush1.bf16.msra.mxu1 %v9454_v47 }
 0x9e9   :  { %7259 = vmatprep.subr.bf16.mxu1 %v8425_v2 }
 0xa7e   :  { %v2334_v58 = vpop.f32.mrb[52].mxu1  ;;  %v2375_v7 = vpop.f32.mrb[56].mxu0 }
 0xa7f   :  { %v9785_v57 = vadd.f32 %v2334_v58, %v9701_v23  ;;  %v2435_v63 = vadd.f32 %v2432_v54, %v2375_v7  ;;  %v7197_v56 = vpop.f32.mrb[53].mxu1  ;;  %v2377_v0 = vpop.f32.mrb[57].mxu0  ;;  %v2431_v23 = vmul.f32 %v2427_v38, %v8751_v24 }
 0xa80   :  { %v2337_v6 = vpop.f32.mrb[54].mxu1  ;;  %v2379_v59 = vpop.f32.mrb[58].mxu0  ;;  %v2436_v52 = vadd.f32 %v2433_v51, %v2377_v0 }
 0xa81   :  { %v5988_v62 = vmul.f32 -1.442695, %v2435_v63  ;;  %v7198_v41 = vpop.f32.mrb[55].mxu1  ;;  %v2380_v48 = vpop.f32.mrb[59].mxu0  ;;  %v2434_v26 = vadd.f32 %v2431_v23, %v8759_v27 }
 0xa82   :  { %v5989_v15 = vmul.f32 -1.442695, %v2436_v52 }
 0xa83   :  { %8127 = vpow2.f32 %v5988_v62 }
 0xa84   :  { %8129 = vpow2.f32 %v5989_v15 }
 0xa8d   :  { %v8128_v53 = vpop.eup %8127 }
 0xa8e   :  { %v2443_v21 = vadd.f32 1.0, %v8128_v53  ;;  %v8130_v17 = vpop.eup %8129 }
 0xa8f   :  { %v2444_v37 = vadd.f32 1.0, %v8130_v17  ;;  %v9882_v17 = vld [vmem:[%s11350_s6] ss:$0 sm:$0xff] }
 0xa90   :  { %8131 = vrcp.f32 %v2443_v21 }
 0xa9a   :  { %v8132_v34 = vpop.eup %8131 }
 0xa9e   :  { %v2416_v50 = vpop.f32.mrb[56].mxu1 }
 0xa9f   :  { %v2449_v35 = vadd.f32 %v9337_v36, %v2416_v50  ;;  %v7217_v61 = vpop.f32.mrb[57].mxu1 }
 0xaa0   :  { %v2419_v5 = vpop.f32.mrb[58].mxu1 }
 0xaa1   :  { %v2450_v19 = vmul.f32 %v8132_v34, %v2449_v35  ;;  %v7218_v55 = vpop.f32.mrb[59].mxu1 }
 0xaa3   :  { %v2451_v40 = vadd.f32 %v2450_v19, %v2434_v26 }
 0xaa5   :  { %8133 = vtanh.f32 %v2451_v40 }
 0xaa6   :  { %8135 = vrcp.f32 %v2444_v37 }
 0xaaf   :  { %v8134_v54 = vpop.eup %8133 }
 0xab0   :  { %v2453_v58 = vsub.f32 %v9709_v22, %v8134_v54  ;;  %v8136_v7 = vpop.eup %8135  ;;  %v9819_v22 = vld [vmem:[%s11349_s5 + $0x4] ss:$12 sps:$4 sm:$0xff]  }
 0xab2   :  { %v2454_v38 = vmul.f32 %v8136_v7, %v2453_v58 }
 0xab4   :  { %v9793_v63 = vadd.f32 %v8134_v54, %v2454_v38 }
 0xab6   :  { %v2456_v36 = vpack.c.bf16 %v9793_v63, %v9793_v63 }
 0xab8   :  { %7236 = vmatmul.mubr.bf16.vlgmr.msra.gmra.mrb[60].mxu0 %v2456_v36  ;;  %2596 = vmatmul.mubr.bf16.vlgmr.msra.gmra.mrb[60].mxu1 %v2456_v36 }
 0xab9   :  { %7240 = vmatpush3.bf16.msra.mxu0 %v9508_v9  ;;  %7255 = vmatprep.mubr.msk.bf16.mxu0 %vm8427_vm0, %v8425_v2 }
 0xaba   :  { %7241 = vmatprep.subr.bf16.mxu0 %v8425_v2  ;;  %7275 = vmatprep.mubr.msk.bf16.mxu1 %vm8427_vm0, %v8425_v2 }
 0xabd   :  { %7242 = vmatpush3.bf16.msra.mxu0 %v9519_v25 }
 0xabe   :  { %7243 = vmatprep.subr.bf16.mxu0 %v8425_v2 }
 0xac1   :  { %7244 = vmatpush3.bf16.msra.mxu0 %v9526_v11 }
 0xac2   :  { %7245 = vmatprep.subr.bf16.mxu0 %v8425_v2 }
 0xac5   :  { %7246 = vmatpush3.bf16.msra.mxu0 %v9533_v12 }
 0xac6   :  { %7247 = vmatprep.subr.bf16.mxu0 %v8425_v2 }
 0xac9   :  { %7248 = vmatpush3.bf16.msra.mxu0 %v9540_v13 }
 0xaca   :  { %7249 = vmatprep.subr.bf16.mxu0 %v8425_v2 }
 0xacd   :  { %7250 = vmatpush3.bf16.msra.mxu0 %v9547_v14 }
 0xace   :  { %7251 = vmatprep.subr.bf16.mxu0 %v8425_v2 }
 0xad1   :  { %7252 = vmatpush3.bf16.msra.mxu0 %v9554_v18 }
 0xad2   :  { %7253 = vmatprep.subr.bf16.mxu0 %v8425_v2 }
 0xad5   :  { %7254 = vmatpush3.bf16.msra.mxu0 %v9561_v20 }
 0xad6   :  { %2785 = vmatprep.subr.bf16.mxu0 %v9819_v22 }
 0xad8   :  { %7256 = vmatmul.mubr.bf16.vlgmr.msra.gmra.mrb[64].mxu0 %v2456_v36 }
 0xad9   :  { %2786 = vmatpush1.bf16.msra.mxu0 %v9369_v16  ;;  %2817 = vmatprep.mubr.bf16.mxu0 %v8426_v3  ;;  %v7925_v16 = vld [vmem:[%s11351_s7 + $0x2c0] sm:$0xff]  }
 0xada   :  { %2787 = vmatprep.subr.bf16.mxu0 %v9376_v39  ;;  %7260 = vmatpush3.bf16.msra.mxu1 %v7925_v16  ;;  %v7926_v39 = vld [vmem:[%s11351_s7 + $0x2c8] sm:$0xff]  }
 0xadb   :  { %7261 = vmatprep.subr.bf16.mxu1 %v8425_v2 }
 0xadd   :  { %2788 = vmatpush1.bf16.msra.mxu0 %v9382_v28  ;;  %v7927_v28 = vld [vmem:[%s11351_s7 + $0x2d0] sm:$0xff]  }
 0xade   :  { %2789 = vmatprep.subr.bf16.mxu0 %v9388_v29  ;;  %7262 = vmatpush3.bf16.msra.mxu1 %v7926_v39  ;;  %v7928_v29 = vld [vmem:[%s11351_s7 + $0x2d8] sm:$0xff]  }
 0xadf   :  { %7263 = vmatprep.subr.bf16.mxu1 %v8425_v2  ;;  %v9969_v39 = vld [vmem:[%s11349_s5 + $0x7c] ss:$12 sps:$4 sm:$0xff]  }
 0xae1   :  { %2790 = vmatpush1.bf16.msra.mxu0 %v9394_v30  ;;  %v7929_v30 = vld [vmem:[%s11351_s7 + $0x2e0] sm:$0xff]  }
 0xae2   :  { %2791 = vmatprep.subr.bf16.mxu0 %v9400_v31  ;;  %7264 = vmatpush3.bf16.msra.mxu1 %v7927_v28  ;;  %v7930_v31 = vld [vmem:[%s11351_s7 + $0x2e8] sm:$0xff]   ;;  %v9975_v28 = vld [vmem:[%s11349_s5 + $0x78] ss:$12 sps:$4 sm:$0xff]  }
 0xae3   :  { %7265 = vmatprep.subr.bf16.mxu1 %v8425_v2 }
 0xae5   :  { %2792 = vmatpush1.bf16.msra.mxu0 %v9406_v32  ;;  %v7931_v32 = vld [vmem:[%s11351_s7 + $0x2f0] sm:$0xff]  }
 0xae6   :  { %2793 = vmatprep.subr.bf16.mxu0 %v9412_v33  ;;  %7266 = vmatpush3.bf16.msra.mxu1 %v7928_v29  ;;  %v7932_v33 = vld [vmem:[%s11351_s7 + $0x2f8] sm:$0xff]   ;;  %v9981_v29 = vld [vmem:[%s11349_s5 + $0x94] ss:$12 sps:$4 sm:$0xff]  }
 0xae7   :  { %7267 = vmatprep.subr.bf16.mxu1 %v8425_v2 }
 0xae9   :  { %2794 = vmatpush1.bf16.msra.mxu0 %v9418_v8  ;;  %v2649_v8 = vpop.permute.xlu0 %2648 }
 0xaea   :  { %2795 = vmatprep.subr.bf16.mxu0 %v9424_v42  ;;  %7268 = vmatpush3.bf16.msra.mxu1 %v7929_v30  ;;  %v2651_v42 = vmul.f32 %v2649_v8, %v8736_v60  ;;  %v2652_v49 = vmul.f32 %v2649_v8, %v8744_v4  ;;  %v9987_v30 = vld [vmem:[%s11349_s5 + $0x90] ss:$12 sps:$4 sm:$0xff]  }
 0xaeb   :  { %7269 = vmatprep.subr.bf16.mxu1 %v8425_v2 }
 0xaec   :  { %v2655_v51 = vadd.f32 %v2652_v49, %v8748_v10 }
 0xaed   :  { %2796 = vmatpush1.bf16.msra.mxu0 %v9430_v43  ;;  %v2654_v43 = vadd.f32 %v2651_v42, %v8742_v1  ;;  %v7935_v42 = vld [vmem:[%s11351_s7 + $0x310] sm:$0xff]  }
 0xaee   :  { %2797 = vmatprep.subr.bf16.mxu0 %v9436_v44  ;;  %7270 = vmatpush3.bf16.msra.mxu1 %v7930_v31  ;;  %v9993_v31 = vld [vmem:[%s11349_s5 + $0xac] ss:$12 sps:$4 sm:$0xff]  }
 0xaef   :  { %7271 = vmatprep.subr.bf16.mxu1 %v8425_v2 }
 0xaf1   :  { %2798 = vmatpush1.bf16.msra.mxu0 %v9442_v45 }
 0xaf2   :  { %2799 = vmatprep.subr.bf16.mxu0 %v9448_v46  ;;  %7272 = vmatpush3.bf16.msra.mxu1 %v7931_v32  ;;  %v9999_v32 = vld [vmem:[%s11349_s5 + $0xa8] ss:$12 sps:$4 sm:$0xff]  }
 0xaf3   :  { %7273 = vmatprep.subr.bf16.mxu1 %v8425_v2 }
 0xaf5   :  { %2800 = vmatpush1.bf16.msra.mxu0 %v9454_v47 }
 0xaf6   :  { %7299 = vmatprep.subr.bf16.mxu0 %v8425_v2  ;;  %7274 = vmatpush3.bf16.msra.mxu1 %v7932_v33  ;;  %v7933_v33 = vld [vmem:[%s11351_s7 + $0x300] sm:$0xff]  }
 0xaf7   :  { %7279 = vmatprep.subr.bf16.mxu1 %v8425_v2 }
 0xb8b   :  { %v2556_v44 = vpop.f32.mrb[60].mxu0  ;;  %v2597_v45 = vpop.f32.mrb[60].mxu1 }
 0xb8c   :  { %v9874_v46 = vadd.f32 %v2556_v44, %v9785_v57  ;;  %v2657_v47 = vadd.f32 %v2654_v43, %v2597_v45  ;;  %v7237_v56 = vpop.f32.mrb[61].mxu0  ;;  %v2599_v0 = vpop.f32.mrb[61].mxu1  ;;  %v2653_v57 = vmul.f32 %v2649_v8, %v8751_v24  ;;  %v7934_v8 = vld [vmem:[%s11351_s7 + $0x308] sm:$0xff]   ;;  %v7936_v43 = vld [vmem:[%s11351_s7 + $0x318] sm:$0xff]   ;;  %v7937_v44 = vld [vmem:[%s11351_s7 + $0x320] sm:$0xff]  }
 0xb8d   :  { %v2559_v6 = vpop.f32.mrb[62].mxu0  ;;  %v2601_v59 = vpop.f32.mrb[62].mxu1  ;;  %v2658_v52 = vadd.f32 %v2655_v51, %v2599_v0  ;;  %v7938_v45 = vld [vmem:[%s11351_s7 + $0x328] sm:$0xff]   ;;  %v7940_v56 = vld [vmem:[%s11351_s7 + $0x338] sm:$0xff]  }
 0xb8e   :  { %v6015_v62 = vmul.f32 -1.442695, %v2657_v47  ;;  %v7238_v41 = vpop.f32.mrb[63].mxu0  ;;  %v2602_v48 = vpop.f32.mrb[63].mxu1  ;;  %v2656_v26 = vadd.f32 %v2653_v57, %v8759_v27  ;;  %v7939_v47 = vld [vmem:[%s11351_s7 + $0x330] sm:$0xff]  }
 0xb8f   :  { %v6016_v15 = vmul.f32 -1.442695, %v2658_v52  ;;  %v2871_v0 = vpop.permute.xlu1 %2870 }
 0xb90   :  { %8137 = vpow2.f32 %v6015_v62  ;;  %v2873_v6 = vmul.f32 %v2871_v0, %v8736_v60 }
 0xb91   :  { %8139 = vpow2.f32 %v6016_v15 }
 0xb92   :  { %v2876_v59 = vadd.f32 %v2873_v6, %v8742_v1  ;;  %v10071_v6 = vld [vmem:[%s11349_s5 + $0x38] ss:$12 sps:$4 sm:$0xff]  }
 0xb9a   :  { %v8138_v53 = vpop.eup %8137 }
 0xb9b   :  { %v2665_v21 = vadd.f32 1.0, %v8138_v53  ;;  %v8140_v50 = vpop.eup %8139 }
 0xb9c   :  { %v2666_v37 = vadd.f32 1.0, %v8140_v50  ;;  %v2874_v50 = vmul.f32 %v2871_v0, %v8744_v4 }
 0xb9d   :  { %8141 = vrcp.f32 %v2665_v21 }
 0xba7   :  { %v8142_v34 = vpop.eup %8141 }
 0xbab   :  { %v2638_v23 = vpop.f32.mrb[64].mxu0 }
 0xbac   :  { %v2671_v35 = vadd.f32 %v9882_v17, %v2638_v23  ;;  %v7257_v61 = vpop.f32.mrb[65].mxu0 }
 0xbad   :  { %v2641_v5 = vpop.f32.mrb[66].mxu0 }
 0xbae   :  { %v2672_v19 = vmul.f32 %v8142_v34, %v2671_v35  ;;  %v7258_v55 = vpop.f32.mrb[67].mxu0  ;;  %v2877_v35 = vadd.f32 %v2874_v50, %v8748_v10  ;;  %v7947_v50 = vld [vmem:[%s11351_s7 + $0x370] sm:$0xff]  }
 0xbb0   :  { %v2673_v40 = vadd.f32 %v2672_v19, %v2656_v26 }
 0xbb2   :  { %8143 = vtanh.f32 %v2673_v40 }
 0xbb3   :  { %8145 = vrcp.f32 %v2666_v37 }
 0xbbc   :  { %v8144_v54 = vpop.eup %8143 }
 0xbbd   :  { %v2675_v58 = vsub.f32 %v9793_v63, %v8144_v54  ;;  %v8146_v7 = vpop.eup %8145  ;;  %v9963_v63 = vld [vmem:[%s11349_s5 + $0x60] ss:$12 sps:$4 sm:$0xff]  }
 0xbbf   :  { %v2676_v38 = vmul.f32 %v8146_v7, %v2675_v58 }
 0xbc1   :  { %v9887_v36 = vadd.f32 %v8144_v54, %v2676_v38 }
 0xbc3   :  { %v2678_v16 = vpack.c.bf16 %v9887_v36, %v9887_v36 }
 0xbc5   :  { %7276 = vmatmul.mubr.bf16.vlgmr.msra.gmra.mrb[64].mxu1 %v2678_v16  ;;  %2818 = vmatmul.mubr.bf16.vlgmr.msra.gmra.mrb[68].mxu0 %v2678_v16 }
 0xbc6   :  { %7280 = vmatpush3.bf16.msra.mxu1 %v9508_v9  ;;  %7295 = vmatprep.mubr.msk.bf16.mxu1 %vm8427_vm0, %v8425_v2  ;;  %v9914_v9 = vld [vmem:[%s11349_s5] ss:$12 sps:$4 sm:$0xff]  }
 0xbc7   :  { %7281 = vmatprep.subr.bf16.mxu1 %v8425_v2  ;;  %7315 = vmatprep.mubr.msk.bf16.mxu0 %vm8427_vm0, %v8425_v2 }
 0xbc8   :  { %7300 = vmatpush3.bf16.msra.mxu0 %v7933_v33 }
 0xbc9   :  { %7301 = vmatprep.subr.bf16.mxu0 %v8425_v2 }
 0xbca   :  { %7282 = vmatpush3.bf16.msra.mxu1 %v9519_v25  ;;  %v9921_v25 = vld [vmem:[%s11349_s5 + $0x1c] ss:$12 sps:$4 sm:$0xff]  }
 0xbcb   :  { %7283 = vmatprep.subr.bf16.mxu1 %v8425_v2 }
 0xbcc   :  { %7302 = vmatpush3.bf16.msra.mxu0 %v7934_v8 }
 0xbcd   :  { %7303 = vmatprep.subr.bf16.mxu0 %v8425_v2 }
 0xbce   :  { %7284 = vmatpush3.bf16.msra.mxu1 %v9526_v11  ;;  %v9927_v11 = vld [vmem:[%s11349_s5 + $0x18] ss:$12 sps:$4 sm:$0xff]  }
 0xbcf   :  { %7285 = vmatprep.subr.bf16.mxu1 %v8425_v2 }
 0xbd0   :  { %7304 = vmatpush3.bf16.msra.mxu0 %v7935_v42 }
 0xbd1   :  { %7305 = vmatprep.subr.bf16.mxu0 %v8425_v2 }
 0xbd2   :  { %7286 = vmatpush3.bf16.msra.mxu1 %v9533_v12  ;;  %v9933_v12 = vld [vmem:[%s11349_s5 + $0x34] ss:$12 sps:$4 sm:$0xff]  }
 0xbd3   :  { %7287 = vmatprep.subr.bf16.mxu1 %v8425_v2 }
 0xbd4   :  { %7306 = vmatpush3.bf16.msra.mxu0 %v7936_v43 }
 0xbd5   :  { %7307 = vmatprep.subr.bf16.mxu0 %v8425_v2 }
 0xbd6   :  { %7288 = vmatpush3.bf16.msra.mxu1 %v9540_v13  ;;  %v9939_v13 = vld [vmem:[%s11349_s5 + $0x30] ss:$12 sps:$4 sm:$0xff]  }
 0xbd7   :  { %7289 = vmatprep.subr.bf16.mxu1 %v8425_v2 }
 0xbd8   :  { %7308 = vmatpush3.bf16.msra.mxu0 %v7937_v44 }
 0xbd9   :  { %7309 = vmatprep.subr.bf16.mxu0 %v8425_v2 }
 0xbda   :  { %7290 = vmatpush3.bf16.msra.mxu1 %v9547_v14  ;;  %v9945_v14 = vld [vmem:[%s11349_s5 + $0x4c] ss:$12 sps:$4 sm:$0xff]  }
 0xbdb   :  { %7291 = vmatprep.subr.bf16.mxu1 %v8425_v2 }
 0xbdc   :  { %7310 = vmatpush3.bf16.msra.mxu0 %v7938_v45 }
 0xbdd   :  { %7311 = vmatprep.subr.bf16.mxu0 %v8425_v2 }
 0xbde   :  { %7292 = vmatpush3.bf16.msra.mxu1 %v9554_v18  ;;  %v9951_v18 = vld [vmem:[%s11349_s5 + $0x48] ss:$12 sps:$4 sm:$0xff]  }
 0xbdf   :  { %7293 = vmatprep.subr.bf16.mxu1 %v8425_v2 }
 0xbe0   :  { %7312 = vmatpush3.bf16.msra.mxu0 %v7939_v47 }
 0xbe1   :  { %7313 = vmatprep.subr.bf16.mxu0 %v8425_v2 }
 0xbe2   :  { %7294 = vmatpush3.bf16.msra.mxu1 %v9561_v20  ;;  %v9957_v20 = vld [vmem:[%s11349_s5 + $0x64] ss:$12 sps:$4 sm:$0xff]  }
 0xbe3   :  { %3007 = vmatprep.subr.bf16.mxu1 %v9819_v22 }
 0xbe4   :  { %7314 = vmatpush3.bf16.msra.mxu0 %v7940_v56 }
 0xbe5   :  { %7296 = vmatmul.mubr.bf16.vlgmr.msra.gmra.mrb[68].mxu1 %v2678_v16  ;;  %7319 = vmatprep.subr.bf16.mxu0 %v8425_v2 }
 0xbe6   :  { %3008 = vmatpush1.bf16.msra.mxu1 %v9914_v9  ;;  %3039 = vmatprep.mubr.bf16.mxu1 %v8426_v3 }
 0xbe7   :  { %3009 = vmatprep.subr.bf16.mxu1 %v9921_v25 }
 0xbea   :  { %3010 = vmatpush1.bf16.msra.mxu1 %v9927_v11 }
 0xbeb   :  { %3011 = vmatprep.subr.bf16.mxu1 %v9933_v12 }
 0xbee   :  { %3012 = vmatpush1.bf16.msra.mxu1 %v9939_v13 }
 0xbef   :  { %3013 = vmatprep.subr.bf16.mxu1 %v9945_v14 }
 0xbf2   :  { %3014 = vmatpush1.bf16.msra.mxu1 %v9951_v18 }
 0xbf3   :  { %3015 = vmatprep.subr.bf16.mxu1 %v9957_v20 }
 0xbf6   :  { %3016 = vmatpush1.bf16.msra.mxu1 %v9963_v63 }
 0xbf7   :  { %3017 = vmatprep.subr.bf16.mxu1 %v9969_v39 }
 0xbfa   :  { %3018 = vmatpush1.bf16.msra.mxu1 %v9975_v28 }
 0xbfb   :  { %3019 = vmatprep.subr.bf16.mxu1 %v9981_v29 }
 0xbfe   :  { %3020 = vmatpush1.bf16.msra.mxu1 %v9987_v30 }
 0xbff   :  { %3021 = vmatprep.subr.bf16.mxu1 %v9993_v31 }
 0xc02   :  { %3022 = vmatpush1.bf16.msra.mxu1 %v9999_v32 }
 0xc03   :  { %7339 = vmatprep.subr.bf16.mxu1 %v8425_v2 }
 0xc98   :  { %v2778_v62 = vpop.f32.mrb[64].mxu1  ;;  %v2819_v41 = vpop.f32.mrb[68].mxu0 }
 0xc99   :  { %v10038_v48 = vadd.f32 %v2778_v62, %v9874_v46  ;;  %v2879_v49 = vadd.f32 %v2876_v59, %v2819_v41  ;;  %v7277_v51 = vpop.f32.mrb[65].mxu1  ;;  %v2821_v52 = vpop.f32.mrb[69].mxu0  ;;  %v2875_v46 = vmul.f32 %v2871_v0, %v8751_v24  ;;  %v10053_v0 = vld [vmem:[%s11349_s5 + $0x8] ss:$12 sps:$4 sm:$0xff]   ;;  %v10078_v59 = vld [vmem:[%s11349_s5 + $0x50] ss:$12 sps:$4 sm:$0xff]  }
 0xc9a   :  { %v2781_v53 = vpop.f32.mrb[66].mxu1  ;;  %v2823_v15 = vpop.f32.mrb[70].mxu0  ;;  %v2880_v61 = vadd.f32 %v2877_v35, %v2821_v52  ;;  %v10085_v62 = vld [vmem:[%s11349_s5 + $0x68] ss:$12 sps:$4 sm:$0xff]   ;;  %v10092_v41 = vld [vmem:[%s11349_s5 + $0x80] ss:$12 sps:$4 sm:$0xff]  }
 0xc9b   :  { %v6042_v21 = vmul.f32 -1.442695, %v2879_v49  ;;  %v7278_v57 = vpop.f32.mrb[67].mxu1  ;;  %v2824_v23 = vpop.f32.mrb[71].mxu0  ;;  %v2878_v7 = vadd.f32 %v2875_v46, %v8759_v27  ;;  %v10099_v49 = vld [vmem:[%s11349_s5 + $0x98] ss:$12 sps:$4 sm:$0xff]  }
 0xc9c   :  { %v6043_v5 = vmul.f32 -1.442695, %v2880_v61  ;;  %v10106_v51 = vld [vmem:[%s11349_s5 + $0xb0] ss:$12 sps:$4 sm:$0xff]   ;;  %v7941_v52 = vld [vmem:[%s11351_s7 + $0x340] sm:$0xff]   ;;  %v7942_v53 = vld [vmem:[%s11351_s7 + $0x348] sm:$0xff]   ;;  %v3093_v61 = vpop.permute.xlu0 %3092 }
 0xc9d   :  { %8147 = vpow2.f32 %v6042_v21  ;;  %v7943_v15 = vld [vmem:[%s11351_s7 + $0x350] sm:$0xff]   ;;  %v7944_v21 = vld [vmem:[%s11351_s7 + $0x358] sm:$0xff]   ;;  %v7945_v57 = vld [vmem:[%s11351_s7 + $0x360] sm:$0xff]  }
 0xc9e   :  { %8149 = vpow2.f32 %v6043_v5  ;;  %v7946_v23 = vld [vmem:[%s11351_s7 + $0x368] sm:$0xff]   ;;  %v7948_v35 = vld [vmem:[%s11351_s7 + $0x378] sm:$0xff]  }
 0xca7   :  { %v8148_v34 = vpop.eup %8147 }
 0xca8   :  { %v2887_v26 = vadd.f32 1.0, %v8148_v34  ;;  %v8150_v55 = vpop.eup %8149  ;;  %v3095_v34 = vmul.f32 %v3093_v61, %v8736_v60 }
 0xca9   :  { %v2888_v33 = vadd.f32 1.0, %v8150_v55 }
 0xcaa   :  { %8151 = vrcp.f32 %v2887_v26  ;;  %v3098_v5 = vadd.f32 %v3095_v34, %v8742_v1 }
 0xcb4   :  { %v8152_v54 = vpop.eup %8151 }
 0xcb8   :  { %v2860_v19 = vpop.f32.mrb[68].mxu1 }
 0xcb9   :  { %v2893_v37 = vadd.f32 %v9882_v17, %v2860_v19  ;;  %v7297_v40 = vpop.f32.mrb[69].mxu1 }
 0xcba   :  { %v2863_v58 = vpop.f32.mrb[70].mxu1 }
 0xcbb   :  { %v2894_v38 = vmul.f32 %v8152_v54, %v2893_v37  ;;  %v7298_v16 = vpop.f32.mrb[71].mxu1 }
 0xcbd   :  { %v2895_v8 = vadd.f32 %v2894_v38, %v2878_v7 }
 0xcbf   :  { %8153 = vtanh.f32 %v2895_v8 }
 0xcc0   :  { %8155 = vrcp.f32 %v2888_v33  ;;  %v3096_v33 = vmul.f32 %v3093_v61, %v8744_v4 }
 0xcc2   :  { %v3099_v8 = vadd.f32 %v3096_v33, %v8748_v10  ;;  %v7955_v33 = vld [vmem:[%s11351_s7 + $0x3b0] sm:$0xff]  }
 0xcc9   :  { %v8154_v42 = vpop.eup %8153 }
 0xcca   :  { %v2897_v43 = vsub.f32 %v9887_v36, %v8154_v42  ;;  %v8156_v44 = vpop.eup %8155  ;;  %v10064_v36 = vld [vmem:[%s11349_s5 + $0x20] ss:$12 sps:$4 sm:$0xff]  }
 0xccc   :  { %v2898_v45 = vmul.f32 %v8156_v44, %v2897_v43 }
 0xcce   :  { %v10046_v47 = vadd.f32 %v8154_v42, %v2898_v45 }
 0xcd0   :  { %v2900_v56 = vpack.c.bf16 %v10046_v47, %v10046_v47 }
 0xcd2   :  { %7316 = vmatmul.mubr.bf16.vlgmr.msra.gmra.mrb[72].mxu0 %v2900_v56  ;;  %3040 = vmatmul.mubr.bf16.vlgmr.msra.gmra.mrb[72].mxu1 %v2900_v56 }
 0xcd3   :  { %7320 = vmatpush3.bf16.msra.mxu0 %v10053_v0  ;;  %7335 = vmatprep.mubr.msk.bf16.mxu0 %vm8427_vm0, %v8425_v2 }
 0xcd4   :  { %7321 = vmatprep.subr.bf16.mxu0 %v8425_v2  ;;  %7355 = vmatprep.mubr.msk.bf16.mxu1 %vm8427_vm0, %v8425_v2 }
 0xcd5   :  { %7340 = vmatpush3.bf16.msra.mxu1 %v7941_v52 }
 0xcd6   :  { %7341 = vmatprep.subr.bf16.mxu1 %v8425_v2 }
 0xcd7   :  { %7322 = vmatpush3.bf16.msra.mxu0 %v10064_v36 }
 0xcd8   :  { %7323 = vmatprep.subr.bf16.mxu0 %v8425_v2 }
 0xcd9   :  { %7342 = vmatpush3.bf16.msra.mxu1 %v7942_v53 }
 0xcda   :  { %7343 = vmatprep.subr.bf16.mxu1 %v8425_v2 }
 0xcdb   :  { %7324 = vmatpush3.bf16.msra.mxu0 %v10071_v6 }
 0xcdc   :  { %7325 = vmatprep.subr.bf16.mxu0 %v8425_v2 }
 0xcdd   :  { %7344 = vmatpush3.bf16.msra.mxu1 %v7943_v15 }
 0xcde   :  { %7345 = vmatprep.subr.bf16.mxu1 %v8425_v2 }
 0xcdf   :  { %7326 = vmatpush3.bf16.msra.mxu0 %v10078_v59 }
 0xce0   :  { %7327 = vmatprep.subr.bf16.mxu0 %v8425_v2 }
 0xce1   :  { %7346 = vmatpush3.bf16.msra.mxu1 %v7944_v21 }
 0xce2   :  { %7347 = vmatprep.subr.bf16.mxu1 %v8425_v2 }
 0xce3   :  { %7328 = vmatpush3.bf16.msra.mxu0 %v10085_v62 }
 0xce4   :  { %7329 = vmatprep.subr.bf16.mxu0 %v8425_v2 }
 0xce5   :  { %7348 = vmatpush3.bf16.msra.mxu1 %v7945_v57 }
 0xce6   :  { %7349 = vmatprep.subr.bf16.mxu1 %v8425_v2 }
 0xce7   :  { %7330 = vmatpush3.bf16.msra.mxu0 %v10092_v41 }
 0xce8   :  { %7331 = vmatprep.subr.bf16.mxu0 %v8425_v2 }
 0xce9   :  { %7350 = vmatpush3.bf16.msra.mxu1 %v7946_v23 }
 0xcea   :  { %7351 = vmatprep.subr.bf16.mxu1 %v8425_v2 }
 0xceb   :  { %7332 = vmatpush3.bf16.msra.mxu0 %v10099_v49 }
 0xcec   :  { %7333 = vmatprep.subr.bf16.mxu0 %v8425_v2 }
 0xced   :  { %7352 = vmatpush3.bf16.msra.mxu1 %v7947_v50 }
 0xcee   :  { %7353 = vmatprep.subr.bf16.mxu1 %v8425_v2 }
 0xcef   :  { %7334 = vmatpush3.bf16.msra.mxu0 %v10106_v51 }
 0xcf0   :  { %3229 = vmatprep.subr.bf16.mxu0 %v9819_v22 }
 0xcf1   :  { %7354 = vmatpush3.bf16.msra.mxu1 %v7948_v35 }
 0xcf2   :  { %7336 = vmatmul.mubr.bf16.vlgmr.msra.gmra.mrb[76].mxu0 %v2900_v56  ;;  %7359 = vmatprep.subr.bf16.mxu1 %v8425_v2 }
 0xcf3   :  { %3230 = vmatpush1.bf16.msra.mxu0 %v9914_v9  ;;  %3261 = vmatprep.mubr.bf16.mxu0 %v8426_v3 }
 0xcf4   :  { %3231 = vmatprep.subr.bf16.mxu0 %v9921_v25 }
 0xcf7   :  { %3232 = vmatpush1.bf16.msra.mxu0 %v9927_v11 }
 0xcf8   :  { %3233 = vmatprep.subr.bf16.mxu0 %v9933_v12 }
 0xcfb   :  { %3234 = vmatpush1.bf16.msra.mxu0 %v9939_v13 }
 0xcfc   :  { %3235 = vmatprep.subr.bf16.mxu0 %v9945_v14 }
 0xcff   :  { %3236 = vmatpush1.bf16.msra.mxu0 %v9951_v18 }
 0xd00   :  { %3237 = vmatprep.subr.bf16.mxu0 %v9957_v20 }
 0xd03   :  { %3238 = vmatpush1.bf16.msra.mxu0 %v9963_v63 }
 0xd04   :  { %3239 = vmatprep.subr.bf16.mxu0 %v9969_v39 }
 0xd07   :  { %3240 = vmatpush1.bf16.msra.mxu0 %v9975_v28 }
 0xd08   :  { %3241 = vmatprep.subr.bf16.mxu0 %v9981_v29 }
 0xd0b   :  { %3242 = vmatpush1.bf16.msra.mxu0 %v9987_v30 }
 0xd0c   :  { %3243 = vmatprep.subr.bf16.mxu0 %v9993_v31 }
 0xd0f   :  { %3244 = vmatpush1.bf16.msra.mxu0 %v9999_v32 }
 0xd10   :  { %7379 = vmatprep.subr.bf16.mxu0 %v8425_v2 }
 0xda5   :  { %v3000_v26 = vpop.f32.mrb[72].mxu0  ;;  %v3041_v46 = vpop.f32.mrb[72].mxu1 }
 0xda6   :  { %v10162_v19 = vadd.f32 %v3000_v26, %v10038_v48  ;;  %v3101_v55 = vadd.f32 %v3098_v5, %v3041_v46  ;;  %v7317_v37 = vpop.f32.mrb[73].mxu0  ;;  %v3043_v40 = vpop.f32.mrb[73].mxu1  ;;  %v3097_v48 = vmul.f32 %v3093_v61, %v8751_v24 }
 0xda7   :  { %v3003_v54 = vpop.f32.mrb[74].mxu0  ;;  %v3045_v58 = vpop.f32.mrb[74].mxu1  ;;  %v3102_v42 = vadd.f32 %v3099_v8, %v3043_v40  ;;  %v7956_v8 = vld [vmem:[%s11351_s7 + $0x3b8] sm:$0xff]  }
 0xda8   :  { %v6069_v7 = vmul.f32 -1.442695, %v3101_v55  ;;  %v7318_v38 = vpop.f32.mrb[75].mxu0  ;;  %v3046_v16 = vpop.f32.mrb[75].mxu1  ;;  %v3100_v23 = vadd.f32 %v3097_v48, %v8759_v27  ;;  %v7950_v54 = vld [vmem:[%s11351_s7 + $0x388] sm:$0xff]   ;;  %v7951_v58 = vld [vmem:[%s11351_s7 + $0x390] sm:$0xff]  }
 0xda9   :  { %v6070_v44 = vmul.f32 -1.442695, %v3102_v42  ;;  %v7953_v38 = vld [vmem:[%s11351_s7 + $0x3a0] sm:$0xff]   ;;  %v7954_v16 = vld [vmem:[%s11351_s7 + $0x3a8] sm:$0xff]   ;;  %v3315_v42 = vpop.permute.xlu1 %3314 }
 0xdaa   :  { %8157 = vpow2.f32 %v6069_v7  ;;  %v7952_v7 = vld [vmem:[%s11351_s7 + $0x398] sm:$0xff]  }
 0xdab   :  { %8159 = vpow2.f32 %v6070_v44 }
 0xdb4   :  { %v8158_v43 = vpop.eup %8157 }
 0xdb5   :  { %v3109_v45 = vadd.f32 1.0, %v8158_v43  ;;  %v8160_v52 = vpop.eup %8159  ;;  %v3317_v43 = vmul.f32 %v3315_v42, %v8736_v60 }
 0xdb6   :  { %v3110_v34 = vadd.f32 1.0, %v8160_v52 }
 0xdb7   :  { %8161 = vrcp.f32 %v3109_v45  ;;  %v3320_v44 = vadd.f32 %v3317_v43, %v8742_v1 }
 0xdc1   :  { %v8162_v21 = vpop.eup %8161 }
 0xdc5   :  { %v3082_v56 = vpop.f32.mrb[76].mxu0 }
 0xdc6   :  { %v3115_v53 = vadd.f32 %v9882_v17, %v3082_v56  ;;  %v7337_v15 = vpop.f32.mrb[77].mxu0 }
 0xdc7   :  { %v3085_v57 = vpop.f32.mrb[78].mxu0 }
 0xdc8   :  { %v3116_v50 = vmul.f32 %v8162_v21, %v3115_v53  ;;  %v7338_v35 = vpop.f32.mrb[79].mxu0 }
 0xdca   :  { %v3117_v5 = vadd.f32 %v3116_v50, %v3100_v23 }
 0xdcc   :  { %8163 = vtanh.f32 %v3117_v5 }
 0xdcd   :  { %8165 = vrcp.f32 %v3110_v34  ;;  %v3318_v34 = vmul.f32 %v3315_v42, %v8744_v4 }
 0xdcf   :  { %v3321_v5 = vadd.f32 %v3318_v34, %v8748_v10  ;;  %v7964_v34 = vld [vmem:[%s11351_s7 + $0x3f8] sm:$0xff]  }
 0xdd6   :  { %v8164_v26 = vpop.eup %8163 }
 0xdd7   :  { %v3119_v46 = vsub.f32 %v10046_v47, %v8164_v26  ;;  %v8166_v55 = vpop.eup %8165  ;;  %v7949_v47 = vld [vmem:[%s11351_s7 + $0x380] sm:$0xff]  }
 0xdd9   :  { %v3120_v61 = vmul.f32 %v8166_v55, %v3119_v46 }
 0xddb   :  { %v10170_v37 = vadd.f32 %v8164_v26, %v3120_v61 }
 0xddd   :  { %v3122_v40 = vpack.c.bf16 %v10170_v37, %v10170_v37 }
 0xddf   :  { %7356 = vmatmul.mubr.bf16.vlgmr.msra.gmra.mrb[76].mxu1 %v3122_v40  ;;  %3262 = vmatmul.mubr.bf16.vlgmr.msra.gmra.mrb[80].mxu0 %v3122_v40 }
 0xde0   :  { %7360 = vmatpush3.bf16.msra.mxu1 %v10053_v0  ;;  %7375 = vmatprep.mubr.msk.bf16.mxu1 %vm8427_vm0, %v8425_v2 }
 0xde1   :  { %7361 = vmatprep.subr.bf16.mxu1 %v8425_v2  ;;  %7395 = vmatprep.mubr.msk.bf16.mxu0 %vm8427_vm0, %v8425_v2 }
 0xde2   :  { %7380 = vmatpush3.bf16.msra.mxu0 %v7949_v47 }
 0xde3   :  { %7381 = vmatprep.subr.bf16.mxu0 %v8425_v2 }
 0xde4   :  { %7362 = vmatpush3.bf16.msra.mxu1 %v10064_v36 }
 0xde5   :  { %7363 = vmatprep.subr.bf16.mxu1 %v8425_v2 }
 0xde6   :  { %7382 = vmatpush3.bf16.msra.mxu0 %v7950_v54 }
 0xde7   :  { %7383 = vmatprep.subr.bf16.mxu0 %v8425_v2 }
 0xde8   :  { %7364 = vmatpush3.bf16.msra.mxu1 %v10071_v6 }
 0xde9   :  { %7365 = vmatprep.subr.bf16.mxu1 %v8425_v2 }
 0xdea   :  { %7384 = vmatpush3.bf16.msra.mxu0 %v7951_v58 }
 0xdeb   :  { %7385 = vmatprep.subr.bf16.mxu0 %v8425_v2 }
 0xdec   :  { %7366 = vmatpush3.bf16.msra.mxu1 %v10078_v59 }
 0xded   :  { %7367 = vmatprep.subr.bf16.mxu1 %v8425_v2 }
 0xdee   :  { %7386 = vmatpush3.bf16.msra.mxu0 %v7952_v7 }
 0xdef   :  { %7387 = vmatprep.subr.bf16.mxu0 %v8425_v2 }
 0xdf0   :  { %7368 = vmatpush3.bf16.msra.mxu1 %v10085_v62 }
 0xdf1   :  { %7369 = vmatprep.subr.bf16.mxu1 %v8425_v2 }
 0xdf2   :  { %7388 = vmatpush3.bf16.msra.mxu0 %v7953_v38 }
 0xdf3   :  { %7389 = vmatprep.subr.bf16.mxu0 %v8425_v2 }
 0xdf4   :  { %7370 = vmatpush3.bf16.msra.mxu1 %v10092_v41 }
 0xdf5   :  { %7371 = vmatprep.subr.bf16.mxu1 %v8425_v2 }
 0xdf6   :  { %7390 = vmatpush3.bf16.msra.mxu0 %v7954_v16 }
 0xdf7   :  { %7391 = vmatprep.subr.bf16.mxu0 %v8425_v2 }
 0xdf8   :  { %7372 = vmatpush3.bf16.msra.mxu1 %v10099_v49 }
 0xdf9   :  { %7373 = vmatprep.subr.bf16.mxu1 %v8425_v2 }
 0xdfa   :  { %7392 = vmatpush3.bf16.msra.mxu0 %v7955_v33 }
 0xdfb   :  { %7393 = vmatprep.subr.bf16.mxu0 %v8425_v2 }
 0xdfc   :  { %7374 = vmatpush3.bf16.msra.mxu1 %v10106_v51 }
 0xdfd   :  { %3451 = vmatprep.subr.bf16.mxu1 %v9819_v22 }
 0xdfe   :  { %7394 = vmatpush3.bf16.msra.mxu0 %v7956_v8 }
 0xdff   :  { %7376 = vmatmul.mubr.bf16.vlgmr.msra.gmra.mrb[80].mxu1 %v3122_v40  ;;  %7399 = vmatprep.subr.bf16.mxu0 %v8425_v2 }
 0xe00   :  { %3452 = vmatpush1.bf16.msra.mxu1 %v9914_v9  ;;  %3483 = vmatprep.mubr.bf16.mxu1 %v8426_v3 }
 0xe01   :  { %3453 = vmatprep.subr.bf16.mxu1 %v9921_v25 }
 0xe04   :  { %3454 = vmatpush1.bf16.msra.mxu1 %v9927_v11 }
 0xe05   :  { %3455 = vmatprep.subr.bf16.mxu1 %v9933_v12 }
 0xe08   :  { %3456 = vmatpush1.bf16.msra.mxu1 %v9939_v13 }
 0xe09   :  { %3457 = vmatprep.subr.bf16.mxu1 %v9945_v14 }
 0xe0c   :  { %3458 = vmatpush1.bf16.msra.mxu1 %v9951_v18 }
 0xe0d   :  { %3459 = vmatprep.subr.bf16.mxu1 %v9957_v20 }
 0xe10   :  { %3460 = vmatpush1.bf16.msra.mxu1 %v9963_v63 }
 0xe11   :  { %3461 = vmatprep.subr.bf16.mxu1 %v9969_v39 }
 0xe14   :  { %3462 = vmatpush1.bf16.msra.mxu1 %v9975_v28 }
 0xe15   :  { %3463 = vmatprep.subr.bf16.mxu1 %v9981_v29 }
 0xe18   :  { %3464 = vmatpush1.bf16.msra.mxu1 %v9987_v30 }
 0xe19   :  { %3465 = vmatprep.subr.bf16.mxu1 %v9993_v31 }
 0xe1c   :  { %3466 = vmatpush1.bf16.msra.mxu1 %v9999_v32 }
 0xe1d   :  { %7419 = vmatprep.subr.bf16.mxu1 %v8425_v2 }
 0xeb2   :  { %v3222_v45 = vpop.f32.mrb[76].mxu1  ;;  %v3263_v48 = vpop.f32.mrb[80].mxu0 }
 0xeb3   :  { %v10246_v56 = vadd.f32 %v3222_v45, %v10162_v19  ;;  %v3323_v52 = vadd.f32 %v3320_v44, %v3263_v48  ;;  %v7357_v53 = vpop.f32.mrb[77].mxu1  ;;  %v3265_v15 = vpop.f32.mrb[81].mxu0  ;;  %v3319_v19 = vmul.f32 %v3315_v42, %v8751_v24 }
 0xeb4   :  { %v3225_v21 = vpop.f32.mrb[78].mxu1  ;;  %v3267_v57 = vpop.f32.mrb[82].mxu0  ;;  %v3324_v26 = vadd.f32 %v3321_v5, %v3265_v15 }
 0xeb5   :  { %v6096_v23 = vmul.f32 -1.442695, %v3323_v52  ;;  %v7358_v50 = vpop.f32.mrb[79].mxu1  ;;  %v3268_v35 = vpop.f32.mrb[83].mxu0  ;;  %v3322_v16 = vadd.f32 %v3319_v19, %v8759_v27  ;;  %v7959_v21 = vld [vmem:[%s11351_s7 + $0x3d0] sm:$0xff]   ;;  %v7960_v57 = vld [vmem:[%s11351_s7 + $0x3d8] sm:$0xff]  }
 0xeb6   :  { %v6097_v55 = vmul.f32 -1.442695, %v3324_v26  ;;  %v7962_v50 = vld [vmem:[%s11351_s7 + $0x3e8] sm:$0xff]   ;;  %v7963_v35 = vld [vmem:[%s11351_s7 + $0x3f0] sm:$0xff]   ;;  %v3537_v5 = vpop.permute.xlu0 %3536 }
 0xeb7   :  { %8167 = vpow2.f32 %v6096_v23  ;;  %v7961_v23 = vld [vmem:[%s11351_s7 + $0x3e0] sm:$0xff]   ;;  %v3539_v26 = vmul.f32 %v3537_v5, %v8736_v60 }
 0xeb8   :  { %8169 = vpow2.f32 %v6097_v55 }
 0xec1   :  { %v8168_v46 = vpop.eup %8167 }
 0xec2   :  { %v3331_v61 = vadd.f32 1.0, %v8168_v46  ;;  %v8170_v47 = vpop.eup %8169  ;;  %v3542_v46 = vadd.f32 %v3539_v26, %v8742_v1 }
 0xec3   :  { %v3332_v43 = vadd.f32 1.0, %v8170_v47 }
 0xec4   :  { %8171 = vrcp.f32 %v3331_v61 }
 0xece   :  { %v8172_v7 = vpop.eup %8171 }
 0xed2   :  { %v3304_v40 = vpop.f32.mrb[80].mxu1 }
 0xed3   :  { %v3337_v54 = vadd.f32 %v9882_v17, %v3304_v40  ;;  %v7377_v58 = vpop.f32.mrb[81].mxu1 }
 0xed4   :  { %v3307_v38 = vpop.f32.mrb[82].mxu1 }
 0xed5   :  { %v3338_v33 = vmul.f32 %v8172_v7, %v3337_v54  ;;  %v7378_v8 = vpop.f32.mrb[83].mxu1 }
 0xed6   :  { %v3540_v8 = vmul.f32 %v3537_v5, %v8744_v4 }
 0xed7   :  { %v3339_v44 = vadd.f32 %v3338_v33, %v3322_v16 }
 0xed9   :  { %8173 = vtanh.f32 %v3339_v44 }
 0xeda   :  { %8175 = vrcp.f32 %v3332_v43  ;;  %v3543_v43 = vadd.f32 %v3540_v8, %v8748_v10 }
 0xee3   :  { %v8174_v45 = vpop.eup %8173 }
 0xee4   :  { %v3341_v48 = vsub.f32 %v10170_v37, %v8174_v45  ;;  %v8176_v52 = vpop.eup %8175  ;;  %v7958_v37 = vld [vmem:[%s11351_s7 + $0x3c8] sm:$0xff]  }
 0xee6   :  { %v3342_v42 = vmul.f32 %v8176_v52, %v3341_v48 }
 0xee8   :  { %v10254_v53 = vadd.f32 %v8174_v45, %v3342_v42 }
 0xeea   :  { %v3344_v15 = vpack.c.bf16 %v10254_v53, %v10254_v53 }
 0xeec   :  { %7396 = vmatmul.mubr.bf16.vlgmr.msra.gmra.mrb[84].mxu0 %v3344_v15  ;;  %3484 = vmatmul.mubr.bf16.vlgmr.msra.gmra.mrb[84].mxu1 %v3344_v15 }
 0xeed   :  { %7400 = vmatpush3.bf16.msra.mxu0 %v10053_v0  ;;  %7415 = vmatprep.mubr.msk.bf16.mxu0 %vm8427_vm0, %v8425_v2 }
 0xeee   :  { %7401 = vmatprep.subr.bf16.mxu0 %v8425_v2  ;;  %7435 = vmatprep.mubr.msk.bf16.mxu1 %vm8427_vm0, %v8425_v2 }
 0xef1   :  { %7402 = vmatpush3.bf16.msra.mxu0 %v10064_v36 }
 0xef2   :  { %7403 = vmatprep.subr.bf16.mxu0 %v8425_v2 }
 0xef5   :  { %7404 = vmatpush3.bf16.msra.mxu0 %v10071_v6 }
 0xef6   :  { %7405 = vmatprep.subr.bf16.mxu0 %v8425_v2 }
 0xef9   :  { %7406 = vmatpush3.bf16.msra.mxu0 %v10078_v59 }
 0xefa   :  { %7407 = vmatprep.subr.bf16.mxu0 %v8425_v2 }
 0xefd   :  { %7408 = vmatpush3.bf16.msra.mxu0 %v10085_v62 }
 0xefe   :  { %7409 = vmatprep.subr.bf16.mxu0 %v8425_v2 }
 0xf01   :  { %7410 = vmatpush3.bf16.msra.mxu0 %v10092_v41 }
 0xf02   :  { %7411 = vmatprep.subr.bf16.mxu0 %v8425_v2 }
 0xf05   :  { %7412 = vmatpush3.bf16.msra.mxu0 %v10099_v49 }
 0xf06   :  { %7413 = vmatprep.subr.bf16.mxu0 %v8425_v2 }
 0xf09   :  { %7414 = vmatpush3.bf16.msra.mxu0 %v10106_v51 }
 0xf0a   :  { %3673 = vmatprep.subr.bf16.mxu0 %v9819_v22  ;;  %v7957_v22 = vld [vmem:[%s11351_s7 + $0x3c0] sm:$0xff]  }
 0xf0b   :  { %7420 = vmatpush3.bf16.msra.mxu1 %v7957_v22 }
 0xf0c   :  { %7416 = vmatmul.mubr.bf16.vlgmr.msra.gmra.mrb[88].mxu0 %v3344_v15  ;;  %7421 = vmatprep.subr.bf16.mxu1 %v8425_v2 }
 0xf0d   :  { %3674 = vmatpush1.bf16.msra.mxu0 %v9914_v9  ;;  %3705 = vmatprep.mubr.bf16.mxu0 %v8426_v3 }
 0xf0e   :  { %3675 = vmatprep.subr.bf16.mxu0 %v9921_v25 }
 0xf0f   :  { %7422 = vmatpush3.bf16.msra.mxu1 %v7958_v37 }
 0xf10   :  { %7423 = vmatprep.subr.bf16.mxu1 %v8425_v2 }
 0xf11   :  { %3676 = vmatpush1.bf16.msra.mxu0 %v9927_v11 }
 0xf12   :  { %3677 = vmatprep.subr.bf16.mxu0 %v9933_v12 }
 0xf13   :  { %7424 = vmatpush3.bf16.msra.mxu1 %v7959_v21 }
 0xf14   :  { %7425 = vmatprep.subr.bf16.mxu1 %v8425_v2 }
 0xf15   :  { %3678 = vmatpush1.bf16.msra.mxu0 %v9939_v13 }
 0xf16   :  { %3679 = vmatprep.subr.bf16.mxu0 %v9945_v14 }
 0xf17   :  { %7426 = vmatpush3.bf16.msra.mxu1 %v7960_v57 }
 0xf18   :  { %7427 = vmatprep.subr.bf16.mxu1 %v8425_v2 }
 0xf19   :  { %3680 = vmatpush1.bf16.msra.mxu0 %v9951_v18 }
 0xf1a   :  { %3681 = vmatprep.subr.bf16.mxu0 %v9957_v20 }
 0xf1b   :  { %7428 = vmatpush3.bf16.msra.mxu1 %v7961_v23 }
 0xf1c   :  { %7429 = vmatprep.subr.bf16.mxu1 %v8425_v2 }
 0xf1d   :  { %3682 = vmatpush1.bf16.msra.mxu0 %v9963_v63 }
 0xf1e   :  { %3683 = vmatprep.subr.bf16.mxu0 %v9969_v39 }
 0xf1f   :  { %7430 = vmatpush3.bf16.msra.mxu1 %v7962_v50 }
 0xf20   :  { %7431 = vmatprep.subr.bf16.mxu1 %v8425_v2 }
 0xf21   :  { %3684 = vmatpush1.bf16.msra.mxu0 %v9975_v28 }
 0xf22   :  { %3685 = vmatprep.subr.bf16.mxu0 %v9981_v29 }
 0xf23   :  { %7432 = vmatpush3.bf16.msra.mxu1 %v7963_v35 }
 0xf24   :  { %7433 = vmatprep.subr.bf16.mxu1 %v8425_v2 }
 0xf25   :  { %3686 = vmatpush1.bf16.msra.mxu0 %v9987_v30 }
 0xf26   :  { %3687 = vmatprep.subr.bf16.mxu0 %v9993_v31 }
 0xf27   :  { %7434 = vmatpush3.bf16.msra.mxu1 %v7964_v34 }
 0xf28   :  { %7439 = vmatprep.subr.bf16.mxu1 %v8425_v2 }
 0xf29   :  { %3688 = vmatpush1.bf16.msra.mxu0 %v9999_v32 }
 0xf2a   :  { %7459 = vmatprep.subr.bf16.mxu0 %v8425_v2 }
 0xfbf   :  { %v3444_v55 = vpop.f32.mrb[84].mxu0  ;;  %v3485_v61 = vpop.f32.mrb[84].mxu1 }
 0xfc0   :  { %v10330_v19 = vadd.f32 %v3444_v55, %v10246_v56  ;;  %v3545_v40 = vadd.f32 %v3542_v46, %v3485_v61  ;;  %v7397_v47 = vpop.f32.mrb[85].mxu0  ;;  %v3487_v54 = vpop.f32.mrb[85].mxu1  ;;  %v3541_v56 = vmul.f32 %v3537_v5, %v8751_v24 }
 0xfc1   :  { %v3447_v58 = vpop.f32.mrb[86].mxu0  ;;  %v3489_v7 = vpop.f32.mrb[86].mxu1  ;;  %v3546_v44 = vadd.f32 %v3543_v43, %v3487_v54 }
 0xfc2   :  { %v6123_v38 = vmul.f32 -1.442695, %v3545_v40  ;;  %v7398_v16 = vpop.f32.mrb[87].mxu0  ;;  %v3490_v33 = vpop.f32.mrb[87].mxu1  ;;  %v3544_v23 = vadd.f32 %v3541_v56, %v8759_v27 }
 0xfc3   :  { %v6124_v48 = vmul.f32 -1.442695, %v3546_v44 }
 0xfc4   :  { %8177 = vpow2.f32 %v6123_v38 }
 0xfc5   :  { %8179 = vpow2.f32 %v6124_v48 }
 0xfce   :  { %v8178_v45 = vpop.eup %8177 }
 0xfcf   :  { %v3553_v52 = vadd.f32 1.0, %v8178_v45  ;;  %v8180_v15 = vpop.eup %8179 }
 0xfd0   :  { %v3554_v34 = vadd.f32 1.0, %v8180_v15  ;;  %v10427_v15 = vld [vmem:[%s11350_s6] ss:$0 sm:$0xff] }
 0xfd1   :  { %8181 = vrcp.f32 %v3553_v52 }
 0xfdb   :  { %v8182_v21 = vpop.eup %8181 }
 0xfdf   :  { %v3526_v42 = vpop.f32.mrb[88].mxu0 }
 0xfe0   :  { %v3559_v22 = vadd.f32 %v9882_v17, %v3526_v42  ;;  %v7417_v37 = vpop.f32.mrb[89].mxu0 }
 0xfe1   :  { %v3529_v57 = vpop.f32.mrb[90].mxu0 }
 0xfe2   :  { %v3560_v50 = vmul.f32 %v8182_v21, %v3559_v22  ;;  %v7418_v35 = vpop.f32.mrb[91].mxu0 }
 0xfe4   :  { %v3561_v26 = vadd.f32 %v3560_v50, %v3544_v23 }
 0xfe6   :  { %8183 = vtanh.f32 %v3561_v26 }
 0xfe7   :  { %8185 = vrcp.f32 %v3554_v34 }
 0xff0   :  { %v8184_v46 = vpop.eup %8183 }
 0xff1   :  { %v3563_v55 = vsub.f32 %v10254_v53, %v8184_v46  ;;  %v8186_v61 = vpop.eup %8185  ;;  %v10364_v53 = vld [vmem:[%s11349_s5 + $0x4] ss:$12 sps:$4 sm:$0xff]  }
 0xff3   :  { %v3564_v5 = vmul.f32 %v8186_v61, %v3563_v55 }
 0xff5   :  { %v10338_v40 = vadd.f32 %v8184_v46, %v3564_v5 }
 0xff7   :  { %v3566_v17 = vpack.c.bf16 %v10338_v40, %v10338_v40 }
 0xff9   :  { %7436 = vmatmul.mubr.bf16.vlgmr.msra.gmra.mrb[88].mxu1 %v3566_v17  ;;  %3706 = vmatmul.mubr.bf16.vlgmr.msra.gmra.mrb[92].mxu0 %v3566_v17 }
 0xffa   :  { %7440 = vmatpush3.bf16.msra.mxu1 %v10053_v0  ;;  %7455 = vmatprep.mubr.msk.bf16.mxu1 %vm8427_vm0, %v8425_v2 }
 0xffb   :  { %7441 = vmatprep.subr.bf16.mxu1 %v8425_v2  ;;  %7475 = vmatprep.mubr.msk.bf16.mxu0 %vm8427_vm0, %v8425_v2 }
 0xffe   :  { %7442 = vmatpush3.bf16.msra.mxu1 %v10064_v36 }
 0xfff   :  { %7443 = vmatprep.subr.bf16.mxu1 %v8425_v2 }
0x1002   :  { %7444 = vmatpush3.bf16.msra.mxu1 %v10071_v6 }
0x1003   :  { %7445 = vmatprep.subr.bf16.mxu1 %v8425_v2 }
0x1006   :  { %7446 = vmatpush3.bf16.msra.mxu1 %v10078_v59 }
0x1007   :  { %7447 = vmatprep.subr.bf16.mxu1 %v8425_v2 }
0x100a   :  { %7448 = vmatpush3.bf16.msra.mxu1 %v10085_v62 }
0x100b   :  { %7449 = vmatprep.subr.bf16.mxu1 %v8425_v2 }
0x100e   :  { %7450 = vmatpush3.bf16.msra.mxu1 %v10092_v41 }
0x100f   :  { %7451 = vmatprep.subr.bf16.mxu1 %v8425_v2 }
0x1012   :  { %7452 = vmatpush3.bf16.msra.mxu1 %v10099_v49 }
0x1013   :  { %7453 = vmatprep.subr.bf16.mxu1 %v8425_v2 }
0x1016   :  { %7454 = vmatpush3.bf16.msra.mxu1 %v10106_v51 }
0x1017   :  { %3895 = vmatprep.subr.bf16.mxu1 %v10364_v53 }
0x1019   :  { %7456 = vmatmul.mubr.bf16.vlgmr.msra.gmra.mrb[92].mxu1 %v3566_v17 }
0x101a   :  { %3896 = vmatpush1.bf16.msra.mxu1 %v9914_v9  ;;  %3927 = vmatprep.mubr.bf16.mxu1 %v8426_v3  ;;  %v7965_v9 = vld [vmem:[%s11351_s7 + $0x400] sm:$0xff]  }
0x101b   :  { %3897 = vmatprep.subr.bf16.mxu1 %v9921_v25  ;;  %7460 = vmatpush3.bf16.msra.mxu0 %v7965_v9  ;;  %v7966_v25 = vld [vmem:[%s11351_s7 + $0x408] sm:$0xff]  }
0x101c   :  { %7461 = vmatprep.subr.bf16.mxu0 %v8425_v2 }
0x101e   :  { %3898 = vmatpush1.bf16.msra.mxu1 %v9927_v11  ;;  %v7967_v11 = vld [vmem:[%s11351_s7 + $0x410] sm:$0xff]  }
0x101f   :  { %3899 = vmatprep.subr.bf16.mxu1 %v9933_v12  ;;  %7462 = vmatpush3.bf16.msra.mxu0 %v7966_v25  ;;  %v7968_v12 = vld [vmem:[%s11351_s7 + $0x418] sm:$0xff]  }
0x1020   :  { %7463 = vmatprep.subr.bf16.mxu0 %v8425_v2  ;;  %v10514_v25 = vld [vmem:[%s11349_s5 + $0x7c] ss:$12 sps:$4 sm:$0xff]  }
0x1022   :  { %3900 = vmatpush1.bf16.msra.mxu1 %v9939_v13  ;;  %v7969_v13 = vld [vmem:[%s11351_s7 + $0x420] sm:$0xff]  }
0x1023   :  { %3901 = vmatprep.subr.bf16.mxu1 %v9945_v14  ;;  %7464 = vmatpush3.bf16.msra.mxu0 %v7967_v11  ;;  %v7970_v14 = vld [vmem:[%s11351_s7 + $0x428] sm:$0xff]   ;;  %v10520_v11 = vld [vmem:[%s11349_s5 + $0x78] ss:$12 sps:$4 sm:$0xff]  }
0x1024   :  { %7465 = vmatprep.subr.bf16.mxu0 %v8425_v2 }
0x1026   :  { %3902 = vmatpush1.bf16.msra.mxu1 %v9951_v18  ;;  %v7971_v18 = vld [vmem:[%s11351_s7 + $0x430] sm:$0xff]  }
0x1027   :  { %3903 = vmatprep.subr.bf16.mxu1 %v9957_v20  ;;  %7466 = vmatpush3.bf16.msra.mxu0 %v7968_v12  ;;  %v7972_v20 = vld [vmem:[%s11351_s7 + $0x438] sm:$0xff]   ;;  %v10526_v12 = vld [vmem:[%s11349_s5 + $0x94] ss:$12 sps:$4 sm:$0xff]  }
0x1028   :  { %7467 = vmatprep.subr.bf16.mxu0 %v8425_v2 }
0x102a   :  { %3904 = vmatpush1.bf16.msra.mxu1 %v9963_v63  ;;  %v3759_v63 = vpop.permute.xlu1 %3758 }
0x102b   :  { %3905 = vmatprep.subr.bf16.mxu1 %v9969_v39  ;;  %7468 = vmatpush3.bf16.msra.mxu0 %v7969_v13  ;;  %v3761_v39 = vmul.f32 %v3759_v63, %v8736_v60  ;;  %v3762_v8 = vmul.f32 %v3759_v63, %v8744_v4  ;;  %v10532_v13 = vld [vmem:[%s11349_s5 + $0x90] ss:$12 sps:$4 sm:$0xff]  }
0x102c   :  { %7469 = vmatprep.subr.bf16.mxu0 %v8425_v2 }
0x102d   :  { %v3765_v43 = vadd.f32 %v3762_v8, %v8748_v10 }
0x102e   :  { %3906 = vmatpush1.bf16.msra.mxu1 %v9975_v28  ;;  %v3764_v28 = vadd.f32 %v3761_v39, %v8742_v1  ;;  %v7975_v39 = vld [vmem:[%s11351_s7 + $0x450] sm:$0xff]  }
0x102f   :  { %3907 = vmatprep.subr.bf16.mxu1 %v9981_v29  ;;  %7470 = vmatpush3.bf16.msra.mxu0 %v7970_v14  ;;  %v10538_v14 = vld [vmem:[%s11349_s5 + $0xac] ss:$12 sps:$4 sm:$0xff]  }
0x1030   :  { %7471 = vmatprep.subr.bf16.mxu0 %v8425_v2 }
0x1032   :  { %3908 = vmatpush1.bf16.msra.mxu1 %v9987_v30 }
0x1033   :  { %3909 = vmatprep.subr.bf16.mxu1 %v9993_v31  ;;  %7472 = vmatpush3.bf16.msra.mxu0 %v7971_v18  ;;  %v10544_v18 = vld [vmem:[%s11349_s5 + $0xa8] ss:$12 sps:$4 sm:$0xff]  }
0x1034   :  { %7473 = vmatprep.subr.bf16.mxu0 %v8425_v2 }
0x1036   :  { %3910 = vmatpush1.bf16.msra.mxu1 %v9999_v32 }
0x1037   :  { %7499 = vmatprep.subr.bf16.mxu1 %v8425_v2  ;;  %7474 = vmatpush3.bf16.msra.mxu0 %v7972_v20  ;;  %v7973_v20 = vld [vmem:[%s11351_s7 + $0x440] sm:$0xff]  }
0x1038   :  { %7479 = vmatprep.subr.bf16.mxu0 %v8425_v2 }
0x10cc   :  { %v3666_v29 = vpop.f32.mrb[88].mxu1  ;;  %v3707_v30 = vpop.f32.mrb[92].mxu0 }
0x10cd   :  { %v10419_v31 = vadd.f32 %v3666_v29, %v10330_v19  ;;  %v3767_v32 = vadd.f32 %v3764_v28, %v3707_v30  ;;  %v7437_v47 = vpop.f32.mrb[89].mxu1  ;;  %v3709_v54 = vpop.f32.mrb[93].mxu0  ;;  %v3763_v19 = vmul.f32 %v3759_v63, %v8751_v24  ;;  %v7974_v63 = vld [vmem:[%s11351_s7 + $0x448] sm:$0xff]   ;;  %v7976_v28 = vld [vmem:[%s11351_s7 + $0x458] sm:$0xff]   ;;  %v7977_v29 = vld [vmem:[%s11351_s7 + $0x460] sm:$0xff]  }
0x10ce   :  { %v3669_v58 = vpop.f32.mrb[90].mxu1  ;;  %v3711_v7 = vpop.f32.mrb[94].mxu0  ;;  %v3768_v44 = vadd.f32 %v3765_v43, %v3709_v54  ;;  %v7978_v30 = vld [vmem:[%s11351_s7 + $0x468] sm:$0xff]   ;;  %v7980_v47 = vld [vmem:[%s11351_s7 + $0x478] sm:$0xff]  }
0x10cf   :  { %v6150_v38 = vmul.f32 -1.442695, %v3767_v32  ;;  %v7438_v16 = vpop.f32.mrb[91].mxu1  ;;  %v3712_v33 = vpop.f32.mrb[95].mxu0  ;;  %v3766_v23 = vadd.f32 %v3763_v19, %v8759_v27  ;;  %v7979_v32 = vld [vmem:[%s11351_s7 + $0x470] sm:$0xff]  }
0x10d0   :  { %v6151_v48 = vmul.f32 -1.442695, %v3768_v44  ;;  %v3981_v54 = vpop.permute.xlu0 %3980 }
0x10d1   :  { %8187 = vpow2.f32 %v6150_v38  ;;  %v3983_v58 = vmul.f32 %v3981_v54, %v8736_v60 }
0x10d2   :  { %8189 = vpow2.f32 %v6151_v48 }
0x10d3   :  { %v3986_v7 = vadd.f32 %v3983_v58, %v8742_v1  ;;  %v10616_v58 = vld [vmem:[%s11349_s5 + $0x38] ss:$12 sps:$4 sm:$0xff]  }
0x10db   :  { %v8188_v45 = vpop.eup %8187 }
0x10dc   :  { %v3775_v52 = vadd.f32 1.0, %v8188_v45  ;;  %v8190_v42 = vpop.eup %8189 }
0x10dd   :  { %v3776_v34 = vadd.f32 1.0, %v8190_v42  ;;  %v3984_v42 = vmul.f32 %v3981_v54, %v8744_v4 }
0x10de   :  { %8191 = vrcp.f32 %v3775_v52 }
0x10e8   :  { %v8192_v21 = vpop.eup %8191 }
0x10ec   :  { %v3748_v56 = vpop.f32.mrb[92].mxu1 }
0x10ed   :  { %v3781_v22 = vadd.f32 %v10427_v15, %v3748_v56  ;;  %v7457_v37 = vpop.f32.mrb[93].mxu1 }
0x10ee   :  { %v3751_v57 = vpop.f32.mrb[94].mxu1 }
0x10ef   :  { %v3782_v50 = vmul.f32 %v8192_v21, %v3781_v22  ;;  %v7458_v35 = vpop.f32.mrb[95].mxu1  ;;  %v3987_v22 = vadd.f32 %v3984_v42, %v8748_v10  ;;  %v7987_v42 = vld [vmem:[%s11351_s7 + $0x4b0] sm:$0xff]  }
0x10f1   :  { %v3783_v26 = vadd.f32 %v3782_v50, %v3766_v23 }
0x10f3   :  { %8193 = vtanh.f32 %v3783_v26 }
0x10f4   :  { %8195 = vrcp.f32 %v3776_v34 }
0x10fd   :  { %v8194_v46 = vpop.eup %8193 }
0x10fe   :  { %v3785_v55 = vsub.f32 %v10338_v40, %v8194_v46  ;;  %v8196_v61 = vpop.eup %8195  ;;  %v10508_v40 = vld [vmem:[%s11349_s5 + $0x60] ss:$12 sps:$4 sm:$0xff]  }
0x1100   :  { %v3786_v5 = vmul.f32 %v8196_v61, %v3785_v55 }
0x1102   :  { %v10432_v17 = vadd.f32 %v8194_v46, %v3786_v5 }
0x1104   :  { %v3788_v9 = vpack.c.bf16 %v10432_v17, %v10432_v17 }
0x1106   :  { %7476 = vmatmul.mubr.bf16.vlgmr.msra.gmra.mrb[96].mxu0 %v3788_v9  ;;  %3928 = vmatmul.mubr.bf16.vlgmr.msra.gmra.mrb[96].mxu1 %v3788_v9 }
0x1107   :  { %7480 = vmatpush3.bf16.msra.mxu0 %v10053_v0  ;;  %7495 = vmatprep.mubr.msk.bf16.mxu0 %vm8427_vm0, %v8425_v2  ;;  %v10459_v0 = vld [vmem:[%s11349_s5] ss:$12 sps:$4 sm:$0xff]  }
0x1108   :  { %7481 = vmatprep.subr.bf16.mxu0 %v8425_v2  ;;  %7515 = vmatprep.mubr.msk.bf16.mxu1 %vm8427_vm0, %v8425_v2 }
0x1109   :  { %7500 = vmatpush3.bf16.msra.mxu1 %v7973_v20 }
0x110a   :  { %7501 = vmatprep.subr.bf16.mxu1 %v8425_v2 }
0x110b   :  { %7482 = vmatpush3.bf16.msra.mxu0 %v10064_v36  ;;  %v10466_v36 = vld [vmem:[%s11349_s5 + $0x1c] ss:$12 sps:$4 sm:$0xff]  }
0x110c   :  { %7483 = vmatprep.subr.bf16.mxu0 %v8425_v2 }
0x110d   :  { %7502 = vmatpush3.bf16.msra.mxu1 %v7974_v63 }
0x110e   :  { %7503 = vmatprep.subr.bf16.mxu1 %v8425_v2 }
0x110f   :  { %7484 = vmatpush3.bf16.msra.mxu0 %v10071_v6  ;;  %v10472_v6 = vld [vmem:[%s11349_s5 + $0x18] ss:$12 sps:$4 sm:$0xff]  }
0x1110   :  { %7485 = vmatprep.subr.bf16.mxu0 %v8425_v2 }
0x1111   :  { %7504 = vmatpush3.bf16.msra.mxu1 %v7975_v39 }
0x1112   :  { %7505 = vmatprep.subr.bf16.mxu1 %v8425_v2 }
0x1113   :  { %7486 = vmatpush3.bf16.msra.mxu0 %v10078_v59  ;;  %v10478_v59 = vld [vmem:[%s11349_s5 + $0x34] ss:$12 sps:$4 sm:$0xff]  }
0x1114   :  { %7487 = vmatprep.subr.bf16.mxu0 %v8425_v2 }
0x1115   :  { %7506 = vmatpush3.bf16.msra.mxu1 %v7976_v28 }
0x1116   :  { %7507 = vmatprep.subr.bf16.mxu1 %v8425_v2 }
0x1117   :  { %7488 = vmatpush3.bf16.msra.mxu0 %v10085_v62  ;;  %v10484_v62 = vld [vmem:[%s11349_s5 + $0x30] ss:$12 sps:$4 sm:$0xff]  }
0x1118   :  { %7489 = vmatprep.subr.bf16.mxu0 %v8425_v2 }
0x1119   :  { %7508 = vmatpush3.bf16.msra.mxu1 %v7977_v29 }
0x111a   :  { %7509 = vmatprep.subr.bf16.mxu1 %v8425_v2 }
0x111b   :  { %7490 = vmatpush3.bf16.msra.mxu0 %v10092_v41  ;;  %v10490_v41 = vld [vmem:[%s11349_s5 + $0x4c] ss:$12 sps:$4 sm:$0xff]  }
0x111c   :  { %7491 = vmatprep.subr.bf16.mxu0 %v8425_v2 }
0x111d   :  { %7510 = vmatpush3.bf16.msra.mxu1 %v7978_v30 }
0x111e   :  { %7511 = vmatprep.subr.bf16.mxu1 %v8425_v2 }
0x111f   :  { %7492 = vmatpush3.bf16.msra.mxu0 %v10099_v49  ;;  %v10496_v49 = vld [vmem:[%s11349_s5 + $0x48] ss:$12 sps:$4 sm:$0xff]  }
0x1120   :  { %7493 = vmatprep.subr.bf16.mxu0 %v8425_v2 }
0x1121   :  { %7512 = vmatpush3.bf16.msra.mxu1 %v7979_v32 }
0x1122   :  { %7513 = vmatprep.subr.bf16.mxu1 %v8425_v2 }
0x1123   :  { %7494 = vmatpush3.bf16.msra.mxu0 %v10106_v51  ;;  %v10502_v51 = vld [vmem:[%s11349_s5 + $0x64] ss:$12 sps:$4 sm:$0xff]  }
0x1124   :  { %4117 = vmatprep.subr.bf16.mxu0 %v10364_v53 }
0x1125   :  { %7514 = vmatpush3.bf16.msra.mxu1 %v7980_v47 }
0x1126   :  { %7496 = vmatmul.mubr.bf16.vlgmr.msra.gmra.mrb[100].mxu0 %v3788_v9  ;;  %7519 = vmatprep.subr.bf16.mxu1 %v8425_v2 }
0x1127   :  { %4118 = vmatpush1.bf16.msra.mxu0 %v10459_v0  ;;  %4149 = vmatprep.mubr.bf16.mxu0 %v8426_v3 }
0x1128   :  { %4119 = vmatprep.subr.bf16.mxu0 %v10466_v36 }
0x112b   :  { %4120 = vmatpush1.bf16.msra.mxu0 %v10472_v6 }
0x112c   :  { %4121 = vmatprep.subr.bf16.mxu0 %v10478_v59 }
0x112f   :  { %4122 = vmatpush1.bf16.msra.mxu0 %v10484_v62 }
0x1130   :  { %4123 = vmatprep.subr.bf16.mxu0 %v10490_v41 }
0x1133   :  { %4124 = vmatpush1.bf16.msra.mxu0 %v10496_v49 }
0x1134   :  { %4125 = vmatprep.subr.bf16.mxu0 %v10502_v51 }
0x1137   :  { %4126 = vmatpush1.bf16.msra.mxu0 %v10508_v40 }
0x1138   :  { %4127 = vmatprep.subr.bf16.mxu0 %v10514_v25 }
0x113b   :  { %4128 = vmatpush1.bf16.msra.mxu0 %v10520_v11 }
0x113c   :  { %4129 = vmatprep.subr.bf16.mxu0 %v10526_v12 }
0x113f   :  { %4130 = vmatpush1.bf16.msra.mxu0 %v10532_v13 }
0x1140   :  { %4131 = vmatprep.subr.bf16.mxu0 %v10538_v14 }
0x1143   :  { %4132 = vmatpush1.bf16.msra.mxu0 %v10544_v18 }
0x1144   :  { %7539 = vmatprep.subr.bf16.mxu0 %v8425_v2 }
0x11d9   :  { %v3888_v38 = vpop.f32.mrb[96].mxu0  ;;  %v3929_v16 = vpop.f32.mrb[96].mxu1 }
0x11da   :  { %v10583_v33 = vadd.f32 %v3888_v38, %v10419_v31  ;;  %v3989_v8 = vadd.f32 %v3986_v7, %v3929_v16  ;;  %v7477_v43 = vpop.f32.mrb[97].mxu0  ;;  %v3931_v44 = vpop.f32.mrb[97].mxu1  ;;  %v3985_v31 = vmul.f32 %v3981_v54, %v8751_v24  ;;  %v10598_v54 = vld [vmem:[%s11349_s5 + $0x8] ss:$12 sps:$4 sm:$0xff]   ;;  %v10623_v7 = vld [vmem:[%s11349_s5 + $0x50] ss:$12 sps:$4 sm:$0xff]  }
0x11db   :  { %v3891_v45 = vpop.f32.mrb[98].mxu0  ;;  %v3933_v48 = vpop.f32.mrb[98].mxu1  ;;  %v3990_v37 = vadd.f32 %v3987_v22, %v3931_v44  ;;  %v10630_v38 = vld [vmem:[%s11349_s5 + $0x68] ss:$12 sps:$4 sm:$0xff]   ;;  %v10637_v16 = vld [vmem:[%s11349_s5 + $0x80] ss:$12 sps:$4 sm:$0xff]  }
0x11dc   :  { %v6177_v52 = vmul.f32 -1.442695, %v3989_v8  ;;  %v7478_v19 = vpop.f32.mrb[99].mxu0  ;;  %v3934_v56 = vpop.f32.mrb[99].mxu1  ;;  %v3988_v61 = vadd.f32 %v3985_v31, %v8759_v27  ;;  %v10644_v8 = vld [vmem:[%s11349_s5 + $0x98] ss:$12 sps:$4 sm:$0xff]  }
0x11dd   :  { %v6178_v57 = vmul.f32 -1.442695, %v3990_v37  ;;  %v10651_v43 = vld [vmem:[%s11349_s5 + $0xb0] ss:$12 sps:$4 sm:$0xff]   ;;  %v7981_v44 = vld [vmem:[%s11351_s7 + $0x480] sm:$0xff]   ;;  %v7982_v45 = vld [vmem:[%s11351_s7 + $0x488] sm:$0xff]   ;;  %v4203_v37 = vpop.permute.xlu1 %4202 }
0x11de   :  { %8197 = vpow2.f32 %v6177_v52  ;;  %v7983_v48 = vld [vmem:[%s11351_s7 + $0x490] sm:$0xff]   ;;  %v7984_v52 = vld [vmem:[%s11351_s7 + $0x498] sm:$0xff]   ;;  %v7985_v19 = vld [vmem:[%s11351_s7 + $0x4a0] sm:$0xff]  }
0x11df   :  { %8199 = vpow2.f32 %v6178_v57  ;;  %v7986_v56 = vld [vmem:[%s11351_s7 + $0x4a8] sm:$0xff]   ;;  %v7988_v22 = vld [vmem:[%s11351_s7 + $0x4b8] sm:$0xff]  }
0x11e8   :  { %v8198_v21 = vpop.eup %8197 }
0x11e9   :  { %v3997_v23 = vadd.f32 1.0, %v8198_v21  ;;  %v8200_v35 = vpop.eup %8199  ;;  %v4205_v21 = vmul.f32 %v4203_v37, %v8736_v60 }
0x11ea   :  { %v3998_v20 = vadd.f32 1.0, %v8200_v35 }
0x11eb   :  { %8201 = vrcp.f32 %v3997_v23  ;;  %v4208_v57 = vadd.f32 %v4205_v21, %v8742_v1 }
0x11f5   :  { %v8202_v46 = vpop.eup %8201 }
0x11f9   :  { %v3970_v50 = vpop.f32.mrb[100].mxu0 }
0x11fa   :  { %v4003_v34 = vadd.f32 %v10427_v15, %v3970_v50  ;;  %v7497_v26 = vpop.f32.mrb[101].mxu0 }
0x11fb   :  { %v3973_v55 = vpop.f32.mrb[102].mxu0 }
0x11fc   :  { %v4004_v5 = vmul.f32 %v8202_v46, %v4003_v34  ;;  %v7498_v9 = vpop.f32.mrb[103].mxu0 }
0x11fe   :  { %v4005_v63 = vadd.f32 %v4004_v5, %v3988_v61 }
0x1200   :  { %8203 = vtanh.f32 %v4005_v63 }
0x1201   :  { %8205 = vrcp.f32 %v3998_v20  ;;  %v4206_v20 = vmul.f32 %v4203_v37, %v8744_v4 }
0x1203   :  { %v4209_v63 = vadd.f32 %v4206_v20, %v8748_v10  ;;  %v7995_v20 = vld [vmem:[%s11351_s7 + $0x4f0] sm:$0xff]  }
0x120a   :  { %v8204_v39 = vpop.eup %8203 }
0x120b   :  { %v4007_v28 = vsub.f32 %v10432_v17, %v8204_v39  ;;  %v8206_v29 = vpop.eup %8205  ;;  %v10609_v17 = vld [vmem:[%s11349_s5 + $0x20] ss:$12 sps:$4 sm:$0xff]  }
0x120d   :  { %v4008_v30 = vmul.f32 %v8206_v29, %v4007_v28 }
0x120f   :  { %v10591_v32 = vadd.f32 %v8204_v39, %v4008_v30 }
0x1211   :  { %v4010_v47 = vpack.c.bf16 %v10591_v32, %v10591_v32 }
0x1213   :  { %7516 = vmatmul.mubr.bf16.vlgmr.msra.gmra.mrb[100].mxu1 %v4010_v47  ;;  %4150 = vmatmul.mubr.bf16.vlgmr.msra.gmra.mrb[104].mxu0 %v4010_v47 }
0x1214   :  { %7520 = vmatpush3.bf16.msra.mxu1 %v10598_v54  ;;  %7535 = vmatprep.mubr.msk.bf16.mxu1 %vm8427_vm0, %v8425_v2 }
0x1215   :  { %7521 = vmatprep.subr.bf16.mxu1 %v8425_v2  ;;  %7555 = vmatprep.mubr.msk.bf16.mxu0 %vm8427_vm0, %v8425_v2 }
0x1216   :  { %7540 = vmatpush3.bf16.msra.mxu0 %v7981_v44 }
0x1217   :  { %7541 = vmatprep.subr.bf16.mxu0 %v8425_v2 }
0x1218   :  { %7522 = vmatpush3.bf16.msra.mxu1 %v10609_v17 }
0x1219   :  { %7523 = vmatprep.subr.bf16.mxu1 %v8425_v2 }
0x121a   :  { %7542 = vmatpush3.bf16.msra.mxu0 %v7982_v45 }
0x121b   :  { %7543 = vmatprep.subr.bf16.mxu0 %v8425_v2 }
0x121c   :  { %7524 = vmatpush3.bf16.msra.mxu1 %v10616_v58 }
0x121d   :  { %7525 = vmatprep.subr.bf16.mxu1 %v8425_v2 }
0x121e   :  { %7544 = vmatpush3.bf16.msra.mxu0 %v7983_v48 }
0x121f   :  { %7545 = vmatprep.subr.bf16.mxu0 %v8425_v2 }
0x1220   :  { %7526 = vmatpush3.bf16.msra.mxu1 %v10623_v7 }
0x1221   :  { %7527 = vmatprep.subr.bf16.mxu1 %v8425_v2 }
0x1222   :  { %7546 = vmatpush3.bf16.msra.mxu0 %v7984_v52 }
0x1223   :  { %7547 = vmatprep.subr.bf16.mxu0 %v8425_v2 }
0x1224   :  { %7528 = vmatpush3.bf16.msra.mxu1 %v10630_v38 }
0x1225   :  { %7529 = vmatprep.subr.bf16.mxu1 %v8425_v2 }
0x1226   :  { %7548 = vmatpush3.bf16.msra.mxu0 %v7985_v19 }
0x1227   :  { %7549 = vmatprep.subr.bf16.mxu0 %v8425_v2 }
0x1228   :  { %7530 = vmatpush3.bf16.msra.mxu1 %v10637_v16 }
0x1229   :  { %7531 = vmatprep.subr.bf16.mxu1 %v8425_v2 }
0x122a   :  { %7550 = vmatpush3.bf16.msra.mxu0 %v7986_v56 }
0x122b   :  { %7551 = vmatprep.subr.bf16.mxu0 %v8425_v2 }
0x122c   :  { %7532 = vmatpush3.bf16.msra.mxu1 %v10644_v8 }
0x122d   :  { %7533 = vmatprep.subr.bf16.mxu1 %v8425_v2 }
0x122e   :  { %7552 = vmatpush3.bf16.msra.mxu0 %v7987_v42 }
0x122f   :  { %7553 = vmatprep.subr.bf16.mxu0 %v8425_v2 }
0x1230   :  { %7534 = vmatpush3.bf16.msra.mxu1 %v10651_v43 }
0x1231   :  { %4339 = vmatprep.subr.bf16.mxu1 %v10364_v53 }
0x1232   :  { %7554 = vmatpush3.bf16.msra.mxu0 %v7988_v22 }
0x1233   :  { %7536 = vmatmul.mubr.bf16.vlgmr.msra.gmra.mrb[104].mxu1 %v4010_v47  ;;  %7559 = vmatprep.subr.bf16.mxu0 %v8425_v2 }
0x1234   :  { %4340 = vmatpush1.bf16.msra.mxu1 %v10459_v0  ;;  %4371 = vmatprep.mubr.bf16.mxu1 %v8426_v3 }
0x1235   :  { %4341 = vmatprep.subr.bf16.mxu1 %v10466_v36 }
0x1238   :  { %4342 = vmatpush1.bf16.msra.mxu1 %v10472_v6 }
0x1239   :  { %4343 = vmatprep.subr.bf16.mxu1 %v10478_v59 }
0x123c   :  { %4344 = vmatpush1.bf16.msra.mxu1 %v10484_v62 }
0x123d   :  { %4345 = vmatprep.subr.bf16.mxu1 %v10490_v41 }
0x1240   :  { %4346 = vmatpush1.bf16.msra.mxu1 %v10496_v49 }
0x1241   :  { %4347 = vmatprep.subr.bf16.mxu1 %v10502_v51 }
0x1244   :  { %4348 = vmatpush1.bf16.msra.mxu1 %v10508_v40 }
0x1245   :  { %4349 = vmatprep.subr.bf16.mxu1 %v10514_v25 }
0x1248   :  { %4350 = vmatpush1.bf16.msra.mxu1 %v10520_v11 }
0x1249   :  { %4351 = vmatprep.subr.bf16.mxu1 %v10526_v12 }
0x124c   :  { %4352 = vmatpush1.bf16.msra.mxu1 %v10532_v13 }
0x124d   :  { %4353 = vmatprep.subr.bf16.mxu1 %v10538_v14 }
0x1250   :  { %4354 = vmatpush1.bf16.msra.mxu1 %v10544_v18 }
0x1251   :  { %7579 = vmatprep.subr.bf16.mxu1 %v8425_v2 }
0x12e6   :  { %v4110_v23 = vpop.f32.mrb[100].mxu1  ;;  %v4151_v31 = vpop.f32.mrb[104].mxu0 }
0x12e7   :  { %v10707_v50 = vadd.f32 %v4110_v23, %v10583_v33  ;;  %v4211_v35 = vadd.f32 %v4208_v57, %v4151_v31  ;;  %v7517_v34 = vpop.f32.mrb[101].mxu1  ;;  %v4153_v26 = vpop.f32.mrb[105].mxu0  ;;  %v4207_v33 = vmul.f32 %v4203_v37, %v8751_v24 }
0x12e8   :  { %v4113_v46 = vpop.f32.mrb[102].mxu1  ;;  %v4155_v55 = vpop.f32.mrb[106].mxu0  ;;  %v4212_v39 = vadd.f32 %v4209_v63, %v4153_v26  ;;  %v7996_v63 = vld [vmem:[%s11351_s7 + $0x4f8] sm:$0xff]  }
0x12e9   :  { %v6204_v61 = vmul.f32 -1.442695, %v4211_v35  ;;  %v7518_v5 = vpop.f32.mrb[103].mxu1  ;;  %v4156_v9 = vpop.f32.mrb[107].mxu0  ;;  %v4210_v56 = vadd.f32 %v4207_v33, %v8759_v27  ;;  %v7990_v46 = vld [vmem:[%s11351_s7 + $0x4c8] sm:$0xff]   ;;  %v7991_v55 = vld [vmem:[%s11351_s7 + $0x4d0] sm:$0xff]  }
0x12ea   :  { %v6205_v29 = vmul.f32 -1.442695, %v4212_v39  ;;  %v7993_v5 = vld [vmem:[%s11351_s7 + $0x4e0] sm:$0xff]   ;;  %v7994_v9 = vld [vmem:[%s11351_s7 + $0x4e8] sm:$0xff]   ;;  %v4425_v39 = vpop.permute.xlu0 %4424 }
0x12eb   :  { %8207 = vpow2.f32 %v6204_v61  ;;  %v7992_v61 = vld [vmem:[%s11351_s7 + $0x4d8] sm:$0xff]  }
0x12ec   :  { %8209 = vpow2.f32 %v6205_v29 }
0x12f5   :  { %v8208_v28 = vpop.eup %8207 }
0x12f6   :  { %v4219_v30 = vadd.f32 1.0, %v8208_v28  ;;  %v8210_v44 = vpop.eup %8209  ;;  %v4427_v28 = vmul.f32 %v4425_v39, %v8736_v60 }
0x12f7   :  { %v4220_v21 = vadd.f32 1.0, %v8210_v44 }
0x12f8   :  { %8211 = vrcp.f32 %v4219_v30  ;;  %v4430_v29 = vadd.f32 %v4427_v28, %v8742_v1 }
0x1302   :  { %v8212_v52 = vpop.eup %8211 }
0x1306   :  { %v4192_v47 = vpop.f32.mrb[104].mxu1 }
0x1307   :  { %v4225_v45 = vadd.f32 %v10427_v15, %v4192_v47  ;;  %v7537_v48 = vpop.f32.mrb[105].mxu1 }
0x1308   :  { %v4195_v19 = vpop.f32.mrb[106].mxu1 }
0x1309   :  { %v4226_v42 = vmul.f32 %v8212_v52, %v4225_v45  ;;  %v7538_v22 = vpop.f32.mrb[107].mxu1 }
0x130b   :  { %v4227_v57 = vadd.f32 %v4226_v42, %v4210_v56 }
0x130d   :  { %8213 = vtanh.f32 %v4227_v57 }
0x130e   :  { %8215 = vrcp.f32 %v4220_v21  ;;  %v4428_v21 = vmul.f32 %v4425_v39, %v8744_v4 }
0x1310   :  { %v4431_v57 = vadd.f32 %v4428_v21, %v8748_v10  ;;  %v8004_v21 = vld [vmem:[%s11351_s7 + $0x538] sm:$0xff]  }
0x1317   :  { %v8214_v23 = vpop.eup %8213 }
0x1318   :  { %v4229_v31 = vsub.f32 %v10591_v32, %v8214_v23  ;;  %v8216_v35 = vpop.eup %8215  ;;  %v7989_v32 = vld [vmem:[%s11351_s7 + $0x4c0] sm:$0xff]  }
0x131a   :  { %v4230_v37 = vmul.f32 %v8216_v35, %v4229_v31 }
0x131c   :  { %v10715_v34 = vadd.f32 %v8214_v23, %v4230_v37 }
0x131e   :  { %v4232_v26 = vpack.c.bf16 %v10715_v34, %v10715_v34 }
0x1320   :  { %7556 = vmatmul.mubr.bf16.vlgmr.msra.gmra.mrb[108].mxu0 %v4232_v26  ;;  %4372 = vmatmul.mubr.bf16.vlgmr.msra.gmra.mrb[108].mxu1 %v4232_v26 }
0x1321   :  { %7560 = vmatpush3.bf16.msra.mxu0 %v10598_v54  ;;  %7575 = vmatprep.mubr.msk.bf16.mxu0 %vm8427_vm0, %v8425_v2 }
0x1322   :  { %7561 = vmatprep.subr.bf16.mxu0 %v8425_v2  ;;  %7595 = vmatprep.mubr.msk.bf16.mxu1 %vm8427_vm0, %v8425_v2 }
0x1323   :  { %7580 = vmatpush3.bf16.msra.mxu1 %v7989_v32 }
0x1324   :  { %7581 = vmatprep.subr.bf16.mxu1 %v8425_v2 }
0x1325   :  { %7562 = vmatpush3.bf16.msra.mxu0 %v10609_v17 }
0x1326   :  { %7563 = vmatprep.subr.bf16.mxu0 %v8425_v2 }
0x1327   :  { %7582 = vmatpush3.bf16.msra.mxu1 %v7990_v46 }
0x1328   :  { %7583 = vmatprep.subr.bf16.mxu1 %v8425_v2 }
0x1329   :  { %7564 = vmatpush3.bf16.msra.mxu0 %v10616_v58 }
0x132a   :  { %7565 = vmatprep.subr.bf16.mxu0 %v8425_v2 }
0x132b   :  { %7584 = vmatpush3.bf16.msra.mxu1 %v7991_v55 }
0x132c   :  { %7585 = vmatprep.subr.bf16.mxu1 %v8425_v2 }
0x132d   :  { %7566 = vmatpush3.bf16.msra.mxu0 %v10623_v7 }
0x132e   :  { %7567 = vmatprep.subr.bf16.mxu0 %v8425_v2 }
0x132f   :  { %7586 = vmatpush3.bf16.msra.mxu1 %v7992_v61 }
0x1330   :  { %7587 = vmatprep.subr.bf16.mxu1 %v8425_v2 }
0x1331   :  { %7568 = vmatpush3.bf16.msra.mxu0 %v10630_v38 }
0x1332   :  { %7569 = vmatprep.subr.bf16.mxu0 %v8425_v2 }
0x1333   :  { %7588 = vmatpush3.bf16.msra.mxu1 %v7993_v5 }
0x1334   :  { %7589 = vmatprep.subr.bf16.mxu1 %v8425_v2 }
0x1335   :  { %7570 = vmatpush3.bf16.msra.mxu0 %v10637_v16 }
0x1336   :  { %7571 = vmatprep.subr.bf16.mxu0 %v8425_v2 }
0x1337   :  { %7590 = vmatpush3.bf16.msra.mxu1 %v7994_v9 }
0x1338   :  { %7591 = vmatprep.subr.bf16.mxu1 %v8425_v2 }
0x1339   :  { %7572 = vmatpush3.bf16.msra.mxu0 %v10644_v8 }
0x133a   :  { %7573 = vmatprep.subr.bf16.mxu0 %v8425_v2 }
0x133b   :  { %7592 = vmatpush3.bf16.msra.mxu1 %v7995_v20 }
0x133c   :  { %7593 = vmatprep.subr.bf16.mxu1 %v8425_v2 }
0x133d   :  { %7574 = vmatpush3.bf16.msra.mxu0 %v10651_v43 }
0x133e   :  { %4561 = vmatprep.subr.bf16.mxu0 %v10364_v53 }
0x133f   :  { %7594 = vmatpush3.bf16.msra.mxu1 %v7996_v63 }
0x1340   :  { %7576 = vmatmul.mubr.bf16.vlgmr.msra.gmra.mrb[112].mxu0 %v4232_v26  ;;  %7599 = vmatprep.subr.bf16.mxu1 %v8425_v2 }
0x1341   :  { %4562 = vmatpush1.bf16.msra.mxu0 %v10459_v0  ;;  %4593 = vmatprep.mubr.bf16.mxu0 %v8426_v3 }
0x1342   :  { %4563 = vmatprep.subr.bf16.mxu0 %v10466_v36 }
0x1345   :  { %4564 = vmatpush1.bf16.msra.mxu0 %v10472_v6 }
0x1346   :  { %4565 = vmatprep.subr.bf16.mxu0 %v10478_v59 }
0x1349   :  { %4566 = vmatpush1.bf16.msra.mxu0 %v10484_v62 }
0x134a   :  { %4567 = vmatprep.subr.bf16.mxu0 %v10490_v41 }
0x134d   :  { %4568 = vmatpush1.bf16.msra.mxu0 %v10496_v49 }
0x134e   :  { %4569 = vmatprep.subr.bf16.mxu0 %v10502_v51 }
0x1351   :  { %4570 = vmatpush1.bf16.msra.mxu0 %v10508_v40 }
0x1352   :  { %4571 = vmatprep.subr.bf16.mxu0 %v10514_v25 }
0x1355   :  { %4572 = vmatpush1.bf16.msra.mxu0 %v10520_v11 }
0x1356   :  { %4573 = vmatprep.subr.bf16.mxu0 %v10526_v12 }
0x1359   :  { %4574 = vmatpush1.bf16.msra.mxu0 %v10532_v13 }
0x135a   :  { %4575 = vmatprep.subr.bf16.mxu0 %v10538_v14 }
0x135d   :  { %4576 = vmatpush1.bf16.msra.mxu0 %v10544_v18 }
0x135e   :  { %7619 = vmatprep.subr.bf16.mxu0 %v8425_v2 }
0x13f3   :  { %v4332_v30 = vpop.f32.mrb[108].mxu0  ;;  %v4373_v33 = vpop.f32.mrb[108].mxu1 }
0x13f4   :  { %v10791_v47 = vadd.f32 %v4332_v30, %v10707_v50  ;;  %v4433_v44 = vadd.f32 %v4430_v29, %v4373_v33  ;;  %v7557_v45 = vpop.f32.mrb[109].mxu0  ;;  %v4375_v48 = vpop.f32.mrb[109].mxu1  ;;  %v4429_v50 = vmul.f32 %v4425_v39, %v8751_v24 }
0x13f5   :  { %v4335_v52 = vpop.f32.mrb[110].mxu0  ;;  %v4377_v19 = vpop.f32.mrb[110].mxu1  ;;  %v4434_v23 = vadd.f32 %v4431_v57, %v4375_v48 }
0x13f6   :  { %v6231_v56 = vmul.f32 -1.442695, %v4433_v44  ;;  %v7558_v42 = vpop.f32.mrb[111].mxu0  ;;  %v4378_v22 = vpop.f32.mrb[111].mxu1  ;;  %v4432_v9 = vadd.f32 %v4429_v50, %v8759_v27  ;;  %v7999_v52 = vld [vmem:[%s11351_s7 + $0x510] sm:$0xff]   ;;  %v8000_v19 = vld [vmem:[%s11351_s7 + $0x518] sm:$0xff]  }
0x13f7   :  { %v6232_v35 = vmul.f32 -1.442695, %v4434_v23  ;;  %v8002_v42 = vld [vmem:[%s11351_s7 + $0x528] sm:$0xff]   ;;  %v8003_v22 = vld [vmem:[%s11351_s7 + $0x530] sm:$0xff]   ;;  %v4647_v57 = vpop.permute.xlu1 %4646 }
0x13f8   :  { %8217 = vpow2.f32 %v6231_v56  ;;  %v8001_v56 = vld [vmem:[%s11351_s7 + $0x520] sm:$0xff]   ;;  %v4649_v23 = vmul.f32 %v4647_v57, %v8736_v60 }
0x13f9   :  { %8219 = vpow2.f32 %v6232_v35 }
0x1402   :  { %v8218_v31 = vpop.eup %8217 }
0x1403   :  { %v4441_v37 = vadd.f32 1.0, %v8218_v31  ;;  %v8220_v32 = vpop.eup %8219  ;;  %v4652_v31 = vadd.f32 %v4649_v23, %v8742_v1 }
0x1404   :  { %v4442_v28 = vadd.f32 1.0, %v8220_v32 }
0x1405   :  { %8221 = vrcp.f32 %v4441_v37 }
0x140f   :  { %v8222_v61 = vpop.eup %8221 }
0x1413   :  { %v4414_v26 = vpop.f32.mrb[112].mxu0 }
0x1414   :  { %v4447_v46 = vadd.f32 %v10427_v15, %v4414_v26  ;;  %v7577_v55 = vpop.f32.mrb[113].mxu0 }
0x1415   :  { %v4417_v5 = vpop.f32.mrb[114].mxu0 }
0x1416   :  { %v4448_v20 = vmul.f32 %v8222_v61, %v4447_v46  ;;  %v7578_v63 = vpop.f32.mrb[115].mxu0 }
0x1417   :  { %v4650_v63 = vmul.f32 %v4647_v57, %v8744_v4 }
0x1418   :  { %v4449_v29 = vadd.f32 %v4448_v20, %v4432_v9 }
0x141a   :  { %8223 = vtanh.f32 %v4449_v29 }
0x141b   :  { %8225 = vrcp.f32 %v4442_v28  ;;  %v4653_v28 = vadd.f32 %v4650_v63, %v8748_v10 }
0x1424   :  { %v8224_v30 = vpop.eup %8223 }
0x1425   :  { %v4451_v33 = vsub.f32 %v10715_v34, %v8224_v30  ;;  %v8226_v44 = vpop.eup %8225  ;;  %v7998_v34 = vld [vmem:[%s11351_s7 + $0x508] sm:$0xff]  }
0x1427   :  { %v4452_v39 = vmul.f32 %v8226_v44, %v4451_v33 }
0x1429   :  { %v10799_v45 = vadd.f32 %v8224_v30, %v4452_v39 }
0x142b   :  { %v4454_v48 = vpack.c.bf16 %v10799_v45, %v10799_v45 }
0x142d   :  { %7596 = vmatmul.mubr.bf16.vlgmr.msra.gmra.mrb[112].mxu1 %v4454_v48  ;;  %4594 = vmatmul.mubr.bf16.vlgmr.msra.gmra.mrb[116].mxu0 %v4454_v48 }
0x142e   :  { %7600 = vmatpush3.bf16.msra.mxu1 %v10598_v54  ;;  %7615 = vmatprep.mubr.msk.bf16.mxu1 %vm8427_vm0, %v8425_v2 }
0x142f   :  { %7601 = vmatprep.subr.bf16.mxu1 %v8425_v2  ;;  %7635 = vmatprep.mubr.msk.bf16.mxu0 %vm8427_vm0, %v8425_v2 }
0x1432   :  { %7602 = vmatpush3.bf16.msra.mxu1 %v10609_v17 }
0x1433   :  { %7603 = vmatprep.subr.bf16.mxu1 %v8425_v2 }
0x1436   :  { %7604 = vmatpush3.bf16.msra.mxu1 %v10616_v58 }
0x1437   :  { %7605 = vmatprep.subr.bf16.mxu1 %v8425_v2 }
0x143a   :  { %7606 = vmatpush3.bf16.msra.mxu1 %v10623_v7 }
0x143b   :  { %7607 = vmatprep.subr.bf16.mxu1 %v8425_v2 }
0x143e   :  { %7608 = vmatpush3.bf16.msra.mxu1 %v10630_v38 }
0x143f   :  { %7609 = vmatprep.subr.bf16.mxu1 %v8425_v2 }
0x1442   :  { %7610 = vmatpush3.bf16.msra.mxu1 %v10637_v16 }
0x1443   :  { %7611 = vmatprep.subr.bf16.mxu1 %v8425_v2 }
0x1446   :  { %7612 = vmatpush3.bf16.msra.mxu1 %v10644_v8 }
0x1447   :  { %7613 = vmatprep.subr.bf16.mxu1 %v8425_v2 }
0x144a   :  { %7614 = vmatpush3.bf16.msra.mxu1 %v10651_v43 }
0x144b   :  { %4783 = vmatprep.subr.bf16.mxu1 %v10364_v53  ;;  %v7997_v53 = vld [vmem:[%s11351_s7 + $0x500] sm:$0xff]  }
0x144c   :  { %7620 = vmatpush3.bf16.msra.mxu0 %v7997_v53 }
0x144d   :  { %7616 = vmatmul.mubr.bf16.vlgmr.msra.gmra.mrb[116].mxu1 %v4454_v48  ;;  %7621 = vmatprep.subr.bf16.mxu0 %v8425_v2 }
0x144e   :  { %4784 = vmatpush1.bf16.msra.mxu1 %v10459_v0  ;;  %4815 = vmatprep.mubr.bf16.mxu1 %v8426_v3 }
0x144f   :  { %4785 = vmatprep.subr.bf16.mxu1 %v10466_v36 }
0x1450   :  { %7622 = vmatpush3.bf16.msra.mxu0 %v7998_v34 }
0x1451   :  { %7623 = vmatprep.subr.bf16.mxu0 %v8425_v2 }
0x1452   :  { %4786 = vmatpush1.bf16.msra.mxu1 %v10472_v6 }
0x1453   :  { %4787 = vmatprep.subr.bf16.mxu1 %v10478_v59 }
0x1454   :  { %7624 = vmatpush3.bf16.msra.mxu0 %v7999_v52 }
0x1455   :  { %7625 = vmatprep.subr.bf16.mxu0 %v8425_v2 }
0x1456   :  { %4788 = vmatpush1.bf16.msra.mxu1 %v10484_v62 }
0x1457   :  { %4789 = vmatprep.subr.bf16.mxu1 %v10490_v41 }
0x1458   :  { %7626 = vmatpush3.bf16.msra.mxu0 %v8000_v19 }
0x1459   :  { %7627 = vmatprep.subr.bf16.mxu0 %v8425_v2 }
0x145a   :  { %4790 = vmatpush1.bf16.msra.mxu1 %v10496_v49 }
0x145b   :  { %4791 = vmatprep.subr.bf16.mxu1 %v10502_v51 }
0x145c   :  { %7628 = vmatpush3.bf16.msra.mxu0 %v8001_v56 }
0x145d   :  { %7629 = vmatprep.subr.bf16.mxu0 %v8425_v2 }
0x145e   :  { %4792 = vmatpush1.bf16.msra.mxu1 %v10508_v40 }
0x145f   :  { %4793 = vmatprep.subr.bf16.mxu1 %v10514_v25 }
0x1460   :  { %7630 = vmatpush3.bf16.msra.mxu0 %v8002_v42 }
0x1461   :  { %7631 = vmatprep.subr.bf16.mxu0 %v8425_v2 }
0x1462   :  { %4794 = vmatpush1.bf16.msra.mxu1 %v10520_v11 }
0x1463   :  { %4795 = vmatprep.subr.bf16.mxu1 %v10526_v12 }
0x1464   :  { %7632 = vmatpush3.bf16.msra.mxu0 %v8003_v22 }
0x1465   :  { %7633 = vmatprep.subr.bf16.mxu0 %v8425_v2 }
0x1466   :  { %4796 = vmatpush1.bf16.msra.mxu1 %v10532_v13 }
0x1467   :  { %4797 = vmatprep.subr.bf16.mxu1 %v10538_v14 }
0x1468   :  { %7634 = vmatpush3.bf16.msra.mxu0 %v8004_v21 }
0x1469   :  { %7639 = vmatprep.subr.bf16.mxu0 %v8425_v2 }
0x146a   :  { %4798 = vmatpush1.bf16.msra.mxu1 %v10544_v18 }
0x146b   :  { %7659 = vmatprep.subr.bf16.mxu1 %v8425_v2 }
0x1500   :  { %v4554_v35 = vpop.f32.mrb[112].mxu1  ;;  %v4595_v37 = vpop.f32.mrb[116].mxu0 }
0x1501   :  { %v10875_v50 = vadd.f32 %v4554_v35, %v10791_v47  ;;  %v4655_v26 = vadd.f32 %v4652_v31, %v4595_v37  ;;  %v7597_v32 = vpop.f32.mrb[113].mxu1  ;;  %v4597_v46 = vpop.f32.mrb[117].mxu0  ;;  %v4651_v47 = vmul.f32 %v4647_v57, %v8751_v24 }
0x1502   :  { %v4557_v55 = vpop.f32.mrb[114].mxu1  ;;  %v4599_v61 = vpop.f32.mrb[118].mxu0  ;;  %v4656_v29 = vadd.f32 %v4653_v28, %v4597_v46 }
0x1503   :  { %v6258_v5 = vmul.f32 -1.442695, %v4655_v26  ;;  %v7598_v9 = vpop.f32.mrb[115].mxu1  ;;  %v4600_v20 = vpop.f32.mrb[119].mxu0  ;;  %v4654_v56 = vadd.f32 %v4651_v47, %v8759_v27 }
0x1504   :  { %v6259_v33 = vmul.f32 -1.442695, %v4656_v29 }
0x1505   :  { %8227 = vpow2.f32 %v6258_v5 }
0x1506   :  { %8229 = vpow2.f32 %v6259_v33 }
0x150f   :  { %v8228_v30 = vpop.eup %8227 }
0x1510   :  { %v4663_v44 = vadd.f32 1.0, %v8228_v30  ;;  %v8230_v48 = vpop.eup %8229 }
0x1511   :  { %v4664_v21 = vadd.f32 1.0, %v8230_v48  ;;  %v10972_v48 = vld [vmem:[%s11350_s6] ss:$0 sm:$0xff]  ;;  %s8428_s6 = smov [#allocation2]  }
0x1512   :  { %8231 = vrcp.f32 %v4663_v44  ;;  %s5704_s29 = sshll.u32 %s8428_s6, 4  ;;  %s5705_s29 = int_to_ptr.vmem [resolvable:$true] %s5704_s29 }
0x1513   :  { %p8406_p1 = scmp.lt.s32.totalorder %s5705_s29, %s5705_s29 }
0x151c   :  { %v8232_v52 = vpop.eup %8231 }
0x1520   :  { %v4636_v39 = vpop.f32.mrb[116].mxu1 }
0x1521   :  { %v4669_v53 = vadd.f32 %v10427_v15, %v4636_v39  ;;  %v7617_v34 = vpop.f32.mrb[117].mxu1 }
0x1522   :  { %v4639_v19 = vpop.f32.mrb[118].mxu1 }
0x1523   :  { %v4670_v42 = vmul.f32 %v8232_v52, %v4669_v53  ;;  %v7618_v22 = vpop.f32.mrb[119].mxu1 }
0x1525   :  { %v4671_v23 = vadd.f32 %v4670_v42, %v4654_v56 }
0x1527   :  { %8233 = vtanh.f32 %v4671_v23 }
0x1528   :  { %8235 = vrcp.f32 %v4664_v21 }
0x1531   :  { %v8234_v31 = vpop.eup %8233 }
0x1532   :  { %v4673_v35 = vsub.f32 %v10799_v45, %v8234_v31  ;;  %v8236_v37 = vpop.eup %8235  ;;  %v10909_v45 = vld [vmem:[%s11349_s5 + $0x4] ss:$12 sps:$4 sm:$0xff]  }
0x1534   :  { %v4674_v57 = vmul.f32 %v8236_v37, %v4673_v35 }
0x1536   :  { %v10883_v26 = vadd.f32 %v8234_v31, %v4674_v57 }
0x1538   :  { %v4676_v15 = vpack.c.bf16 %v10883_v26, %v10883_v26 }
0x153a   :  { %7636 = vmatmul.mubr.bf16.vlgmr.msra.gmra.mrb[120].mxu0 %v4676_v15  ;;  %4816 = vmatmul.mubr.bf16.vlgmr.msra.gmra.mrb[120].mxu1 %v4676_v15 }
0x153b   :  { %7640 = vmatpush3.bf16.msra.mxu0 %v10598_v54  ;;  %7655 = vmatprep.mubr.msk.bf16.mxu0 %vm8427_vm0, %v8425_v2 }
0x153c   :  { %7641 = vmatprep.subr.bf16.mxu0 %v8425_v2  ;;  %7675 = vmatprep.mubr.msk.bf16.mxu1 %vm8427_vm0, %v8425_v2 }
0x153f   :  { %7642 = vmatpush3.bf16.msra.mxu0 %v10609_v17 }
0x1540   :  { %7643 = vmatprep.subr.bf16.mxu0 %v8425_v2 }
0x1543   :  { %7644 = vmatpush3.bf16.msra.mxu0 %v10616_v58 }
0x1544   :  { %7645 = vmatprep.subr.bf16.mxu0 %v8425_v2 }
0x1547   :  { %7646 = vmatpush3.bf16.msra.mxu0 %v10623_v7 }
0x1548   :  { %7647 = vmatprep.subr.bf16.mxu0 %v8425_v2 }
0x154b   :  { %7648 = vmatpush3.bf16.msra.mxu0 %v10630_v38 }
0x154c   :  { %7649 = vmatprep.subr.bf16.mxu0 %v8425_v2 }
0x154f   :  { %7650 = vmatpush3.bf16.msra.mxu0 %v10637_v16 }
0x1550   :  { %7651 = vmatprep.subr.bf16.mxu0 %v8425_v2 }
0x1553   :  { %7652 = vmatpush3.bf16.msra.mxu0 %v10644_v8 }
0x1554   :  { %7653 = vmatprep.subr.bf16.mxu0 %v8425_v2 }
0x1557   :  { %7654 = vmatpush3.bf16.msra.mxu0 %v10651_v43 }
0x1558   :  { %5005 = vmatprep.subr.bf16.mxu0 %v10909_v45 }
0x155a   :  { %7656 = vmatmul.mubr.bf16.vlgmr.msra.gmra.mrb[124].mxu0 %v4676_v15 }
0x155b   :  { %5006 = vmatpush1.bf16.msra.mxu0 %v10459_v0  ;;  %5037 = vmatprep.mubr.bf16.mxu0 %v8426_v3  ;;  %v8005_v0 = vld [vmem:[%s11351_s7 + $0x540] sm:$0xff]  }
0x155c   :  { %5007 = vmatprep.subr.bf16.mxu0 %v10466_v36  ;;  %7660 = vmatpush3.bf16.msra.mxu1 %v8005_v0  ;;  %v8006_v36 = vld [vmem:[%s11351_s7 + $0x548] sm:$0xff]  }
0x155d   :  { %7661 = vmatprep.subr.bf16.mxu1 %v8425_v2 }
0x155f   :  { %5008 = vmatpush1.bf16.msra.mxu0 %v10472_v6  ;;  %v8007_v6 = vld [vmem:[%s11351_s7 + $0x550] sm:$0xff]  }
0x1560   :  { %5009 = vmatprep.subr.bf16.mxu0 %v10478_v59  ;;  %7662 = vmatpush3.bf16.msra.mxu1 %v8006_v36  ;;  %v8008_v59 = vld [vmem:[%s11351_s7 + $0x558] sm:$0xff]  }
0x1561   :  { %7663 = vmatprep.subr.bf16.mxu1 %v8425_v2  ;;  %v11059_v36 = vld [vmem:[%s11349_s5 + $0x7c] ss:$12 sps:$4 sm:$0xff]  }
0x1563   :  { %5010 = vmatpush1.bf16.msra.mxu0 %v10484_v62  ;;  %v8009_v62 = vld [vmem:[%s11351_s7 + $0x560] sm:$0xff]  }
0x1564   :  { %5011 = vmatprep.subr.bf16.mxu0 %v10490_v41  ;;  %7664 = vmatpush3.bf16.msra.mxu1 %v8007_v6  ;;  %v8010_v41 = vld [vmem:[%s11351_s7 + $0x568] sm:$0xff]   ;;  %v11065_v6 = vld [vmem:[%s11349_s5 + $0x78] ss:$12 sps:$4 sm:$0xff]  }
0x1565   :  { %7665 = vmatprep.subr.bf16.mxu1 %v8425_v2 }
0x1567   :  { %5012 = vmatpush1.bf16.msra.mxu0 %v10496_v49  ;;  %v8011_v49 = vld [vmem:[%s11351_s7 + $0x570] sm:$0xff]  }
0x1568   :  { %5013 = vmatprep.subr.bf16.mxu0 %v10502_v51  ;;  %7666 = vmatpush3.bf16.msra.mxu1 %v8008_v59  ;;  %v8012_v51 = vld [vmem:[%s11351_s7 + $0x578] sm:$0xff]   ;;  %v11071_v59 = vld [vmem:[%s11349_s5 + $0x94] ss:$12 sps:$4 sm:$0xff]  }
0x1569   :  { %7667 = vmatprep.subr.bf16.mxu1 %v8425_v2 }
0x156b   :  { %5014 = vmatpush1.bf16.msra.mxu0 %v10508_v40  ;;  %v4869_v40 = vpop.permute.xlu0 %4868 }
0x156c   :  { %5015 = vmatprep.subr.bf16.mxu0 %v10514_v25  ;;  %7668 = vmatpush3.bf16.msra.mxu1 %v8009_v62  ;;  %v4871_v25 = vmul.f32 %v4869_v40, %v8736_v60  ;;  %v4872_v63 = vmul.f32 %v4869_v40, %v8744_v4  ;;  %v11077_v62 = vld [vmem:[%s11349_s5 + $0x90] ss:$12 sps:$4 sm:$0xff]  }
0x156d   :  { %7669 = vmatprep.subr.bf16.mxu1 %v8425_v2 }
0x156e   :  { %v4875_v28 = vadd.f32 %v4872_v63, %v8748_v10 }
0x156f   :  { %5016 = vmatpush1.bf16.msra.mxu0 %v10520_v11  ;;  %v4874_v11 = vadd.f32 %v4871_v25, %v8742_v1  ;;  %v8015_v25 = vld [vmem:[%s11351_s7 + $0x590] sm:$0xff]  }
0x1570   :  { %5017 = vmatprep.subr.bf16.mxu0 %v10526_v12  ;;  %7670 = vmatpush3.bf16.msra.mxu1 %v8010_v41  ;;  %v11083_v41 = vld [vmem:[%s11349_s5 + $0xac] ss:$12 sps:$4 sm:$0xff]  }
0x1571   :  { %7671 = vmatprep.subr.bf16.mxu1 %v8425_v2 }
0x1573   :  { %5018 = vmatpush1.bf16.msra.mxu0 %v10532_v13 }
0x1574   :  { %5019 = vmatprep.subr.bf16.mxu0 %v10538_v14  ;;  %7672 = vmatpush3.bf16.msra.mxu1 %v8011_v49  ;;  %v11089_v49 = vld [vmem:[%s11349_s5 + $0xa8] ss:$12 sps:$4 sm:$0xff]  }
0x1575   :  { %7673 = vmatprep.subr.bf16.mxu1 %v8425_v2 }
0x1577   :  { %5020 = vmatpush1.bf16.msra.mxu0 %v10544_v18 }
0x1578   :  { %7699 = vmatprep.subr.bf16.mxu0 %v8425_v2  ;;  %7674 = vmatpush3.bf16.msra.mxu1 %v8012_v51  ;;  %v8013_v51 = vld [vmem:[%s11351_s7 + $0x580] sm:$0xff]  }
0x1579   :  { %7679 = vmatprep.subr.bf16.mxu1 %v8425_v2 }
0x160d   :  { %v4776_v12 = vpop.f32.mrb[120].mxu0  ;;  %v4817_v13 = vpop.f32.mrb[120].mxu1 }
0x160e   :  { %v10964_v14 = vadd.f32 %v4776_v12, %v10875_v50  ;;  %v4877_v18 = vadd.f32 %v4874_v11, %v4817_v13  ;;  %v7637_v32 = vpop.f32.mrb[121].mxu0  ;;  %v4819_v46 = vpop.f32.mrb[121].mxu1  ;;  %v4873_v50 = vmul.f32 %v4869_v40, %v8751_v24  ;;  %v8014_v40 = vld [vmem:[%s11351_s7 + $0x588] sm:$0xff]   ;;  %v8016_v11 = vld [vmem:[%s11351_s7 + $0x598] sm:$0xff]   ;;  %v8017_v12 = vld [vmem:[%s11351_s7 + $0x5a0] sm:$0xff]  }
0x160f   :  { %v4779_v55 = vpop.f32.mrb[122].mxu0  ;;  %v4821_v61 = vpop.f32.mrb[122].mxu1  ;;  %v4878_v29 = vadd.f32 %v4875_v28, %v4819_v46  ;;  %v8018_v13 = vld [vmem:[%s11351_s7 + $0x5a8] sm:$0xff]   ;;  %v8020_v32 = vld [vmem:[%s11351_s7 + $0x5b8] sm:$0xff]  }
0x1610   :  { %v6285_v5 = vmul.f32 -1.442695, %v4877_v18  ;;  %v7638_v9 = vpop.f32.mrb[123].mxu0  ;;  %v4822_v20 = vpop.f32.mrb[123].mxu1  ;;  %v4876_v56 = vadd.f32 %v4873_v50, %v8759_v27  ;;  %v8019_v18 = vld [vmem:[%s11351_s7 + $0x5b0] sm:$0xff]  }
0x1611   :  { %v6286_v33 = vmul.f32 -1.442695, %v4878_v29  ;;  %v5091_v46 = vpop.permute.xlu1 %5090 }
0x1612   :  { %8237 = vpow2.f32 %v6285_v5  ;;  %v5093_v55 = vmul.f32 %v5091_v46, %v8736_v60 }
0x1613   :  { %8239 = vpow2.f32 %v6286_v33 }
0x1614   :  { %v5096_v61 = vadd.f32 %v5093_v55, %v8742_v1  ;;  %v11161_v55 = vld [vmem:[%s11349_s5 + $0x38] ss:$12 sps:$4 sm:$0xff]  }
0x161c   :  { %v8238_v30 = vpop.eup %8237 }
0x161d   :  { %v4885_v44 = vadd.f32 1.0, %v8238_v30  ;;  %v8240_v39 = vpop.eup %8239 }
0x161e   :  { %v4886_v21 = vadd.f32 1.0, %v8240_v39  ;;  %v5094_v39 = vmul.f32 %v5091_v46, %v8744_v4 }
0x161f   :  { %8241 = vrcp.f32 %v4885_v44 }
0x1629   :  { %v8242_v52 = vpop.eup %8241 }
0x162d   :  { %v4858_v47 = vpop.f32.mrb[124].mxu0 }
0x162e   :  { %v4891_v53 = vadd.f32 %v10972_v48, %v4858_v47  ;;  %v7657_v34 = vpop.f32.mrb[125].mxu0 }
0x162f   :  { %v4861_v19 = vpop.f32.mrb[126].mxu0 }
0x1630   :  { %v4892_v42 = vmul.f32 %v8242_v52, %v4891_v53  ;;  %v7658_v22 = vpop.f32.mrb[127].mxu0  ;;  %v5097_v53 = vadd.f32 %v5094_v39, %v8748_v10 }
0x1632   :  { %v4893_v23 = vadd.f32 %v4892_v42, %v4876_v56 }
0x1634   :  { %8243 = vtanh.f32 %v4893_v23 }
0x1635   :  { %8245 = vrcp.f32 %v4886_v21 }
0x163e   :  { %v8244_v31 = vpop.eup %8243 }
0x163f   :  { %v4895_v35 = vsub.f32 %v10883_v26, %v8244_v31  ;;  %v8246_v37 = vpop.eup %8245  ;;  %v11053_v26 = vld [vmem:[%s11349_s5 + $0x60] ss:$12 sps:$4 sm:$0xff]  }
0x1641   :  { %v4896_v57 = vmul.f32 %v8246_v37, %v4895_v35 }
0x1643   :  { %v10977_v15 = vadd.f32 %v8244_v31, %v4896_v57 }
0x1645   :  { %v4898_v0 = vpack.c.bf16 %v10977_v15, %v10977_v15 }
0x1647   :  { %7676 = vmatmul.mubr.bf16.vlgmr.msra.gmra.mrb[124].mxu1 %v4898_v0  ;;  %5038 = vmatmul.mubr.bf16.vlgmr.msra.gmra.mrb[128].mxu0 %v4898_v0 }
0x1648   :  { %7680 = vmatpush3.bf16.msra.mxu1 %v10598_v54  ;;  %7695 = vmatprep.mubr.msk.bf16.mxu1 %vm8427_vm0, %v8425_v2  ;;  %v11004_v54 = vld [vmem:[%s11349_s5] ss:$12 sps:$4 sm:$0xff]  }
0x1649   :  { %7681 = vmatprep.subr.bf16.mxu1 %v8425_v2  ;;  %7715 = vmatprep.mubr.msk.bf16.mxu0 %vm8427_vm0, %v8425_v2 }
0x164a   :  { %7700 = vmatpush3.bf16.msra.mxu0 %v8013_v51 }
0x164b   :  { %7701 = vmatprep.subr.bf16.mxu0 %v8425_v2 }
0x164c   :  { %7682 = vmatpush3.bf16.msra.mxu1 %v10609_v17  ;;  %v11011_v17 = vld [vmem:[%s11349_s5 + $0x1c] ss:$12 sps:$4 sm:$0xff]  }
0x164d   :  { %7683 = vmatprep.subr.bf16.mxu1 %v8425_v2 }
0x164e   :  { %7702 = vmatpush3.bf16.msra.mxu0 %v8014_v40 }
0x164f   :  { %7703 = vmatprep.subr.bf16.mxu0 %v8425_v2 }
0x1650   :  { %7684 = vmatpush3.bf16.msra.mxu1 %v10616_v58  ;;  %v11017_v58 = vld [vmem:[%s11349_s5 + $0x18] ss:$12 sps:$4 sm:$0xff]  }
0x1651   :  { %7685 = vmatprep.subr.bf16.mxu1 %v8425_v2 }
0x1652   :  { %7704 = vmatpush3.bf16.msra.mxu0 %v8015_v25 }
0x1653   :  { %7705 = vmatprep.subr.bf16.mxu0 %v8425_v2 }
0x1654   :  { %7686 = vmatpush3.bf16.msra.mxu1 %v10623_v7  ;;  %v11023_v7 = vld [vmem:[%s11349_s5 + $0x34] ss:$12 sps:$4 sm:$0xff]  }
0x1655   :  { %7687 = vmatprep.subr.bf16.mxu1 %v8425_v2 }
0x1656   :  { %7706 = vmatpush3.bf16.msra.mxu0 %v8016_v11 }
0x1657   :  { %7707 = vmatprep.subr.bf16.mxu0 %v8425_v2 }
0x1658   :  { %7688 = vmatpush3.bf16.msra.mxu1 %v10630_v38  ;;  %v11029_v38 = vld [vmem:[%s11349_s5 + $0x30] ss:$12 sps:$4 sm:$0xff]  }
0x1659   :  { %7689 = vmatprep.subr.bf16.mxu1 %v8425_v2 }
0x165a   :  { %7708 = vmatpush3.bf16.msra.mxu0 %v8017_v12 }
0x165b   :  { %7709 = vmatprep.subr.bf16.mxu0 %v8425_v2 }
0x165c   :  { %7690 = vmatpush3.bf16.msra.mxu1 %v10637_v16  ;;  %v11035_v16 = vld [vmem:[%s11349_s5 + $0x4c] ss:$12 sps:$4 sm:$0xff]  }
0x165d   :  { %7691 = vmatprep.subr.bf16.mxu1 %v8425_v2 }
0x165e   :  { %7710 = vmatpush3.bf16.msra.mxu0 %v8018_v13 }
0x165f   :  { %7711 = vmatprep.subr.bf16.mxu0 %v8425_v2 }
0x1660   :  { %7692 = vmatpush3.bf16.msra.mxu1 %v10644_v8  ;;  %v11041_v8 = vld [vmem:[%s11349_s5 + $0x48] ss:$12 sps:$4 sm:$0xff]  }
0x1661   :  { %7693 = vmatprep.subr.bf16.mxu1 %v8425_v2 }
0x1662   :  { %7712 = vmatpush3.bf16.msra.mxu0 %v8019_v18 }
0x1663   :  { %7713 = vmatprep.subr.bf16.mxu0 %v8425_v2 }
0x1664   :  { %7694 = vmatpush3.bf16.msra.mxu1 %v10651_v43  ;;  %v11047_v43 = vld [vmem:[%s11349_s5 + $0x64] ss:$12 sps:$4 sm:$0xff]  }
0x1665   :  { %5227 = vmatprep.subr.bf16.mxu1 %v10909_v45 }
0x1666   :  { %7714 = vmatpush3.bf16.msra.mxu0 %v8020_v32 }
0x1667   :  { %7696 = vmatmul.mubr.bf16.vlgmr.msra.gmra.mrb[128].mxu1 %v4898_v0  ;;  %7719 = vmatprep.subr.bf16.mxu0 %v8425_v2 }
0x1668   :  { %5228 = vmatpush1.bf16.msra.mxu1 %v11004_v54  ;;  %5259 = vmatprep.mubr.bf16.mxu1 %v8426_v3 }
0x1669   :  { %5229 = vmatprep.subr.bf16.mxu1 %v11011_v17 }
0x166c   :  { %5230 = vmatpush1.bf16.msra.mxu1 %v11017_v58 }
0x166d   :  { %5231 = vmatprep.subr.bf16.mxu1 %v11023_v7 }
0x1670   :  { %5232 = vmatpush1.bf16.msra.mxu1 %v11029_v38 }
0x1671   :  { %5233 = vmatprep.subr.bf16.mxu1 %v11035_v16 }
0x1674   :  { %5234 = vmatpush1.bf16.msra.mxu1 %v11041_v8 }
0x1675   :  { %5235 = vmatprep.subr.bf16.mxu1 %v11047_v43 }
0x1678   :  { %5236 = vmatpush1.bf16.msra.mxu1 %v11053_v26 }
0x1679   :  { %5237 = vmatprep.subr.bf16.mxu1 %v11059_v36 }
0x167c   :  { %5238 = vmatpush1.bf16.msra.mxu1 %v11065_v6 }
0x167d   :  { %5239 = vmatprep.subr.bf16.mxu1 %v11071_v59 }
0x1680   :  { %5240 = vmatpush1.bf16.msra.mxu1 %v11077_v62 }
0x1681   :  { %5241 = vmatprep.subr.bf16.mxu1 %v11083_v41 }
0x1684   :  { %5242 = vmatpush1.bf16.msra.mxu1 %v11089_v49 }
0x1685   :  { %7739 = vmatprep.subr.bf16.mxu1 %v8425_v2 }
0x171a   :  { %v4998_v5 = vpop.f32.mrb[124].mxu1  ;;  %v5039_v9 = vpop.f32.mrb[128].mxu0 }
0x171b   :  { %v11128_v20 = vadd.f32 %v4998_v5, %v10964_v14  ;;  %v5099_v63 = vadd.f32 %v5096_v61, %v5039_v9  ;;  %v7677_v28 = vpop.f32.mrb[125].mxu1  ;;  %v5041_v29 = vpop.f32.mrb[129].mxu0  ;;  %v5095_v14 = vmul.f32 %v5091_v46, %v8751_v24  ;;  %v11143_v46 = vld [vmem:[%s11349_s5 + $0x8] ss:$12 sps:$4 sm:$0xff]   ;;  %v11168_v61 = vld [vmem:[%s11349_s5 + $0x50] ss:$12 sps:$4 sm:$0xff]  }
0x171c   :  { %v5001_v30 = vpop.f32.mrb[126].mxu1  ;;  %v5043_v33 = vpop.f32.mrb[130].mxu0  ;;  %v5100_v34 = vadd.f32 %v5097_v53, %v5041_v29  ;;  %v11175_v5 = vld [vmem:[%s11349_s5 + $0x68] ss:$12 sps:$4 sm:$0xff]   ;;  %v11182_v9 = vld [vmem:[%s11349_s5 + $0x80] ss:$12 sps:$4 sm:$0xff]  }
0x171d   :  { %v6312_v44 = vmul.f32 -1.442695, %v5099_v63  ;;  %v7678_v50 = vpop.f32.mrb[127].mxu1  ;;  %v5044_v47 = vpop.f32.mrb[131].mxu0  ;;  %v5098_v37 = vadd.f32 %v5095_v14, %v8759_v27  ;;  %v11189_v63 = vld [vmem:[%s11349_s5 + $0x98] ss:$12 sps:$4 sm:$0xff]  }
0x171e   :  { %v6313_v19 = vmul.f32 -1.442695, %v5100_v34  ;;  %v11196_v28 = vld [vmem:[%s11349_s5 + $0xb0] ss:$12 sps:$4 sm:$0xff]  }
0x171f   :  { %8247 = vpow2.f32 %v6312_v44 }
0x1720   :  { %8249 = vpow2.f32 %v6313_v19 }
0x1729   :  { %v8248_v52 = vpop.eup %8247 }
0x172a   :  { %v5107_v56 = vadd.f32 1.0, %v8248_v52  ;;  %v8250_v22 = vpop.eup %8249 }
0x172b   :  { %v5108_v51 = vadd.f32 1.0, %v8250_v22 }
0x172c   :  { %8251 = vrcp.f32 %v5107_v56 }
0x1736   :  { %v8252_v31 = vpop.eup %8251 }
0x173a   :  { %v5080_v42 = vpop.f32.mrb[128].mxu1 }
0x173b   :  { %v5113_v21 = vadd.f32 %v10972_v48, %v5080_v42  ;;  %v7697_v23 = vpop.f32.mrb[129].mxu1 }
0x173c   :  { %v5083_v35 = vpop.f32.mrb[130].mxu1 }
0x173d   :  { %v5114_v57 = vmul.f32 %v8252_v31, %v5113_v21  ;;  %v7698_v0 = vpop.f32.mrb[131].mxu1 }
0x173f   :  { %v5115_v40 = vadd.f32 %v5114_v57, %v5098_v37 }
0x1741   :  { %8253 = vtanh.f32 %v5115_v40 }
0x1742   :  { %8255 = vrcp.f32 %v5108_v51 }
0x174b   :  { %v8254_v25 = vpop.eup %8253 }
0x174c   :  { %v5117_v11 = vsub.f32 %v10977_v15, %v8254_v25  ;;  %v8256_v12 = vpop.eup %8255  ;;  %v11154_v15 = vld [vmem:[%s11349_s5 + $0x20] ss:$12 sps:$4 sm:$0xff]  }
0x174e   :  { %v5118_v13 = vmul.f32 %v8256_v12, %v5117_v11 }
0x1750   :  { %v11136_v18 = vadd.f32 %v8254_v25, %v5118_v13 }
0x1752   :  { %v5120_v32 = vpack.c.bf16 %v11136_v18, %v11136_v18 }
0x1754   :  { %7716 = vmatmul.mubr.bf16.vlgmr.msra.gmra.mrb[132].mxu0 %v5120_v32  ;;  %5260 = vmatmul.mubr.bf16.vlgmr.msra.gmra.mrb[132].mxu1 %v5120_v32 }
0x1755   :  { %7720 = vmatpush3.bf16.msra.mxu0 %v11143_v46  ;;  %7735 = vmatprep.mubr.msk.bf16.mxu0 %vm8427_vm0, %v8425_v2 }
0x1756   :  { %7721 = vmatprep.subr.bf16.mxu0 %v8425_v2  ;;  %7755 = vmatprep.mubr.msk.bf16.mxu1 %vm8427_vm0, %v8425_v2 }
0x1759   :  { %7722 = vmatpush3.bf16.msra.mxu0 %v11154_v15 }
0x175a   :  { %7723 = vmatprep.subr.bf16.mxu0 %v8425_v2 }
0x175d   :  { %7724 = vmatpush3.bf16.msra.mxu0 %v11161_v55 }
0x175e   :  { %7725 = vmatprep.subr.bf16.mxu0 %v8425_v2 }
0x1761   :  { %7726 = vmatpush3.bf16.msra.mxu0 %v11168_v61 }
0x1762   :  { %7727 = vmatprep.subr.bf16.mxu0 %v8425_v2 }
0x1765   :  { %7728 = vmatpush3.bf16.msra.mxu0 %v11175_v5 }
0x1766   :  { %7729 = vmatprep.subr.bf16.mxu0 %v8425_v2 }
0x1769   :  { %7730 = vmatpush3.bf16.msra.mxu0 %v11182_v9 }
0x176a   :  { %7731 = vmatprep.subr.bf16.mxu0 %v8425_v2 }
0x176d   :  { %7732 = vmatpush3.bf16.msra.mxu0 %v11189_v63 }
0x176e   :  { %7733 = vmatprep.subr.bf16.mxu0 %v8425_v2 }
0x1771   :  { %7734 = vmatpush3.bf16.msra.mxu0 %v11196_v28 }
0x1772   :  { %5449 = vmatprep.subr.bf16.mxu0 %v10909_v45  ;;  %v8022_v45 = vld [vmem:[%s11351_s7 + $0x5c8] sm:$0xff]  }
0x1774   :  { %7736 = vmatmul.mubr.bf16.vlgmr.msra.gmra.mrb[136].mxu0 %v5120_v32  ;;  %v8030_v32 = vld [vmem:[%s11352_s8 + $0x8] sm:$0xff]  }
0x1775   :  { %5450 = vmatpush1.bf16.msra.mxu0 %v11004_v54  ;;  %5481 = vmatprep.mubr.bf16.mxu0 %v8426_v3  ;;  %v8021_v3 = vld [vmem:[%s11351_s7 + $0x5c0] sm:$0xff]   ;;  %v8023_v54 = vld [vmem:[%s11351_s7 + $0x5d0] sm:$0xff]  }
0x1776   :  { %5451 = vmatprep.subr.bf16.mxu0 %v11011_v17  ;;  %7740 = vmatpush3.bf16.msra.mxu1 %v8021_v3  ;;  %v8024_v17 = vld [vmem:[%s11351_s7 + $0x5d8] sm:$0xff]  }
0x1777   :  { %7741 = vmatprep.subr.bf16.mxu1 %v8425_v2 }
0x1779   :  { %5452 = vmatpush1.bf16.msra.mxu0 %v11017_v58  ;;  %v8025_v58 = vld [vmem:[%s11351_s7 + $0x5e0] sm:$0xff]  }
0x177a   :  { %5453 = vmatprep.subr.bf16.mxu0 %v11023_v7  ;;  %7742 = vmatpush3.bf16.msra.mxu1 %v8022_v45  ;;  %v8026_v7 = vld [vmem:[%s11351_s7 + $0x5e8] sm:$0xff]  }
0x177b   :  { %7743 = vmatprep.subr.bf16.mxu1 %v8425_v2 }
0x177d   :  { %5454 = vmatpush1.bf16.msra.mxu0 %v11029_v38  ;;  %v8027_v38 = vld [vmem:[%s11351_s7 + $0x5f0] sm:$0xff]  }
0x177e   :  { %5455 = vmatprep.subr.bf16.mxu0 %v11035_v16  ;;  %7744 = vmatpush3.bf16.msra.mxu1 %v8023_v54  ;;  %v8028_v16 = vld [vmem:[%s11351_s7 + $0x5f8] sm:$0xff]  }
0x177f   :  { %7745 = vmatprep.subr.bf16.mxu1 %v8425_v2 }
0x1781   :  { %5456 = vmatpush1.bf16.msra.mxu0 %v11041_v8  ;;  %v5313_v8 = vpop.permute.xlu0 %5312 }
0x1782   :  { %5457 = vmatprep.subr.bf16.mxu0 %v11047_v43  ;;  %7746 = vmatpush3.bf16.msra.mxu1 %v8024_v17  ;;  %v5315_v43 = vmul.f32 %v5313_v8, %v8736_v60  ;;  %v5316_v47 = vmul.f32 %v5313_v8, %v8744_v4 }
0x1783   :  { %7747 = vmatprep.subr.bf16.mxu1 %v8425_v2 }
0x1784   :  { %v5319_v39 = vadd.f32 %v5316_v47, %v8748_v10 }
0x1785   :  { %5458 = vmatpush1.bf16.msra.mxu0 %v11053_v26  ;;  %v5318_v26 = vadd.f32 %v5315_v43, %v8742_v1 }
0x1786   :  { %5459 = vmatprep.subr.bf16.mxu0 %v11059_v36  ;;  %7748 = vmatpush3.bf16.msra.mxu1 %v8025_v58 }
0x1787   :  { %7749 = vmatprep.subr.bf16.mxu1 %v8425_v2 }
0x1789   :  { %5460 = vmatpush1.bf16.msra.mxu0 %v11065_v6 }
0x178a   :  { %5461 = vmatprep.subr.bf16.mxu0 %v11071_v59  ;;  %7750 = vmatpush3.bf16.msra.mxu1 %v8026_v7 }
0x178b   :  { %7751 = vmatprep.subr.bf16.mxu1 %v8425_v2 }
0x178d   :  { %5462 = vmatpush1.bf16.msra.mxu0 %v11077_v62 }
0x178e   :  { %5463 = vmatprep.subr.bf16.mxu0 %v11083_v41  ;;  %7752 = vmatpush3.bf16.msra.mxu1 %v8027_v38 }
0x178f   :  { %7753 = vmatprep.subr.bf16.mxu1 %v8425_v2 }
0x1791   :  { %5464 = vmatpush1.bf16.msra.mxu0 %v11089_v49 }
0x1792   :  { %7779 = vmatprep.subr.bf16.mxu0 %v8425_v2  ;;  %7754 = vmatpush3.bf16.msra.mxu1 %v8028_v16 }
0x1793   :  { %7759 = vmatprep.subr.bf16.mxu1 %v8425_v2 }
0x1827   :  { %v5220_v36 = vpop.f32.mrb[132].mxu0  ;;  %v5261_v6 = vpop.f32.mrb[132].mxu1 }
0x1828   :  { %v11252_v59 = vadd.f32 %v5220_v36, %v11128_v20  ;;  %v5321_v62 = vadd.f32 %v5318_v26, %v5261_v6  ;;  %v7717_v41 = vpop.f32.mrb[133].mxu0  ;;  %v5263_v49 = vpop.f32.mrb[133].mxu1  ;;  %v5317_v20 = vmul.f32 %v5313_v8, %v8751_v24 }
0x1829   :  { %v5223_v29 = vpop.f32.mrb[134].mxu0  ;;  %v5265_v30 = vpop.f32.mrb[134].mxu1  ;;  %v5322_v53 = vadd.f32 %v5319_v39, %v5263_v49 }
0x182a   :  { %v6339_v33 = vmul.f32 -1.442695, %v5321_v62  ;;  %v7718_v44 = vpop.f32.mrb[135].mxu0  ;;  %v5266_v50 = vpop.f32.mrb[135].mxu1  ;;  %v5320_v31 = vadd.f32 %v5317_v20, %v8759_v27 }
0x182b   :  { %v6340_v52 = vmul.f32 -1.442695, %v5322_v53 }
0x182c   :  { %8257 = vpow2.f32 %v6339_v33 }
0x182d   :  { %8259 = vpow2.f32 %v6340_v52 }
0x1836   :  { %v8258_v34 = vpop.eup %8257 }
0x1837   :  { %v5329_v19 = vadd.f32 1.0, %v8258_v34  ;;  %v8260_v14 = vpop.eup %8259 }
0x1838   :  { %v5330_v57 = vadd.f32 1.0, %v8260_v14  ;;  %v5675_v14 = vpop.permute.xlu0 %5674 }
0x1839   :  { %8261 = vrcp.f32 %v5329_v19 }
0x1843   :  { %v8262_v21 = vpop.eup %8261 }
0x1847   :  { %v5302_v56 = vpop.f32.mrb[136].mxu0 }
0x1848   :  { %v5335_v42 = vadd.f32 %v10972_v48, %v5302_v56  ;;  %v7737_v22 = vpop.f32.mrb[137].mxu0 }
0x1849   :  { %v5305_v23 = vpop.f32.mrb[138].mxu0 }
0x184a   :  { %v5336_v35 = vmul.f32 %v8262_v21, %v5335_v42  ;;  %v7738_v37 = vpop.f32.mrb[139].mxu0  ;;  %v6377_v23 = vld [vmem:[%s11354_s10] ss:$0 sm:$0xff] }
0x184c   :  { %v5337_v0 = vadd.f32 %v5336_v35, %v5320_v31 }
0x184e   :  { %8263 = vtanh.f32 %v5337_v0  ;;  %v5694_v0 = vld [vmem:[%s11345_s1] sm:$0xff] }
0x184f   :  { %8265 = vrcp.f32 %v5330_v57 }
0x1858   :  { %v8264_v51 = vpop.eup %8263 }
0x1859   :  { %v5339_v40 = vsub.f32 %v11136_v18, %v8264_v51  ;;  %v8266_v25 = vpop.eup %8265  ;;  %v8029_v18 = vld [vmem:[%s11352_s8] sm:$0xff]  }
0x185b   :  { %v5340_v11 = vmul.f32 %v8266_v25, %v5339_v40 }
0x185d   :  { %v11260_v12 = vadd.f32 %v8264_v51, %v5340_v11 }
0x185f   :  { %v5342_v13 = vpack.c.bf16 %v11260_v12, %v11260_v12 }
0x1861   :  { %7756 = vmatmul.mubr.bf16.vlgmr.msra.gmra.mrb[136].mxu1 %v5342_v13  ;;  %5482 = vmatmul.mubr.bf16.vlgmr.msra.gmra.mrb[140].mxu0 %v5342_v13 }
0x1862   :  { %7760 = vmatpush3.bf16.msra.mxu1 %v11143_v46  ;;  %7775 = vmatprep.mubr.msk.bf16.mxu1 %vm8427_vm0, %v8425_v2  ;;  %v8031_v46 = vld [vmem:[%s11352_s8 + $0x10] sm:$0xff]  }
0x1863   :  { %7761 = vmatprep.subr.bf16.mxu1 %v8425_v2  ;;  %7795 = vmatprep.mubr.msk.bf16.mxu0 %vm8427_vm0, %v8425_v2 }
0x1864   :  { %7780 = vmatpush3.bf16.msra.mxu0 %v8029_v18 }
0x1865   :  { %7781 = vmatprep.subr.bf16.mxu0 %v8425_v2 }
0x1866   :  { %7762 = vmatpush3.bf16.msra.mxu1 %v11154_v15  ;;  %v8032_v15 = vld [vmem:[%s11352_s8 + $0x18] sm:$0xff]  }
0x1867   :  { %7763 = vmatprep.subr.bf16.mxu1 %v8425_v2 }
0x1868   :  { %7782 = vmatpush3.bf16.msra.mxu0 %v8030_v32 }
0x1869   :  { %7783 = vmatprep.subr.bf16.mxu0 %v8425_v2 }
0x186a   :  { %7764 = vmatpush3.bf16.msra.mxu1 %v11161_v55  ;;  %v8033_v55 = vld [vmem:[%s11352_s8 + $0x20] sm:$0xff]  }
0x186b   :  { %7765 = vmatprep.subr.bf16.mxu1 %v8425_v2 }
0x186c   :  { %7784 = vmatpush3.bf16.msra.mxu0 %v8031_v46 }
0x186d   :  { %7785 = vmatprep.subr.bf16.mxu0 %v8425_v2 }
0x186e   :  { %7766 = vmatpush3.bf16.msra.mxu1 %v11168_v61  ;;  %v8034_v61 = vld [vmem:[%s11352_s8 + $0x28] sm:$0xff]  }
0x186f   :  { %7767 = vmatprep.subr.bf16.mxu1 %v8425_v2 }
0x1870   :  { %7786 = vmatpush3.bf16.msra.mxu0 %v8032_v15 }
0x1871   :  { %7787 = vmatprep.subr.bf16.mxu0 %v8425_v2 }
0x1872   :  { %7768 = vmatpush3.bf16.msra.mxu1 %v11175_v5  ;;  %v8035_v5 = vld [vmem:[%s11352_s8 + $0x30] sm:$0xff]  }
0x1873   :  { %7769 = vmatprep.subr.bf16.mxu1 %v8425_v2 }
0x1874   :  { %7788 = vmatpush3.bf16.msra.mxu0 %v8033_v55 }
0x1875   :  { %7789 = vmatprep.subr.bf16.mxu0 %v8425_v2 }
0x1876   :  { %7770 = vmatpush3.bf16.msra.mxu1 %v11182_v9  ;;  %v8036_v9 = vld [vmem:[%s11352_s8 + $0x38] sm:$0xff]  }
0x1877   :  { %7771 = vmatprep.subr.bf16.mxu1 %v8425_v2 }
0x1878   :  { %7790 = vmatpush3.bf16.msra.mxu0 %v8034_v61 }
0x1879   :  { %7791 = vmatprep.subr.bf16.mxu0 %v8425_v2 }
0x187a   :  { %7772 = vmatpush3.bf16.msra.mxu1 %v11189_v63  ;;  %v5535_v63 = vpop.permute.xlu1 %5534 }
0x187b   :  { %7773 = vmatprep.subr.bf16.mxu1 %v8425_v2 }
0x187c   :  { %7792 = vmatpush3.bf16.msra.mxu0 %v8035_v5 }
0x187d   :  { %7793 = vmatprep.subr.bf16.mxu0 %v8425_v2  ;;  %v5538_v2 = vmul.f32 %v5535_v63, %v8744_v4 }
0x187e   :  { %7774 = vmatpush3.bf16.msra.mxu1 %v11196_v28  ;;  %v5537_v28 = vmul.f32 %v5535_v63, %v8736_v60 }
0x187f   :  { %v5541_v6 = vadd.f32 %v5538_v2, %v8748_v10 }
0x1880   :  { %7794 = vmatpush3.bf16.msra.mxu0 %v8036_v9  ;;  %v5540_v3 = vadd.f32 %v5537_v28, %v8742_v1 }
0x1881   :  { %7776 = vmatmul.mubr.bf16.vlgmr.msra.gmra.mrb[140].mxu1 %v5342_v13 }
0x1934   :  { %v5442_v45 = vpop.f32.mrb[136].mxu1  ;;  %v5483_v54 = vpop.f32.mrb[140].mxu0 }
0x1935   :  { %v5448_v17 = vadd.f32 %v5442_v45, %v11252_v59  ;;  %v5543_v58 = vadd.f32 %v5540_v3, %v5483_v54  ;;  %v7757_v7 = vpop.f32.mrb[137].mxu1  ;;  %v5485_v38 = vpop.f32.mrb[141].mxu0  ;;  %v5539_v59 = vmul.f32 %v5535_v63, %v8751_v24 }
0x1936   :  { %v5445_v16 = vpop.f32.mrb[138].mxu1  ;;  %v5487_v8 = vpop.f32.mrb[142].mxu0  ;;  %v5544_v60 = vadd.f32 %v5541_v6, %v5485_v38 }
0x1937   :  { %v6366_v43 = vmul.f32 -1.442695, %v5543_v58  ;;  %v7758_v26 = vpop.f32.mrb[139].mxu1  ;;  %v5488_v36 = vpop.f32.mrb[143].mxu0  ;;  %v5542_v47 = vadd.f32 %v5539_v59, %v8759_v27 }
0x1938   :  { %v6367_v1 = vmul.f32 -1.442695, %v5544_v60 }
0x1939   :  { %8267 = vpow2.f32 %v6366_v43 }
0x193a   :  { %8269 = vpow2.f32 %v6367_v1 }
0x1943   :  { %v8268_v62 = vpop.eup %8267 }
0x1944   :  { %v5551_v41 = vadd.f32 1.0, %v8268_v62  ;;  %v8270_v29 = vpop.eup %8269 }
0x1945   :  { %v5552_v10 = vadd.f32 1.0, %v8270_v29 }
0x1946   :  { %8271 = vrcp.f32 %v5551_v41 }
0x1950   :  { %v8272_v44 = vpop.eup %8271 }
0x1954   :  { %v5524_v49 = vpop.f32.mrb[140].mxu1 }
0x1955   :  { %v5557_v30 = vadd.f32 %v10972_v48, %v5524_v49  ;;  %v7777_v33 = vpop.f32.mrb[141].mxu1  ;;  %v6376_v48 = vld [vmem:[%s11353_s9] ss:$0 sm:$0xff]  ;;  %s8401_s9 = scalar_lea.vmem %s5705_s29, 128 }
0x1956   :  { %v5527_v50 = vpop.f32.mrb[142].mxu1  ;;  %v5683_v42 = vmul.f32 %v6376_v48, %v5675_v14  ;;  %p8402_p0 = scmp.ne.s32.totalorder %s5705_s29, %s8401_s9  ;;  %p8407_p2 = scmp.lt.s32.totalorder %s8401_s9, %s8401_s9 }
0x1957   :  { %v5558_v4 = vmul.f32 %v8272_v44, %v5557_v30  ;;  %v7778_v39 = vpop.f32.mrb[143].mxu1 }
0x1958   :  { %p8408_p3 = por %p8407_p2, %p8406_p1 }
0x1959   :  { %v5559_v53 = vadd.f32 %v5558_v4, %v5542_v47 }
0x195a   :  { %p8409_p4 = pnand %p8408_p3, %p8402_p0 }
0x195b   :  { %8273 = vtanh.f32 %v5559_v53 }
0x195c   :  { %8275 = vrcp.f32 %v5552_v10 }
0x1965   :  { %v8274_v34 = vpop.eup %8273 }
0x1966   :  { %v5561_v52 = vsub.f32 %v11260_v12, %v8274_v34  ;;  %v8276_v19 = vpop.eup %8275 }
0x1968   :  { %v5562_v24 = vmul.f32 %v8276_v19, %v5561_v52 }
0x196a   :  { %v5563_v20 = vadd.f32 %v8274_v34, %v5562_v24 }
0x196c   :  { %v5564_v56 = vpack.c.bf16 %v5563_v20, %v5563_v20 }
0x196e   :  { %7796 = vmatmul.mubr.bf16.vlgmr.msra.gmra.mrb[144].mxu0 %v5564_v56 }
0x1a41   :  { %v5663_v27 = vpop.f32.mrb[144].mxu0 }
0x1a42   :  { %v5669_v22 = vadd.f32 %v5663_v27, %v5448_v17  ;;  %v7797_v21 = vpop.f32.mrb[145].mxu0 }
0x1a43   :  { %v5666_v31 = vpop.f32.mrb[146].mxu0 }
0x1a44   :  { %v5684_v35 = vadd.f32 %v5683_v42, %v5669_v22  ;;  %v7798_v37 = vpop.f32.mrb[147].mxu0 }
0x1a46   :  { %v5692_v57 = vadd.f32 %v6377_v23, %v5684_v35 }
0x1a48   :  { %v5693_v51 = vmax.f32 %v5692_v57, 0.0 }
0x1a4a   :  { %v5695_v40 = vmin.f32 %v5693_v51, %v5694_v0 }
0x1a4c   :  { %5697 = vst.msk [vmem:[#allocation2] sm:$0xff] %vm5696_vm1, %v5695_v40 }
0x1a4d   :  { %8412 = shalt.err (!%p8409_p4)
}
0x1a4e   :  { %s8413_s12 = scalar_lea.hbm %s11355_s11, 128 }
0x1a4f   :  { %p8414_p5 = scmp.ne.s32.totalorder %s11355_s11, %s8413_s12  ;;  %p8417_p6 = scmp.lt.u32.totalorder %s8413_s12, %s11355_s11 }
0x1a51   :  { %p8419_p7 = pnand %p8417_p6, %p8414_p5 }
0x1a53   :  { %8422 = shalt.err (!%p8419_p7)
}
0x1a54   :  { %5707 = dma.vmem_to_hbm [thread:$0]  %s5705_s29, 128, %s11355_s11, [#allocation3]  }
0x1a55   :  { %8423 = dma.done.wait [#allocation3], 128  }
0x1a56   :  { %8424 = vsyncadd [#allocation3], 4294967168 }
0x1a57   :  { %5711 = vsyncpa [#allocation3], 1 }

</bundles_post_ra>
